<compile_context>
chip_gen: v7x
topology: tpu7x:2x2x1
jax: 0.10.0
libtpu: 0.0.40
codegen_flags: <defaults>
</compile_context>

<pallas_src>
import functools

import jax
import jax.numpy as jnp
from jax.experimental import pallas as pl
from jax.experimental.pallas import tpu as pltpu


# ---------------------------------------------------------------------------
# VMEM budgeting (generation aware: v7x has 64 MiB, v5e/v6e 128 MiB)
# ---------------------------------------------------------------------------
def _rup(x, m):
    return ((x + m - 1) // m) * m


def _vmem_limit_bytes():
    cap = 64 << 20                                  # conservative default (v7x)
    try:
        info = pltpu.get_tpu_info()
        cap = int(getattr(info, "vmem_capacity_bytes", cap) or cap)
    except Exception:
        pass
    return max(32 << 20, min(int(cap * 3 // 4), 96 << 20))


_VMEM_LIMIT = _vmem_limit_bytes()
_TILE_BUDGET = max(24 << 20, _VMEM_LIMIT - (8 << 20))


# ---------------------------------------------------------------------------
# Pallas kernels
# ---------------------------------------------------------------------------
def _conv3x3_kernel(x_ref, w_ref, b_ref, o_ref, *, th, out_w, post_relu):
    """One (batch, cout-block, row-block) tile of a 3x3 same conv.

    x_ref: (1, H+2, W+2, Cin) bf16  whole padded image, VMEM-resident across the
                                    row/cout grid axes (index map ignores them)
    w_ref: (9, Cin, tn)       bf16  per-(dy,dx) weight slabs
    b_ref: (1, tn)            f32
    o_ref: (1, th*W, tn)      f32 / bf16
    """
    cin = x_ref.shape[3]
    tn = o_ref.shape[2]
    row0 = pl.program_id(2) * th

    # Bias-initialised accumulator: the 9 dots below run back-to-back and the
    # epilogue is just an optional ReLU + store.
    acc = jnp.broadcast_to(b_ref[...], (th * out_w, tn)).astype(jnp.float32)
    for dy in range(3):                              # static unroll: 9 MXU pushes
        xrow = x_ref[0, pl.ds(row0 + dy, th), :, :]  # (th, W+2, Cin)
        for dx in range(3):
            xs = xrow[:, dx:dx + out_w, :].reshape(th * out_w, cin)
            acc = acc + jnp.dot(xs, w_ref[3 * dy + dx],
                                preferred_element_type=jnp.float32)

    if post_relu:
        acc = jnp.maximum(acc, 0.0)
    o_ref[0] = acc.astype(o_ref.dtype)


def _conv_gemm_kernel(p_ref, w_ref, b_ref, o_ref, *, post_relu):
    """Plain tiled GEMM over im2col patches (fallback for W % 8 != 0).

    p_ref: (1, tm, K9) bf16   w_ref: (K9, tn) bf16
    b_ref: (1, tn)     f32    o_ref: (1, tm, tn) f32/bf16
    """
    y = jnp.dot(p_ref[0], w_ref[...], preferred_element_type=jnp.float32) + b_ref[...]
    if post_relu:
        y = jnp.maximum(y, 0.0)
    o_ref[0] = y.astype(o_ref.dtype)


def _relu_maxpool_kernel(x_ref, o_ref, *, c):
    """ReLU followed by 2x2/stride-2 max pool.

    x_ref: (g, 2, W/2, 2*C)  -- row pair on axis 1, horizontally adjacent pixel
                                pair packed on the lane axis (free reshape)
    o_ref: (g, W/2, C)
    """
    top = x_ref[:, 0, :, :]
    bot = x_ref[:, 1, :, :]
    v = jnp.maximum(jnp.maximum(top, bot), 0)                 # relu + vertical max
    o_ref[...] = jnp.maximum(v[:, :, :c], v[:, :, c:]).astype(o_ref.dtype)


# ---------------------------------------------------------------------------
# Tile pickers (VMEM-budget aware; lane dims padded to 128, sublanes to 16)
# ---------------------------------------------------------------------------
def _pick_row_tile(h, w, cin, cout, out_itemsize):
    def aligned(th):
        return th == h or (th * w) % 8 == 0

    cands = [d for d in range(1, h + 1) if h % d == 0 and aligned(d)]
    lane = lambda c: _rup(c, 128)
    sub = lambda s: _rup(s, 16)

    # Double-buffered resident blocks: padded image + weight slabs + bias.
    fixed = (2 * (h + 2) * sub(w + 2) * lane(cin) * 2
             + 2 * 9 * sub(cin) * lane(cout) * 2
             + 2 * 8 * lane(cout) * 4)

    def vmem_use(th):
        out_blk = 2 * sub(th * w) * lane(cout) * out_itemsize   # double-buffered output
        acc = sub(th * w) * lane(cout) * 4                      # f32 accumulator value
        xtmp = 2 * th * sub(w) * lane(cin) * 2                  # shifted-slice temporaries
        return fixed + out_blk + acc + xtmp

    # Keep >= ~4 row tiles per image so both v7x TensorCores get work.
    max_rows = min(64, max(8, h // 4))
    fits = [d for d in cands if d <= max_rows and vmem_use(d) <= _TILE_BUDGET]
    if fits:
        return max(fits)
    return min(cands)                       # clamped fallback (never th == h blow-up)


def _pick_gemm_tile(hw, k, tn, out_itemsize):
    cands = [d for d in range(1, hw + 1) if hw % d == 0 and (d == hw or d % 8 == 0)]

    def use(tm):
        return (2 * _rup(tm, 16) * _rup(k, 128) * 2
                + 2 * _rup(tm, 8) * _rup(tn, 128) * max(out_itemsize, 4))

    fits = [d for d in cands if d <= 1024 and use(d) <= _TILE_BUDGET]
    if fits:
        return max(fits)
    return min(cands)


# ---------------------------------------------------------------------------
# Conv / pool wrappers
# ---------------------------------------------------------------------------
def _conv3x3_im2col(x_nhwc, w_hwio, b, *, post_relu, out_dtype):
    """Fallback path: tiled bf16 im2col GEMM (used only when W % 8 != 0)."""
    n, h, w, cin = x_nhwc.shape
    cout = w_hwio.shape[-1]
    k9 = 9 * cin

    xp = jnp.pad(x_nhwc, ((0, 0), (1, 1), (1, 1), (0, 0)))
    taps = [xp[:, dy:dy + h, dx:dx + w, :] for dy in range(3) for dx in range(3)]
    patches = jnp.concatenate(taps, axis=-1).reshape(n, h * w, k9).astype(jnp.bfloat16)
    w2 = w_hwio.reshape(k9, cout).astype(jnp.bfloat16)
    b2 = b.reshape(1, cout).astype(jnp.float32)

    tn = cout
    tm = _pick_gemm_tile(h * w, k9, tn, jnp.dtype(out_dtype).itemsize)
    grid = (n, cout // tn, (h * w) // tm)

    kern = functools.partial(_conv_gemm_kernel, post_relu=post_relu)
    out = pl.pallas_call(
        kern,
        out_shape=jax.ShapeDtypeStruct((n, h * w, cout), out_dtype),
        grid=grid,
        in_specs=[
            pl.BlockSpec((1, tm, k9), lambda ni, j, i: (ni, i, 0)),
            pl.BlockSpec((k9, tn), lambda ni, j, i: (0, j)),
            pl.BlockSpec((1, tn), lambda ni, j, i: (0, j)),
        ],
        out_specs=pl.BlockSpec((1, tm, tn), lambda ni, j, i: (ni, i, j)),
        compiler_params=pltpu.CompilerParams(
            dimension_semantics=("parallel", "parallel", "parallel"),
            vmem_limit_bytes=_VMEM_LIMIT),
        cost_estimate=pl.CostEstimate(
            flops=2 * n * h * w * cout * k9,
            transcendentals=0,
            bytes_accessed=(patches.size * 2 + w2.size * 2 + b2.size * 4
                            + n * h * w * cout * jnp.dtype(out_dtype).itemsize)),
    )(patches, w2, b2)
    return out.reshape(n, h, w, cout)


def conv3x3(x_nhwc, w_hwio, b, *, pre_relu=False, post_relu=False,
            out_dtype=jnp.float32):
    """3x3, stride 1, padding 1 conv with optional fused input/output ReLU."""
    n, h, w, cin = x_nhwc.shape
    cout = w_hwio.shape[-1]

    if pre_relu:                                    # ReLU folded into the XLA glue
        x_nhwc = jnp.maximum(x_nhwc, 0)             # (1x data, fused with pad/cast)

    # Pad ragged Cin (first conv has Cin=3) to a sublane/MXU-friendly multiple of 8.
    cpad = (-cin) % 8
    if cpad:
        x_nhwc = jnp.pad(x_nhwc, ((0, 0), (0, 0), (0, 0), (0, cpad)))
        w_hwio = jnp.pad(w_hwio, ((0, 0), (0, 0), (0, cpad), (0, 0)))
        cin += cpad

    if w % 8 != 0:
        return _conv3x3_im2col(x_nhwc, w_hwio, b,
                               post_relu=post_relu, out_dtype=out_dtype)

    # Single zero-padded bf16 copy of the activation; dy/dx shifts are in-kernel.
    xp = jnp.pad(x_nhwc, ((0, 0), (1, 1), (1, 1), (0, 0))).astype(jnp.bfloat16)
    # Weight (ky,kx,Cin,Cout) -> (dy*3+dx, Cin, Cout), matching the kernel loop order.
    wr = w_hwio.reshape(9, cin, cout).astype(jnp.bfloat16)
    b2 = b.reshape(1, cout).astype(jnp.float32)

    tn = cout                                       # VGG: cout <= 256 -> one cout block
    th = _pick_row_tile(h, w, cin, cout, jnp.dtype(out_dtype).itemsize)
    # cout axis slower than rows: weight/bias blocks never re-fetch.
    grid = (n, cout // tn, h // th)

    kern = functools.partial(_conv3x3_kernel, th=th, out_w=w, post_relu=post_relu)
    out = pl.pallas_call(
        kern,
        out_shape=jax.ShapeDtypeStruct((n, h * w, cout), out_dtype),
        grid=grid,
        in_specs=[
            # Whole padded image: block index depends only on the batch axis, so
            # the pipeline keeps it VMEM-resident across the row/cout axes.
            pl.BlockSpec((1, h + 2, w + 2, cin), lambda ni, j, i: (ni, 0, 0, 0)),
            pl.BlockSpec((9, cin, tn), lambda ni, j, i: (0, 0, j)),
            pl.BlockSpec((1, tn), lambda ni, j, i: (0, j)),
        ],
        out_specs=pl.BlockSpec((1, th * w, tn), lambda ni, j, i: (ni, i, j)),
        compiler_params=pltpu.CompilerParams(
            dimension_semantics=("parallel", "parallel", "parallel"),
            vmem_limit_bytes=_VMEM_LIMIT),
        cost_estimate=pl.CostEstimate(
            flops=2 * n * h * w * cout * 9 * cin,
            transcendentals=0,
            bytes_accessed=(xp.size * 2 + wr.size * 2 + b2.size * 4
                            + n * h * w * cout * jnp.dtype(out_dtype).itemsize)),
    )(xp, wr, b2)
    return out.reshape(n, h, w, cout)


def relu_maxpool2(x_nhwc, *, out_dtype=None):
    """ReLU then MaxPool2d(kernel_size=2, stride=2)."""
    n, h, w, c = x_nhwc.shape
    assert h % 2 == 0 and w % 2 == 0, "maxpool(2,2) needs even spatial dims"
    h2, w2 = h // 2, w // 2
    out_dtype = x_nhwc.dtype if out_dtype is None else out_dtype

    # Free row-major reshape: (N,H,W,C) -> (N*H2, 2, W2, 2C).  Row pair on axis
    # 1, horizontally adjacent pixel pair packed on the lane axis.
    x4 = x_nhwc.reshape(n * h2, 2, w2, 2 * c)

    itemsize = jnp.dtype(x_nhwc.dtype).itemsize
    budget = 6 << 20
    g = 1
    for d in sorted((d for d in range(1, n * h2 + 1) if (n * h2) % d == 0),
                    reverse=True):
        if d <= 64 and d * 2 * _rup(w2, 16) * _rup(2 * c, 128) * itemsize <= budget:
            g = d
            break

    out = pl.pallas_call(
        functools.partial(_relu_maxpool_kernel, c=c),
        out_shape=jax.ShapeDtypeStruct((n * h2, w2, c), out_dtype),
        grid=((n * h2) // g,),
        in_specs=[pl.BlockSpec((g, 2, w2, 2 * c), lambda i: (i, 0, 0, 0))],
        out_specs=pl.BlockSpec((g, w2, c), lambda i: (i, 0, 0)),
        compiler_params=pltpu.CompilerParams(
            dimension_semantics=("parallel",),
            vmem_limit_bytes=_VMEM_LIMIT),
    )(x4)
    return out.reshape(n, h2, w2, c)


# ---------------------------------------------------------------------------
# VGG19 front (features[0:16]) forward
# ---------------------------------------------------------------------------
_CONV_CFG = [(3, 64), (64, 64), (64, 128), (128, 128), (128, 256), (256, 256), (256, 256)]


def init_params(key):
    # Deterministic synthetic weights (shapes match torchvision vgg19.features[0:16]).
    params = []
    for cin, cout in _CONV_CFG:
        key, kw, kb = jax.random.split(key, 3)
        scale = (2.0 / (9.0 * cin)) ** 0.5
        w = jax.random.normal(kw, (3, 3, cin, cout), jnp.float32) * scale
        b = jax.random.normal(kb, (cout,), jnp.float32) * 0.01
        params.append((w, b))
    return params


def vgg19_forward(params, x_nchw):
    x = jnp.transpose(x_nchw, (0, 2, 3, 1))                      # NCHW -> NHWC
    (w0, b0), (w1, b1), (w2, b2), (w3, b3), (w4, b4), (w5, b5), (w6, b6) = params

    # layer1: Conv(3,64), ReLU, Conv(64,64)
    h1 = conv3x3(x, w0, b0, post_relu=True, out_dtype=jnp.bfloat16)   # feats[0..1]
    out1 = conv3x3(h1, w1, b1, out_dtype=jnp.float32)                 # feats[2]
    # layer2: ReLU, MaxPool, Conv(64,128)
    p1 = relu_maxpool2(out1, out_dtype=jnp.bfloat16)                  # feats[3..4]
    out2 = conv3x3(p1, w2, b2, out_dtype=jnp.float32)                 # feats[5]
    # layer3: ReLU, Conv(128,128), ReLU, MaxPool, Conv(128,256)
    h3 = conv3x3(out2, w3, b3, pre_relu=True, post_relu=True,
                 out_dtype=jnp.bfloat16)                              # feats[6..8]
    p3 = relu_maxpool2(h3, out_dtype=jnp.bfloat16)                    # feats[9]
    out3 = conv3x3(p3, w4, b4, out_dtype=jnp.float32)                 # feats[10]
    # layer4: ReLU, Conv(256,256), ReLU, Conv(256,256), ReLU
    h4 = conv3x3(out3, w5, b5, pre_relu=True, post_relu=True,
                 out_dtype=jnp.bfloat16)                              # feats[11..13]
    out4 = conv3x3(h4, w6, b6, post_relu=True, out_dtype=jnp.float32)  # feats[14..15]

    to_nchw = lambda t: jnp.transpose(t, (0, 3, 1, 2))
    return to_nchw(out1), to_nchw(out2), to_nchw(out3), to_nchw(out4)


# ---------------------------------------------------------------------------
# Pure-XLA reference (verification only)
# ---------------------------------------------------------------------------
def _ref_forward(params, x_nchw):
    x = jnp.transpose(x_nchw, (0, 2, 3, 1))

    def conv(t, w, b):
        y = jax.lax.conv_general_dilated(
            t, w, window_strides=(1, 1), padding=((1, 1), (1, 1)),
            dimension_numbers=("NHWC", "HWIO", "NHWC"),
            precision=jax.lax.Precision.HIGHEST)
        return y + b

    def pool(t):
        t = jnp.maximum(t, 0.0)
        bn, hh, ww, cc = t.shape
        return jnp.max(t.reshape(bn, hh // 2, 2, ww // 2, 2, cc), axis=(2, 4))

    (w0, b0), (w1, b1), (w2, b2), (w3, b3), (w4, b4), (w5, b5), (w6, b6) = params
    h1 = jnp.maximum(conv(x, w0, b0), 0.0)
    out1 = conv(h1, w1, b1)
    out2 = conv(pool(out1), w2, b2)
    h3 = conv(jnp.maximum(out2, 0.0), w3, b3)
    out3 = conv(pool(h3), w4, b4)
    h4 = conv(jnp.maximum(out3, 0.0), w5, b5)
    out4 = jnp.maximum(conv(jnp.maximum(h4, 0.0), w6, b6), 0.0)
    to_nchw = lambda t: jnp.transpose(t, (0, 3, 1, 2))
    return to_nchw(out1), to_nchw(out2), to_nchw(out3), to_nchw(out4)


if __name__ == "__main__":
    key = jax.random.PRNGKey(0)
    k_param, k_x = jax.random.split(key)
    params = init_params(k_param)
    x = jax.random.normal(k_x, (2, 3, 16, 16), jnp.float32)        # NCHW, like PyTorch

    fwd = jax.jit(vgg19_forward)
    outs = fwd(params, x)
    jax.block_until_ready(outs)
    out1, out2, out3, out4 = outs

    assert out1.shape == (2, 64, 16, 16)
    assert out2.shape == (2, 128, 8, 8)
    assert out3.shape == (2, 256, 4, 4)
    assert out4.shape == (2, 256, 4, 4)

    # Loose correctness check vs an XLA reference (kernels use bf16 MXU operands
    # and bf16 intermediate activations).
    refs = jax.jit(_ref_forward)(params, x)
    jax.block_until_ready(refs)
    for got, want in zip(outs, refs):
        err = jnp.linalg.norm(got.astype(jnp.float32) - want) / (jnp.linalg.norm(want) + 1e-6)
        assert float(err) < 0.1, f"relative error too large: {float(err)}"

    print("KERNEL_OK")
</pallas_src>

<mosaic_0001>
module attributes {stable_mosaic.version = 11 : i64} {
  func.func @_conv3x3_kernel(%arg0: i32, %arg1: i32, %arg2: i32, %arg3: memref<1x18x18x8xbf16, #tpu.memory_space<vmem>>, %arg4: memref<9x8x64xbf16, #tpu.memory_space<vmem>>, %arg5: memref<1x64xf32, #tpu.memory_space<vmem>>, %arg6: memref<1x128x64xbf16, #tpu.memory_space<vmem>>) attributes {dimension_semantics = [#tpu.dimension_semantics<parallel>, #tpu.dimension_semantics<parallel>, #tpu.dimension_semantics<parallel>], iteration_bounds = array<i64: 2, 1, 2>, scalar_prefetch = 0 : i64, scratch_operands = 0 : i64, tpu.core_type = #tpu.core_type<tc>, window_params = [{transform_indices = @transform_0, window_bounds = array<i64: 1, 18, 18, 8>}, {transform_indices = @transform_1, window_bounds = array<i64: 9, 8, 64>}, {transform_indices = @transform_2, window_bounds = array<i64: 1, 64>}, {transform_indices = @transform_3, window_bounds = array<i64: 1, 128, 64>}]} {
    %c8_i32 = arith.constant 8 : i32
    %0 = arith.muli %arg2, %c8_i32 : i32
    %c0 = arith.constant 0 : index
    %c0_0 = arith.constant 0 : index
    %1 = vector.load %arg5[%c0, %c0_0] : memref<1x64xf32, #tpu.memory_space<vmem>>, vector<1x64xf32>
    %2 = vector.shape_cast %1 : vector<1x64xf32> to vector<1x64xf32>
    %3 = vector.broadcast %2 : vector<1x64xf32> to vector<128x64xf32>
    %c0_i32 = arith.constant 0 : i32
    %4 = arith.addi %0, %c0_i32 : i32
    %c0_1 = arith.constant 0 : index
    %5 = arith.index_cast %4 : i32 to index
    %c0_2 = arith.constant 0 : index
    %c0_3 = arith.constant 0 : index
    %6 = vector.load %arg3[%c0_1, %5, %c0_2, %c0_3] : memref<1x18x18x8xbf16, #tpu.memory_space<vmem>>, vector<1x8x18x8xbf16>
    %7 = vector.shape_cast %6 : vector<1x8x18x8xbf16> to vector<8x18x8xbf16>
    %8 = vector.extract_strided_slice %7 {offsets = [0, 0, 0], sizes = [8, 16, 8], strides = [1, 1, 1]} : vector<8x18x8xbf16> to vector<8x16x8xbf16>
    %9 = vector.shape_cast %8 : vector<8x16x8xbf16> to vector<128x8xbf16>
    %c0_4 = arith.constant 0 : index
    %c0_5 = arith.constant 0 : index
    %c0_6 = arith.constant 0 : index
    %10 = vector.load %arg4[%c0_4, %c0_5, %c0_6] : memref<9x8x64xbf16, #tpu.memory_space<vmem>>, vector<1x8x64xbf16>
    %11 = vector.shape_cast %10 : vector<1x8x64xbf16> to vector<8x64xbf16>
    %cst = arith.constant dense<0.000000e+00> : vector<128x64xf32>
    %12 = tpu.matmul %9, %11, %cst {dimension_numbers = #tpu.dot_dimension_numbers<[1], [0], [0], [1], [0, 0, 1, 1], [], []>} : vector<128x8xbf16>, vector<8x64xbf16>, vector<128x64xf32> -> vector<128x64xf32>
    %13 = arith.addf %3, %12 : vector<128x64xf32>
    %14 = vector.extract_strided_slice %7 {offsets = [0, 1, 0], sizes = [8, 16, 8], strides = [1, 1, 1]} : vector<8x18x8xbf16> to vector<8x16x8xbf16>
    %15 = vector.shape_cast %14 : vector<8x16x8xbf16> to vector<128x8xbf16>
    %c1 = arith.constant 1 : index
    %c0_7 = arith.constant 0 : index
    %c0_8 = arith.constant 0 : index
    %16 = vector.load %arg4[%c1, %c0_7, %c0_8] : memref<9x8x64xbf16, #tpu.memory_space<vmem>>, vector<1x8x64xbf16>
    %17 = vector.shape_cast %16 : vector<1x8x64xbf16> to vector<8x64xbf16>
    %cst_9 = arith.constant dense<0.000000e+00> : vector<128x64xf32>
    %18 = tpu.matmul %15, %17, %cst_9 {dimension_numbers = #tpu.dot_dimension_numbers<[1], [0], [0], [1], [0, 0, 1, 1], [], []>} : vector<128x8xbf16>, vector<8x64xbf16>, vector<128x64xf32> -> vector<128x64xf32>
    %19 = arith.addf %13, %18 : vector<128x64xf32>
    %20 = vector.extract_strided_slice %7 {offsets = [0, 2, 0], sizes = [8, 16, 8], strides = [1, 1, 1]} : vector<8x18x8xbf16> to vector<8x16x8xbf16>
    %21 = vector.shape_cast %20 : vector<8x16x8xbf16> to vector<128x8xbf16>
    %c2 = arith.constant 2 : index
    %c0_10 = arith.constant 0 : index
    %c0_11 = arith.constant 0 : index
    %22 = vector.load %arg4[%c2, %c0_10, %c0_11] : memref<9x8x64xbf16, #tpu.memory_space<vmem>>, vector<1x8x64xbf16>
    %23 = vector.shape_cast %22 : vector<1x8x64xbf16> to vector<8x64xbf16>
    %cst_12 = arith.constant dense<0.000000e+00> : vector<128x64xf32>
    %24 = tpu.matmul %21, %23, %cst_12 {dimension_numbers = #tpu.dot_dimension_numbers<[1], [0], [0], [1], [0, 0, 1, 1], [], []>} : vector<128x8xbf16>, vector<8x64xbf16>, vector<128x64xf32> -> vector<128x64xf32>
    %25 = arith.addf %19, %24 : vector<128x64xf32>
    %c1_i32 = arith.constant 1 : i32
    %26 = arith.addi %0, %c1_i32 : i32
    %c0_13 = arith.constant 0 : index
    %27 = arith.index_cast %26 : i32 to index
    %c0_14 = arith.constant 0 : index
    %c0_15 = arith.constant 0 : index
    %28 = vector.load %arg3[%c0_13, %27, %c0_14, %c0_15] : memref<1x18x18x8xbf16, #tpu.memory_space<vmem>>, vector<1x8x18x8xbf16>
    %29 = vector.shape_cast %28 : vector<1x8x18x8xbf16> to vector<8x18x8xbf16>
    %30 = vector.extract_strided_slice %29 {offsets = [0, 0, 0], sizes = [8, 16, 8], strides = [1, 1, 1]} : vector<8x18x8xbf16> to vector<8x16x8xbf16>
    %31 = vector.shape_cast %30 : vector<8x16x8xbf16> to vector<128x8xbf16>
    %c3 = arith.constant 3 : index
    %c0_16 = arith.constant 0 : index
    %c0_17 = arith.constant 0 : index
    %32 = vector.load %arg4[%c3, %c0_16, %c0_17] : memref<9x8x64xbf16, #tpu.memory_space<vmem>>, vector<1x8x64xbf16>
    %33 = vector.shape_cast %32 : vector<1x8x64xbf16> to vector<8x64xbf16>
    %cst_18 = arith.constant dense<0.000000e+00> : vector<128x64xf32>
    %34 = tpu.matmul %31, %33, %cst_18 {dimension_numbers = #tpu.dot_dimension_numbers<[1], [0], [0], [1], [0, 0, 1, 1], [], []>} : vector<128x8xbf16>, vector<8x64xbf16>, vector<128x64xf32> -> vector<128x64xf32>
    %35 = arith.addf %25, %34 : vector<128x64xf32>
    %36 = vector.extract_strided_slice %29 {offsets = [0, 1, 0], sizes = [8, 16, 8], strides = [1, 1, 1]} : vector<8x18x8xbf16> to vector<8x16x8xbf16>
    %37 = vector.shape_cast %36 : vector<8x16x8xbf16> to vector<128x8xbf16>
    %c4 = arith.constant 4 : index
    %c0_19 = arith.constant 0 : index
    %c0_20 = arith.constant 0 : index
    %38 = vector.load %arg4[%c4, %c0_19, %c0_20] : memref<9x8x64xbf16, #tpu.memory_space<vmem>>, vector<1x8x64xbf16>
    %39 = vector.shape_cast %38 : vector<1x8x64xbf16> to vector<8x64xbf16>
    %cst_21 = arith.constant dense<0.000000e+00> : vector<128x64xf32>
    %40 = tpu.matmul %37, %39, %cst_21 {dimension_numbers = #tpu.dot_dimension_numbers<[1], [0], [0], [1], [0, 0, 1, 1], [], []>} : vector<128x8xbf16>, vector<8x64xbf16>, vector<128x64xf32> -> vector<128x64xf32>
    %41 = arith.addf %35, %40 : vector<128x64xf32>
    %42 = vector.extract_strided_slice %29 {offsets = [0, 2, 0], sizes = [8, 16, 8], strides = [1, 1, 1]} : vector<8x18x8xbf16> to vector<8x16x8xbf16>
    %43 = vector.shape_cast %42 : vector<8x16x8xbf16> to vector<128x8xbf16>
    %c5 = arith.constant 5 : index
    %c0_22 = arith.constant 0 : index
    %c0_23 = arith.constant 0 : index
    %44 = vector.load %arg4[%c5, %c0_22, %c0_23] : memref<9x8x64xbf16, #tpu.memory_space<vmem>>, vector<1x8x64xbf16>
    %45 = vector.shape_cast %44 : vector<1x8x64xbf16> to vector<8x64xbf16>
    %cst_24 = arith.constant dense<0.000000e+00> : vector<128x64xf32>
    %46 = tpu.matmul %43, %45, %cst_24 {dimension_numbers = #tpu.dot_dimension_numbers<[1], [0], [0], [1], [0, 0, 1, 1], [], []>} : vector<128x8xbf16>, vector<8x64xbf16>, vector<128x64xf32> -> vector<128x64xf32>
    %47 = arith.addf %41, %46 : vector<128x64xf32>
    %c2_i32 = arith.constant 2 : i32
    %48 = arith.addi %0, %c2_i32 : i32
    %c0_25 = arith.constant 0 : index
    %49 = arith.index_cast %48 : i32 to index
    %c0_26 = arith.constant 0 : index
    %c0_27 = arith.constant 0 : index
    %50 = vector.load %arg3[%c0_25, %49, %c0_26, %c0_27] : memref<1x18x18x8xbf16, #tpu.memory_space<vmem>>, vector<1x8x18x8xbf16>
    %51 = vector.shape_cast %50 : vector<1x8x18x8xbf16> to vector<8x18x8xbf16>
    %52 = vector.extract_strided_slice %51 {offsets = [0, 0, 0], sizes = [8, 16, 8], strides = [1, 1, 1]} : vector<8x18x8xbf16> to vector<8x16x8xbf16>
    %53 = vector.shape_cast %52 : vector<8x16x8xbf16> to vector<128x8xbf16>
    %c6 = arith.constant 6 : index
    %c0_28 = arith.constant 0 : index
    %c0_29 = arith.constant 0 : index
    %54 = vector.load %arg4[%c6, %c0_28, %c0_29] : memref<9x8x64xbf16, #tpu.memory_space<vmem>>, vector<1x8x64xbf16>
    %55 = vector.shape_cast %54 : vector<1x8x64xbf16> to vector<8x64xbf16>
    %cst_30 = arith.constant dense<0.000000e+00> : vector<128x64xf32>
    %56 = tpu.matmul %53, %55, %cst_30 {dimension_numbers = #tpu.dot_dimension_numbers<[1], [0], [0], [1], [0, 0, 1, 1], [], []>} : vector<128x8xbf16>, vector<8x64xbf16>, vector<128x64xf32> -> vector<128x64xf32>
    %57 = arith.addf %47, %56 : vector<128x64xf32>
    %58 = vector.extract_strided_slice %51 {offsets = [0, 1, 0], sizes = [8, 16, 8], strides = [1, 1, 1]} : vector<8x18x8xbf16> to vector<8x16x8xbf16>
    %59 = vector.shape_cast %58 : vector<8x16x8xbf16> to vector<128x8xbf16>
    %c7 = arith.constant 7 : index
    %c0_31 = arith.constant 0 : index
    %c0_32 = arith.constant 0 : index
    %60 = vector.load %arg4[%c7, %c0_31, %c0_32] : memref<9x8x64xbf16, #tpu.memory_space<vmem>>, vector<1x8x64xbf16>
    %61 = vector.shape_cast %60 : vector<1x8x64xbf16> to vector<8x64xbf16>
    %cst_33 = arith.constant dense<0.000000e+00> : vector<128x64xf32>
    %62 = tpu.matmul %59, %61, %cst_33 {dimension_numbers = #tpu.dot_dimension_numbers<[1], [0], [0], [1], [0, 0, 1, 1], [], []>} : vector<128x8xbf16>, vector<8x64xbf16>, vector<128x64xf32> -> vector<128x64xf32>
    %63 = arith.addf %57, %62 : vector<128x64xf32>
    %64 = vector.extract_strided_slice %51 {offsets = [0, 2, 0], sizes = [8, 16, 8], strides = [1, 1, 1]} : vector<8x18x8xbf16> to vector<8x16x8xbf16>
    %65 = vector.shape_cast %64 : vector<8x16x8xbf16> to vector<128x8xbf16>
    %c8 = arith.constant 8 : index
    %c0_34 = arith.constant 0 : index
    %c0_35 = arith.constant 0 : index
    %66 = vector.load %arg4[%c8, %c0_34, %c0_35] : memref<9x8x64xbf16, #tpu.memory_space<vmem>>, vector<1x8x64xbf16>
    %67 = vector.shape_cast %66 : vector<1x8x64xbf16> to vector<8x64xbf16>
    %cst_36 = arith.constant dense<0.000000e+00> : vector<128x64xf32>
    %68 = tpu.matmul %65, %67, %cst_36 {dimension_numbers = #tpu.dot_dimension_numbers<[1], [0], [0], [1], [0, 0, 1, 1], [], []>} : vector<128x8xbf16>, vector<8x64xbf16>, vector<128x64xf32> -> vector<128x64xf32>
    %69 = arith.addf %63, %68 : vector<128x64xf32>
    %cst_37 = arith.constant 0.000000e+00 : f32
    %70 = vector.broadcast %cst_37 : f32 to vector<128x64xf32>
    %71 = arith.maximumf %69, %70 : vector<128x64xf32>
    %72 = arith.truncf %71 : vector<128x64xf32> to vector<128x64xbf16>
    %c0_38 = arith.constant 0 : index
    %c0_39 = arith.constant 0 : index
    %c0_40 = arith.constant 0 : index
    %73 = vector.load %arg6[%c0_38, %c0_39, %c0_40] : memref<1x128x64xbf16, #tpu.memory_space<vmem>>, vector<1x128x64xbf16>
    %74 = vector.shape_cast %73 : vector<1x128x64xbf16> to vector<128x64xbf16>
    %75 = vector.shape_cast %72 : vector<128x64xbf16> to vector<1x128x64xbf16>
    tpu.vector_store %arg6[%c0_38, %c0_39, %c0_40], %75 {strides = array<i32>} : memref<1x128x64xbf16, #tpu.memory_space<vmem>>, vector<1x128x64xbf16>,
    return
  }
  func.func @transform_0(%arg0: i32, %arg1: i32, %arg2: i32) -> (i32, i32, i32, i32) {
    %c0_i32 = arith.constant 0 : i32
    %c0_i32_0 = arith.constant 0 : i32
    %c0_i32_1 = arith.constant 0 : i32
    %c0_i32_2 = arith.constant 0 : i32
    return %arg0, %c0_i32, %c0_i32_0, %c0_i32_1 : i32, i32, i32, i32
  }
  func.func @transform_1(%arg0: i32, %arg1: i32, %arg2: i32) -> (i32, i32, i32) {
    %c0_i32 = arith.constant 0 : i32
    %c0_i32_0 = arith.constant 0 : i32
    %c0_i32_1 = arith.constant 0 : i32
    return %c0_i32, %c0_i32_0, %arg1 : i32, i32, i32
  }
  func.func @transform_2(%arg0: i32, %arg1: i32, %arg2: i32) -> (i32, i32) {
    %c0_i32 = arith.constant 0 : i32
    %c0_i32_0 = arith.constant 0 : i32
    return %c0_i32, %arg1 : i32, i32
  }
  func.func @transform_3(%arg0: i32, %arg1: i32, %arg2: i32) -> (i32, i32, i32) {
    %c0_i32 = arith.constant 0 : i32
    return %arg0, %arg2, %arg1 : i32, i32, i32
  }
}

module attributes {stable_mosaic.version = 11 : i64} {
  func.func @_conv3x3_kernel(%arg0: i32, %arg1: i32, %arg2: i32, %arg3: memref<1x18x18x64xbf16, #tpu.memory_space<vmem>>, %arg4: memref<9x64x64xbf16, #tpu.memory_space<vmem>>, %arg5: memref<1x64xf32, #tpu.memory_space<vmem>>, %arg6: memref<1x128x64xf32, #tpu.memory_space<vmem>>) attributes {dimension_semantics = [#tpu.dimension_semantics<parallel>, #tpu.dimension_semantics<parallel>, #tpu.dimension_semantics<parallel>], iteration_bounds = array<i64: 2, 1, 2>, scalar_prefetch = 0 : i64, scratch_operands = 0 : i64, tpu.core_type = #tpu.core_type<tc>, window_params = [{transform_indices = @transform_0, window_bounds = array<i64: 1, 18, 18, 64>}, {transform_indices = @transform_1, window_bounds = array<i64: 9, 64, 64>}, {transform_indices = @transform_2, window_bounds = array<i64: 1, 64>}, {transform_indices = @transform_3, window_bounds = array<i64: 1, 128, 64>}]} {
    %c8_i32 = arith.constant 8 : i32
    %0 = arith.muli %arg2, %c8_i32 : i32
    %c0 = arith.constant 0 : index
    %c0_0 = arith.constant 0 : index
    %1 = vector.load %arg5[%c0, %c0_0] : memref<1x64xf32, #tpu.memory_space<vmem>>, vector<1x64xf32>
    %2 = vector.shape_cast %1 : vector<1x64xf32> to vector<1x64xf32>
    %3 = vector.broadcast %2 : vector<1x64xf32> to vector<128x64xf32>
    %c0_i32 = arith.constant 0 : i32
    %4 = arith.addi %0, %c0_i32 : i32
    %c0_1 = arith.constant 0 : index
    %5 = arith.index_cast %4 : i32 to index
    %c0_2 = arith.constant 0 : index
    %c0_3 = arith.constant 0 : index
    %6 = vector.load %arg3[%c0_1, %5, %c0_2, %c0_3] : memref<1x18x18x64xbf16, #tpu.memory_space<vmem>>, vector<1x8x18x64xbf16>
    %7 = vector.shape_cast %6 : vector<1x8x18x64xbf16> to vector<8x18x64xbf16>
    %8 = vector.extract_strided_slice %7 {offsets = [0, 0, 0], sizes = [8, 16, 64], strides = [1, 1, 1]} : vector<8x18x64xbf16> to vector<8x16x64xbf16>
    %9 = vector.shape_cast %8 : vector<8x16x64xbf16> to vector<128x64xbf16>
    %c0_4 = arith.constant 0 : index
    %c0_5 = arith.constant 0 : index
    %c0_6 = arith.constant 0 : index
    %10 = vector.load %arg4[%c0_4, %c0_5, %c0_6] : memref<9x64x64xbf16, #tpu.memory_space<vmem>>, vector<1x64x64xbf16>
    %11 = vector.shape_cast %10 : vector<1x64x64xbf16> to vector<64x64xbf16>
    %cst = arith.constant dense<0.000000e+00> : vector<128x64xf32>
    %12 = tpu.matmul %9, %11, %cst {dimension_numbers = #tpu.dot_dimension_numbers<[1], [0], [0], [1], [0, 0, 1, 1], [], []>} : vector<128x64xbf16>, vector<64x64xbf16>, vector<128x64xf32> -> vector<128x64xf32>
    %13 = arith.addf %3, %12 : vector<128x64xf32>
    %14 = vector.extract_strided_slice %7 {offsets = [0, 1, 0], sizes = [8, 16, 64], strides = [1, 1, 1]} : vector<8x18x64xbf16> to vector<8x16x64xbf16>
    %15 = vector.shape_cast %14 : vector<8x16x64xbf16> to vector<128x64xbf16>
    %c1 = arith.constant 1 : index
    %c0_7 = arith.constant 0 : index
    %c0_8 = arith.constant 0 : index
    %16 = vector.load %arg4[%c1, %c0_7, %c0_8] : memref<9x64x64xbf16, #tpu.memory_space<vmem>>, vector<1x64x64xbf16>
    %17 = vector.shape_cast %16 : vector<1x64x64xbf16> to vector<64x64xbf16>
    %cst_9 = arith.constant dense<0.000000e+00> : vector<128x64xf32>
    %18 = tpu.matmul %15, %17, %cst_9 {dimension_numbers = #tpu.dot_dimension_numbers<[1], [0], [0], [1], [0, 0, 1, 1], [], []>} : vector<128x64xbf16>, vector<64x64xbf16>, vector<128x64xf32> -> vector<128x64xf32>
    %19 = arith.addf %13, %18 : vector<128x64xf32>
    %20 = vector.extract_strided_slice %7 {offsets = [0, 2, 0], sizes = [8, 16, 64], strides = [1, 1, 1]} : vector<8x18x64xbf16> to vector<8x16x64xbf16>
    %21 = vector.shape_cast %20 : vector<8x16x64xbf16> to vector<128x64xbf16>
    %c2 = arith.constant 2 : index
    %c0_10 = arith.constant 0 : index
    %c0_11 = arith.constant 0 : index
    %22 = vector.load %arg4[%c2, %c0_10, %c0_11] : memref<9x64x64xbf16, #tpu.memory_space<vmem>>, vector<1x64x64xbf16>
    %23 = vector.shape_cast %22 : vector<1x64x64xbf16> to vector<64x64xbf16>
    %cst_12 = arith.constant dense<0.000000e+00> : vector<128x64xf32>
    %24 = tpu.matmul %21, %23, %cst_12 {dimension_numbers = #tpu.dot_dimension_numbers<[1], [0], [0], [1], [0, 0, 1, 1], [], []>} : vector<128x64xbf16>, vector<64x64xbf16>, vector<128x64xf32> -> vector<128x64xf32>
    %25 = arith.addf %19, %24 : vector<128x64xf32>
    %c1_i32 = arith.constant 1 : i32
    %26 = arith.addi %0, %c1_i32 : i32
    %c0_13 = arith.constant 0 : index
    %27 = arith.index_cast %26 : i32 to index
    %c0_14 = arith.constant 0 : index
    %c0_15 = arith.constant 0 : index
    %28 = vector.load %arg3[%c0_13, %27, %c0_14, %c0_15] : memref<1x18x18x64xbf16, #tpu.memory_space<vmem>>, vector<1x8x18x64xbf16>
    %29 = vector.shape_cast %28 : vector<1x8x18x64xbf16> to vector<8x18x64xbf16>
    %30 = vector.extract_strided_slice %29 {offsets = [0, 0, 0], sizes = [8, 16, 64], strides = [1, 1, 1]} : vector<8x18x64xbf16> to vector<8x16x64xbf16>
    %31 = vector.shape_cast %30 : vector<8x16x64xbf16> to vector<128x64xbf16>
    %c3 = arith.constant 3 : index
    %c0_16 = arith.constant 0 : index
    %c0_17 = arith.constant 0 : index
    %32 = vector.load %arg4[%c3, %c0_16, %c0_17] : memref<9x64x64xbf16, #tpu.memory_space<vmem>>, vector<1x64x64xbf16>
    %33 = vector.shape_cast %32 : vector<1x64x64xbf16> to vector<64x64xbf16>
    %cst_18 = arith.constant dense<0.000000e+00> : vector<128x64xf32>
    %34 = tpu.matmul %31, %33, %cst_18 {dimension_numbers = #tpu.dot_dimension_numbers<[1], [0], [0], [1], [0, 0, 1, 1], [], []>} : vector<128x64xbf16>, vector<64x64xbf16>, vector<128x64xf32> -> vector<128x64xf32>
    %35 = arith.addf %25, %34 : vector<128x64xf32>
    %36 = vector.extract_strided_slice %29 {offsets = [0, 1, 0], sizes = [8, 16, 64], strides = [1, 1, 1]} : vector<8x18x64xbf16> to vector<8x16x64xbf16>
    %37 = vector.shape_cast %36 : vector<8x16x64xbf16> to vector<128x64xbf16>
    %c4 = arith.constant 4 : index
    %c0_19 = arith.constant 0 : index
    %c0_20 = arith.constant 0 : index
    %38 = vector.load %arg4[%c4, %c0_19, %c0_20] : memref<9x64x64xbf16, #tpu.memory_space<vmem>>, vector<1x64x64xbf16>
    %39 = vector.shape_cast %38 : vector<1x64x64xbf16> to vector<64x64xbf16>
    %cst_21 = arith.constant dense<0.000000e+00> : vector<128x64xf32>
    %40 = tpu.matmul %37, %39, %cst_21 {dimension_numbers = #tpu.dot_dimension_numbers<[1], [0], [0], [1], [0, 0, 1, 1], [], []>} : vector<128x64xbf16>, vector<64x64xbf16>, vector<128x64xf32> -> vector<128x64xf32>
    %41 = arith.addf %35, %40 : vector<128x64xf32>
    %42 = vector.extract_strided_slice %29 {offsets = [0, 2, 0], sizes = [8, 16, 64], strides = [1, 1, 1]} : vector<8x18x64xbf16> to vector<8x16x64xbf16>
    %43 = vector.shape_cast %42 : vector<8x16x64xbf16> to vector<128x64xbf16>
    %c5 = arith.constant 5 : index
    %c0_22 = arith.constant 0 : index
    %c0_23 = arith.constant 0 : index
    %44 = vector.load %arg4[%c5, %c0_22, %c0_23] : memref<9x64x64xbf16, #tpu.memory_space<vmem>>, vector<1x64x64xbf16>
    %45 = vector.shape_cast %44 : vector<1x64x64xbf16> to vector<64x64xbf16>
    %cst_24 = arith.constant dense<0.000000e+00> : vector<128x64xf32>
    %46 = tpu.matmul %43, %45, %cst_24 {dimension_numbers = #tpu.dot_dimension_numbers<[1], [0], [0], [1], [0, 0, 1, 1], [], []>} : vector<128x64xbf16>, vector<64x64xbf16>, vector<128x64xf32> -> vector<128x64xf32>
    %47 = arith.addf %41, %46 : vector<128x64xf32>
    %c2_i32 = arith.constant 2 : i32
    %48 = arith.addi %0, %c2_i32 : i32
    %c0_25 = arith.constant 0 : index
    %49 = arith.index_cast %48 : i32 to index
    %c0_26 = arith.constant 0 : index
    %c0_27 = arith.constant 0 : index
    %50 = vector.load %arg3[%c0_25, %49, %c0_26, %c0_27] : memref<1x18x18x64xbf16, #tpu.memory_space<vmem>>, vector<1x8x18x64xbf16>
    %51 = vector.shape_cast %50 : vector<1x8x18x64xbf16> to vector<8x18x64xbf16>
    %52 = vector.extract_strided_slice %51 {offsets = [0, 0, 0], sizes = [8, 16, 64], strides = [1, 1, 1]} : vector<8x18x64xbf16> to vector<8x16x64xbf16>
    %53 = vector.shape_cast %52 : vector<8x16x64xbf16> to vector<128x64xbf16>
    %c6 = arith.constant 6 : index
    %c0_28 = arith.constant 0 : index
    %c0_29 = arith.constant 0 : index
    %54 = vector.load %arg4[%c6, %c0_28, %c0_29] : memref<9x64x64xbf16, #tpu.memory_space<vmem>>, vector<1x64x64xbf16>
    %55 = vector.shape_cast %54 : vector<1x64x64xbf16> to vector<64x64xbf16>
    %cst_30 = arith.constant dense<0.000000e+00> : vector<128x64xf32>
    %56 = tpu.matmul %53, %55, %cst_30 {dimension_numbers = #tpu.dot_dimension_numbers<[1], [0], [0], [1], [0, 0, 1, 1], [], []>} : vector<128x64xbf16>, vector<64x64xbf16>, vector<128x64xf32> -> vector<128x64xf32>
    %57 = arith.addf %47, %56 : vector<128x64xf32>
    %58 = vector.extract_strided_slice %51 {offsets = [0, 1, 0], sizes = [8, 16, 64], strides = [1, 1, 1]} : vector<8x18x64xbf16> to vector<8x16x64xbf16>
    %59 = vector.shape_cast %58 : vector<8x16x64xbf16> to vector<128x64xbf16>
    %c7 = arith.constant 7 : index
    %c0_31 = arith.constant 0 : index
    %c0_32 = arith.constant 0 : index
    %60 = vector.load %arg4[%c7, %c0_31, %c0_32] : memref<9x64x64xbf16, #tpu.memory_space<vmem>>, vector<1x64x64xbf16>
    %61 = vector.shape_cast %60 : vector<1x64x64xbf16> to vector<64x64xbf16>
    %cst_33 = arith.constant dense<0.000000e+00> : vector<128x64xf32>
    %62 = tpu.matmul %59, %61, %cst_33 {dimension_numbers = #tpu.dot_dimension_numbers<[1], [0], [0], [1], [0, 0, 1, 1], [], []>} : vector<128x64xbf16>, vector<64x64xbf16>, vector<128x64xf32> -> vector<128x64xf32>
    %63 = arith.addf %57, %62 : vector<128x64xf32>
    %64 = vector.extract_strided_slice %51 {offsets = [0, 2, 0], sizes = [8, 16, 64], strides = [1, 1, 1]} : vector<8x18x64xbf16> to vector<8x16x64xbf16>
    %65 = vector.shape_cast %64 : vector<8x16x64xbf16> to vector<128x64xbf16>
    %c8 = arith.constant 8 : index
    %c0_34 = arith.constant 0 : index
    %c0_35 = arith.constant 0 : index
    %66 = vector.load %arg4[%c8, %c0_34, %c0_35] : memref<9x64x64xbf16, #tpu.memory_space<vmem>>, vector<1x64x64xbf16>
    %67 = vector.shape_cast %66 : vector<1x64x64xbf16> to vector<64x64xbf16>
    %cst_36 = arith.constant dense<0.000000e+00> : vector<128x64xf32>
    %68 = tpu.matmul %65, %67, %cst_36 {dimension_numbers = #tpu.dot_dimension_numbers<[1], [0], [0], [1], [0, 0, 1, 1], [], []>} : vector<128x64xbf16>, vector<64x64xbf16>, vector<128x64xf32> -> vector<128x64xf32>
    %69 = arith.addf %63, %68 : vector<128x64xf32>
    %c0_37 = arith.constant 0 : index
    %c0_38 = arith.constant 0 : index
    %c0_39 = arith.constant 0 : index
    %70 = vector.load %arg6[%c0_37, %c0_38, %c0_39] : memref<1x128x64xf32, #tpu.memory_space<vmem>>, vector<1x128x64xf32>
    %71 = vector.shape_cast %70 : vector<1x128x64xf32> to vector<128x64xf32>
    %72 = vector.shape_cast %69 : vector<128x64xf32> to vector<1x128x64xf32>
    tpu.vector_store %arg6[%c0_37, %c0_38, %c0_39], %72 {strides = array<i32>} : memref<1x128x64xf32, #tpu.memory_space<vmem>>, vector<1x128x64xf32>,
    return
  }
  func.func @transform_0(%arg0: i32, %arg1: i32, %arg2: i32) -> (i32, i32, i32, i32) {
    %c0_i32 = arith.constant 0 : i32
    %c0_i32_0 = arith.constant 0 : i32
    %c0_i32_1 = arith.constant 0 : i32
    %c0_i32_2 = arith.constant 0 : i32
    return %arg0, %c0_i32, %c0_i32_0, %c0_i32_1 : i32, i32, i32, i32
  }
  func.func @transform_1(%arg0: i32, %arg1: i32, %arg2: i32) -> (i32, i32, i32) {
    %c0_i32 = arith.constant 0 : i32
    %c0_i32_0 = arith.constant 0 : i32
    %c0_i32_1 = arith.constant 0 : i32
    return %c0_i32, %c0_i32_0, %arg1 : i32, i32, i32
  }
  func.func @transform_2(%arg0: i32, %arg1: i32, %arg2: i32) -> (i32, i32) {
    %c0_i32 = arith.constant 0 : i32
    %c0_i32_0 = arith.constant 0 : i32
    return %c0_i32, %arg1 : i32, i32
  }
  func.func @transform_3(%arg0: i32, %arg1: i32, %arg2: i32) -> (i32, i32, i32) {
    %c0_i32 = arith.constant 0 : i32
    return %arg0, %arg2, %arg1 : i32, i32, i32
  }
}

module attributes {stable_mosaic.version = 11 : i64} {
  func.func @_relu_maxpool_kernel(%arg0: i32, %arg1: memref<16x2x8x128xf32, #tpu.memory_space<vmem>>, %arg2: memref<16x8x64xbf16, #tpu.memory_space<vmem>>) attributes {dimension_semantics = [#tpu.dimension_semantics<parallel>], iteration_bounds = array<i64: 1>, scalar_prefetch = 0 : i64, scratch_operands = 0 : i64, tpu.core_type = #tpu.core_type<tc>, window_params = [{transform_indices = @transform_0, window_bounds = array<i64: 16, 2, 8, 128>}, {transform_indices = @transform_1, window_bounds = array<i64: 16, 8, 64>}]} {
    %c0 = arith.constant 0 : index
    %c0_0 = arith.constant 0 : index
    %c0_1 = arith.constant 0 : index
    %c0_2 = arith.constant 0 : index
    %0 = vector.load %arg1[%c0, %c0_0, %c0_1, %c0_2] : memref<16x2x8x128xf32, #tpu.memory_space<vmem>>, vector<16x1x8x128xf32>
    %1 = vector.shape_cast %0 : vector<16x1x8x128xf32> to vector<16x8x128xf32>
    %c0_3 = arith.constant 0 : index
    %c1 = arith.constant 1 : index
    %c0_4 = arith.constant 0 : index
    %c0_5 = arith.constant 0 : index
    %2 = vector.load %arg1[%c0_3, %c1, %c0_4, %c0_5] : memref<16x2x8x128xf32, #tpu.memory_space<vmem>>, vector<16x1x8x128xf32>
    %3 = vector.shape_cast %2 : vector<16x1x8x128xf32> to vector<16x8x128xf32>
    %4 = arith.maximumf %1, %3 : vector<16x8x128xf32>
    %cst = arith.constant 0.000000e+00 : f32
    %5 = vector.broadcast %cst : f32 to vector<16x8x128xf32>
    %6 = arith.maximumf %4, %5 : vector<16x8x128xf32>
    %7 = vector.extract_strided_slice %6 {offsets = [0, 0, 0], sizes = [16, 8, 64], strides = [1, 1, 1]} : vector<16x8x128xf32> to vector<16x8x64xf32>
    %8 = vector.extract_strided_slice %6 {offsets = [0, 0, 64], sizes = [16, 8, 64], strides = [1, 1, 1]} : vector<16x8x128xf32> to vector<16x8x64xf32>
    %9 = arith.maximumf %7, %8 : vector<16x8x64xf32>
    %10 = arith.truncf %9 : vector<16x8x64xf32> to vector<16x8x64xbf16>
    %c0_6 = arith.constant 0 : index
    %c0_7 = arith.constant 0 : index
    %c0_8 = arith.constant 0 : index
    %11 = vector.load %arg2[%c0_6, %c0_7, %c0_8] : memref<16x8x64xbf16, #tpu.memory_space<vmem>>, vector<16x8x64xbf16>
    tpu.vector_store %arg2[%c0_6, %c0_7, %c0_8], %10 {strides = array<i32>} : memref<16x8x64xbf16, #tpu.memory_space<vmem>>, vector<16x8x64xbf16>,
    return
  }
  func.func @transform_0(%arg0: i32) -> (i32, i32, i32, i32) {
    %c0_i32 = arith.constant 0 : i32
    %c0_i32_0 = arith.constant 0 : i32
    %c0_i32_1 = arith.constant 0 : i32
    %c0_i32_2 = arith.constant 0 : i32
    return %arg0, %c0_i32, %c0_i32_0, %c0_i32_1 : i32, i32, i32, i32
  }
  func.func @transform_1(%arg0: i32) -> (i32, i32, i32) {
    %c0_i32 = arith.constant 0 : i32
    %c0_i32_0 = arith.constant 0 : i32
    %c0_i32_1 = arith.constant 0 : i32
    return %arg0, %c0_i32, %c0_i32_0 : i32, i32, i32
  }
}

module attributes {stable_mosaic.version = 11 : i64} {
  func.func @_conv3x3_kernel(%arg0: i32, %arg1: i32, %arg2: i32, %arg3: memref<1x10x10x64xbf16, #tpu.memory_space<vmem>>, %arg4: memref<9x64x128xbf16, #tpu.memory_space<vmem>>, %arg5: memref<1x128xf32, #tpu.memory_space<vmem>>, %arg6: memref<1x64x128xf32, #tpu.memory_space<vmem>>) attributes {dimension_semantics = [#tpu.dimension_semantics<parallel>, #tpu.dimension_semantics<parallel>, #tpu.dimension_semantics<parallel>], iteration_bounds = array<i64: 2, 1, 1>, scalar_prefetch = 0 : i64, scratch_operands = 0 : i64, tpu.core_type = #tpu.core_type<tc>, window_params = [{transform_indices = @transform_0, window_bounds = array<i64: 1, 10, 10, 64>}, {transform_indices = @transform_1, window_bounds = array<i64: 9, 64, 128>}, {transform_indices = @transform_2, window_bounds = array<i64: 1, 128>}, {transform_indices = @transform_3, window_bounds = array<i64: 1, 64, 128>}]} {
    %c8_i32 = arith.constant 8 : i32
    %0 = arith.muli %arg2, %c8_i32 : i32
    %c0 = arith.constant 0 : index
    %c0_0 = arith.constant 0 : index
    %1 = vector.load %arg5[%c0, %c0_0] : memref<1x128xf32, #tpu.memory_space<vmem>>, vector<1x128xf32>
    %2 = vector.shape_cast %1 : vector<1x128xf32> to vector<1x128xf32>
    %3 = vector.broadcast %2 : vector<1x128xf32> to vector<64x128xf32>
    %c0_i32 = arith.constant 0 : i32
    %4 = arith.addi %0, %c0_i32 : i32
    %c0_1 = arith.constant 0 : index
    %5 = arith.index_cast %4 : i32 to index
    %c0_2 = arith.constant 0 : index
    %c0_3 = arith.constant 0 : index
    %6 = vector.load %arg3[%c0_1, %5, %c0_2, %c0_3] : memref<1x10x10x64xbf16, #tpu.memory_space<vmem>>, vector<1x8x10x64xbf16>
    %7 = vector.shape_cast %6 : vector<1x8x10x64xbf16> to vector<8x10x64xbf16>
    %8 = vector.extract_strided_slice %7 {offsets = [0, 0, 0], sizes = [8, 8, 64], strides = [1, 1, 1]} : vector<8x10x64xbf16> to vector<8x8x64xbf16>
    %9 = vector.shape_cast %8 : vector<8x8x64xbf16> to vector<64x64xbf16>
    %c0_4 = arith.constant 0 : index
    %c0_5 = arith.constant 0 : index
    %c0_6 = arith.constant 0 : index
    %10 = vector.load %arg4[%c0_4, %c0_5, %c0_6] : memref<9x64x128xbf16, #tpu.memory_space<vmem>>, vector<1x64x128xbf16>
    %11 = vector.shape_cast %10 : vector<1x64x128xbf16> to vector<64x128xbf16>
    %cst = arith.constant dense<0.000000e+00> : vector<64x128xf32>
    %12 = tpu.matmul %9, %11, %cst {dimension_numbers = #tpu.dot_dimension_numbers<[1], [0], [0], [1], [0, 0, 1, 1], [], []>} : vector<64x64xbf16>, vector<64x128xbf16>, vector<64x128xf32> -> vector<64x128xf32>
    %13 = arith.addf %3, %12 : vector<64x128xf32>
    %14 = vector.extract_strided_slice %7 {offsets = [0, 1, 0], sizes = [8, 8, 64], strides = [1, 1, 1]} : vector<8x10x64xbf16> to vector<8x8x64xbf16>
    %15 = vector.shape_cast %14 : vector<8x8x64xbf16> to vector<64x64xbf16>
    %c1 = arith.constant 1 : index
    %c0_7 = arith.constant 0 : index
    %c0_8 = arith.constant 0 : index
    %16 = vector.load %arg4[%c1, %c0_7, %c0_8] : memref<9x64x128xbf16, #tpu.memory_space<vmem>>, vector<1x64x128xbf16>
    %17 = vector.shape_cast %16 : vector<1x64x128xbf16> to vector<64x128xbf16>
    %cst_9 = arith.constant dense<0.000000e+00> : vector<64x128xf32>
    %18 = tpu.matmul %15, %17, %cst_9 {dimension_numbers = #tpu.dot_dimension_numbers<[1], [0], [0], [1], [0, 0, 1, 1], [], []>} : vector<64x64xbf16>, vector<64x128xbf16>, vector<64x128xf32> -> vector<64x128xf32>
    %19 = arith.addf %13, %18 : vector<64x128xf32>
    %20 = vector.extract_strided_slice %7 {offsets = [0, 2, 0], sizes = [8, 8, 64], strides = [1, 1, 1]} : vector<8x10x64xbf16> to vector<8x8x64xbf16>
    %21 = vector.shape_cast %20 : vector<8x8x64xbf16> to vector<64x64xbf16>
    %c2 = arith.constant 2 : index
    %c0_10 = arith.constant 0 : index
    %c0_11 = arith.constant 0 : index
    %22 = vector.load %arg4[%c2, %c0_10, %c0_11] : memref<9x64x128xbf16, #tpu.memory_space<vmem>>, vector<1x64x128xbf16>
    %23 = vector.shape_cast %22 : vector<1x64x128xbf16> to vector<64x128xbf16>
    %cst_12 = arith.constant dense<0.000000e+00> : vector<64x128xf32>
    %24 = tpu.matmul %21, %23, %cst_12 {dimension_numbers = #tpu.dot_dimension_numbers<[1], [0], [0], [1], [0, 0, 1, 1], [], []>} : vector<64x64xbf16>, vector<64x128xbf16>, vector<64x128xf32> -> vector<64x128xf32>
    %25 = arith.addf %19, %24 : vector<64x128xf32>
    %c1_i32 = arith.constant 1 : i32
    %26 = arith.addi %0, %c1_i32 : i32
    %c0_13 = arith.constant 0 : index
    %27 = arith.index_cast %26 : i32 to index
    %c0_14 = arith.constant 0 : index
    %c0_15 = arith.constant 0 : index
    %28 = vector.load %arg3[%c0_13, %27, %c0_14, %c0_15] : memref<1x10x10x64xbf16, #tpu.memory_space<vmem>>, vector<1x8x10x64xbf16>
    %29 = vector.shape_cast %28 : vector<1x8x10x64xbf16> to vector<8x10x64xbf16>
    %30 = vector.extract_strided_slice %29 {offsets = [0, 0, 0], sizes = [8, 8, 64], strides = [1, 1, 1]} : vector<8x10x64xbf16> to vector<8x8x64xbf16>
    %31 = vector.shape_cast %30 : vector<8x8x64xbf16> to vector<64x64xbf16>
    %c3 = arith.constant 3 : index
    %c0_16 = arith.constant 0 : index
    %c0_17 = arith.constant 0 : index
    %32 = vector.load %arg4[%c3, %c0_16, %c0_17] : memref<9x64x128xbf16, #tpu.memory_space<vmem>>, vector<1x64x128xbf16>
    %33 = vector.shape_cast %32 : vector<1x64x128xbf16> to vector<64x128xbf16>
    %cst_18 = arith.constant dense<0.000000e+00> : vector<64x128xf32>
    %34 = tpu.matmul %31, %33, %cst_18 {dimension_numbers = #tpu.dot_dimension_numbers<[1], [0], [0], [1], [0, 0, 1, 1], [], []>} : vector<64x64xbf16>, vector<64x128xbf16>, vector<64x128xf32> -> vector<64x128xf32>
    %35 = arith.addf %25, %34 : vector<64x128xf32>
    %36 = vector.extract_strided_slice %29 {offsets = [0, 1, 0], sizes = [8, 8, 64], strides = [1, 1, 1]} : vector<8x10x64xbf16> to vector<8x8x64xbf16>
    %37 = vector.shape_cast %36 : vector<8x8x64xbf16> to vector<64x64xbf16>
    %c4 = arith.constant 4 : index
    %c0_19 = arith.constant 0 : index
    %c0_20 = arith.constant 0 : index
    %38 = vector.load %arg4[%c4, %c0_19, %c0_20] : memref<9x64x128xbf16, #tpu.memory_space<vmem>>, vector<1x64x128xbf16>
    %39 = vector.shape_cast %38 : vector<1x64x128xbf16> to vector<64x128xbf16>
    %cst_21 = arith.constant dense<0.000000e+00> : vector<64x128xf32>
    %40 = tpu.matmul %37, %39, %cst_21 {dimension_numbers = #tpu.dot_dimension_numbers<[1], [0], [0], [1], [0, 0, 1, 1], [], []>} : vector<64x64xbf16>, vector<64x128xbf16>, vector<64x128xf32> -> vector<64x128xf32>
    %41 = arith.addf %35, %40 : vector<64x128xf32>
    %42 = vector.extract_strided_slice %29 {offsets = [0, 2, 0], sizes = [8, 8, 64], strides = [1, 1, 1]} : vector<8x10x64xbf16> to vector<8x8x64xbf16>
    %43 = vector.shape_cast %42 : vector<8x8x64xbf16> to vector<64x64xbf16>
    %c5 = arith.constant 5 : index
    %c0_22 = arith.constant 0 : index
    %c0_23 = arith.constant 0 : index
    %44 = vector.load %arg4[%c5, %c0_22, %c0_23] : memref<9x64x128xbf16, #tpu.memory_space<vmem>>, vector<1x64x128xbf16>
    %45 = vector.shape_cast %44 : vector<1x64x128xbf16> to vector<64x128xbf16>
    %cst_24 = arith.constant dense<0.000000e+00> : vector<64x128xf32>
    %46 = tpu.matmul %43, %45, %cst_24 {dimension_numbers = #tpu.dot_dimension_numbers<[1], [0], [0], [1], [0, 0, 1, 1], [], []>} : vector<64x64xbf16>, vector<64x128xbf16>, vector<64x128xf32> -> vector<64x128xf32>
    %47 = arith.addf %41, %46 : vector<64x128xf32>
    %c2_i32 = arith.constant 2 : i32
    %48 = arith.addi %0, %c2_i32 : i32
    %c0_25 = arith.constant 0 : index
    %49 = arith.index_cast %48 : i32 to index
    %c0_26 = arith.constant 0 : index
    %c0_27 = arith.constant 0 : index
    %50 = vector.load %arg3[%c0_25, %49, %c0_26, %c0_27] : memref<1x10x10x64xbf16, #tpu.memory_space<vmem>>, vector<1x8x10x64xbf16>
    %51 = vector.shape_cast %50 : vector<1x8x10x64xbf16> to vector<8x10x64xbf16>
    %52 = vector.extract_strided_slice %51 {offsets = [0, 0, 0], sizes = [8, 8, 64], strides = [1, 1, 1]} : vector<8x10x64xbf16> to vector<8x8x64xbf16>
    %53 = vector.shape_cast %52 : vector<8x8x64xbf16> to vector<64x64xbf16>
    %c6 = arith.constant 6 : index
    %c0_28 = arith.constant 0 : index
    %c0_29 = arith.constant 0 : index
    %54 = vector.load %arg4[%c6, %c0_28, %c0_29] : memref<9x64x128xbf16, #tpu.memory_space<vmem>>, vector<1x64x128xbf16>
    %55 = vector.shape_cast %54 : vector<1x64x128xbf16> to vector<64x128xbf16>
    %cst_30 = arith.constant dense<0.000000e+00> : vector<64x128xf32>
    %56 = tpu.matmul %53, %55, %cst_30 {dimension_numbers = #tpu.dot_dimension_numbers<[1], [0], [0], [1], [0, 0, 1, 1], [], []>} : vector<64x64xbf16>, vector<64x128xbf16>, vector<64x128xf32> -> vector<64x128xf32>
    %57 = arith.addf %47, %56 : vector<64x128xf32>
    %58 = vector.extract_strided_slice %51 {offsets = [0, 1, 0], sizes = [8, 8, 64], strides = [1, 1, 1]} : vector<8x10x64xbf16> to vector<8x8x64xbf16>
    %59 = vector.shape_cast %58 : vector<8x8x64xbf16> to vector<64x64xbf16>
    %c7 = arith.constant 7 : index
    %c0_31 = arith.constant 0 : index
    %c0_32 = arith.constant 0 : index
    %60 = vector.load %arg4[%c7, %c0_31, %c0_32] : memref<9x64x128xbf16, #tpu.memory_space<vmem>>, vector<1x64x128xbf16>
    %61 = vector.shape_cast %60 : vector<1x64x128xbf16> to vector<64x128xbf16>
    %cst_33 = arith.constant dense<0.000000e+00> : vector<64x128xf32>
    %62 = tpu.matmul %59, %61, %cst_33 {dimension_numbers = #tpu.dot_dimension_numbers<[1], [0], [0], [1], [0, 0, 1, 1], [], []>} : vector<64x64xbf16>, vector<64x128xbf16>, vector<64x128xf32> -> vector<64x128xf32>
    %63 = arith.addf %57, %62 : vector<64x128xf32>
    %64 = vector.extract_strided_slice %51 {offsets = [0, 2, 0], sizes = [8, 8, 64], strides = [1, 1, 1]} : vector<8x10x64xbf16> to vector<8x8x64xbf16>
    %65 = vector.shape_cast %64 : vector<8x8x64xbf16> to vector<64x64xbf16>
    %c8 = arith.constant 8 : index
    %c0_34 = arith.constant 0 : index
    %c0_35 = arith.constant 0 : index
    %66 = vector.load %arg4[%c8, %c0_34, %c0_35] : memref<9x64x128xbf16, #tpu.memory_space<vmem>>, vector<1x64x128xbf16>
    %67 = vector.shape_cast %66 : vector<1x64x128xbf16> to vector<64x128xbf16>
    %cst_36 = arith.constant dense<0.000000e+00> : vector<64x128xf32>
    %68 = tpu.matmul %65, %67, %cst_36 {dimension_numbers = #tpu.dot_dimension_numbers<[1], [0], [0], [1], [0, 0, 1, 1], [], []>} : vector<64x64xbf16>, vector<64x128xbf16>, vector<64x128xf32> -> vector<64x128xf32>
    %69 = arith.addf %63, %68 : vector<64x128xf32>
    %c0_37 = arith.constant 0 : index
    %c0_38 = arith.constant 0 : index
    %c0_39 = arith.constant 0 : index
    %70 = vector.load %arg6[%c0_37, %c0_38, %c0_39] : memref<1x64x128xf32, #tpu.memory_space<vmem>>, vector<1x64x128xf32>
    %71 = vector.shape_cast %70 : vector<1x64x128xf32> to vector<64x128xf32>
    %72 = vector.shape_cast %69 : vector<64x128xf32> to vector<1x64x128xf32>
    tpu.vector_store %arg6[%c0_37, %c0_38, %c0_39], %72 {strides = array<i32>} : memref<1x64x128xf32, #tpu.memory_space<vmem>>, vector<1x64x128xf32>,
    return
  }
  func.func @transform_0(%arg0: i32, %arg1: i32, %arg2: i32) -> (i32, i32, i32, i32) {
    %c0_i32 = arith.constant 0 : i32
    %c0_i32_0 = arith.constant 0 : i32
    %c0_i32_1 = arith.constant 0 : i32
    %c0_i32_2 = arith.constant 0 : i32
    return %arg0, %c0_i32, %c0_i32_0, %c0_i32_1 : i32, i32, i32, i32
  }
  func.func @transform_1(%arg0: i32, %arg1: i32, %arg2: i32) -> (i32, i32, i32) {
    %c0_i32 = arith.constant 0 : i32
    %c0_i32_0 = arith.constant 0 : i32
    %c0_i32_1 = arith.constant 0 : i32
    return %c0_i32, %c0_i32_0, %arg1 : i32, i32, i32
  }
  func.func @transform_2(%arg0: i32, %arg1: i32, %arg2: i32) -> (i32, i32) {
    %c0_i32 = arith.constant 0 : i32
    %c0_i32_0 = arith.constant 0 : i32
    return %c0_i32, %arg1 : i32, i32
  }
  func.func @transform_3(%arg0: i32, %arg1: i32, %arg2: i32) -> (i32, i32, i32) {
    %c0_i32 = arith.constant 0 : i32
    return %arg0, %arg2, %arg1 : i32, i32, i32
  }
}

module attributes {stable_mosaic.version = 11 : i64} {
  func.func @_conv3x3_kernel(%arg0: i32, %arg1: i32, %arg2: i32, %arg3: memref<1x10x10x128xbf16, #tpu.memory_space<vmem>>, %arg4: memref<9x128x128xbf16, #tpu.memory_space<vmem>>, %arg5: memref<1x128xf32, #tpu.memory_space<vmem>>, %arg6: memref<1x64x128xbf16, #tpu.memory_space<vmem>>) attributes {dimension_semantics = [#tpu.dimension_semantics<parallel>, #tpu.dimension_semantics<parallel>, #tpu.dimension_semantics<parallel>], iteration_bounds = array<i64: 2, 1, 1>, scalar_prefetch = 0 : i64, scratch_operands = 0 : i64, tpu.core_type = #tpu.core_type<tc>, window_params = [{transform_indices = @transform_0, window_bounds = array<i64: 1, 10, 10, 128>}, {transform_indices = @transform_1, window_bounds = array<i64: 9, 128, 128>}, {transform_indices = @transform_2, window_bounds = array<i64: 1, 128>}, {transform_indices = @transform_3, window_bounds = array<i64: 1, 64, 128>}]} {
    %c8_i32 = arith.constant 8 : i32
    %0 = arith.muli %arg2, %c8_i32 : i32
    %c0 = arith.constant 0 : index
    %c0_0 = arith.constant 0 : index
    %1 = vector.load %arg5[%c0, %c0_0] : memref<1x128xf32, #tpu.memory_space<vmem>>, vector<1x128xf32>
    %2 = vector.shape_cast %1 : vector<1x128xf32> to vector<1x128xf32>
    %3 = vector.broadcast %2 : vector<1x128xf32> to vector<64x128xf32>
    %c0_i32 = arith.constant 0 : i32
    %4 = arith.addi %0, %c0_i32 : i32
    %c0_1 = arith.constant 0 : index
    %5 = arith.index_cast %4 : i32 to index
    %c0_2 = arith.constant 0 : index
    %c0_3 = arith.constant 0 : index
    %6 = vector.load %arg3[%c0_1, %5, %c0_2, %c0_3] : memref<1x10x10x128xbf16, #tpu.memory_space<vmem>>, vector<1x8x10x128xbf16>
    %7 = vector.shape_cast %6 : vector<1x8x10x128xbf16> to vector<8x10x128xbf16>
    %8 = vector.extract_strided_slice %7 {offsets = [0, 0, 0], sizes = [8, 8, 128], strides = [1, 1, 1]} : vector<8x10x128xbf16> to vector<8x8x128xbf16>
    %9 = vector.shape_cast %8 : vector<8x8x128xbf16> to vector<64x128xbf16>
    %c0_4 = arith.constant 0 : index
    %c0_5 = arith.constant 0 : index
    %c0_6 = arith.constant 0 : index
    %10 = vector.load %arg4[%c0_4, %c0_5, %c0_6] : memref<9x128x128xbf16, #tpu.memory_space<vmem>>, vector<1x128x128xbf16>
    %11 = vector.shape_cast %10 : vector<1x128x128xbf16> to vector<128x128xbf16>
    %cst = arith.constant dense<0.000000e+00> : vector<64x128xf32>
    %12 = tpu.matmul %9, %11, %cst {dimension_numbers = #tpu.dot_dimension_numbers<[1], [0], [0], [1], [0, 0, 1, 1], [], []>} : vector<64x128xbf16>, vector<128x128xbf16>, vector<64x128xf32> -> vector<64x128xf32>
    %13 = arith.addf %3, %12 : vector<64x128xf32>
    %14 = vector.extract_strided_slice %7 {offsets = [0, 1, 0], sizes = [8, 8, 128], strides = [1, 1, 1]} : vector<8x10x128xbf16> to vector<8x8x128xbf16>
    %15 = vector.shape_cast %14 : vector<8x8x128xbf16> to vector<64x128xbf16>
    %c1 = arith.constant 1 : index
    %c0_7 = arith.constant 0 : index
    %c0_8 = arith.constant 0 : index
    %16 = vector.load %arg4[%c1, %c0_7, %c0_8] : memref<9x128x128xbf16, #tpu.memory_space<vmem>>, vector<1x128x128xbf16>
    %17 = vector.shape_cast %16 : vector<1x128x128xbf16> to vector<128x128xbf16>
    %cst_9 = arith.constant dense<0.000000e+00> : vector<64x128xf32>
    %18 = tpu.matmul %15, %17, %cst_9 {dimension_numbers = #tpu.dot_dimension_numbers<[1], [0], [0], [1], [0, 0, 1, 1], [], []>} : vector<64x128xbf16>, vector<128x128xbf16>, vector<64x128xf32> -> vector<64x128xf32>
    %19 = arith.addf %13, %18 : vector<64x128xf32>
    %20 = vector.extract_strided_slice %7 {offsets = [0, 2, 0], sizes = [8, 8, 128], strides = [1, 1, 1]} : vector<8x10x128xbf16> to vector<8x8x128xbf16>
    %21 = vector.shape_cast %20 : vector<8x8x128xbf16> to vector<64x128xbf16>
    %c2 = arith.constant 2 : index
    %c0_10 = arith.constant 0 : index
    %c0_11 = arith.constant 0 : index
    %22 = vector.load %arg4[%c2, %c0_10, %c0_11] : memref<9x128x128xbf16, #tpu.memory_space<vmem>>, vector<1x128x128xbf16>
    %23 = vector.shape_cast %22 : vector<1x128x128xbf16> to vector<128x128xbf16>
    %cst_12 = arith.constant dense<0.000000e+00> : vector<64x128xf32>
    %24 = tpu.matmul %21, %23, %cst_12 {dimension_numbers = #tpu.dot_dimension_numbers<[1], [0], [0], [1], [0, 0, 1, 1], [], []>} : vector<64x128xbf16>, vector<128x128xbf16>, vector<64x128xf32> -> vector<64x128xf32>
    %25 = arith.addf %19, %24 : vector<64x128xf32>
    %c1_i32 = arith.constant 1 : i32
    %26 = arith.addi %0, %c1_i32 : i32
    %c0_13 = arith.constant 0 : index
    %27 = arith.index_cast %26 : i32 to index
    %c0_14 = arith.constant 0 : index
    %c0_15 = arith.constant 0 : index
    %28 = vector.load %arg3[%c0_13, %27, %c0_14, %c0_15] : memref<1x10x10x128xbf16, #tpu.memory_space<vmem>>, vector<1x8x10x128xbf16>
    %29 = vector.shape_cast %28 : vector<1x8x10x128xbf16> to vector<8x10x128xbf16>
    %30 = vector.extract_strided_slice %29 {offsets = [0, 0, 0], sizes = [8, 8, 128], strides = [1, 1, 1]} : vector<8x10x128xbf16> to vector<8x8x128xbf16>
    %31 = vector.shape_cast %30 : vector<8x8x128xbf16> to vector<64x128xbf16>
    %c3 = arith.constant 3 : index
    %c0_16 = arith.constant 0 : index
    %c0_17 = arith.constant 0 : index
    %32 = vector.load %arg4[%c3, %c0_16, %c0_17] : memref<9x128x128xbf16, #tpu.memory_space<vmem>>, vector<1x128x128xbf16>
    %33 = vector.shape_cast %32 : vector<1x128x128xbf16> to vector<128x128xbf16>
    %cst_18 = arith.constant dense<0.000000e+00> : vector<64x128xf32>
    %34 = tpu.matmul %31, %33, %cst_18 {dimension_numbers = #tpu.dot_dimension_numbers<[1], [0], [0], [1], [0, 0, 1, 1], [], []>} : vector<64x128xbf16>, vector<128x128xbf16>, vector<64x128xf32> -> vector<64x128xf32>
    %35 = arith.addf %25, %34 : vector<64x128xf32>
    %36 = vector.extract_strided_slice %29 {offsets = [0, 1, 0], sizes = [8, 8, 128], strides = [1, 1, 1]} : vector<8x10x128xbf16> to vector<8x8x128xbf16>
    %37 = vector.shape_cast %36 : vector<8x8x128xbf16> to vector<64x128xbf16>
    %c4 = arith.constant 4 : index
    %c0_19 = arith.constant 0 : index
    %c0_20 = arith.constant 0 : index
    %38 = vector.load %arg4[%c4, %c0_19, %c0_20] : memref<9x128x128xbf16, #tpu.memory_space<vmem>>, vector<1x128x128xbf16>
    %39 = vector.shape_cast %38 : vector<1x128x128xbf16> to vector<128x128xbf16>
    %cst_21 = arith.constant dense<0.000000e+00> : vector<64x128xf32>
    %40 = tpu.matmul %37, %39, %cst_21 {dimension_numbers = #tpu.dot_dimension_numbers<[1], [0], [0], [1], [0, 0, 1, 1], [], []>} : vector<64x128xbf16>, vector<128x128xbf16>, vector<64x128xf32> -> vector<64x128xf32>
    %41 = arith.addf %35, %40 : vector<64x128xf32>
    %42 = vector.extract_strided_slice %29 {offsets = [0, 2, 0], sizes = [8, 8, 128], strides = [1, 1, 1]} : vector<8x10x128xbf16> to vector<8x8x128xbf16>
    %43 = vector.shape_cast %42 : vector<8x8x128xbf16> to vector<64x128xbf16>
    %c5 = arith.constant 5 : index
    %c0_22 = arith.constant 0 : index
    %c0_23 = arith.constant 0 : index
    %44 = vector.load %arg4[%c5, %c0_22, %c0_23] : memref<9x128x128xbf16, #tpu.memory_space<vmem>>, vector<1x128x128xbf16>
    %45 = vector.shape_cast %44 : vector<1x128x128xbf16> to vector<128x128xbf16>
    %cst_24 = arith.constant dense<0.000000e+00> : vector<64x128xf32>
    %46 = tpu.matmul %43, %45, %cst_24 {dimension_numbers = #tpu.dot_dimension_numbers<[1], [0], [0], [1], [0, 0, 1, 1], [], []>} : vector<64x128xbf16>, vector<128x128xbf16>, vector<64x128xf32> -> vector<64x128xf32>
    %47 = arith.addf %41, %46 : vector<64x128xf32>
    %c2_i32 = arith.constant 2 : i32
    %48 = arith.addi %0, %c2_i32 : i32
    %c0_25 = arith.constant 0 : index
    %49 = arith.index_cast %48 : i32 to index
    %c0_26 = arith.constant 0 : index
    %c0_27 = arith.constant 0 : index
    %50 = vector.load %arg3[%c0_25, %49, %c0_26, %c0_27] : memref<1x10x10x128xbf16, #tpu.memory_space<vmem>>, vector<1x8x10x128xbf16>
    %51 = vector.shape_cast %50 : vector<1x8x10x128xbf16> to vector<8x10x128xbf16>
    %52 = vector.extract_strided_slice %51 {offsets = [0, 0, 0], sizes = [8, 8, 128], strides = [1, 1, 1]} : vector<8x10x128xbf16> to vector<8x8x128xbf16>
    %53 = vector.shape_cast %52 : vector<8x8x128xbf16> to vector<64x128xbf16>
    %c6 = arith.constant 6 : index
    %c0_28 = arith.constant 0 : index
    %c0_29 = arith.constant 0 : index
    %54 = vector.load %arg4[%c6, %c0_28, %c0_29] : memref<9x128x128xbf16, #tpu.memory_space<vmem>>, vector<1x128x128xbf16>
    %55 = vector.shape_cast %54 : vector<1x128x128xbf16> to vector<128x128xbf16>
    %cst_30 = arith.constant dense<0.000000e+00> : vector<64x128xf32>
    %56 = tpu.matmul %53, %55, %cst_30 {dimension_numbers = #tpu.dot_dimension_numbers<[1], [0], [0], [1], [0, 0, 1, 1], [], []>} : vector<64x128xbf16>, vector<128x128xbf16>, vector<64x128xf32> -> vector<64x128xf32>
    %57 = arith.addf %47, %56 : vector<64x128xf32>
    %58 = vector.extract_strided_slice %51 {offsets = [0, 1, 0], sizes = [8, 8, 128], strides = [1, 1, 1]} : vector<8x10x128xbf16> to vector<8x8x128xbf16>
    %59 = vector.shape_cast %58 : vector<8x8x128xbf16> to vector<64x128xbf16>
    %c7 = arith.constant 7 : index
    %c0_31 = arith.constant 0 : index
    %c0_32 = arith.constant 0 : index
    %60 = vector.load %arg4[%c7, %c0_31, %c0_32] : memref<9x128x128xbf16, #tpu.memory_space<vmem>>, vector<1x128x128xbf16>
    %61 = vector.shape_cast %60 : vector<1x128x128xbf16> to vector<128x128xbf16>
    %cst_33 = arith.constant dense<0.000000e+00> : vector<64x128xf32>
    %62 = tpu.matmul %59, %61, %cst_33 {dimension_numbers = #tpu.dot_dimension_numbers<[1], [0], [0], [1], [0, 0, 1, 1], [], []>} : vector<64x128xbf16>, vector<128x128xbf16>, vector<64x128xf32> -> vector<64x128xf32>
    %63 = arith.addf %57, %62 : vector<64x128xf32>
    %64 = vector.extract_strided_slice %51 {offsets = [0, 2, 0], sizes = [8, 8, 128], strides = [1, 1, 1]} : vector<8x10x128xbf16> to vector<8x8x128xbf16>
    %65 = vector.shape_cast %64 : vector<8x8x128xbf16> to vector<64x128xbf16>
    %c8 = arith.constant 8 : index
    %c0_34 = arith.constant 0 : index
    %c0_35 = arith.constant 0 : index
    %66 = vector.load %arg4[%c8, %c0_34, %c0_35] : memref<9x128x128xbf16, #tpu.memory_space<vmem>>, vector<1x128x128xbf16>
    %67 = vector.shape_cast %66 : vector<1x128x128xbf16> to vector<128x128xbf16>
    %cst_36 = arith.constant dense<0.000000e+00> : vector<64x128xf32>
    %68 = tpu.matmul %65, %67, %cst_36 {dimension_numbers = #tpu.dot_dimension_numbers<[1], [0], [0], [1], [0, 0, 1, 1], [], []>} : vector<64x128xbf16>, vector<128x128xbf16>, vector<64x128xf32> -> vector<64x128xf32>
    %69 = arith.addf %63, %68 : vector<64x128xf32>
    %cst_37 = arith.constant 0.000000e+00 : f32
    %70 = vector.broadcast %cst_37 : f32 to vector<64x128xf32>
    %71 = arith.maximumf %69, %70 : vector<64x128xf32>
    %72 = arith.truncf %71 : vector<64x128xf32> to vector<64x128xbf16>
    %c0_38 = arith.constant 0 : index
    %c0_39 = arith.constant 0 : index
    %c0_40 = arith.constant 0 : index
    %73 = vector.load %arg6[%c0_38, %c0_39, %c0_40] : memref<1x64x128xbf16, #tpu.memory_space<vmem>>, vector<1x64x128xbf16>
    %74 = vector.shape_cast %73 : vector<1x64x128xbf16> to vector<64x128xbf16>
    %75 = vector.shape_cast %72 : vector<64x128xbf16> to vector<1x64x128xbf16>
    tpu.vector_store %arg6[%c0_38, %c0_39, %c0_40], %75 {strides = array<i32>} : memref<1x64x128xbf16, #tpu.memory_space<vmem>>, vector<1x64x128xbf16>,
    return
  }
  func.func @transform_0(%arg0: i32, %arg1: i32, %arg2: i32) -> (i32, i32, i32, i32) {
    %c0_i32 = arith.constant 0 : i32
    %c0_i32_0 = arith.constant 0 : i32
    %c0_i32_1 = arith.constant 0 : i32
    %c0_i32_2 = arith.constant 0 : i32
    return %arg0, %c0_i32, %c0_i32_0, %c0_i32_1 : i32, i32, i32, i32
  }
  func.func @transform_1(%arg0: i32, %arg1: i32, %arg2: i32) -> (i32, i32, i32) {
    %c0_i32 = arith.constant 0 : i32
    %c0_i32_0 = arith.constant 0 : i32
    %c0_i32_1 = arith.constant 0 : i32
    return %c0_i32, %c0_i32_0, %arg1 : i32, i32, i32
  }
  func.func @transform_2(%arg0: i32, %arg1: i32, %arg2: i32) -> (i32, i32) {
    %c0_i32 = arith.constant 0 : i32
    %c0_i32_0 = arith.constant 0 : i32
    return %c0_i32, %arg1 : i32, i32
  }
  func.func @transform_3(%arg0: i32, %arg1: i32, %arg2: i32) -> (i32, i32, i32) {
    %c0_i32 = arith.constant 0 : i32
    return %arg0, %arg2, %arg1 : i32, i32, i32
  }
}

module attributes {stable_mosaic.version = 11 : i64} {
  func.func @_relu_maxpool_kernel(%arg0: i32, %arg1: memref<8x2x4x256xbf16, #tpu.memory_space<vmem>>, %arg2: memref<8x4x128xbf16, #tpu.memory_space<vmem>>) attributes {dimension_semantics = [#tpu.dimension_semantics<parallel>], iteration_bounds = array<i64: 1>, scalar_prefetch = 0 : i64, scratch_operands = 0 : i64, tpu.core_type = #tpu.core_type<tc>, window_params = [{transform_indices = @transform_0, window_bounds = array<i64: 8, 2, 4, 256>}, {transform_indices = @transform_1, window_bounds = array<i64: 8, 4, 128>}]} {
    %c0 = arith.constant 0 : index
    %c0_0 = arith.constant 0 : index
    %c0_1 = arith.constant 0 : index
    %c0_2 = arith.constant 0 : index
    %0 = vector.load %arg1[%c0, %c0_0, %c0_1, %c0_2] : memref<8x2x4x256xbf16, #tpu.memory_space<vmem>>, vector<8x1x4x256xbf16>
    %1 = vector.shape_cast %0 : vector<8x1x4x256xbf16> to vector<8x4x256xbf16>
    %c0_3 = arith.constant 0 : index
    %c1 = arith.constant 1 : index
    %c0_4 = arith.constant 0 : index
    %c0_5 = arith.constant 0 : index
    %2 = vector.load %arg1[%c0_3, %c1, %c0_4, %c0_5] : memref<8x2x4x256xbf16, #tpu.memory_space<vmem>>, vector<8x1x4x256xbf16>
    %3 = vector.shape_cast %2 : vector<8x1x4x256xbf16> to vector<8x4x256xbf16>
    %4 = arith.maximumf %1, %3 : vector<8x4x256xbf16>
    %cst = arith.constant 0.000000e+00 : bf16
    %5 = vector.broadcast %cst : bf16 to vector<8x4x256xbf16>
    %6 = arith.maximumf %4, %5 : vector<8x4x256xbf16>
    %7 = vector.extract_strided_slice %6 {offsets = [0, 0, 0], sizes = [8, 4, 128], strides = [1, 1, 1]} : vector<8x4x256xbf16> to vector<8x4x128xbf16>
    %8 = vector.extract_strided_slice %6 {offsets = [0, 0, 128], sizes = [8, 4, 128], strides = [1, 1, 1]} : vector<8x4x256xbf16> to vector<8x4x128xbf16>
    %9 = arith.maximumf %7, %8 : vector<8x4x128xbf16>
    %c0_6 = arith.constant 0 : index
    %c0_7 = arith.constant 0 : index
    %c0_8 = arith.constant 0 : index
    %10 = vector.load %arg2[%c0_6, %c0_7, %c0_8] : memref<8x4x128xbf16, #tpu.memory_space<vmem>>, vector<8x4x128xbf16>
    tpu.vector_store %arg2[%c0_6, %c0_7, %c0_8], %9 {strides = array<i32>} : memref<8x4x128xbf16, #tpu.memory_space<vmem>>, vector<8x4x128xbf16>,
    return
  }
  func.func @transform_0(%arg0: i32) -> (i32, i32, i32, i32) {
    %c0_i32 = arith.constant 0 : i32
    %c0_i32_0 = arith.constant 0 : i32
    %c0_i32_1 = arith.constant 0 : i32
    %c0_i32_2 = arith.constant 0 : i32
    return %arg0, %c0_i32, %c0_i32_0, %c0_i32_1 : i32, i32, i32, i32
  }
  func.func @transform_1(%arg0: i32) -> (i32, i32, i32) {
    %c0_i32 = arith.constant 0 : i32
    %c0_i32_0 = arith.constant 0 : i32
    %c0_i32_1 = arith.constant 0 : i32
    return %arg0, %c0_i32, %c0_i32_0 : i32, i32, i32
  }
}

module attributes {stable_mosaic.version = 11 : i64} {
  func.func @_conv_gemm_kernel(%arg0: i32, %arg1: i32, %arg2: i32, %arg3: memref<1x16x1152xbf16, #tpu.memory_space<vmem>>, %arg4: memref<1152x256xbf16, #tpu.memory_space<vmem>>, %arg5: memref<1x256xf32, #tpu.memory_space<vmem>>, %arg6: memref<1x16x256xf32, #tpu.memory_space<vmem>>) attributes {dimension_semantics = [#tpu.dimension_semantics<parallel>, #tpu.dimension_semantics<parallel>, #tpu.dimension_semantics<parallel>], iteration_bounds = array<i64: 2, 1, 1>, scalar_prefetch = 0 : i64, scratch_operands = 0 : i64, tpu.core_type = #tpu.core_type<tc>, window_params = [{transform_indices = @transform_0, window_bounds = array<i64: 1, 16, 1152>}, {transform_indices = @transform_1, window_bounds = array<i64: 1152, 256>}, {transform_indices = @transform_2, window_bounds = array<i64: 1, 256>}, {transform_indices = @transform_3, window_bounds = array<i64: 1, 16, 256>}]} {
    %c0 = arith.constant 0 : index
    %c0_0 = arith.constant 0 : index
    %c0_1 = arith.constant 0 : index
    %0 = vector.load %arg3[%c0, %c0_0, %c0_1] : memref<1x16x1152xbf16, #tpu.memory_space<vmem>>, vector<1x16x1152xbf16>
    %1 = vector.shape_cast %0 : vector<1x16x1152xbf16> to vector<16x1152xbf16>
    %c0_2 = arith.constant 0 : index
    %c0_3 = arith.constant 0 : index
    %2 = vector.load %arg4[%c0_2, %c0_3] : memref<1152x256xbf16, #tpu.memory_space<vmem>>, vector<1152x256xbf16>
    %cst = arith.constant dense<0.000000e+00> : vector<16x256xf32>
    %3 = tpu.matmul %1, %2, %cst {dimension_numbers = #tpu.dot_dimension_numbers<[1], [0], [0], [1], [0, 0, 1, 1], [], []>} : vector<16x1152xbf16>, vector<1152x256xbf16>, vector<16x256xf32> -> vector<16x256xf32>
    %c0_4 = arith.constant 0 : index
    %c0_5 = arith.constant 0 : index
    %4 = vector.load %arg5[%c0_4, %c0_5] : memref<1x256xf32, #tpu.memory_space<vmem>>, vector<1x256xf32>
    %5 = vector.broadcast %4 : vector<1x256xf32> to vector<16x256xf32>
    %6 = arith.addf %3, %5 : vector<16x256xf32>
    %c0_6 = arith.constant 0 : index
    %c0_7 = arith.constant 0 : index
    %c0_8 = arith.constant 0 : index
    %7 = vector.load %arg6[%c0_6, %c0_7, %c0_8] : memref<1x16x256xf32, #tpu.memory_space<vmem>>, vector<1x16x256xf32>
    %8 = vector.shape_cast %7 : vector<1x16x256xf32> to vector<16x256xf32>
    %9 = vector.shape_cast %6 : vector<16x256xf32> to vector<1x16x256xf32>
    tpu.vector_store %arg6[%c0_6, %c0_7, %c0_8], %9 {strides = array<i32>} : memref<1x16x256xf32, #tpu.memory_space<vmem>>, vector<1x16x256xf32>,
    return
  }
  func.func @transform_0(%arg0: i32, %arg1: i32, %arg2: i32) -> (i32, i32, i32) {
    %c0_i32 = arith.constant 0 : i32
    %c0_i32_0 = arith.constant 0 : i32
    return %arg0, %arg2, %c0_i32 : i32, i32, i32
  }
  func.func @transform_1(%arg0: i32, %arg1: i32, %arg2: i32) -> (i32, i32) {
    %c0_i32 = arith.constant 0 : i32
    %c0_i32_0 = arith.constant 0 : i32
    return %c0_i32, %arg1 : i32, i32
  }
  func.func @transform_2(%arg0: i32, %arg1: i32, %arg2: i32) -> (i32, i32) {
    %c0_i32 = arith.constant 0 : i32
    %c0_i32_0 = arith.constant 0 : i32
    return %c0_i32, %arg1 : i32, i32
  }
  func.func @transform_3(%arg0: i32, %arg1: i32, %arg2: i32) -> (i32, i32, i32) {
    %c0_i32 = arith.constant 0 : i32
    return %arg0, %arg2, %arg1 : i32, i32, i32
  }
}

module attributes {stable_mosaic.version = 11 : i64} {
  func.func @_conv_gemm_kernel(%arg0: i32, %arg1: i32, %arg2: i32, %arg3: memref<1x16x2304xbf16, #tpu.memory_space<vmem>>, %arg4: memref<2304x256xbf16, #tpu.memory_space<vmem>>, %arg5: memref<1x256xf32, #tpu.memory_space<vmem>>, %arg6: memref<1x16x256xbf16, #tpu.memory_space<vmem>>) attributes {dimension_semantics = [#tpu.dimension_semantics<parallel>, #tpu.dimension_semantics<parallel>, #tpu.dimension_semantics<parallel>], iteration_bounds = array<i64: 2, 1, 1>, scalar_prefetch = 0 : i64, scratch_operands = 0 : i64, tpu.core_type = #tpu.core_type<tc>, window_params = [{transform_indices = @transform_0, window_bounds = array<i64: 1, 16, 2304>}, {transform_indices = @transform_1, window_bounds = array<i64: 2304, 256>}, {transform_indices = @transform_2, window_bounds = array<i64: 1, 256>}, {transform_indices = @transform_3, window_bounds = array<i64: 1, 16, 256>}]} {
    %c0 = arith.constant 0 : index
    %c0_0 = arith.constant 0 : index
    %c0_1 = arith.constant 0 : index
    %0 = vector.load %arg3[%c0, %c0_0, %c0_1] : memref<1x16x2304xbf16, #tpu.memory_space<vmem>>, vector<1x16x2304xbf16>
    %1 = vector.shape_cast %0 : vector<1x16x2304xbf16> to vector<16x2304xbf16>
    %c0_2 = arith.constant 0 : index
    %c0_3 = arith.constant 0 : index
    %2 = vector.load %arg4[%c0_2, %c0_3] : memref<2304x256xbf16, #tpu.memory_space<vmem>>, vector<2304x256xbf16>
    %cst = arith.constant dense<0.000000e+00> : vector<16x256xf32>
    %3 = tpu.matmul %1, %2, %cst {dimension_numbers = #tpu.dot_dimension_numbers<[1], [0], [0], [1], [0, 0, 1, 1], [], []>} : vector<16x2304xbf16>, vector<2304x256xbf16>, vector<16x256xf32> -> vector<16x256xf32>
    %c0_4 = arith.constant 0 : index
    %c0_5 = arith.constant 0 : index
    %4 = vector.load %arg5[%c0_4, %c0_5] : memref<1x256xf32, #tpu.memory_space<vmem>>, vector<1x256xf32>
    %5 = vector.broadcast %4 : vector<1x256xf32> to vector<16x256xf32>
    %6 = arith.addf %3, %5 : vector<16x256xf32>
    %cst_6 = arith.constant 0.000000e+00 : f32
    %7 = vector.broadcast %cst_6 : f32 to vector<16x256xf32>
    %8 = arith.maximumf %6, %7 : vector<16x256xf32>
    %9 = arith.truncf %8 : vector<16x256xf32> to vector<16x256xbf16>
    %c0_7 = arith.constant 0 : index
    %c0_8 = arith.constant 0 : index
    %c0_9 = arith.constant 0 : index
    %10 = vector.load %arg6[%c0_7, %c0_8, %c0_9] : memref<1x16x256xbf16, #tpu.memory_space<vmem>>, vector<1x16x256xbf16>
    %11 = vector.shape_cast %10 : vector<1x16x256xbf16> to vector<16x256xbf16>
    %12 = vector.shape_cast %9 : vector<16x256xbf16> to vector<1x16x256xbf16>
    tpu.vector_store %arg6[%c0_7, %c0_8, %c0_9], %12 {strides = array<i32>} : memref<1x16x256xbf16, #tpu.memory_space<vmem>>, vector<1x16x256xbf16>,
    return
  }
  func.func @transform_0(%arg0: i32, %arg1: i32, %arg2: i32) -> (i32, i32, i32) {
    %c0_i32 = arith.constant 0 : i32
    %c0_i32_0 = arith.constant 0 : i32
    return %arg0, %arg2, %c0_i32 : i32, i32, i32
  }
  func.func @transform_1(%arg0: i32, %arg1: i32, %arg2: i32) -> (i32, i32) {
    %c0_i32 = arith.constant 0 : i32
    %c0_i32_0 = arith.constant 0 : i32
    return %c0_i32, %arg1 : i32, i32
  }
  func.func @transform_2(%arg0: i32, %arg1: i32, %arg2: i32) -> (i32, i32) {
    %c0_i32 = arith.constant 0 : i32
    %c0_i32_0 = arith.constant 0 : i32
    return %c0_i32, %arg1 : i32, i32
  }
  func.func @transform_3(%arg0: i32, %arg1: i32, %arg2: i32) -> (i32, i32, i32) {
    %c0_i32 = arith.constant 0 : i32
    return %arg0, %arg2, %arg1 : i32, i32, i32
  }
}

module attributes {stable_mosaic.version = 11 : i64} {
  func.func @_conv_gemm_kernel(%arg0: i32, %arg1: i32, %arg2: i32, %arg3: memref<1x16x2304xbf16, #tpu.memory_space<vmem>>, %arg4: memref<2304x256xbf16, #tpu.memory_space<vmem>>, %arg5: memref<1x256xf32, #tpu.memory_space<vmem>>, %arg6: memref<1x16x256xf32, #tpu.memory_space<vmem>>) attributes {dimension_semantics = [#tpu.dimension_semantics<parallel>, #tpu.dimension_semantics<parallel>, #tpu.dimension_semantics<parallel>], iteration_bounds = array<i64: 2, 1, 1>, scalar_prefetch = 0 : i64, scratch_operands = 0 : i64, tpu.core_type = #tpu.core_type<tc>, window_params = [{transform_indices = @transform_0, window_bounds = array<i64: 1, 16, 2304>}, {transform_indices = @transform_1, window_bounds = array<i64: 2304, 256>}, {transform_indices = @transform_2, window_bounds = array<i64: 1, 256>}, {transform_indices = @transform_3, window_bounds = array<i64: 1, 16, 256>}]} {
    %c0 = arith.constant 0 : index
    %c0_0 = arith.constant 0 : index
    %c0_1 = arith.constant 0 : index
    %0 = vector.load %arg3[%c0, %c0_0, %c0_1] : memref<1x16x2304xbf16, #tpu.memory_space<vmem>>, vector<1x16x2304xbf16>
    %1 = vector.shape_cast %0 : vector<1x16x2304xbf16> to vector<16x2304xbf16>
    %c0_2 = arith.constant 0 : index
    %c0_3 = arith.constant 0 : index
    %2 = vector.load %arg4[%c0_2, %c0_3] : memref<2304x256xbf16, #tpu.memory_space<vmem>>, vector<2304x256xbf16>
    %cst = arith.constant dense<0.000000e+00> : vector<16x256xf32>
    %3 = tpu.matmul %1, %2, %cst {dimension_numbers = #tpu.dot_dimension_numbers<[1], [0], [0], [1], [0, 0, 1, 1], [], []>} : vector<16x2304xbf16>, vector<2304x256xbf16>, vector<16x256xf32> -> vector<16x256xf32>
    %c0_4 = arith.constant 0 : index
    %c0_5 = arith.constant 0 : index
    %4 = vector.load %arg5[%c0_4, %c0_5] : memref<1x256xf32, #tpu.memory_space<vmem>>, vector<1x256xf32>
    %5 = vector.broadcast %4 : vector<1x256xf32> to vector<16x256xf32>
    %6 = arith.addf %3, %5 : vector<16x256xf32>
    %cst_6 = arith.constant 0.000000e+00 : f32
    %7 = vector.broadcast %cst_6 : f32 to vector<16x256xf32>
    %8 = arith.maximumf %6, %7 : vector<16x256xf32>
    %c0_7 = arith.constant 0 : index
    %c0_8 = arith.constant 0 : index
    %c0_9 = arith.constant 0 : index
    %9 = vector.load %arg6[%c0_7, %c0_8, %c0_9] : memref<1x16x256xf32, #tpu.memory_space<vmem>>, vector<1x16x256xf32>
    %10 = vector.shape_cast %9 : vector<1x16x256xf32> to vector<16x256xf32>
    %11 = vector.shape_cast %8 : vector<16x256xf32> to vector<1x16x256xf32>
    tpu.vector_store %arg6[%c0_7, %c0_8, %c0_9], %11 {strides = array<i32>} : memref<1x16x256xf32, #tpu.memory_space<vmem>>, vector<1x16x256xf32>,
    return
  }
  func.func @transform_0(%arg0: i32, %arg1: i32, %arg2: i32) -> (i32, i32, i32) {
    %c0_i32 = arith.constant 0 : i32
    %c0_i32_0 = arith.constant 0 : i32
    return %arg0, %arg2, %c0_i32 : i32, i32, i32
  }
  func.func @transform_1(%arg0: i32, %arg1: i32, %arg2: i32) -> (i32, i32) {
    %c0_i32 = arith.constant 0 : i32
    %c0_i32_0 = arith.constant 0 : i32
    return %c0_i32, %arg1 : i32, i32
  }
  func.func @transform_2(%arg0: i32, %arg1: i32, %arg2: i32) -> (i32, i32) {
    %c0_i32 = arith.constant 0 : i32
    %c0_i32_0 = arith.constant 0 : i32
    return %c0_i32, %arg1 : i32, i32
  }
  func.func @transform_3(%arg0: i32, %arg1: i32, %arg2: i32) -> (i32, i32, i32) {
    %c0_i32 = arith.constant 0 : i32
    return %arg0, %arg2, %arg1 : i32, i32, i32
  }
}

</mosaic_0001>

<bundles_post_ra>
// kernel: vgg19_forward.11
= control target key start
LH: loop header
LB: loop body
LE: loop exit
PB: predicated region body
PF: predicated region fallthrough
CT: control target
= control target key end

     0   :  { %s247_s25 = smov 64   ;;  %vm169_vm0 = vcmask 519168   ;;  %s490_s0 = inlined_call_operand.vmem [shape: f32[16,2,8,128], index: 0, kind: input, shape index: {}]   ;;  %s491_s1 = inlined_call_operand.vmem [shape: bf16[16,8,64], index: 1, kind: output, shape index: {}]  }
   0x1   :  { %v12_v0 = vld [vmem:[%s490_s0 + $0x40] sm:$0xff]  ;;  %v13_v1 = vld [vmem:[%s490_s0 + $0x50] sm:$0xff]  ;;  %v194_v2 = vld [vmem:[%s490_s0 + $0x48] sm:$0xff] }
   0x2   :  { %v195_v3 = vld [vmem:[%s490_s0 + $0x58] sm:$0xff]  ;;  %v45_v4 = vmax.f32 %v12_v0, %v194_v2  ;;  %v8_v5 = vld [vmem:[%s490_s0] sm:$0xff]  ;;  %v9_v6 = vld [vmem:[%s490_s0 + $0x10] sm:$0xff] }
   0x3   :  { %v46_v7 = vmax.f32 %v13_v1, %v195_v3  ;;  %v190_v8 = vld [vmem:[%s490_s0 + $0x8] sm:$0xff]  ;;  %v191_v9 = vld [vmem:[%s490_s0 + $0x18] sm:$0xff]  ;;  %v14_v10 = vld [vmem:[%s490_s0 + $0x60] sm:$0xff] }
   0x4   :  { %v285_v11 = vmax.f32 %v45_v4, 0.0  ;;  %v41_v12 = vmax.f32 %v8_v5, %v190_v8  ;;  %v42_v13 = vmax.f32 %v9_v6, %v191_v9  ;;  %v15_v14 = vld [vmem:[%s490_s0 + $0x70] sm:$0xff]  ;;  %v196_v15 = vld [vmem:[%s490_s0 + $0x68] sm:$0xff]  ;;  %v197_v16 = vld [vmem:[%s490_s0 + $0x78] sm:$0xff] }
   0x5   :  { %v296_v17 = vmax.f32 %v46_v7, 0.0  ;;  %v47_v18 = vmax.f32 %v14_v10, %v196_v15  ;;  %v48_v19 = vmax.f32 %v15_v14, %v197_v16  ;;  %v10_v20 = vld [vmem:[%s490_s0 + $0x20] sm:$0xff]  ;;  %v11_v21 = vld [vmem:[%s490_s0 + $0x30] sm:$0xff]  ;;  %v192_v22 = vld [vmem:[%s490_s0 + $0x28] sm:$0xff] }
   0x6   :  { %v307_v23 = vmax.f32 %v41_v12, 0.0  ;;  %v309_v24 = vmax.f32 %v42_v13, 0.0  ;;  %v193_v25 = vld [vmem:[%s490_s0 + $0x38] sm:$0xff]  ;;  %v43_v26 = vmax.f32 %v10_v20, %v192_v22  ;;  %v18_v27 = vld [vmem:[%s490_s0 + $0xa0] sm:$0xff]  ;;  %v19_v28 = vld [vmem:[%s490_s0 + $0xb0] sm:$0xff] }
   0x7   :  { %v217_v29 = vpack.i.bf16 %v296_v17, %v285_v11  ;;  %v322_v30 = vmax.f32 %v47_v18, 0.0  ;;  %v324_v31 = vmax.f32 %v48_v19, 0.0  ;;  %v44_v32 = vmax.f32 %v11_v21, %v193_v25  ;;  %v200_v33 = vld [vmem:[%s490_s0 + $0xa8] sm:$0xff]  ;;  %v201_v34 = vld [vmem:[%s490_s0 + $0xb8] sm:$0xff]  ;;  %v16_v35 = vld [vmem:[%s490_s0 + $0x80] sm:$0xff] }
   0x8   :  { %v207_v36 = vpack.i.bf16 %v309_v24, %v307_v23  ;;  %v337_v37 = vmax.f32 %v43_v26, 0.0  ;;  %v51_v38 = vmax.f32 %v18_v27, %v200_v33  ;;  %v52_v39 = vmax.f32 %v19_v28, %v201_v34  ;;  %v17_v40 = vld [vmem:[%s490_s0 + $0x90] sm:$0xff]  ;;  %v198_v41 = vld [vmem:[%s490_s0 + $0x88] sm:$0xff]  ;;  %v199_v42 = vld [vmem:[%s490_s0 + $0x98] sm:$0xff] }
   0x9   :  { %218 = vrot.lane.b32.xlu1 %v217_v29, %s247_s25  ;;  %v222_v43 = vpack.i.bf16 %v324_v31, %v322_v30  ;;  %v351_v44 = vmax.f32 %v44_v32, 0.0  ;;  %v49_v45 = vmax.f32 %v16_v35, %v198_v41  ;;  %v50_v46 = vmax.f32 %v17_v40, %v199_v42  ;;  %v22_v47 = vld [vmem:[%s490_s0 + $0xe0] sm:$0xff]  ;;  %v23_v48 = vld [vmem:[%s490_s0 + $0xf0] sm:$0xff]  ;;  %v204_v49 = vld [vmem:[%s490_s0 + $0xe8] sm:$0xff] }
   0xa   :  { %208 = vrot.lane.b32.xlu0 %v207_v36, %s247_s25  ;;  %v363_v50 = vmax.f32 %v51_v38, 0.0  ;;  %v365_v51 = vmax.f32 %v52_v39, 0.0  ;;  %v205_v52 = vld [vmem:[%s490_s0 + $0xf8] sm:$0xff]  ;;  %v55_v53 = vmax.f32 %v22_v47, %v204_v49  ;;  %v20_v54 = vld [vmem:[%s490_s0 + $0xc0] sm:$0xff]  ;;  %v21_v55 = vld [vmem:[%s490_s0 + $0xd0] sm:$0xff] }
   0xb   :  { %v212_v56 = vpack.i.bf16 %v351_v44, %v337_v37  ;;  %v378_v57 = vmax.f32 %v49_v45, 0.0  ;;  %v380_v58 = vmax.f32 %v50_v46, 0.0  ;;  %v56_v59 = vmax.f32 %v23_v48, %v205_v52  ;;  %v202_v60 = vld [vmem:[%s490_s0 + $0xc8] sm:$0xff]  ;;  %v203_v61 = vld [vmem:[%s490_s0 + $0xd8] sm:$0xff] }
   0xc   :  { %v53_v62 = vmax.f32 %v20_v54, %v202_v60  ;;  %v54_v63 = vmax.f32 %v21_v55, %v203_v61  ;;  %v232_v0 = vpack.i.bf16 %v365_v51, %v363_v50  ;;  %v391_v1 = vmax.f32 %v55_v53, 0.0 }
   0xd   :  { %223 = vrot.lane.b32.xlu1 %v222_v43, %s247_s25  ;;  %v393_v2 = vmax.f32 %v56_v59, 0.0  ;;  %v227_v3 = vpack.i.bf16 %v380_v58, %v378_v57 }
   0xe   :  { %213 = vrot.lane.b32.xlu0 %v212_v56, %s247_s25  ;;  %v398_v4 = vmax.f32 %v53_v62, 0.0  ;;  %v400_v5 = vmax.f32 %v54_v63, 0.0 }
   0xf   :  { %v242_v6 = vpack.i.bf16 %v393_v2, %v391_v1 }
  0x10   :  { %v237_v7 = vpack.i.bf16 %v400_v5, %v398_v4 }
  0x11   :  { %233 = vrot.lane.b32.xlu1 %v232_v0, %s247_s25 }
  0x12   :  { %228 = vrot.lane.b32.xlu0 %v227_v3, %s247_s25 }
  0x15   :  { %243 = vrot.lane.b32.xlu1 %v242_v6, %s247_s25 }
  0x16   :  { %238 = vrot.lane.b32.xlu0 %v237_v7, %s247_s25 }
  0x7b   :  { %v219_v8 = vpop.permute.xlu1 %218 }
  0x7c   :  { %v221_v9 = vunpack.i.h.bf16 %v219_v8  ;;  %v220_v10 = vunpack.i.l.bf16 %v219_v8  ;;  %v209_v12 = vpop.permute.xlu0 %208 }
  0x7d   :  { %v211_v13 = vunpack.i.h.bf16 %v209_v12  ;;  %v210_v14 = vunpack.i.l.bf16 %v209_v12 }
  0x7e   :  { %v142_v15 = vmax.f32 %v296_v17, %v221_v9  ;;  %v141_v16 = vmax.f32 %v285_v11, %v220_v10 }
  0x7f   :  { %v138_v18 = vmax.f32 %v309_v24, %v211_v13  ;;  %v137_v19 = vmax.f32 %v307_v23, %v210_v14  ;;  %v224_v20 = vpop.permute.xlu1 %223 }
  0x80   :  { %v158_v21 = vpack.c.bf16 %v142_v15, %v142_v15  ;;  %v157_v22 = vpack.c.bf16 %v141_v16, %v141_v16  ;;  %v226_v25 = vunpack.i.h.bf16 %v224_v20  ;;  %v225_v26 = vunpack.i.l.bf16 %v224_v20  ;;  %v214_v27 = vpop.permute.xlu0 %213 }
  0x81   :  { %v154_v28 = vpack.c.bf16 %v138_v18, %v138_v18  ;;  %v153_v29 = vpack.c.bf16 %v137_v19, %v137_v19  ;;  %v216_v32 = vunpack.i.h.bf16 %v214_v27  ;;  %v215_v33 = vunpack.i.l.bf16 %v214_v27 }
  0x82   :  { %175 = vst.msk [vmem:[%s491_s1 + $0x14] sm:$0xf] %vm169_vm0, %v158_v21  ;;  %174 = vst.msk [vmem:[%s491_s1 + $0x10] sm:$0xf] %vm169_vm0, %v157_v22  ;;  %v144_v11 = vmax.f32 %v324_v31, %v226_v25  ;;  %v143_v17 = vmax.f32 %v322_v30, %v225_v26 }
  0x83   :  { %171 = vst.msk [vmem:[%s491_s1 + $0x4] sm:$0xf] %vm169_vm0, %v154_v28  ;;  %170 = vst.msk [vmem:[%s491_s1] sm:$0xf] %vm169_vm0, %v153_v29  ;;  %v140_v23 = vmax.f32 %v351_v44, %v216_v32  ;;  %v139_v24 = vmax.f32 %v337_v37, %v215_v33  ;;  %v234_v34 = vpop.permute.xlu1 %233 }
  0x84   :  { %v160_v35 = vpack.c.bf16 %v144_v11, %v144_v11  ;;  %v159_v36 = vpack.c.bf16 %v143_v17, %v143_v17  ;;  %v236_v31 = vunpack.i.h.bf16 %v234_v34  ;;  %v235_v38 = vunpack.i.l.bf16 %v234_v34  ;;  %v229_v30 = vpop.permute.xlu0 %228 }
  0x85   :  { %v156_v39 = vpack.c.bf16 %v140_v23, %v140_v23  ;;  %v155_v40 = vpack.c.bf16 %v139_v24, %v139_v24  ;;  %v231_v41 = vunpack.i.h.bf16 %v229_v30  ;;  %v230_v42 = vunpack.i.l.bf16 %v229_v30 }
  0x86   :  { %177 = vst.msk [vmem:[%s491_s1 + $0x1c] sm:$0xf] %vm169_vm0, %v160_v35  ;;  %176 = vst.msk [vmem:[%s491_s1 + $0x18] sm:$0xf] %vm169_vm0, %v159_v36  ;;  %v148_v37 = vmax.f32 %v365_v51, %v236_v31  ;;  %v147_v43 = vmax.f32 %v363_v50, %v235_v38 }
  0x87   :  { %173 = vst.msk [vmem:[%s491_s1 + $0xc] sm:$0xf] %vm169_vm0, %v156_v39  ;;  %172 = vst.msk [vmem:[%s491_s1 + $0x8] sm:$0xf] %vm169_vm0, %v155_v40  ;;  %v146_v44 = vmax.f32 %v380_v58, %v231_v41  ;;  %v145_v45 = vmax.f32 %v378_v57, %v230_v42  ;;  %v244_v46 = vpop.permute.xlu1 %243 }
  0x88   :  { %v164_v47 = vpack.c.bf16 %v148_v37, %v148_v37  ;;  %v163_v48 = vpack.c.bf16 %v147_v43, %v147_v43  ;;  %v246_v49 = vunpack.i.h.bf16 %v244_v46  ;;  %v245_v51 = vunpack.i.l.bf16 %v244_v46  ;;  %v239_v50 = vpop.permute.xlu0 %238 }
  0x89   :  { %v162_v52 = vpack.c.bf16 %v146_v44, %v146_v44  ;;  %v161_v53 = vpack.c.bf16 %v145_v45, %v145_v45  ;;  %v241_v54 = vunpack.i.h.bf16 %v239_v50  ;;  %v240_v55 = vunpack.i.l.bf16 %v239_v50 }
  0x8a   :  { %181 = vst.msk [vmem:[%s491_s1 + $0x2c] sm:$0xf] %vm169_vm0, %v164_v47  ;;  %180 = vst.msk [vmem:[%s491_s1 + $0x28] sm:$0xf] %vm169_vm0, %v163_v48  ;;  %v152_v56 = vmax.f32 %v393_v2, %v246_v49  ;;  %v151_v57 = vmax.f32 %v391_v1, %v245_v51 }
  0x8b   :  { %179 = vst.msk [vmem:[%s491_s1 + $0x24] sm:$0xf] %vm169_vm0, %v162_v52  ;;  %178 = vst.msk [vmem:[%s491_s1 + $0x20] sm:$0xf] %vm169_vm0, %v161_v53  ;;  %v150_v58 = vmax.f32 %v400_v5, %v241_v54  ;;  %v149_v59 = vmax.f32 %v398_v4, %v240_v55 }
  0x8c   :  { %v168_v60 = vpack.c.bf16 %v152_v56, %v152_v56  ;;  %v167_v61 = vpack.c.bf16 %v151_v57, %v151_v57 }
  0x8d   :  { %v166_v62 = vpack.c.bf16 %v150_v58, %v150_v58  ;;  %v165_v63 = vpack.c.bf16 %v149_v59, %v149_v59 }
  0x8e   :  { %185 = vst.msk [vmem:[%s491_s1 + $0x3c] sm:$0xf] %vm169_vm0, %v168_v60  ;;  %184 = vst.msk [vmem:[%s491_s1 + $0x38] sm:$0xf] %vm169_vm0, %v167_v61 }
  0x8f   :  { %183 = vst.msk [vmem:[%s491_s1 + $0x34] sm:$0xf] %vm169_vm0, %v166_v62  ;;  %182 = vst.msk [vmem:[%s491_s1 + $0x30] sm:$0xf] %vm169_vm0, %v165_v63 }

// kernel: vgg19_forward.9
= control target key start
LH: loop header
LB: loop body
LE: loop exit
PB: predicated region body
PF: predicated region fallthrough
CT: control target
= control target key end

     0   :  { %8 = vsyncpa [#allocation3], 0  ;;  %s3735_s12 = smov 0   ;;  %s3737_s13 = smov 0   ;;  %s4887_s0 = inlined_call_operand.vmem [shape: bf16[2,18,18,8], index: 0, kind: input, shape index: {}]   ;;  %s4888_s1 = inlined_call_operand.vmem [shape: bf16[9,8,64], index: 1, kind: input, shape index: {}]   ;;  %s4889_s2 = inlined_call_operand.hbm [shape: f32[1,64], index: 2, kind: input, shape index: {}]   ;;  %s4890_s3 = inlined_call_operand.vmem [shape: bf16[2,256,64], index: 3, kind: output, shape index: {}]  }
   0x1   :  { %s3739_s14 = smov 0   ;;  %s3741_s15 = smov 0  }
   0x2   :  { %s3743_s16 = smov 0  }
   0x3 LB: > { %s2888_s17 = sadd.s32 4294967295, %s3712_s16   ;;  %s26_s18 = sadd.s32 1, %s3704_s14  ;;  %s3712_s16 = sphi %s3743_s16, %s14_s16   ;;  %s3708_s15 = sphi %s3741_s15, %s5002_s15   ;;  %s3704_s14 = sphi %s3739_s14, %s5001_s14   ;;  %s3700_s13 = sphi %s3737_s13, %s5000_s13   ;;  %s3696_s12 = sphi %s3735_s12, %s4999_s12  }
   0x4   : > { %p27_p0 = scmp.ge.s32.totalorder %s26_s18, 2  ;;  %s33_s19 = sadd.s32 1, %s3708_s15 }
   0x5   : > { %p2890_p1 = scmp.ge.s32.totalorder %s3712_s16, 1  ;;  %p146_p2 = scmp.lt.s32.totalorder %s3712_s16, 5 }
   0x6   : > { %s5004_s18 = smov (%p27_p0, %s26_s18), 0  ;;  %s5006_s19 = smov (!%p27_p0, %s33_s19), %s3708_s15 }
   0x7   : > { %p3768_p3 = pnand %p2890_p1, %p146_p2  ;;  %p35_p4 = scmp.ge.s32.totalorder %s5006_s19, 2 }
   0x8   : > { %p3772_p5 = scmp.eq.s32.totalorder %s2888_s17, 0  ;;  %s3714_s22 = smov [#allocation2]  }
   0x9   : > { %s4921_s20 = scalar_select %p3768_p3, 1, 0 }
   0xa   : > { %s4922_s21 = scalar_select %p3772_p5, 1, 0 }
   0xb   : > { %p3571_p6 = pneg %p3768_p3  ;;  %s5008_s19 = smov (%p35_p4, %s5006_s19), 0 }
   0xc   : > { %s168_s23 = sshll.u32 %s3714_s22, 4  ;;  %s3642_s27 = scalar_lea.hbm %s4889_s2, 16  ;;  %s169_s23 = int_to_ptr.vmem [resolvable:$true] %s168_s23 }
   0xd   : > { %p3782_p7 = pnand %p3772_p5, %p3571_p6  ;;  %p3643_p8 = scmp.ne.s32.totalorder %s4889_s2, %s3642_s27 }
   0xe   : > { %p3649_p12 = scmp.lt.u32.totalorder %s3642_s27, %s4889_s2 }
   0xf   : > { %p3644_p9 = pneg %p3782_p7 }
  0x11   : > { %p3645_p10 = pnand %p3644_p9, %p3643_p8 }
  0x13   : > { %p3646_p11 = pneg %p3645_p10 }
  0x15   : > { %p3651_p13 = pnand %p3649_p12, %p3646_p11 }
  0x17   : > { %3654 = shalt.err (!%p3651_p13)
}
  0x18   : > { %s3655_s5 = scalar_lea.vmem %s169_s23, 16  ;;  %s3662_s6 = scalar_lea.vmem %s169_s23, 32 }
  0x19   : > { %p3656_p0 = scmp.ne.s32.totalorder %s169_s23, %s3655_s5  ;;  %p3663_p4 = scmp.lt.s32.totalorder %s169_s23, %s169_s23 }
  0x1a   : > { %p3664_p6 = scmp.lt.s32.totalorder %s3662_s6, %s3655_s5 }
  0x1b   : > { %p3658_p1 = pnand %p3656_p0, %p3644_p9 }
  0x1c   : > { %p3665_p5 = por %p3664_p6, %p3663_p4 }
  0x1d   : > { %p3659_p2 = pneg %p3658_p1 }
  0x1f   : > { %p3666_p3 = pnand %p3665_p5, %p3659_p2 }
  0x21   : > { %3669 = shalt.err (!%p3666_p3)
}
  0x22   : > { %3574 = dma.hbm_to_vmem [thread:$0]  (!%p3782_p7), %s4889_s2, 16, %s169_s23, [#allocation3]  }
  0x23   : > { %p4924_p8 = scmp.ne.s32.totalorder %s4921_s20, 0 }
  0x25   : > { %189 = sbr.rel (%p4924_p8) target bundleno = 439 (0x1b7), region = 32 }
  0x2c   : > { %p4925_p10 = scmp.ne.s32.totalorder %s4922_s21, 0 }
  0x2e   : > { %3691 = dma.done.wait (%p4925_p10), [#allocation3], 16  }
  0x2f   : > { %3693 = vsyncadd (%p4925_p10), [#allocation3], 4294967280  ;;  %p224_p5 = scmp.lt.s32.totalorder %s3700_s13, 1  ;;  %s3150_s9 = smul.u32 96, %s3696_s12  ;;  %vm348_vm0 = vcmask 1043456   ;;  %vm323_vm1 = vcmask 64512  }
  0x30   : > { %v282_v0 = vld [vmem:[%s4888_s1] sm:$0xf]  ;;  %v3825_v1 = vld [vmem:[%s4888_s1 + $0x10] sm:$0xf]  ;;  %v2920_v2 = vld [vmem:[%s4888_s1 + $0x4] sm:$0xf] }
  0x31   : > { %s5010_s13 = smov (!%p224_p5, %s3700_s13), 1  ;;  %3556 = vmatprep.subr.msk.bf16.mxu1 %vm348_vm0, %v282_v0  ;;  %v350_v3 = vsel %vm348_vm0, %v282_v0, 0  ;;  %3560 = vmatprep.subr.msk.bf16.mxu0 %vm348_vm0, %v3825_v1  ;;  %v3842_v6 = vsel %vm348_vm0, %v3825_v1, 0  ;;  %vm465_vm2 = vsmask.f32 3328  ;;  %v711_v49 = vsel %vm348_vm0, %v2920_v2, 0 }
  0x32   : > { %s3566_s10 = smul.u32 216, %s5010_s13  ;;  %4926 = vst [vmem:[#allocation5_spill] sm:$0xff] %v3842_v6  ;;  %3249 = vmatpush3.bf16.msra.mxu1 %v350_v3  ;;  %3321 = vmatpush3.bf16.msra.mxu0 %v3842_v6  ;;  %vm466_vm3 = vsmask.f32 7440  ;;  %v3030_v51 = vld [vmem:[%s4888_s1 + $0x14] sm:$0xf] }
  0x33   : > { %3557 = vmatprep.subr.msk.bf16.mxu1 %vm348_vm0, %v2920_v2  ;;  %3562 = vmatprep.subr.msk.bf16.mxu0 %vm348_vm0, %v3030_v51  ;;  %vm3958_vm4 = vmor %vm465_vm2, %vm466_vm3  ;;  %vm834_vm5 = vcmask 1042432   ;;  %vm835_vm6 = vcmask 1046532   ;;  %s2898_s22 = sshll.u32 %s5010_s13, 5  ;;  %vm2735_vm8 = vcmask 519168  }
  0x34   : > { %s228_s20 = scalar_lea.vmem %s4887_s0, %s3566_s10  ;;  %vm4060_vm7 = vmor %vm834_vm5, %vm835_vm6 }
  0x35   : > { %s3820_s21 = scalar_lea.vmem %s228_s20, %s3150_s9  ;;  %s2897_s20 = sshll.u32 %s3696_s12, 4 }
  0x36   : > { %v3833_v4 = vld [vmem:[%s3820_s21] sm:$0xf]  ;;  %v3836_v5 = vld [vmem:[%s3820_s21 + $0x4] sm:$0xf]  ;;  %v3850_v11 = vld [vmem:[%s3820_s21 + $0xc] sm:$0xf] }
  0x37   : > { %v2904_v7 = vcombine.low %v3833_v4, %v3836_v5  ;;  %v469_v8 = vshrl.u32 %v3833_v4, 16  ;;  %v472_v9 = vshll.u32 %v3833_v4, 16  ;;  %v478_v10 = vshll.u32 %v3836_v5, 16  ;;  %v3857_v15 = vld [vmem:[%s3820_s21 + $0x10] sm:$0xf]  ;;  %p236_p3 = scmp.lt.s32.totalorder %s2897_s20, 31 }
  0x38   : > { %v482_v12 = vshrl.u32 %v3836_v5, 16  ;;  %v4895_v14 = vrot.slane %v3836_v5, 5  ;;  %v493_v16 = vshrl.u32 %v3850_v11, 16  ;;  %v2905_v20 = vcombine.low %v3850_v11, %v3857_v15  ;;  %v3867_v21 = vld [vmem:[%s3820_s21 + $0x18] sm:$0xf] }
  0x39   : > { %3250 = vmatprep.mubr.msk.bf16.mxu1 %vm323_vm1, %v2904_v7  ;;  %v471_v17 = vrot.slane %v469_v8, 4  ;;  %v474_v18 = vrot.slane %v472_v9, 5  ;;  %v3862_v19 = vrot.slane %v478_v10, 5  ;;  %v496_v25 = vshll.u32 %v3850_v11, 16  ;;  %v3875_v26 = vld [vmem:[%s3820_s21 + $0x1c] sm:$0xf] }
  0x3a   : > { %v484_v22 = vrot.slane %v482_v12, 4  ;;  %v3871_v23 = vrot.slane %v4895_v14, 4  ;;  %v495_v24 = vrot.slane %v493_v16, 4  ;;  %3251 = vmatmul.mubr.msk.bf16.vlgmr.msra.gmra.mrb[0].mxu1 %vm323_vm1, %v2905_v20  ;;  %v502_v28 = vshll.u32 %v3857_v15, 16  ;;  %v3886_v35 = vld [vmem:[%s3820_s21 + $0x24] sm:$0xf] }
  0x3b   : > { %v475_v27 = vor.u32 %v474_v18, %v471_v17  ;;  %v506_v29 = vshrl.u32 %v3857_v15, 16  ;;  %v498_v32 = vrot.slane %v496_v25, 5  ;;  %v4894_v33 = vrot.slane %v3857_v15, 5  ;;  %v3889_v36 = vld [vmem:[%s3820_s21 + $0x28] sm:$0xf]  ;;  %3267 = vmatpush3.bf16.msra.mxu1 %v711_v49  ;;  %s5012_s20 = smov (!%p236_p3, %s2897_s20), 31 }
  0x3c   : > { %v485_v31 = vor.u32 %v484_v22, %v3862_v19  ;;  %v2906_v34 = vcombine.low %v3867_v21, %v3875_v26  ;;  %v3893_v38 = vrot.slane %v502_v28, 5  ;;  %v3897_v41 = vld [vmem:[%s3820_s21 + $0xc] sm:$0xf]  ;;  %v3907_v45 = vld [vmem:[%s3820_s21 + $0x10] sm:$0xf]  ;;  %v2907_v50 = vcombine.low %v3886_v35, %v3889_v36  ;;  %s242_s23 = sadd.s32 %s2898_s22, %s5012_s20 }
  0x3d   : > { %v3891_v37 = vrot.slane %v475_v27, 4  ;;  %v508_v39 = vrot.slane %v506_v29, 4  ;;  %v499_v43 = vor.u32 %v498_v32, %v495_v24  ;;  %v3903_v44 = vrot.slane %v4894_v33, 4  ;;  %v3910_v46 = vld [vmem:[%s3820_s21 + $0x14] sm:$0x1] }
  0x3e   : > { %v3899_v42 = vrot.slane %v485_v31, 4  ;;  %3254 = vmatprep.mubr.msk.bf16.mxu1 %vm323_vm1, %v2906_v34  ;;  %v3921_v52 = vld [vmem:[%s3820_s21 + $0x18] sm:$0xf]  ;;  %v1270_v58 = vshrl.u32 %v3897_v41, 16  ;;  %v1273_v59 = vshll.u32 %v3897_v41, 16  ;;  %v1279_v60 = vshll.u32 %v3907_v45, 16 }
  0x3f   : > { %v509_v47 = vor.u32 %v508_v39, %v3893_v38  ;;  %v3923_v53 = vrot.slane %v499_v43, 4  ;;  %v3934_v61 = vld [vmem:[%s3820_s21 + $0x1c] sm:$0xf]  ;;  %v1283_v63 = vshrl.u32 %v3907_v45, 16  ;;  %v1289_v0 = vshll.u32 %v3910_v46, 16 }
  0x40   : > { %v3941_v2 = vld [vmem:[%s3820_s21 + $0x20] sm:$0x1]  ;;  %v1294_v3 = vshrl.u32 %v3921_v52, 16  ;;  %v1272_v7 = vrot.slane %v1270_v58, 4  ;;  %v1275_v8 = vrot.slane %v1273_v59, 5  ;;  %v1281_v9 = vrot.slane %v1279_v60, 5 }
  0x41   : > { %v3936_v62 = vrot.slane %v509_v47, 4  ;;  %v1297_v10 = vshll.u32 %v3921_v52, 16  ;;  %v1285_v12 = vrot.slane %v1283_v63, 4  ;;  %v1640_v16 = vrot.slane %v3910_v46, 5  ;;  %v3949_v20 = vld [vmem:[%s3820_s21 + $0x30] sm:$0xf] }
  0x42   : > { %3255 = vmatmul.mubr.msk.bf16.gmra.mrb[4].mxu1 %vm323_vm1, %v2907_v50  ;;  %v1296_v17 = vrot.slane %v1294_v3, 4  ;;  %v1303_v18 = vshll.u32 %v3934_v61, 16  ;;  %v1276_v22 = vor.u32 %v1275_v8, %v1272_v7  ;;  %v1307_v25 = vshrl.u32 %v3934_v61, 16  ;;  %v3954_v28 = vld [vmem:[%s3820_s21 + $0x34] sm:$0xf] }
  0x43   : > { %v1299_v24 = vrot.slane %v1297_v10, 5  ;;  %v1313_v27 = vshll.u32 %v3941_v2, 16  ;;  %v1286_v31 = vor.u32 %v1285_v12, %v1281_v9  ;;  %v1291_v32 = vrot.slane %v1289_v0, 5  ;;  %v3964_v43 = vld [vmem:[%s3820_s21 + $0x3c] sm:$0xf] }
  0x44   : > { %v1305_v34 = vrot.slane %v1303_v18, 5  ;;  %v1644_v39 = vrot.slane %v3934_v61, 5  ;;  %v1277_v47 = vrot.slane %v1276_v22, 4  ;;  %v1309_v50 = vrot.slane %v1307_v25, 4  ;;  %v3968_v59 = vld [vmem:[%s3820_s21 + $0x40] sm:$0xf] }
  0x45   : > { %v1300_v49 = vor.u32 %v1299_v24, %v1296_v17  ;;  %v1647_v58 = vrot.slane %v3941_v2, 5  ;;  %v1287_v60 = vrot.slane %v1286_v31, 4  ;;  %v1315_v63 = vrot.slane %v1313_v27, 5  ;;  %v3977_v17 = vld [vmem:[%s3820_s21 + $0x24] sm:$0xf] }
  0x46   : > { %v1742_v0 = vsel %vm348_vm0, %v3030_v51, 0  ;;  %v2908_v3 = vcombine.low %v3949_v20, %v3954_v28  ;;  %v1282_v7 = vsel %vm3958_vm4, %v1277_v47, %v1281_v9  ;;  %v1310_v10 = vor.u32 %v1309_v50, %v1305_v34  ;;  %v3980_v18 = vld [vmem:[%s3820_s21 + $0x28] sm:$0xf]  ;;  %v3990_v25 = vld [vmem:[%s3820_s21 + $0x2c] sm:$0x1] }
  0x47   : > { %v1301_v8 = vrot.slane %v1300_v49, 4  ;;  %v1292_v22 = vsel %vm3958_vm4, %v1287_v60, %v1291_v32  ;;  %v2909_v9 = vcombine.low %v3964_v43, %v3968_v59  ;;  %v3993_v27 = vld [vmem:[%s3820_s21 + $0x30] sm:$0xf]  ;;  %v3999_v50 = vld [vmem:[%s3820_s21 + $0x34] sm:$0xf]  ;;  %v1321_v30 = vshll.u32 %v3977_v17, 16 }
  0x48   : > { %3258 = vmatprep.mubr.msk.bf16.mxu1 %vm323_vm1, %v2908_v3  ;;  %4929 = vst [vmem:[#allocation6_spill] sm:$0xff] %v3993_v27  ;;  %v3006_v31 = vcombine.low %v1282_v7, %v1292_v22  ;;  %v1311_v47 = vrot.slane %v1310_v10, 4  ;;  %4930 = vst [vmem:[#allocation7_spill] sm:$0xff] %v3999_v50  ;;  %v1318_v3 = vshrl.u32 %v3977_v17, 16  ;;  %v1327_v7 = vshll.u32 %v3980_v18, 16 }
  0x49   : > { %v1306_v32 = vsel %vm3958_vm4, %v1301_v8, %v1305_v34  ;;  %v4007_v22 = vld [vmem:[%s3820_s21 + $0x38] sm:$0x1]  ;;  %v1331_v8 = vshrl.u32 %v3980_v18, 16  ;;  %v1337_v10 = vshll.u32 %v3990_v25, 16  ;;  %v4016_v33 = vld [vmem:[%s3820_s21 + $0x48] sm:$0xf] }
  0x4a   : > { %3259 = vmatmul.mubr.msk.bf16.gmra.mrb[8].mxu1 %vm323_vm1, %v2909_v9  ;;  %3322 = vmatprep.mubr.msk.bf16.mxu0 %vm323_vm1, %v3006_v31  ;;  %v1316_v34 = vsel %vm3958_vm4, %v1311_v47, %v1315_v63  ;;  %v1342_v9 = vshrl.u32 %v3993_v27, 16  ;;  %v1320_v14 = vrot.slane %v1318_v3, 4  ;;  %v1323_v60 = vrot.slane %v1321_v30, 5  ;;  %v4019_v24 = vld [vmem:[%s3820_s21 + $0x4c] sm:$0xf] }
  0x4b   : > { %v3007_v13 = vcombine.low %v1306_v32, %v1316_v34  ;;  %v1329_v49 = vrot.slane %v1327_v7, 5  ;;  %v1333_v31 = vrot.slane %v1331_v8, 4  ;;  %v1345_v47 = vshll.u32 %v3993_v27, 16  ;;  %v3073_v12 = vld [vmem:[%s4888_s1 + $0x18] sm:$0xf] }
  0x4c   : > { %v1344_v63 = vrot.slane %v1342_v9, 4  ;;  %v1324_v32 = vor.u32 %v1323_v60, %v1320_v14  ;;  %v1351_v30 = vshll.u32 %v3999_v50, 16  ;;  %v1355_v3 = vshrl.u32 %v3999_v50, 16  ;;  %v4033_v34 = vld [vmem:[%s4888_s1 + $0x8] sm:$0xf] }
  0x4d   : > { %3323 = vmatmul.mubr.msk.bf16.vlgmr.msra.gmra.mrb[0].mxu0 %vm323_vm1, %v3007_v13  ;;  %v1361_v7 = vshll.u32 %v4007_v22, 16  ;;  %v1334_v8 = vor.u32 %v1333_v31, %v1329_v49  ;;  %v1339_v9 = vrot.slane %v1337_v10, 5  ;;  %v1347_v51 = vrot.slane %v1345_v47, 5  ;;  %v4038_v13 = vld [vmem:[%s3820_s21 + $0x54] sm:$0xf]  ;;  %3558 = vmatprep.subr.msk.bf16.mxu1 %vm348_vm0, %v4033_v34 }
  0x4e   : > { %3339 = vmatpush3.bf16.msra.mxu0 %v1742_v0  ;;  %v2910_v57 = vcombine.low %v4016_v33, %v4019_v24  ;;  %v4041_v14 = vld [vmem:[%s3820_s21 + $0x58] sm:$0xf]  ;;  %v1325_v60 = vrot.slane %v1324_v32, 4  ;;  %v1353_v56 = vrot.slane %v1351_v30, 5  ;;  %v1357_v55 = vrot.slane %v1355_v3, 4 }
  0x4f   : > { %3563 = vmatprep.subr.msk.bf16.mxu0 %vm348_vm0, %v3073_v12  ;;  %v1335_v0 = vrot.slane %v1334_v8, 4  ;;  %v1348_v10 = vor.u32 %v1347_v51, %v1344_v63  ;;  %v1363_v31 = vrot.slane %v1361_v7, 5  ;;  %v2911_v30 = vcombine.low %v4038_v13, %v4041_v14  ;;  %v4817_v7 = vld [vmem:[#allocation2] ss:$0 sm:$0xff] }
  0x50   : > { %3262 = vmatprep.mubr.msk.bf16.mxu1 %vm323_vm1, %v2910_v57  ;;  %v1330_v48 = vsel %vm3958_vm4, %v1325_v60, %v1329_v49  ;;  %v1358_v40 = vor.u32 %v1357_v55, %v1353_v56  ;;  %v3022_v8 = vrot.slane %v3897_v41, 9  ;;  %v1637_v60 = vrot.slane %v3907_v45, 5 }
  0x51   : > { %v1340_v3 = vsel %vm3958_vm4, %v1335_v0, %v1339_v9  ;;  %v1349_v51 = vrot.slane %v1348_v10, 4  ;;  %v4068_v9 = vld [vmem:[%s3820_s21 + $0x8] sm:$0x1]  ;;  %v3023_v10 = vrot.slane %v3921_v52, 9  ;;  %v1646_v57 = vrot.slane %v1644_v39, 4 }
  0x52   : > { %v3008_v55 = vcombine.low %v1330_v48, %v1340_v3  ;;  %v1359_v49 = vrot.slane %v1358_v40, 4  ;;  %3263 = vmatmul.mubr.msk.bf16.gmra.mrb[12].mxu1 %vm323_vm1, %v2911_v30  ;;  %v4076_v63 = vsel %vm348_vm0, %v3073_v12, 0  ;;  %v4079_v40 = vld [vmem:[%s3820_s21 + $0x14] sm:$0x1]  ;;  %v1638_v30 = vsel %vm4060_vm7, %v3022_v8, %v1637_v60 }
  0x53   : > { %v1354_v0 = vsel %vm3958_vm4, %v1349_v51, %v1353_v56  ;;  %v1639_v3 = vrot.slane %v1637_v60, 4  ;;  %v481_v56 = vsel %vm3958_vm4, %v3891_v37, %v3862_v19  ;;  %v1645_v12 = vsel %vm4060_vm7, %v3023_v10, %v1644_v39 }
  0x54   : > { %3326 = vmatprep.mubr.msk.bf16.mxu0 %vm323_vm1, %v3008_v55  ;;  %v1364_v48 = vsel %vm3958_vm4, %v1359_v49, %v1363_v31  ;;  %v1648_v31 = vsel %vm4060_vm7, %v1646_v57, %v1647_v58  ;;  %v488_v55 = vshll.u32 %v4068_v9, 16  ;;  %v505_v19 = vsel %vm3958_vm4, %v3923_v53, %v3893_v38 }
  0x55   : > { %v3009_v51 = vcombine.low %v1354_v0, %v1364_v48  ;;  %v1641_v49 = vsel %vm4060_vm7, %v1639_v3, %v1640_v16  ;;  %v3032_v8 = vcombine.low %v1645_v12, %v1648_v31  ;;  %v512_v37 = vshll.u32 %v4079_v40, 16  ;;  %v4129_v12 = vld [vmem:[%s3820_s21 + $0x20] sm:$0x1] }
  0x56   : > { %v3031_v2 = vcombine.low %v1638_v30, %v1641_v49  ;;  %v490_v39 = vrot.slane %v488_v55, 5  ;;  %v3024_v58 = vrot.slane %v3977_v17, 9  ;;  %v1651_v46 = vrot.slane %v3980_v18, 5 }
  0x57   : > { %3327 = vmatmul.mubr.msk.bf16.gmra.mrb[4].mxu0 %vm323_vm1, %v3009_v51  ;;  %v514_v57 = vrot.slane %v512_v37, 5  ;;  %v1654_v16 = vrot.slane %v3990_v25, 5  ;;  %v3025_v60 = vrot.slane %v3993_v27, 9  ;;  %v1658_v0 = vrot.slane %v3999_v50, 5  ;;  %v4138_v37 = vld [vmem:[%s3820_s21 + $0x2c] sm:$0x1] }
  0x58   : > { %3340 = vmatprep.mubr.msk.bf16.mxu0 %vm323_vm1, %v3031_v2  ;;  %v491_v38 = vsel %vm3958_vm4, %v3899_v42, %v490_v39  ;;  %v1652_v53 = vsel %vm4060_vm7, %v3024_v58, %v1651_v46  ;;  %v1653_v10 = vrot.slane %v1651_v46, 4  ;;  %v1661_v48 = vrot.slane %v4007_v22, 5  ;;  %v4147_v46 = vld [vmem:[%s3820_s21 + $0x3c] sm:$0xf] }
  0x59   : > { %v2921_v30 = vcombine.low %v481_v56, %v491_v38  ;;  %v515_v25 = vsel %vm3958_vm4, %v3936_v62, %v514_v57  ;;  %v4126_v3 = vsel %vm4060_vm7, %v3025_v60, %v1658_v0  ;;  %v1660_v51 = vrot.slane %v1658_v0, 4  ;;  %4936 = vst [vmem:[#allocation8_spill] sm:$0xff] %v4147_v46  ;;  %v4150_v57 = vld [vmem:[%s3820_s21 + $0x40] sm:$0xf] }
  0x5a   : > { %v2922_v42 = vcombine.low %v505_v19, %v515_v25  ;;  %v1655_v31 = vsel %vm4060_vm7, %v1653_v10, %v1654_v16  ;;  %v4933_v22 = vshrl.u32 %v3867_v21, 16  ;;  %v4934_v55 = vshll.u32 %v3867_v21, 16  ;;  %4937 = vst [vmem:[#allocation9_spill] sm:$0xff] %v4150_v57  ;;  %v4163_v10 = vld [vmem:[%s4888_s1 + $0x1c] sm:$0xf] }
  0x5b   : > { %3268 = vmatprep.mubr.msk.bf16.mxu1 %vm323_vm1, %v2921_v30  ;;  %v3033_v62 = vcombine.low %v1652_v53, %v1655_v31  ;;  %v1662_v2 = vsel %vm4060_vm7, %v1660_v51, %v1661_v48  ;;  %v526_v19 = vshll.u32 %v3875_v26, 16  ;;  %v4935_v39 = vshrl.u32 %v3875_v26, 16  ;;  %v4158_v53 = vld [vmem:[%s3820_s21 + $0x44] sm:$0x1] }
  0x5c   : > { %v519_v56 = vrot.slane %v4933_v22, 4  ;;  %v522_v49 = vrot.slane %v4934_v55, 5  ;;  %3269 = vmatmul.mubr.msk.bf16.vlgmr.msra.gmra.mrb[0].mxu1 %vm323_vm1, %v2922_v42  ;;  %v3034_v16 = vcombine.low %v4126_v3, %v1662_v2  ;;  %v536_v0 = vshll.u32 %v4129_v12, 16  ;;  %4938 = vst [vmem:[#allocation10_spill] sm:$0xff] %v4158_v53 }
  0x5d   : > { %v532_v58 = vrot.slane %v4935_v39, 4  ;;  %v944_v38 = vsel %vm348_vm0, %v4033_v34, 0  ;;  %v528_v48 = vrot.slane %v526_v19, 5  ;;  %v4939_v30 = vshrl.u32 %v3886_v35, 16  ;;  %v4173_v34 = vld [vmem:[%s4888_s1 + $0xc] sm:$0xf] }
  0x5e   : > { %v523_v60 = vor.u32 %v522_v49, %v519_v56  ;;  %3285 = vmatpush3.bf16.msra.mxu1 %v944_v38  ;;  %v4940_v3 = vshll.u32 %v3886_v35, 16  ;;  %v550_v42 = vshll.u32 %v3889_v36, 16  ;;  %v538_v22 = vrot.slane %v536_v0, 5 }
  0x5f   : > { %v543_v25 = vrot.slane %v4939_v30, 4  ;;  %3341 = vmatmul.mubr.msk.bf16.vlgmr.msra.gmra.mrb[0].mxu0 %vm323_vm1, %v3032_v8  ;;  %v4941_v56 = vshrl.u32 %v3889_v36, 16  ;;  %v560_v49 = vshll.u32 %v4138_v37, 16  ;;  %3559 = vmatprep.subr.msk.bf16.mxu1 %vm348_vm0, %v4173_v34  ;;  %v533_v2 = vor.u32 %v532_v58, %v528_v48 }
  0x60   : > { %v546_v51 = vrot.slane %v4940_v3, 5  ;;  %v524_v31 = vrot.slane %v523_v60, 4  ;;  %3357 = vmatpush3.bf16.msra.mxu0 %v4076_v63  ;;  %3344 = vmatprep.mubr.msk.bf16.mxu0 %vm323_vm1, %v3033_v62  ;;  %v552_v39 = vrot.slane %v550_v42, 5  ;;  %v3026_v8 = vrot.slane %v4147_v46, 9  ;;  %v4189_v3 = vld [vmem:[%s3820_s21 + $0x48] sm:$0xf] }
  0x61   : > { %v556_v55 = vrot.slane %v4941_v56, 4  ;;  %v562_v0 = vrot.slane %v560_v49, 5  ;;  %v1665_v38 = vrot.slane %v4150_v57, 5  ;;  %v1668_v30 = vrot.slane %v4158_v53, 5  ;;  %4942 = vst [vmem:[#allocation11_spill] sm:$0xff] %v4189_v3  ;;  %3564 = vmatprep.subr.msk.bf16.mxu0 %vm348_vm0, %v4163_v10 }
  0x62   : > { %v547_v19 = vor.u32 %v546_v51, %v543_v25  ;;  %v529_v60 = vsel %vm3958_vm4, %v524_v31, %v528_v48  ;;  %v534_v63 = vrot.slane %v533_v2, 4  ;;  %v4194_v25 = vld [vmem:[%s3820_s21 + $0x4c] sm:$0xf]  ;;  %v1390_v51 = vshrl.u32 %v4189_v3, 16 }
  0x63   : > { %v557_v58 = vor.u32 %v556_v55, %v552_v39  ;;  %4943 = vst [vmem:[#allocation12_spill] sm:$0xff] %v4194_v25  ;;  %v1666_v48 = vsel %vm4060_vm7, %v3026_v8, %v1665_v38  ;;  %v1667_v42 = vrot.slane %v1665_v38, 4  ;;  %v1393_v31 = vshll.u32 %v4189_v3, 16 }
  0x64   : > { %v548_v62 = vrot.slane %v547_v19, 4  ;;  %v1399_v56 = vshll.u32 %v4194_v25, 16  ;;  %v539_v32 = vsel %vm3958_vm4, %v534_v63, %v538_v22  ;;  %v4207_v19 = vld [vmem:[%s3820_s21 + $0x50] sm:$0x1]  ;;  %v4211_v38 = vrot.slane %v1390_v51, 4 }
  0x65   : > { %v558_v2 = vrot.slane %v557_v58, 4  ;;  %v2923_v47 = vcombine.low %v529_v60, %v539_v32  ;;  %v1669_v8 = vsel %vm4060_vm7, %v1667_v42, %v1668_v30  ;;  %v4213_v54 = vrot.slane %v1393_v31, 5  ;;  %v4226_v58 = vld [vmem:[%s3820_s21 + $0x38] sm:$0x1]  ;;  %v4237_v31 = vld [vmem:[%s3820_s21 + $0x44] sm:$0x1] }
  0x66   : > { %v553_v55 = vsel %vm3958_vm4, %v548_v62, %v552_v39  ;;  %4944 = vst [vmem:[#allocation13_spill] sm:$0xff] %v4211_v38  ;;  %v3035_v22 = vcombine.low %v1666_v48, %v1669_v8  ;;  %v4217_v63 = vrot.slane %v1399_v56, 5  ;;  %v1403_v39 = vshrl.u32 %v4194_v25, 16 }
  0x67   : > { %4945 = vst [vmem:[#allocation14_spill] sm:$0xff] %v4213_v54  ;;  %v563_v49 = vsel %vm3958_vm4, %v558_v2, %v562_v0  ;;  %3345 = vmatmul.mubr.msk.bf16.gmra.mrb[4].mxu0 %vm323_vm1, %v3034_v16  ;;  %3272 = vmatprep.mubr.msk.bf16.mxu1 %vm323_vm1, %v2923_v47  ;;  %v3027_v60 = vrot.slane %v4189_v3, 9  ;;  %v1672_v30 = vrot.slane %v4194_v25, 5  ;;  %v1675_v62 = vrot.slane %v4207_v19, 5 }
  0x68   : > { %4946 = vst [vmem:[#allocation15_spill] sm:$0xff] %v4217_v63  ;;  %v2924_v32 = vcombine.low %v553_v55, %v563_v49  ;;  %3348 = vmatprep.mubr.msk.bf16.mxu0 %vm323_vm1, %v3035_v22  ;;  %v4229_v0 = vrot.slane %v1403_v39, 4  ;;  %v4948_v16 = vshrl.u32 %v3949_v20, 16  ;;  %v4949_v48 = vshll.u32 %v3949_v20, 16  ;;  %v4246_v22 = vld [vmem:[%s3820_s21 + $0x54] sm:$0xf] }
  0x69   : > { %v1673_v56 = vsel %vm4060_vm7, %v3027_v60, %v1672_v30  ;;  %v1674_v49 = vrot.slane %v1672_v30, 4  ;;  %v574_v55 = vshll.u32 %v3954_v28, 16  ;;  %v4950_v2 = vshrl.u32 %v3954_v28, 16  ;;  %4951 = vst [vmem:[#allocation17_spill] sm:$0xff] %v4246_v22  ;;  %v4254_v60 = vld [vmem:[%s3820_s21 + $0x58] sm:$0xf] }
  0x6a   : > { %4947 = vst [vmem:[#allocation16_spill] sm:$0xff] %v4229_v0  ;;  %v567_v47 = vrot.slane %v4948_v16, 4  ;;  %v570_v42 = vrot.slane %v4949_v48, 5  ;;  %3273 = vmatmul.mubr.msk.bf16.gmra.mrb[4].mxu1 %vm323_vm1, %v2924_v32  ;;  %v584_v16 = vshll.u32 %v4226_v58, 16  ;;  %v4952_v48 = vshrl.u32 %v3964_v43, 16  ;;  %4954 = vst [vmem:[#allocation18_spill] sm:$0xff] %v4254_v60 }
  0x6b   : > { %v580_v8 = vrot.slane %v4950_v2, 4  ;;  %v4953_v32 = vshll.u32 %v3964_v43, 16  ;;  %v1676_v30 = vsel %vm4060_vm7, %v1674_v49, %v1675_v62  ;;  %v576_v63 = vrot.slane %v574_v55, 5  ;;  %v4270_v49 = vld [vmem:[%s3820_s21 + $0x64] sm:$0xf] }
  0x6c   : > { %v571_v39 = vor.u32 %v570_v42, %v567_v47  ;;  %v591_v51 = vrot.slane %v4952_v48, 4  ;;  %v598_v2 = vshll.u32 %v3968_v59, 16  ;;  %v4955_v54 = vshrl.u32 %v3968_v59, 16  ;;  %v4262_v42 = vld [vmem:[%s3820_s21 + $0x5c] sm:$0x1]  ;;  %4958 = vst [vmem:[#allocation21_spill] sm:$0xff] %v4270_v49 }
  0x6d   : > { %v594_v0 = vrot.slane %v4953_v32, 5  ;;  %4956 = vst [vmem:[#allocation19_spill] sm:$0xff] %v4262_v42  ;;  %v3036_v38 = vcombine.low %v1673_v56, %v1676_v30  ;;  %v586_v53 = vrot.slane %v584_v16, 5  ;;  %v4265_v32 = vld [vmem:[%s3820_s21 + $0x60] sm:$0xf]  ;;  %v581_v25 = vor.u32 %v580_v8, %v576_v63 }
  0x6e   : > { %v604_v47 = vrot.slane %v4955_v54, 4  ;;  %v572_v48 = vrot.slane %v571_v39, 4  ;;  %4957 = vst [vmem:[#allocation20_spill] sm:$0xff] %v4265_v32  ;;  %v600_v6 = vrot.slane %v598_v2, 5  ;;  %v608_v46 = vshll.u32 %v4237_v31, 16 }
  0x6f   : > { %v595_v3 = vor.u32 %v594_v0, %v591_v51  ;;  %v3028_v62 = vrot.slane %v4246_v22, 9  ;;  %v1679_v56 = vrot.slane %v4254_v60, 5  ;;  %v1682_v39 = vrot.slane %v4262_v42, 5  ;;  %v4277_v0 = vld [vmem:[%s3820_s21 + $0x68] sm:$0x1]  ;;  %3349 = vmatmul.mubr.msk.bf16.gmra.mrb[8].mxu0 %vm323_vm1, %v3036_v38 }
  0x70   : > { %v577_v54 = vsel %vm3958_vm4, %v572_v48, %v576_v63  ;;  %4959 = vst [vmem:[#allocation22_spill] sm:$0xff] %v4277_v0  ;;  %v582_v51 = vrot.slane %v581_v25, 4  ;;  %v605_v8 = vor.u32 %v604_v47, %v600_v6  ;;  %v610_v16 = vrot.slane %v608_v46, 5  ;;  %v4290_v38 = vld [vmem:[%s3820_s21 + $0x50] sm:$0x1] }
  0x71   : > { %v596_v55 = vrot.slane %v595_v3, 4  ;;  %v3029_v30 = vrot.slane %v4265_v32, 9  ;;  %v1680_v3 = vsel %vm4060_vm7, %v3028_v62, %v1679_v56  ;;  %v1681_v63 = vrot.slane %v1679_v56, 4 }
  0x72   : > { %v1686_v48 = vrot.slane %v4270_v49, 5  ;;  %v587_v42 = vsel %vm3958_vm4, %v582_v51, %v586_v53  ;;  %v606_v22 = vrot.slane %v605_v8, 4  ;;  %v1689_v25 = vrot.slane %v4277_v0, 5  ;;  %v4304_v49 = vld [vmem:[%s3820_s21 + $0x5c] sm:$0x1] }
  0x73   : > { %v601_v2 = vsel %vm3958_vm4, %v596_v55, %v600_v6  ;;  %v4960_v46 = vshrl.u32 %v4016_v33, 16  ;;  %v2925_v6 = vcombine.low %v577_v54, %v587_v42  ;;  %v1683_v62 = vsel %vm4060_vm7, %v1681_v63, %v1682_v39 }
  0x74   : > { %v1687_v55 = vsel %vm4060_vm7, %v3029_v30, %v1686_v48  ;;  %v1688_v56 = vrot.slane %v1686_v48, 4  ;;  %v611_v53 = vsel %vm3958_vm4, %v606_v22, %v610_v16  ;;  %v3037_v51 = vcombine.low %v1680_v3, %v1683_v62  ;;  %v4313_v22 = vld [vmem:[%s3820_s21 + $0x18] sm:$0xf]  ;;  %v4316_v16 = vld [vmem:[%s3820_s21 + $0x1c] sm:$0xf] }
  0x75   : > { %v615_v47 = vrot.slane %v4960_v46, 4  ;;  %v4961_v8 = vshll.u32 %v4016_v33, 16  ;;  %v622_v32 = vshll.u32 %v4019_v24, 16  ;;  %3276 = vmatprep.mubr.msk.bf16.mxu1 %vm323_vm1, %v2925_v6  ;;  %v2926_v42 = vcombine.low %v601_v2, %v611_v53 }
  0x76   : > { %v1690_v54 = vsel %vm4060_vm7, %v1688_v56, %v1689_v25  ;;  %v4962_v39 = vshrl.u32 %v4019_v24, 16  ;;  %v632_v63 = vshll.u32 %v4290_v38, 16  ;;  %3352 = vmatprep.mubr.msk.bf16.mxu0 %vm323_vm1, %v3037_v51  ;;  %v4963_v2 = vshrl.u32 %v4038_v13, 16 }
  0x77   : > { %v618_v0 = vrot.slane %v4961_v8, 5  ;;  %v3038_v3 = vcombine.low %v1687_v55, %v1690_v54  ;;  %v624_v46 = vrot.slane %v622_v32, 5  ;;  %3277 = vmatmul.mubr.msk.bf16.gmra.mrb[8].mxu1 %vm323_vm1, %v2926_v42  ;;  %v4964_v62 = vshll.u32 %v4038_v13, 16  ;;  %v4335_v42 = vld [vmem:[%s3820_s21 + $0x28] sm:$0xf] }
  0x78   : > { %v628_v30 = vrot.slane %v4962_v39, 4  ;;  %v639_v6 = vrot.slane %v4963_v2, 4  ;;  %v634_v25 = vrot.slane %v632_v63, 5  ;;  %v646_v53 = vshll.u32 %v4041_v14, 16 }
  0x79   : > { %v619_v48 = vor.u32 %v618_v0, %v615_v47  ;;  %v642_v56 = vrot.slane %v4964_v62, 5  ;;  %v4965_v8 = vshrl.u32 %v4041_v14, 16  ;;  %3353 = vmatmul.mubr.msk.bf16.gmra.mrb[12].mxu0 %vm323_vm1, %v3038_v3  ;;  %v656_v32 = vshll.u32 %v4304_v49, 16  ;;  %v4332_v47 = vld [vmem:[%s3820_s21 + $0x24] sm:$0xf] }
  0x7a   : > { %v629_v55 = vor.u32 %v628_v30, %v624_v46  ;;  %v3074_v0 = vcombine.low %v4313_v22, %v4316_v16  ;;  %v4966_v54 = vshll.u32 %v4207_v19, 16  ;;  %v648_v62 = vrot.slane %v646_v53, 5 }
  0x7b   : > { %v652_v39 = vrot.slane %v4965_v8, 4  ;;  %v620_v51 = vrot.slane %v619_v48, 4  ;;  %v643_v2 = vor.u32 %v642_v56, %v639_v6  ;;  %v2068_v3 = vshrl.u32 %v4313_v22, 16  ;;  %v4350_v6 = vld [vmem:[%s3820_s21 + $0x30] sm:$0xf] }
  0x7c   : > { %v4339_v63 = vrot.slane %v4966_v54, 5  ;;  %v630_v48 = vrot.slane %v629_v55, 4  ;;  %v658_v8 = vrot.slane %v656_v32, 5  ;;  %3358 = vmatprep.mubr.msk.bf16.mxu0 %vm323_vm1, %v3074_v0  ;;  %v2071_v60 = vshll.u32 %v4313_v22, 16  ;;  %v4353_v56 = vld [vmem:[%s3820_s21 + $0x34] sm:$0xf] }
  0x7d   : > { %v625_v30 = vsel %vm3958_vm4, %v620_v51, %v624_v46  ;;  %v644_v57 = vrot.slane %v643_v2, 4  ;;  %v653_v27 = vor.u32 %v652_v39, %v648_v62  ;;  %v3075_v19 = vcombine.low %v4332_v47, %v4335_v42 }
  0x7e   : > { %v635_v46 = vsel %vm3958_vm4, %v630_v48, %v634_v25  ;;  %v2092_v53 = vshrl.u32 %v4332_v47, 16  ;;  %v2310_v39 = vsel %vm348_vm0, %v4163_v10, 0  ;;  %v4967_v54 = vrot.slane %v3836_v5, 5 }
  0x7f   : > { %v2927_v55 = vcombine.low %v625_v30, %v635_v46  ;;  %v649_v32 = vsel %vm3958_vm4, %v644_v57, %v648_v62  ;;  %v654_v0 = vrot.slane %v653_v27, 4  ;;  %v4968_v2 = vrot.slane %v3833_v4, 9  ;;  %v4382_v27 = vld [vmem:[%s3820_s21 + $0x3c] sm:$0xf]  ;;  %v4385_v4 = vld [vmem:[%s3820_s21 + $0x40] sm:$0xf] }
  0x80   : > { %v842_v25 = vrot.slane %v4068_v9, 5  ;;  %v4969_v48 = vrot.slane %v3857_v15, 5  ;;  %v4970_v51 = vrot.slane %v3850_v11, 9  ;;  %v849_v57 = vrot.slane %v4079_v40, 5  ;;  %v4396_v62 = vld [vmem:[%s4888_s1 + $0x20] sm:$0xf] }
  0x81   : > { %v840_v50 = vsel %vm4060_vm7, %v4968_v2, %v4967_v54  ;;  %v3076_v5 = vcombine.low %v4350_v6, %v4353_v56  ;;  %3280 = vmatprep.mubr.msk.bf16.mxu1 %vm323_vm1, %v2927_v55  ;;  %v659_v15 = vsel %vm3958_vm4, %v654_v0, %v658_v8  ;;  %v2105_v11 = vshrl.u32 %v4335_v42, 16  ;;  %3359 = vmatmul.mubr.msk.bf16.vlgmr.msra.gmra.mrb[0].mxu0 %vm323_vm1, %v3075_v19  ;;  %v4415_v54 = vld [vmem:[%s3820_s21 + $0x4c] sm:$0xf] }
  0x82   : > { %v4376_v10 = vsel %vm4060_vm7, %v4970_v51, %v4969_v48  ;;  %v2116_v9 = vshrl.u32 %v4350_v6, 16  ;;  %v2119_v40 = vshll.u32 %v4350_v6, 16  ;;  %v2928_v30 = vcombine.low %v649_v32, %v659_v15  ;;  %3375 = vmatpush3.bf16.msra.mxu0 %v2310_v39 }
  0x83   : > { %v843_v8 = vsel %vm4060_vm7, %v3871_v23, %v842_v25  ;;  %v850_v46 = vsel %vm4060_vm7, %v3903_v44, %v849_v57  ;;  %v2129_v51 = vshrl.u32 %v4353_v56, 16  ;;  %3362 = vmatprep.mubr.msk.bf16.mxu0 %vm323_vm1, %v3076_v5  ;;  %v3077_v19 = vcombine.low %v4382_v27, %v4385_v4  ;;  %v4412_v23 = vld [vmem:[%s3820_s21 + $0x48] sm:$0xf]  ;;  %v4423_v25 = vld [vmem:[%s3820_s21 + $0x54] sm:$0xf]  ;;  %3565 = vmatprep.subr.msk.bf16.mxu0 %vm348_vm0, %v4396_v62 }
  0x84   : > { %v2946_v55 = vcombine.low %v840_v50, %v843_v8  ;;  %v2947_v0 = vcombine.low %v4376_v10, %v850_v46  ;;  %v2140_v32 = vshrl.u32 %v4382_v27, 16  ;;  %3281 = vmatmul.mubr.msk.bf16.gmra.mrb[12].mxu1 %vm323_vm1, %v2928_v30  ;;  %v2939_v50 = vrot.slane %v3867_v21, 9 }
  0x85   : > { %v853_v39 = vrot.slane %v3875_v26, 5  ;;  %v856_v2 = vrot.slane %v4129_v12, 5  ;;  %v2940_v10 = vrot.slane %v3886_v35, 9  ;;  %v860_v57 = vrot.slane %v3889_v36, 5  ;;  %v4433_v26 = vld [vmem:[%s3820_s21 + $0x58] sm:$0xf] }
  0x86   : > { %3286 = vmatprep.mubr.msk.bf16.mxu1 %vm323_vm1, %v2946_v55  ;;  %v863_v21 = vrot.slane %v4138_v37, 5  ;;  %v1154_v15 = vsel %vm348_vm0, %v4173_v34, 0  ;;  %v3078_v30 = vcombine.low %v4412_v23, %v4415_v54  ;;  %v3079_v34 = vcombine.low %v4423_v25, %v4433_v26 }
  0x87   : > { %v854_v12 = vsel %vm4060_vm7, %v2939_v50, %v853_v39  ;;  %v855_v5 = vrot.slane %v853_v39, 4  ;;  %v4443_v35 = vsel %vm4060_vm7, %v2940_v10, %v860_v57  ;;  %v862_v36 = vrot.slane %v860_v57, 4  ;;  %v4454_v39 = vld [vmem:[%s3820_s21 + $0x60] sm:$0xf]  ;;  %v4457_v10 = vld [vmem:[%s3820_s21 + $0x64] sm:$0xf] }
  0x88   : > { %v2191_v8 = vshll.u32 %v4423_v25, 16  ;;  %v2201_v55 = vshrl.u32 %v4433_v26, 16  ;;  %v867_v50 = vrot.slane %v3954_v28, 5  ;;  %v870_v48 = vrot.slane %v4226_v58, 5 }
  0x89   : > { %v857_v46 = vsel %vm4060_vm7, %v855_v5, %v856_v2  ;;  %v864_v37 = vsel %vm4060_vm7, %v862_v36, %v863_v21  ;;  %v2941_v2 = vrot.slane %v3949_v20, 9  ;;  %v4464_v5 = vld [vmem:[%s3820_s21 + $0x6c] sm:$0xf]  ;;  %3363 = vmatmul.mubr.msk.bf16.gmra.mrb[4].mxu0 %vm323_vm1, %v3077_v19  ;;  %v2942_v44 = vrot.slane %v3964_v43, 9 }
  0x8a   : > { %v2948_v57 = vcombine.low %v854_v12, %v857_v46  ;;  %v4472_v12 = vld [vmem:[%s3820_s21 + $0x70] sm:$0xf]  ;;  %v2949_v21 = vcombine.low %v4443_v35, %v864_v37  ;;  %3366 = vmatprep.mubr.msk.bf16.mxu0 %vm323_vm1, %v3078_v30  ;;  %v874_v20 = vrot.slane %v3968_v59, 5  ;;  %v877_v36 = vrot.slane %v4237_v31, 5 }
  0x8b   : > { %v3080_v19 = vcombine.low %v4454_v39, %v4457_v10  ;;  %v868_v28 = vsel %vm4060_vm7, %v2941_v2, %v867_v50  ;;  %v869_v58 = vrot.slane %v867_v50, 4  ;;  %v2212_v43 = vshrl.u32 %v4454_v39, 16  ;;  %v4509_v50 = vld [vmem:[%s3820_s21 + $0x20] sm:$0x1] }
  0x8c   : > { %3287 = vmatmul.mubr.msk.bf16.vlgmr.msra.gmra.mrb[0].mxu1 %vm323_vm1, %v2947_v0  ;;  %v2215_v46 = vshll.u32 %v4454_v39, 16  ;;  %v4488_v59 = vsel %vm4060_vm7, %v2942_v44, %v874_v20  ;;  %v876_v31 = vrot.slane %v874_v20, 4  ;;  %v3081_v0 = vcombine.low %v4464_v5, %v4472_v12 }
  0x8d   : > { %3290 = vmatprep.mubr.msk.bf16.mxu1 %vm323_vm1, %v2948_v57  ;;  %3303 = vmatpush3.bf16.msra.mxu1 %v1154_v15  ;;  %v871_v35 = vsel %vm4060_vm7, %v869_v58, %v870_v48  ;;  %v2236_v37 = vshrl.u32 %v4464_v5, 16  ;;  %v2943_v15 = vrot.slane %v4016_v33, 9  ;;  %v2249_v57 = vshrl.u32 %v4472_v12, 16 }
  0x8e   : > { %3561 = vmatprep.subr.msk.bf16.mxu1 %vm348_vm0, %v3825_v1  ;;  %v2950_v44 = vcombine.low %v868_v28, %v871_v35  ;;  %v881_v2 = vrot.slane %v4019_v24, 5  ;;  %v884_v20 = vrot.slane %v4290_v38, 5  ;;  %v878_v30 = vsel %vm4060_vm7, %v876_v31, %v877_v36 }
  0x8f   : > { %v2944_v48 = vrot.slane %v4038_v13, 9  ;;  %v888_v58 = vrot.slane %v4041_v14, 5  ;;  %v891_v33 = vrot.slane %v4304_v49, 5  ;;  %v2070_v24 = vrot.slane %v2068_v3, 4 }
  0x90   : > { %v882_v1 = vsel %vm4060_vm7, %v2943_v15, %v881_v2  ;;  %v883_v28 = vrot.slane %v881_v2, 4  ;;  %v2073_v38 = vrot.slane %v2071_v60, 5  ;;  %v2077_v49 = vshll.u32 %v4316_v16, 16  ;;  %v4530_v15 = vld [vmem:[%s3820_s21 + $0x2c] sm:$0x1] }
  0x91   : > { %3367 = vmatmul.mubr.msk.bf16.gmra.mrb[8].mxu0 %vm323_vm1, %v3079_v34  ;;  %v4520_v13 = vsel %vm4060_vm7, %v2944_v48, %v888_v58  ;;  %v890_v14 = vrot.slane %v888_v58, 4  ;;  %v4971_v36 = vshrl.u32 %v4316_v16, 16  ;;  %v2087_v60 = vshll.u32 %v4509_v50, 16 }
  0x92   : > { %3370 = vmatprep.mubr.msk.bf16.mxu0 %vm323_vm1, %v3080_v19  ;;  %v885_v3 = vsel %vm4060_vm7, %v883_v28, %v884_v20  ;;  %v2074_v35 = vor.u32 %v2073_v38, %v2070_v24  ;;  %v2094_v34 = vrot.slane %v2092_v53, 4  ;;  %v2079_v19 = vrot.slane %v2077_v49, 5 }
  0x93   : > { %v2083_v31 = vrot.slane %v4971_v36, 4  ;;  %v2952_v2 = vcombine.low %v882_v1, %v885_v3  ;;  %v4537_v48 = vsel %vm4060_vm7, %v890_v14, %v891_v33  ;;  %v4972_v58 = vshll.u32 %v4332_v47, 16 }
  0x94   : > { %3291 = vmatmul.mubr.msk.bf16.gmra.mrb[4].mxu1 %vm323_vm1, %v2949_v21  ;;  %v2953_v28 = vcombine.low %v4520_v13, %v4537_v48  ;;  %v2075_v24 = vrot.slane %v2074_v35, 4  ;;  %v2089_v38 = vrot.slane %v2087_v60, 5  ;;  %v2101_v53 = vshll.u32 %v4335_v42, 16  ;;  %v4554_v35 = vld [vmem:[%s3820_s21 + $0x38] sm:$0x1] }
  0x95   : > { %v2097_v20 = vrot.slane %v4972_v58, 5  ;;  %3294 = vmatprep.mubr.msk.bf16.mxu1 %vm323_vm1, %v2950_v44  ;;  %v2084_v21 = vor.u32 %v2083_v31, %v2079_v19  ;;  %v2107_v33 = vrot.slane %v2105_v11, 4  ;;  %v2111_v14 = vshll.u32 %v4530_v15, 16 }
  0x96   : > { %v2951_v49 = vcombine.low %v4488_v59, %v878_v30  ;;  %v2080_v36 = vsel %vm3958_vm4, %v2075_v24, %v2079_v19  ;;  %v2103_v44 = vrot.slane %v2101_v53, 5  ;;  %v2540_v3 = vsel %vm348_vm0, %v4396_v62, 0 }
  0x97   : > { %v2098_v1 = vor.u32 %v2097_v20, %v2094_v34  ;;  %v2085_v60 = vrot.slane %v2084_v21, 4  ;;  %v2113_v31 = vrot.slane %v2111_v14, 5  ;;  %v2989_v11 = vcombine.low %v3897_v41, %v3907_v45 }
  0x98   : > { %v2108_v34 = vor.u32 %v2107_v33, %v2103_v44  ;;  %v2118_v59 = vrot.slane %v2116_v9, 4  ;;  %v2121_v30 = vrot.slane %v2119_v40, 5  ;;  %v2125_v19 = vshll.u32 %v4353_v56, 16  ;;  %v4572_v40 = vld [vmem:[%s3820_s21 + $0x44] sm:$0x1] }
  0x99   : > { %v2099_v58 = vrot.slane %v2098_v1, 4  ;;  %3371 = vmatmul.mubr.msk.bf16.gmra.mrb[12].mxu0 %vm323_vm1, %v3081_v0  ;;  %v2090_v62 = vsel %vm3958_vm4, %v2085_v60, %v2089_v38  ;;  %v2131_v41 = vrot.slane %v2129_v51, 4  ;;  %v2135_v45 = vshll.u32 %v4554_v35, 16 }
  0x9a   : > { %v3091_v24 = vcombine.low %v2080_v36, %v2090_v62  ;;  %v2109_v9 = vrot.slane %v2108_v34, 4  ;;  %v2122_v53 = vor.u32 %v2121_v30, %v2118_v59  ;;  %v2127_v21 = vrot.slane %v2125_v19, 5  ;;  %v4594_v62 = vld [vmem:[%s3820_s21 + $0x50] sm:$0x1] }
  0x9b   : > { %v2104_v20 = vsel %vm3958_vm4, %v2099_v58, %v2103_v44  ;;  %v2137_v0 = vrot.slane %v2135_v45, 5  ;;  %v2142_v38 = vrot.slane %v2140_v32, 4  ;;  %v4973_v1 = vshll.u32 %v4382_v27, 16 }
  0x9c   : > { %3295 = vmatmul.mubr.msk.bf16.gmra.mrb[8].mxu1 %vm323_vm1, %v2951_v49  ;;  %v2149_v51 = vshll.u32 %v4385_v4, 16  ;;  %3376 = vmatprep.mubr.msk.bf16.mxu0 %vm323_vm1, %v3091_v24  ;;  %v2114_v14 = vsel %vm3958_vm4, %v2109_v9, %v2113_v31  ;;  %v2123_v36 = vrot.slane %v2122_v53, 4  ;;  %v2132_v44 = vor.u32 %v2131_v41, %v2127_v21 }
  0x9d   : > { %v2145_v33 = vrot.slane %v4973_v1, 5  ;;  %3298 = vmatprep.mubr.msk.bf16.mxu1 %vm323_vm1, %v2952_v2  ;;  %v4974_v49 = vshrl.u32 %v4385_v4, 16  ;;  %v3092_v58 = vcombine.low %v2104_v20, %v2114_v14  ;;  %v2159_v59 = vshll.u32 %v4572_v40, 16 }
  0x9e   : > { %v2151_v34 = vrot.slane %v2149_v51, 5  ;;  %v2990_v30 = vcombine.low %v3921_v52, %v3934_v61  ;;  %v2128_v2 = vsel %vm3958_vm4, %v2123_v36, %v2127_v21  ;;  %v2133_v19 = vrot.slane %v2132_v44, 4 }
  0x9f   : > { %v2155_v60 = vrot.slane %v4974_v49, 4  ;;  %v2146_v32 = vor.u32 %v2145_v33, %v2142_v38  ;;  %v2991_v31 = vcombine.low %v3977_v17, %v3980_v18  ;;  %v2161_v20 = vrot.slane %v2159_v59, 5  ;;  %v4610_v49 = vld [vmem:[%s3820_s21 + $0x5c] sm:$0x1] }
  0xa0   : > { %v4975_v24 = vshrl.u32 %v4412_v23, 16  ;;  %v2138_v53 = vsel %vm3958_vm4, %v2133_v19, %v2137_v0  ;;  %v4976_v52 = vshll.u32 %v4412_v23, 16  ;;  %v2173_v21 = vshll.u32 %v4415_v54, 16 }
  0xa1   : > { %v2147_v41 = vrot.slane %v2146_v32, 4  ;;  %v2156_v45 = vor.u32 %v2155_v60, %v2151_v34  ;;  %v4977_v38 = vshrl.u32 %v4415_v54, 16  ;;  %3377 = vmatmul.mubr.msk.bf16.vlgmr.msra.gmra.mrb[0].mxu0 %vm323_vm1, %v3092_v58  ;;  %v3093_v33 = vcombine.low %v2128_v2, %v2138_v53  ;;  %v4979_v58 = vld [vmem:[#allocation7_spill] sm:$0xff]  ;;  %v4981_v53 = vld [vmem:[#allocation9_spill] sm:$0xff] }
  0xa2   : > { %v2166_v9 = vrot.slane %v4975_v24, 4  ;;  %v2169_v61 = vrot.slane %v4976_v52, 5  ;;  %v2183_v36 = vshll.u32 %v4594_v62, 16  ;;  %3393 = vmatpush3.bf16.msra.mxu0 %v2540_v3  ;;  %v2175_v0 = vrot.slane %v2173_v21, 5 }
  0xa3   : > { %v2179_v1 = vrot.slane %v4977_v38, 4  ;;  %v2152_v51 = vsel %vm3958_vm4, %v2147_v41, %v2151_v34  ;;  %v2157_v14 = vrot.slane %v2156_v45, 4  ;;  %v4978_v60 = vshrl.u32 %v4423_v25, 16  ;;  %3380 = vmatprep.mubr.msk.bf16.mxu0 %vm323_vm1, %v3093_v33  ;;  %v4980_v34 = vld [vmem:[#allocation6_spill] sm:$0xff] }
  0xa4   : > { %v2170_v44 = vor.u32 %v2169_v61, %v2166_v9  ;;  %v2193_v59 = vrot.slane %v2191_v8, 5  ;;  %3299 = vmatmul.mubr.msk.bf16.gmra.mrb[12].mxu1 %vm323_vm1, %v2953_v28  ;;  %v2992_v2 = vcombine.low %v4980_v34, %v4979_v58  ;;  %v2197_v19 = vshll.u32 %v4433_v26, 16  ;;  %v4633_v61 = vld [vmem:[%s3820_s21 + $0x68] sm:$0x1] }
  0xa5   : > { %v2190_v32 = vrot.slane %v4978_v60, 4  ;;  %v2162_v3 = vsel %vm3958_vm4, %v2157_v14, %v2161_v20  ;;  %v2203_v41 = vrot.slane %v2201_v55, 4  ;;  %3304 = vmatprep.mubr.msk.bf16.mxu1 %vm323_vm1, %v2989_v11  ;;  %v2180_v13 = vor.u32 %v2179_v1, %v2175_v0  ;;  %v4982_v20 = vld [vmem:[#allocation8_spill] sm:$0xff] }
  0xa6   : > { %v2171_v8 = vrot.slane %v2170_v44, 4  ;;  %v2185_v48 = vrot.slane %v2183_v36, 5  ;;  %v3094_v28 = vcombine.low %v2152_v51, %v2162_v3  ;;  %v2199_v24 = vrot.slane %v2197_v19, 5 }
  0xa7   : > { %v2194_v45 = vor.u32 %v2193_v59, %v2190_v32  ;;  %v2207_v9 = vshll.u32 %v4610_v49, 16  ;;  %v2993_v52 = vcombine.low %v4982_v20, %v4981_v53  ;;  %v2181_v38 = vrot.slane %v2180_v13, 4 }
  0xa8   : > { %v2176_v21 = vsel %vm3958_vm4, %v2171_v8, %v2175_v0  ;;  %v2214_v11 = vrot.slane %v2212_v43, 4  ;;  %v2204_v1 = vor.u32 %v2203_v41, %v2199_v24  ;;  %v2217_v51 = vrot.slane %v2215_v46, 5  ;;  %v4651_v46 = vld [vmem:[%s3820_s21 + $0x74] sm:$0x1]  ;;  %s2899_s21 = sshll.u32 %s242_s23, 2 }
  0xa9   : > { %v2195_v55 = vrot.slane %v2194_v45, 4  ;;  %v2209_v33 = vrot.slane %v2207_v9, 5  ;;  %v2221_v14 = vshll.u32 %v4457_v10, 16  ;;  %v2186_v36 = vsel %vm3958_vm4, %v2181_v38, %v2185_v48  ;;  %3381 = vmatmul.mubr.msk.bf16.gmra.mrb[4].mxu0 %vm323_vm1, %v3094_v28  ;;  %v4986_v38 = vld [vmem:[#allocation12_spill] sm:$0xff]  ;;  %s4826_s24 = scalar_lea.vmem %s4890_s3, %s2899_s21 }
  0xaa   : > { %v4983_v0 = vshrl.u32 %v4457_v10, 16  ;;  %v2231_v32 = vshll.u32 %v4633_v61, 16  ;;  %v3095_v43 = vcombine.low %v2176_v21, %v2186_v36  ;;  %v2205_v59 = vrot.slane %v2204_v1, 4 }
  0xab   : > { %v2200_v44 = vsel %vm3958_vm4, %v2195_v55, %v2199_v24  ;;  %v2218_v3 = vor.u32 %v2217_v51, %v2214_v11  ;;  %v2223_v19 = vrot.slane %v2221_v14, 5  ;;  %v2238_v8 = vrot.slane %v2236_v37, 4  ;;  %v4985_v37 = vld [vmem:[#allocation5_spill] sm:$0xff]  ;;  %v4987_v55 = vld [vmem:[#allocation11_spill] sm:$0xff] }
  0xac   : > { %v2227_v60 = vrot.slane %v4983_v0, 4  ;;  %v2233_v41 = vrot.slane %v2231_v32, 5  ;;  %v4984_v13 = vshll.u32 %v4464_v5, 16  ;;  %v2245_v45 = vshll.u32 %v4472_v12, 16  ;;  %3305 = vmatmul.mubr.msk.bf16.vlgmr.msra.gmra.mrb[0].mxu1 %vm323_vm1, %v2990_v30  ;;  %3384 = vmatprep.mubr.msk.bf16.mxu0 %vm323_vm1, %v3095_v43  ;;  %v4989_v0 = vld [vmem:[#allocation17_spill] sm:$0xff] }
  0xad   : > { %v2210_v28 = vsel %vm3958_vm4, %v2205_v59, %v2209_v33  ;;  %v2219_v24 = vrot.slane %v2218_v3, 4  ;;  %v2251_v21 = vrot.slane %v2249_v57, 4  ;;  %3308 = vmatprep.mubr.msk.bf16.mxu1 %vm323_vm1, %v2991_v31  ;;  %3411 = vmatpush3.bf16.msra.mxu1 %v4985_v37  ;;  %v2994_v30 = vcombine.low %v4987_v55, %v4986_v38  ;;  %v4988_v57 = vld [vmem:[#allocation18_spill] sm:$0xff] }
  0xae   : > { %v2241_v48 = vrot.slane %v4984_v13, 5  ;;  %v2228_v9 = vor.u32 %v2227_v60, %v2223_v19  ;;  %v2247_v1 = vrot.slane %v2245_v45, 5  ;;  %v2255_v51 = vshll.u32 %v4651_v46, 16 }
  0xaf   : > { %v3096_v33 = vcombine.low %v2200_v44, %v2210_v28  ;;  %v2224_v14 = vsel %vm3958_vm4, %v2219_v24, %v2223_v19  ;;  %v2995_v60 = vcombine.low %v4989_v0, %v4988_v57  ;;  %v3107_v32 = vrot.slane %v4313_v22, 9  ;;  %v4991_v28 = vld [vmem:[#allocation20_spill] sm:$0xff] }
  0xb0   : > { %v2242_v11 = vor.u32 %v2241_v48, %v2238_v8  ;;  %v2229_v36 = vrot.slane %v2228_v9, 4  ;;  %v2252_v18 = vor.u32 %v2251_v21, %v2247_v1  ;;  %v2257_v31 = vrot.slane %v2255_v51, 5 }
  0xb1   : > { %v2435_v59 = vrot.slane %v4316_v16, 5  ;;  %v2438_v3 = vrot.slane %v4509_v50, 5  ;;  %v3108_v44 = vrot.slane %v4332_v47, 9  ;;  %v2442_v48 = vrot.slane %v4335_v42, 5  ;;  %3385 = vmatmul.mubr.msk.bf16.gmra.mrb[8].mxu0 %vm323_vm1, %v3096_v33  ;;  %v4990_v50 = vld [vmem:[#allocation21_spill] sm:$0xff] }
  0xb2   : > { %v2243_v17 = vrot.slane %v2242_v11, 4  ;;  %v2234_v43 = vsel %vm3958_vm4, %v2229_v36, %v2233_v41  ;;  %v2253_v13 = vrot.slane %v2252_v18, 4  ;;  %v2445_v41 = vrot.slane %v4530_v15, 5  ;;  %v4994_v18 = vld [vmem:[#allocation14_spill] sm:$0xff] }
  0xb3   : > { %v3097_v8 = vcombine.low %v2224_v14, %v2234_v43  ;;  %v2436_v22 = vsel %vm4060_vm7, %v3107_v32, %v2435_v59  ;;  %v2437_v45 = vrot.slane %v2435_v59, 4  ;;  %v1366_v16 = vshrl.u32 %v4982_v20, 16  ;;  %v4992_v14 = vld [vmem:[#allocation10_spill] sm:$0xff]  ;;  %v4995_v59 = vld [vmem:[#allocation15_spill] sm:$0xff] }
  0xb4   : > { %v2248_v19 = vsel %vm3958_vm4, %v2243_v17, %v2247_v1  ;;  %v2258_v47 = vsel %vm3958_vm4, %v2253_v13, %v2257_v31  ;;  %v2996_v24 = vcombine.low %v4991_v28, %v4990_v50  ;;  %v2444_v9 = vrot.slane %v2442_v48, 4  ;;  %3309 = vmatmul.mubr.msk.bf16.gmra.mrb[4].mxu1 %vm323_vm1, %v2992_v2  ;;  %v4993_v17 = vld [vmem:[#allocation13_spill] sm:$0xff] }
  0xb5   : > { %3388 = vmatprep.mubr.msk.bf16.mxu0 %vm323_vm1, %v3097_v8  ;;  %v1369_v42 = vshll.u32 %v4982_v20, 16  ;;  %v2439_v15 = vsel %vm4060_vm7, %v2437_v45, %v2438_v3  ;;  %v2443_v21 = vsel %vm4060_vm7, %v3108_v44, %v2442_v48  ;;  %v1368_v37 = vrot.slane %v1366_v16, 4  ;;  %3312 = vmatprep.mubr.msk.bf16.mxu1 %vm323_vm1, %v2993_v52  ;;  %v4996_v20 = vld [vmem:[#allocation16_spill] sm:$0xff] }
  0xb6   : > { %v1375_v11 = vshll.u32 %v4981_v53, 16  ;;  %v3098_v1 = vcombine.low %v2248_v19, %v2258_v47  ;;  %v3116_v51 = vcombine.low %v2436_v22, %v2439_v15  ;;  %v1379_v58 = vshrl.u32 %v4981_v53, 16 }
  0xb7   : > { %v1371_v33 = vrot.slane %v1369_v42, 5  ;;  %v2446_v34 = vsel %vm4060_vm7, %v2444_v9, %v2445_v41  ;;  %v1385_v36 = vshll.u32 %v4992_v14, 16  ;;  %v1396_v31 = vor.u32 %v4994_v18, %v4993_v17 }
  0xb8   : > { %v1377_v2 = vrot.slane %v1375_v11, 5  ;;  %v1381_v43 = vrot.slane %v1379_v58, 4  ;;  %v1406_v3 = vor.u32 %v4996_v20, %v4995_v59  ;;  %v3109_v52 = vrot.slane %v4350_v6, 9  ;;  %v4997_v58 = vld [vmem:[#allocation19_spill] sm:$0xff]  ;;  %v4998_v20 = vld [vmem:[#allocation22_spill] sm:$0xff] }
  0xb9   : > { %v1372_v32 = vor.u32 %v1371_v33, %v1368_v37  ;;  %v1387_v44 = vrot.slane %v1385_v36, 5  ;;  %v1397_v8 = vrot.slane %v1396_v31, 4  ;;  %v2449_v53 = vrot.slane %v4353_v56, 5  ;;  %3389 = vmatmul.mubr.msk.bf16.gmra.mrb[12].mxu0 %vm323_vm1, %v3098_v1 }
  0xba   : > { %v2452_v19 = vrot.slane %v4554_v35, 5  ;;  %v1382_v48 = vor.u32 %v1381_v43, %v1377_v2  ;;  %v1407_v22 = vrot.slane %v1406_v3, 4  ;;  %v3110_v45 = vrot.slane %v4382_v27, 9  ;;  %3394 = vmatprep.mubr.msk.bf16.mxu0 %vm323_vm1, %v3116_v51 }
  0xbb   : > { %v1373_v13 = vrot.slane %v1372_v32, 4  ;;  %v1402_v41 = vsel %vm3958_vm4, %v1397_v8, %v4995_v59  ;;  %v2450_v6 = vsel %vm4060_vm7, %v3109_v52, %v2449_v53  ;;  %v2451_v16 = vrot.slane %v2449_v53, 4 }
  0xbc   : > { %v2456_v47 = vrot.slane %v4385_v4, 5  ;;  %v1383_v35 = vrot.slane %v1382_v48, 4  ;;  %v1412_v27 = vsel %vm3958_vm4, %v1407_v22, %v4339_v63  ;;  %v2459_v9 = vrot.slane %v4572_v40, 5  ;;  %3313 = vmatmul.mubr.msk.bf16.gmra.mrb[8].mxu1 %vm323_vm1, %v2994_v30 }
  0xbd   : > { %v1378_v56 = vsel %vm3958_vm4, %v1373_v13, %v1377_v2  ;;  %v3117_v42 = vcombine.low %v2443_v21, %v2446_v34  ;;  %v4739_v15 = vcombine.low %v1402_v41, %v1412_v27  ;;  %v2453_v4 = vsel %vm4060_vm7, %v2451_v16, %v2452_v19  ;;  %3316 = vmatprep.mubr.msk.bf16.mxu1 %vm323_vm1, %v2995_v60 }
  0xbe   : > { %v2458_v37 = vrot.slane %v2456_v47, 4  ;;  %v1388_v63 = vsel %vm3958_vm4, %v1383_v35, %v1387_v44  ;;  %v2457_v40 = vsel %vm4060_vm7, %v3110_v45, %v2456_v47  ;;  %v1414_v38 = vshrl.u32 %v4989_v0, 16 }
  0xbf   : > { %v1417_v55 = vshll.u32 %v4989_v0, 16  ;;  %v3010_v30 = vcombine.low %v1378_v56, %v1388_v63  ;;  %v3118_v21 = vcombine.low %v2450_v6, %v2453_v4  ;;  %v1423_v11 = vshll.u32 %v4988_v57, 16 }
  0xc0   : > { %v1427_v1 = vshrl.u32 %v4988_v57, 16  ;;  %v2460_v51 = vsel %vm4060_vm7, %v2458_v37, %v2459_v9  ;;  %v1416_v60 = vrot.slane %v1414_v38, 4  ;;  %v1433_v34 = vshll.u32 %v4997_v58, 16 }
  0xc1   : > { %v1419_v33 = vrot.slane %v1417_v55, 5  ;;  %v1425_v2 = vrot.slane %v1423_v11, 5  ;;  %v1438_v36 = vshrl.u32 %v4991_v28, 16  ;;  %v1441_v17 = vshll.u32 %v4991_v28, 16  ;;  %3395 = vmatmul.mubr.msk.bf16.vlgmr.msra.gmra.mrb[0].mxu0 %vm323_vm1, %v3117_v42 }
  0xc2   : > { %v1429_v14 = vrot.slane %v1427_v1, 4  ;;  %v1435_v18 = vrot.slane %v1433_v34, 5  ;;  %v1447_v31 = vshll.u32 %v4990_v50, 16  ;;  %v1451_v32 = vshrl.u32 %v4990_v50, 16  ;;  %3398 = vmatprep.mubr.msk.bf16.mxu0 %vm323_vm1, %v3118_v21 }
  0xc3   : > { %v1420_v0 = vor.u32 %v1419_v33, %v1416_v60  ;;  %v1440_v43 = vrot.slane %v1438_v36, 4  ;;  %v1443_v59 = vrot.slane %v1441_v17, 5  ;;  %v1457_v3 = vshll.u32 %v4998_v20, 16 }
  0xc4   : > { %v1430_v57 = vor.u32 %v1429_v14, %v1425_v2  ;;  %v1449_v44 = vrot.slane %v1447_v31, 5  ;;  %v1453_v8 = vrot.slane %v1451_v32, 4  ;;  %v3111_v53 = vrot.slane %v4412_v23, 9  ;;  %3317 = vmatmul.mubr.msk.bf16.gmra.mrb[12].mxu1 %vm323_vm1, %v2996_v24 }
  0xc5   : > { %v1421_v52 = vrot.slane %v1420_v0, 4  ;;  %v1444_v13 = vor.u32 %v1443_v59, %v1440_v43  ;;  %v2463_v48 = vrot.slane %v4415_v54, 5  ;;  %3330 = vmatprep.mubr.msk.bf16.mxu1 %vm323_vm1, %v3010_v30  ;;  %v3119_v22 = vcombine.low %v2457_v40, %v2460_v51 }
  0xc6   : > { %v1431_v19 = vrot.slane %v1430_v57, 4  ;;  %v1454_v45 = vor.u32 %v1453_v8, %v1449_v44  ;;  %v2466_v41 = vrot.slane %v4594_v62, 5  ;;  %v1459_v24 = vrot.slane %v1457_v3, 5 }
  0xc7   : > { %v1426_v6 = vsel %vm3958_vm4, %v1421_v52, %v1425_v2  ;;  %v2464_v50 = vsel %vm4060_vm7, %v3111_v53, %v2463_v48  ;;  %v2465_v28 = vrot.slane %v2463_v48, 4  ;;  %v3112_v16 = vrot.slane %v4423_v25, 9 }
  0xc8   : > { %v1436_v23 = vsel %vm3958_vm4, %v1431_v19, %v1435_v18  ;;  %v2470_v54 = vrot.slane %v4433_v26, 5  ;;  %v2473_v47 = vrot.slane %v4610_v49, 5  ;;  %v1445_v56 = vrot.slane %v1444_v13, 4 }
  0xc9   : > { %v2467_v62 = vsel %vm4060_vm7, %v2465_v28, %v2466_v41  ;;  %v3113_v35 = vrot.slane %v4454_v39, 9  ;;  %v2477_v27 = vrot.slane %v4457_v10, 5  ;;  %v3012_v9 = vcombine.low %v1426_v6, %v1436_v23  ;;  %3399 = vmatmul.mubr.msk.bf16.gmra.mrb[4].mxu0 %vm323_vm1, %v3119_v22 }
  0xca   : > { %v1455_v42 = vrot.slane %v1454_v45, 4  ;;  %v3120_v4 = vcombine.low %v2464_v50, %v2467_v62  ;;  %v2472_v37 = vrot.slane %v2470_v54, 4  ;;  %v2480_v25 = vrot.slane %v4633_v61, 5 }
  0xcb   : > { %v2479_v63 = vrot.slane %v2477_v27, 4  ;;  %v2471_v26 = vsel %vm4060_vm7, %v3112_v16, %v2470_v54  ;;  %v2484_v39 = vrot.slane %v4472_v12, 5  ;;  %v2478_v10 = vsel %vm4060_vm7, %v3113_v35, %v2477_v27 }
  0xcc   : > { %3402 = vmatprep.mubr.msk.bf16.mxu0 %vm323_vm1, %v3120_v4  ;;  %v2474_v49 = vsel %vm4060_vm7, %v2472_v37, %v2473_v47  ;;  %3331 = vmatmul.mubr.msk.bf16.vlgmr.msra.gmra.mrb[8].mxu1 %vm323_vm1, %v4739_v15  ;;  %v1450_v61 = vsel %vm3958_vm4, %v1445_v56, %v1449_v44  ;;  %v1460_v38 = vsel %vm3958_vm4, %v1455_v42, %v1459_v24  ;;  %v3114_v12 = vrot.slane %v4464_v5, 9 }
  0xcd   : > { %v2481_v40 = vsel %vm4060_vm7, %v2479_v63, %v2480_v25  ;;  %3334 = vmatprep.mubr.msk.bf16.mxu1 %vm323_vm1, %v3012_v9  ;;  %v3121_v55 = vcombine.low %v2471_v26, %v2474_v49  ;;  %v2486_v21 = vrot.slane %v2484_v39, 4  ;;  %v2487_v15 = vrot.slane %v4651_v46, 5 }
  0xce   : > { %v3122_v30 = vcombine.low %v2478_v10, %v2481_v40  ;;  %v3013_v11 = vcombine.low %v1450_v61, %v1460_v38  ;;  %v2485_v1 = vsel %vm4060_vm7, %v3114_v12, %v2484_v39 }
  0xcf   : > { %v2488_v29 = vsel %vm4060_vm7, %v2486_v21, %v2487_v15 }
  0xd0   : > { %v3123_v51 = vcombine.low %v2485_v1, %v2488_v29 }
  0xd1   : > { %3403 = vmatmul.mubr.msk.bf16.gmra.mrb[8].mxu0 %vm323_vm1, %v3121_v55 }
  0xd2   : > { %3406 = vmatprep.mubr.msk.bf16.mxu0 %vm323_vm1, %v3122_v30 }
  0xd4   : > { %3335 = vmatmul.mubr.msk.bf16.gmra.mrb[12].mxu1 %vm323_vm1, %v3013_v11 }
  0xd9   : > { %3407 = vmatmul.mubr.msk.bf16.gmra.mrb[12].mxu0 %vm323_vm1, %v3123_v51 }
 0x17f   : > { %v3306_v5 = vpop.f32.mrb[0].mxu1 }
 0x180   : > { %v1190_v60 = vpop.f32.mrb[1].mxu1  ;;  %v3412_v36 = vadd.f32 %v3306_v5, %v4817_v7 }
 0x181   : > { %v3307_v46 = vpop.f32.mrb[2].mxu1  ;;  %v3414_v17 = vadd.f32 %v4817_v7, %v1190_v60 }
 0x182   : > { %v1193_v33 = vpop.f32.mrb[3].mxu1  ;;  %v3416_v18 = vadd.f32 %v3307_v46, %v4817_v7 }
 0x183   : > { %v3418_v57 = vadd.f32 %v4817_v7, %v1193_v33 }
 0x187   : > { %v3310_v58 = vpop.f32.mrb[4].mxu1 }
 0x188   : > { %v1206_v34 = vpop.f32.mrb[5].mxu1  ;;  %v3420_v22 = vadd.f32 %v3310_v58, %v4817_v7 }
 0x189   : > { %v3311_v2 = vpop.f32.mrb[6].mxu1  ;;  %v3422_v41 = vadd.f32 %v4817_v7, %v1206_v34 }
 0x18a   : > { %v1209_v14 = vpop.f32.mrb[7].mxu1  ;;  %v3424_v50 = vadd.f32 %v3311_v2, %v4817_v7 }
 0x18b   : > { %v3426_v16 = vadd.f32 %v4817_v7, %v1209_v14 }
 0x194   : > { %v3396_v0 = vpop.f32.mrb[0].mxu0 }
 0x195   : > { %v3413_v31 = vadd.f32 %v3412_v36, %v3396_v0  ;;  %v2576_v32 = vpop.f32.mrb[1].mxu0 }
 0x196   : > { %v3415_v43 = vadd.f32 %v3414_v17, %v2576_v32  ;;  %v3397_v59 = vpop.f32.mrb[2].mxu0 }
 0x197   : > { %v2657_v20 = vmax.f32 %v3413_v31, 0.0  ;;  %v3417_v3 = vadd.f32 %v3416_v18, %v3397_v59  ;;  %v2579_v52 = vpop.f32.mrb[3].mxu0 }
 0x198   : > { %v2655_v44 = vmax.f32 %v3415_v43, 0.0  ;;  %v3419_v8 = vadd.f32 %v3418_v57, %v2579_v52 }
 0x199   : > { %v3153_v53 = vpack.c.bf16 %v2657_v20, %v2657_v20  ;;  %v2658_v19 = vmax.f32 %v3417_v3, 0.0 }
 0x19a   : > { %v3151_v13 = vpack.c.bf16 %v2655_v44, %v2655_v44  ;;  %v2656_v48 = vmax.f32 %v3419_v8, 0.0 }
 0x19b   : > { %2738 = vst.msk [vmem:[%s4826_s24 + $0x8] sm:$0xf] %vm2735_vm8, %v3153_v53  ;;  %v3154_v45 = vpack.c.bf16 %v2658_v19, %v2658_v19 }
 0x19c   : > { %2736 = vst.msk [vmem:[%s4826_s24] sm:$0xf] %vm2735_vm8, %v3151_v13  ;;  %v3152_v6 = vpack.c.bf16 %v2656_v48, %v2656_v48  ;;  %v3400_v23 = vpop.f32.mrb[4].mxu0 }
 0x19d   : > { %2739 = vst.msk [vmem:[%s4826_s24 + $0xc] sm:$0xf] %vm2735_vm8, %v3154_v45  ;;  %v3421_v28 = vadd.f32 %v3420_v22, %v3400_v23  ;;  %v2592_v24 = vpop.f32.mrb[5].mxu0 }
 0x19e   : > { %2737 = vst.msk [vmem:[%s4826_s24 + $0x4] sm:$0xf] %vm2735_vm8, %v3152_v6  ;;  %v3423_v47 = vadd.f32 %v3422_v41, %v2592_v24  ;;  %v3401_v56 = vpop.f32.mrb[6].mxu0 }
 0x19f   : > { %v3332_v54 = vpop.f32.mrb[8].mxu1  ;;  %v2661_v35 = vmax.f32 %v3421_v28, 0.0  ;;  %v3425_v27 = vadd.f32 %v3424_v50, %v3401_v56  ;;  %v2595_v9 = vpop.f32.mrb[7].mxu0 }
 0x1a0   : > { %v1580_v62 = vpop.f32.mrb[9].mxu1  ;;  %v2659_v4 = vmax.f32 %v3423_v47, 0.0  ;;  %v3427_v37 = vadd.f32 %v3426_v16, %v2595_v9  ;;  %v3428_v10 = vadd.f32 %v3332_v54, %v4817_v7 }
 0x1a1   : > { %v3333_v42 = vpop.f32.mrb[10].mxu1  ;;  %v3157_v63 = vpack.c.bf16 %v2661_v35, %v2661_v35  ;;  %v2662_v26 = vmax.f32 %v3425_v27, 0.0  ;;  %v3430_v61 = vadd.f32 %v4817_v7, %v1580_v62 }
 0x1a2   : > { %v1583_v25 = vpop.f32.mrb[11].mxu1  ;;  %v3155_v49 = vpack.c.bf16 %v2659_v4, %v2659_v4  ;;  %v2660_v39 = vmax.f32 %v3427_v37, 0.0  ;;  %v3432_v30 = vadd.f32 %v3333_v42, %v4817_v7 }
 0x1a3   : > { %2742 = vst.msk [vmem:[%s4826_s24 + $0x18] sm:$0xf] %vm2735_vm8, %v3157_v63  ;;  %v3158_v40 = vpack.c.bf16 %v2662_v26, %v2662_v26  ;;  %v3434_v15 = vadd.f32 %v4817_v7, %v1583_v25 }
 0x1a4   : > { %2740 = vst.msk [vmem:[%s4826_s24 + $0x10] sm:$0xf] %vm2735_vm8, %v3155_v49  ;;  %v3156_v38 = vpack.c.bf16 %v2660_v39, %v2660_v39  ;;  %v3404_v55 = vpop.f32.mrb[8].mxu0 }
 0x1a5   : > { %2743 = vst.msk [vmem:[%s4826_s24 + $0x1c] sm:$0xf] %vm2735_vm8, %v3158_v40  ;;  %v3429_v12 = vadd.f32 %v3428_v10, %v3404_v55  ;;  %v2608_v21 = vpop.f32.mrb[9].mxu0 }
 0x1a6   : > { %2741 = vst.msk [vmem:[%s4826_s24 + $0x14] sm:$0xf] %vm2735_vm8, %v3156_v38  ;;  %v3431_v1 = vadd.f32 %v3430_v61, %v2608_v21  ;;  %v3405_v29 = vpop.f32.mrb[10].mxu0 }
 0x1a7   : > { %v3336_v11 = vpop.f32.mrb[12].mxu1  ;;  %v2665_v5 = vmax.f32 %v3429_v12, 0.0  ;;  %v3433_v60 = vadd.f32 %v3432_v30, %v3405_v29  ;;  %v2611_v46 = vpop.f32.mrb[11].mxu0 }
 0x1a8   : > { %v1596_v51 = vpop.f32.mrb[13].mxu1  ;;  %v2663_v58 = vmax.f32 %v3431_v1, 0.0  ;;  %v3435_v34 = vadd.f32 %v3434_v15, %v2611_v46  ;;  %v3436_v18 = vadd.f32 %v3336_v11, %v4817_v7 }
 0x1a9   : > { %v3337_v33 = vpop.f32.mrb[14].mxu1  ;;  %v3161_v2 = vpack.c.bf16 %v2665_v5, %v2665_v5  ;;  %v2666_v36 = vmax.f32 %v3433_v60, 0.0  ;;  %v3438_v32 = vadd.f32 %v4817_v7, %v1596_v51 }
 0x1aa   : > { %v1599_v14 = vpop.f32.mrb[15].mxu1  ;;  %v3159_v17 = vpack.c.bf16 %v2663_v58, %v2663_v58  ;;  %v2664_v0 = vmax.f32 %v3435_v34, 0.0  ;;  %v3440_v59 = vadd.f32 %v3337_v33, %v4817_v7 }
 0x1ab   : > { %2746 = vst.msk [vmem:[%s4826_s24 + $0x28] sm:$0xf] %vm2735_vm8, %v3161_v2  ;;  %v3162_v31 = vpack.c.bf16 %v2666_v36, %v2666_v36  ;;  %v3442_v52 = vadd.f32 %v4817_v7, %v1599_v14 }
 0x1ac   : > { %2744 = vst.msk [vmem:[%s4826_s24 + $0x20] sm:$0xf] %vm2735_vm8, %v3159_v17  ;;  %v3160_v57 = vpack.c.bf16 %v2664_v0, %v2664_v0  ;;  %v3408_v43 = vpop.f32.mrb[12].mxu0 }
 0x1ad   : > { %2747 = vst.msk [vmem:[%s4826_s24 + $0x2c] sm:$0xf] %vm2735_vm8, %v3162_v31  ;;  %v3437_v20 = vadd.f32 %v3436_v18, %v3408_v43  ;;  %v2624_v3 = vpop.f32.mrb[13].mxu0 }
 0x1ae   : > { %2745 = vst.msk [vmem:[%s4826_s24 + $0x24] sm:$0xf] %vm2735_vm8, %v3160_v57  ;;  %v3439_v44 = vadd.f32 %v3438_v32, %v2624_v3  ;;  %v3409_v8 = vpop.f32.mrb[14].mxu0 }
 0x1af   : > { %v2669_v53 = vmax.f32 %v3437_v20, 0.0  ;;  %v3441_v19 = vadd.f32 %v3440_v59, %v3409_v8  ;;  %v2627_v13 = vpop.f32.mrb[15].mxu0 }
 0x1b0   : > { %v2667_v48 = vmax.f32 %v3439_v44, 0.0  ;;  %v3443_v22 = vadd.f32 %v3442_v52, %v2627_v13 }
 0x1b1   : > { %v3165_v45 = vpack.c.bf16 %v2669_v53, %v2669_v53  ;;  %v2670_v41 = vmax.f32 %v3441_v19, 0.0 }
 0x1b2   : > { %v3163_v6 = vpack.c.bf16 %v2667_v48, %v2667_v48  ;;  %v2668_v23 = vmax.f32 %v3443_v22, 0.0 }
 0x1b3   : > { %2750 = vst.msk [vmem:[%s4826_s24 + $0x38] sm:$0xf] %vm2735_vm8, %v3165_v45  ;;  %v3166_v50 = vpack.c.bf16 %v2670_v41, %v2670_v41 }
 0x1b4   : > { %2748 = vst.msk [vmem:[%s4826_s24 + $0x30] sm:$0xf] %vm2735_vm8, %v3163_v6  ;;  %v3164_v7 = vpack.c.bf16 %v2668_v23, %v2668_v23 }
 0x1b5   : > { %2751 = vst.msk [vmem:[%s4826_s24 + $0x3c] sm:$0xf] %vm2735_vm8, %v3166_v50 }
 0x1b6   : > { %2749 = vst.msk [vmem:[%s4826_s24 + $0x34] sm:$0xf] %vm2735_vm8, %v3164_v7 }
 0x1b7 PF: > { %s14_s16 = sadd.s32 1, %s3712_s16   ;;  %s4999_s12 = smov %s3704_s14 }
 0x1b8   : > { %p11_p7 = scmp.ge.s32.totalorder %s14_s16, 6   ;;  %s5000_s13 = smov %s3708_s15 }
 0x1b9   : > { %s5001_s14 = smov %s5004_s18  ;;  %s5002_s15 = smov %s5008_s19 }
 0x1ba   :  { %13 = sbr.rel (!%p11_p7) target bundleno = 3 (0x3), region = 82 }
 0x1c1   :  { %2788 = vsyncpa [#allocation3], 1 }
 0x1c2   :  { %2790 = vsyncpa [#allocation3 + $0x1], 1 }

// kernel: vgg19_forward.10
= control target key start
LH: loop header
LB: loop body
LE: loop exit
PB: predicated region body
PF: predicated region fallthrough
CT: control target
= control target key end

     0   :  { %s4047_s12 = smov 0   ;;  %s4049_s13 = smov 0   ;;  %s5229_s0 = inlined_call_operand.vmem [shape: bf16[2,18,18,64], index: 0, kind: input, shape index: {}]   ;;  %s5230_s1 = inlined_call_operand.vmem [shape: bf16[9,64,64], index: 1, kind: input, shape index: {}]   ;;  %s5231_s2 = inlined_call_operand.vmem [shape: f32[1,64], index: 2, kind: input, shape index: {}]   ;;  %s5232_s3 = inlined_call_operand.vmem [shape: f32[2,256,64], index: 3, kind: output, shape index: {}]  }
   0x1   :  { %s4051_s14 = smov 0   ;;  %s4053_s15 = smov 0  }
   0x2   :  { %s4055_s16 = smov 0  }
   0x3 LB: > { %s25_s17 = sadd.s32 1, %s4017_s14  ;;  %s32_s18 = sadd.s32 1, %s4021_s15  ;;  %s4025_s16 = sphi %s4055_s16, %s13_s16   ;;  %s4021_s15 = sphi %s4053_s15, %s5276_s15   ;;  %s4017_s14 = sphi %s4051_s14, %s5275_s14   ;;  %s4013_s13 = sphi %s4049_s13, %s5274_s13   ;;  %s4009_s12 = sphi %s4047_s12, %s5273_s12  }
   0x4   : > { %p26_p0 = scmp.ge.s32.totalorder %s25_s17, 2  ;;  %p3056_p1 = scmp.ge.s32.totalorder %s4025_s16, 1 }
   0x5   : > { %p177_p2 = scmp.lt.s32.totalorder %s4025_s16, 5 }
   0x6   : > { %s5278_s17 = smov (%p26_p0, %s25_s17), 0  ;;  %s5280_s18 = smov (!%p26_p0, %s32_s18), %s4021_s15 }
   0x7   : > { %p178_p3 = pnand %p3056_p1, %p177_p2  ;;  %p34_p4 = scmp.ge.s32.totalorder %s5280_s18, 2 }
   0x9   : > { %s5282_s18 = smov (%p34_p4, %s5280_s18), 0  ;;  %181 = sbr.rel (%p178_p3) target bundleno = 402 (0x192), region = 32 }
  0x10   : > { %v3905_v0 = vld [vmem:[%s5230_s1] sm:$0xff]   ;;  %p215_p5 = scmp.lt.s32.totalorder %s4013_s13, 1  ;;  %v3907_v2 = vld [vmem:[%s5230_s1 + $0x8] sm:$0xff]   ;;  %s3387_s27 = smul.u32 96, %s4009_s12  ;;  %v3909_v4 = vld [vmem:[%s5230_s1 + $0x10] sm:$0xff]   ;;  %vm348_vm0 = vcmask 523264  }
  0x11   : > { %v3906_v1 = vld [vmem:[%s5230_s1 + $0x80] sm:$0xff]   ;;  %3496 = vmatprep.subr.bf16.mxu1 %v3905_v0  ;;  %v3908_v3 = vld [vmem:[%s5230_s1 + $0x88] sm:$0xff]   ;;  %v3910_v5 = vld [vmem:[%s5230_s1 + $0x90] sm:$0xff]   ;;  %vm486_vm1 = vsmask.f32 3328  ;;  %vm883_vm4 = vcmask 1042432  }
  0x12   : > { %s5284_s13 = smov (!%p215_p5, %s4013_s13), 1  ;;  %3497 = vmatpush3.bf16.msra.mxu1 %v3905_v0  ;;  %3592 = vmatprep.subr.bf16.mxu0 %v3906_v1  ;;  %v3911_v6 = vld [vmem:[%s5230_s1 + $0x18] sm:$0xff]   ;;  %v3915_v28 = vld [vmem:[%s5230_s1 + $0x20] sm:$0xff]   ;;  %v3920_v42 = vld [vmem:[%s5230_s1 + $0x28] sm:$0xff]   ;;  %vm487_vm2 = vsmask.f32 7440 }
  0x13   : > { %3593 = vmatpush3.bf16.msra.mxu0 %v3906_v1  ;;  %3498 = vmatprep.subr.bf16.mxu1 %v3907_v2  ;;  %s3864_s30 = smul.u32 216, %s5284_s13  ;;  %v3912_v10 = vld [vmem:[%s5230_s1 + $0x98] sm:$0xff]   ;;  %v4155_v34 = vld [vmem:[%s5230_s1 + $0xa0] sm:$0xff]   ;;  %vm4204_vm3 = vmor %vm486_vm1, %vm487_vm2  ;;  %vm884_vm5 = vcmask 1046532   ;;  %s3059_s28 = sshll.u32 %s5284_s13, 5 }
  0x14   : > { %3594 = vmatprep.subr.bf16.mxu0 %v3908_v3  ;;  %vm4317_vm6 = vmor %vm883_vm4, %vm884_vm5 }
  0x15   : > { %s219_s8 = scalar_lea.vmem %s5229_s0, %s3864_s30 }
  0x16   : > { %3499 = vmatpush3.bf16.msra.mxu1 %v3907_v2  ;;  %s4107_s11 = scalar_lea.vmem %s219_s8, %s3387_s27 }
  0x17   : > { %3595 = vmatpush3.bf16.msra.mxu0 %v3908_v3  ;;  %3500 = vmatprep.subr.bf16.mxu1 %v3909_v4  ;;  %v4110_v7 = vld [vmem:[%s4107_s11] sm:$0xf]  ;;  %v4113_v8 = vld [vmem:[%s4107_s11 + $0x4] sm:$0xf]  ;;  %v4116_v9 = vld [vmem:[%s4107_s11 + $0xc] sm:$0xf] }
  0x18   : > { %3596 = vmatprep.subr.bf16.mxu0 %v3910_v5  ;;  %v3065_v11 = vcombine.low %v4110_v7, %v4113_v8  ;;  %v490_v12 = vshrl.u32 %v4110_v7, 16  ;;  %v493_v13 = vshll.u32 %v4110_v7, 16  ;;  %v499_v14 = vshll.u32 %v4113_v8, 16  ;;  %v4127_v15 = vld [vmem:[%s4107_s11 + $0x10] sm:$0xf] }
  0x19   : > { %v503_v16 = vshrl.u32 %v4113_v8, 16  ;;  %v3113_v17 = vrot.slane %v4110_v7, 9  ;;  %v888_v18 = vrot.slane %v4113_v8, 5  ;;  %v3066_v19 = vcombine.low %v4116_v9, %v4127_v15  ;;  %v4150_v33 = vld [vmem:[%s4107_s11 + $0xc] sm:$0xf] }
  0x1a   : > { %3501 = vmatpush3.bf16.msra.mxu1 %v3909_v4  ;;  %3504 = vmatprep.mubr.msk.bf16.mxu1 %vm348_vm0, %v3065_v11  ;;  %v492_v20 = vrot.slane %v490_v12, 4  ;;  %v495_v21 = vrot.slane %v493_v13, 5  ;;  %v4135_v22 = vrot.slane %v499_v14, 5  ;;  %v514_v23 = vshrl.u32 %v4116_v9, 16  ;;  %v4162_v39 = vld [vmem:[%s4107_s11 + $0x10] sm:$0xf] }
  0x1b   : > { %3597 = vmatpush3.bf16.msra.mxu0 %v3910_v5  ;;  %3502 = vmatprep.subr.bf16.mxu1 %v3911_v6  ;;  %v505_v24 = vrot.slane %v503_v16, 4  ;;  %v4140_v25 = vrot.slane %v888_v18, 4  ;;  %v517_v26 = vshll.u32 %v4116_v9, 16  ;;  %v523_v27 = vshll.u32 %v4127_v15, 16  ;;  %v4165_v41 = vld [vmem:[%s4107_s11 + $0x14] sm:$0x1] }
  0x1c   : > { %3598 = vmatprep.subr.bf16.mxu0 %v3912_v10  ;;  %v496_v29 = vor.u32 %v495_v21, %v492_v20  ;;  %v516_v30 = vrot.slane %v514_v23, 4  ;;  %v527_v31 = vshrl.u32 %v4127_v15, 16  ;;  %v5233_v38 = vrot.slane %v4127_v15, 5  ;;  %v4174_v45 = vld [vmem:[%s4107_s11 + $0x18] sm:$0xf]  ;;  %v3930_v8 = vld [vmem:[%s5230_s1 + $0xc8] sm:$0xff]  }
  0x1d   : > { %v506_v35 = vor.u32 %v505_v24, %v4135_v22  ;;  %v519_v36 = vrot.slane %v517_v26, 5  ;;  %v4158_v37 = vrot.slane %v523_v27, 5  ;;  %v1375_v44 = vshrl.u32 %v4150_v33, 16  ;;  %v4182_v50 = vld [vmem:[%s4107_s11 + $0x1c] sm:$0xf] }
  0x1e   : > { %3503 = vmatpush3.bf16.msra.mxu1 %v3911_v6  ;;  %v529_v40 = vrot.slane %v527_v31, 4  ;;  %v4170_v43 = vrot.slane %v496_v29, 4  ;;  %v1378_v47 = vshll.u32 %v4150_v33, 16  ;;  %v1384_v48 = vshll.u32 %v4162_v39, 16  ;;  %v4192_v55 = vld [vmem:[%s4107_s11 + $0x20] sm:$0x1] }
  0x1f   : > { %3599 = vmatpush3.bf16.msra.mxu0 %v3912_v10  ;;  %3520 = vmatprep.subr.bf16.mxu1 %v3915_v28  ;;  %v4176_v46 = vrot.slane %v506_v35, 4  ;;  %v1388_v49 = vshrl.u32 %v4162_v39, 16  ;;  %v520_v51 = vor.u32 %v519_v36, %v516_v30  ;;  %v4188_v52 = vrot.slane %v5233_v38, 4  ;;  %v4209_v12 = vld [vmem:[%s4107_s11 + $0x18] sm:$0xf]  ;;  %v3925_v36 = vld [vmem:[%s5230_s1 + $0x30] sm:$0xff]  }
  0x20   : > { %3616 = vmatprep.subr.bf16.mxu0 %v4155_v34  ;;  %v1377_v53 = vrot.slane %v1375_v44, 4  ;;  %v1394_v54 = vshll.u32 %v4165_v41, 16  ;;  %v530_v56 = vor.u32 %v529_v40, %v4158_v37  ;;  %v1380_v57 = vrot.slane %v1378_v47, 5  ;;  %v4213_v20 = vld [vmem:[%s4107_s11 + $0x1c] sm:$0xf] }
  0x21   : > { %3505 = vmatmul.mubr.msk.bf16.vlgmr.msra.gmra.mrb[0].mxu1 %vm348_vm0, %v3066_v19  ;;  %v1386_v58 = vrot.slane %v1384_v48, 5  ;;  %v1390_v59 = vrot.slane %v1388_v49, 4  ;;  %v1399_v61 = vshrl.u32 %v4174_v45, 16  ;;  %v1402_v62 = vshll.u32 %v4174_v45, 16  ;;  %v4221_v27 = vld [vmem:[%s4107_s11 + $0x24] sm:$0xf] }
  0x22   : > { %3521 = vmatpush3.bf16.msra.mxu1 %v3915_v28  ;;  %v1396_v60 = vrot.slane %v1394_v54, 5  ;;  %v1408_v63 = vshll.u32 %v4182_v50, 16  ;;  %v1381_v0 = vor.u32 %v1380_v57, %v1377_v53  ;;  %v1412_v2 = vshrl.u32 %v4182_v50, 16  ;;  %v4224_v28 = vld [vmem:[%s4107_s11 + $0x28] sm:$0xf] }
  0x23   : > { %3522 = vmatprep.subr.bf16.mxu1 %v3920_v42  ;;  %v1391_v1 = vor.u32 %v1390_v59, %v1386_v58  ;;  %v1418_v3 = vshll.u32 %v4192_v55, 16  ;;  %v4200_v4 = vrot.slane %v520_v51, 4  ;;  %v1401_v6 = vrot.slane %v1399_v61, 4  ;;  %v4238_v48 = vld [vmem:[%s4107_s11 + $0x24] sm:$0xf]  ;;  %v3917_v59 = vld [vmem:[%s5230_s1 + $0xa8] sm:$0xff]  }
  0x24   : > { %v1404_v10 = vrot.slane %v1402_v62, 5  ;;  %v1410_v11 = vrot.slane %v1408_v63, 5  ;;  %v1382_v13 = vrot.slane %v1381_v0, 4  ;;  %v1773_v16 = vrot.slane %v4165_v41, 5  ;;  %v4241_v49 = vld [vmem:[%s4107_s11 + $0x28] sm:$0xf] }
  0x25   : > { %v1392_v14 = vrot.slane %v1391_v1, 4  ;;  %v1414_v19 = vrot.slane %v1412_v2, 4  ;;  %v4215_v21 = vrot.slane %v530_v56, 4  ;;  %v1777_v24 = vrot.slane %v4182_v50, 5  ;;  %v4247_v57 = vld [vmem:[%s4107_s11 + $0x2c] sm:$0x1] }
  0x26   : > { %3523 = vmatpush3.bf16.msra.mxu1 %v3920_v42  ;;  %v1405_v23 = vor.u32 %v1404_v10, %v1401_v6  ;;  %v3067_v26 = vcombine.low %v4209_v12, %v4213_v20  ;;  %v1387_v29 = vsel %vm4204_vm3, %v1382_v13, %v1386_v58  ;;  %v1420_v35 = vrot.slane %v1418_v3, 5  ;;  %v4260_v63 = vld [vmem:[%s4107_s11 + $0x30] sm:$0xf]  ;;  %v4267_v3 = vld [vmem:[%s4107_s11 + $0x34] sm:$0xf] }
  0x27   : > { %v1397_v30 = vsel %vm4204_vm3, %v1392_v14, %v1396_v60  ;;  %v1415_v31 = vor.u32 %v1414_v19, %v1410_v11  ;;  %v1780_v44 = vrot.slane %v4192_v55, 5  ;;  %v3068_v47 = vcombine.low %v4221_v27, %v4224_v28  ;;  %3524 = vmatprep.subr.bf16.mxu1 %v3925_v36  ;;  %v4270_v6 = vld [vmem:[%s4107_s11 + $0x38] sm:$0x1] }
  0x28   : > { %v3211_v40 = vcombine.low %v1387_v29, %v1397_v30  ;;  %v1406_v42 = vrot.slane %v1405_v23, 4  ;;  %3508 = vmatprep.mubr.msk.bf16.mxu1 %vm348_vm0, %v3067_v26  ;;  %v538_v53 = vshrl.u32 %v4209_v12, 16  ;;  %v541_v54 = vshll.u32 %v4209_v12, 16  ;;  %v3929_v19 = vld [vmem:[%s5230_s1 + $0x38] sm:$0xff]  }
  0x29   : > { %v1416_v51 = vrot.slane %v1415_v31, 4  ;;  %v551_v56 = vshrl.u32 %v4213_v20, 16  ;;  %3509 = vmatmul.mubr.msk.bf16.gmra.mrb[4].mxu1 %vm348_vm0, %v3068_v47  ;;  %v1423_v60 = vshrl.u32 %v4238_v48, 16  ;;  %v1426_v61 = vshll.u32 %v4238_v48, 16 }
  0x2a   : > { %3600 = vmatprep.mubr.msk.bf16.mxu0 %vm348_vm0, %v3211_v40  ;;  %v1411_v58 = vsel %vm4204_vm3, %v1406_v42, %v1410_v11  ;;  %v1432_v62 = vshll.u32 %v4241_v49, 16  ;;  %v1436_v1 = vshrl.u32 %v4241_v49, 16  ;;  %v1442_v2 = vshll.u32 %v4247_v57, 16  ;;  %3525 = vmatpush3.bf16.msra.mxu1 %v3925_v36  ;;  %v3921_v42 = vld [vmem:[%s5230_s1 + $0xb0] sm:$0xff]  }
  0x2b   : > { %v1421_v0 = vsel %vm4204_vm3, %v1416_v51, %v1420_v35  ;;  %v1425_v11 = vrot.slane %v1423_v60, 4  ;;  %v1428_v13 = vrot.slane %v1426_v61, 5  ;;  %v1447_v29 = vshrl.u32 %v4260_v63, 16  ;;  %3526 = vmatprep.subr.bf16.mxu1 %v3929_v19  ;;  %v4286_v60 = vld [vmem:[%s4107_s11 + $0x30] sm:$0xf] }
  0x2c   : > { %v3212_v10 = vcombine.low %v1411_v58, %v1421_v0  ;;  %v1434_v14 = vrot.slane %v1432_v62, 5  ;;  %v1438_v23 = vrot.slane %v1436_v1, 4  ;;  %v1444_v26 = vrot.slane %v1442_v2, 5  ;;  %v4290_v2 = vld [vmem:[%s4107_s11 + $0x34] sm:$0xf] }
  0x2d   : > { %v1450_v30 = vshll.u32 %v4260_v63, 16  ;;  %v1429_v31 = vor.u32 %v1428_v13, %v1425_v11  ;;  %v1456_v35 = vshll.u32 %v4267_v3, 16  ;;  %v1460_v36 = vshrl.u32 %v4267_v3, 16 }
  0x2e   : > { %3601 = vmatmul.mubr.msk.bf16.vlgmr.msra.gmra.mrb[0].mxu0 %vm348_vm0, %v3212_v10  ;;  %v1466_v40 = vshll.u32 %v4270_v6, 16  ;;  %v1439_v47 = vor.u32 %v1438_v23, %v1434_v14  ;;  %v1449_v51 = vrot.slane %v1447_v29, 4  ;;  %3527 = vmatpush3.bf16.msra.mxu1 %v3929_v19  ;;  %v562_v61 = vshrl.u32 %v4221_v27, 16  ;;  %v4296_v23 = vld [vmem:[%s4107_s11 + $0x3c] sm:$0xf] }
  0x2f   : > { %3617 = vmatpush3.bf16.msra.mxu0 %v4155_v34  ;;  %v1452_v58 = vrot.slane %v1450_v30, 5  ;;  %v1430_v62 = vrot.slane %v1429_v31, 4  ;;  %v1458_v0 = vrot.slane %v1456_v35, 5  ;;  %v1462_v1 = vrot.slane %v1460_v36, 4  ;;  %v4299_v29 = vld [vmem:[%s4107_s11 + $0x40] sm:$0xf] }
  0x30   : > { %3618 = vmatprep.subr.bf16.mxu0 %v3917_v59  ;;  %v565_v10 = vshll.u32 %v4221_v27, 16  ;;  %v1440_v11 = vrot.slane %v1439_v47, 4  ;;  %v3069_v13 = vcombine.low %v4286_v60, %v4290_v2  ;;  %v575_v19 = vshrl.u32 %v4224_v28, 16  ;;  %v3922_v36 = vld [vmem:[%s5230_s1 + $0xb8] sm:$0xff]  }
  0x31   : > { %v1453_v34 = vor.u32 %v1452_v58, %v1449_v51  ;;  %v1435_v30 = vsel %vm4204_vm3, %v1430_v62, %v1434_v14  ;;  %v1463_v31 = vor.u32 %v1462_v1, %v1458_v0  ;;  %v1468_v35 = vrot.slane %v1466_v40, 5 }
  0x32   : > { %v1445_v47 = vsel %vm4204_vm3, %v1440_v11, %v1444_v26  ;;  %3512 = vmatprep.mubr.msk.bf16.mxu1 %vm348_vm0, %v3069_v13  ;;  %v586_v58 = vshrl.u32 %v4286_v60, 16  ;;  %v3070_v14 = vcombine.low %v4296_v23, %v4299_v29  ;;  %v4322_v26 = vld [vmem:[%s4107_s11 + $0x48] sm:$0xf]  ;;  %v4327_v11 = vld [vmem:[%s5230_s1 + $0x40] sm:$0xff]   ;;  %v3231_v13 = vrot.slane %v4150_v33, 9 }
  0x33   : > { %3619 = vmatpush3.bf16.msra.mxu0 %v3917_v59  ;;  %v1454_v51 = vrot.slane %v1453_v34, 4  ;;  %v3213_v62 = vcombine.low %v1435_v30, %v1445_v47  ;;  %v1464_v1 = vrot.slane %v1463_v31, 4  ;;  %v1770_v30 = vrot.slane %v4162_v39, 5  ;;  %v4336_v47 = vld [vmem:[%s4107_s11 + $0x4c] sm:$0xf]  ;;  %v4347_v33 = vld [vmem:[%s5230_s1 + $0xc0] sm:$0xff]   ;;  %3544 = vmatprep.subr.bf16.mxu1 %v4327_v11 }
  0x34   : > { %3620 = vmatprep.subr.bf16.mxu0 %v3921_v42  ;;  %3513 = vmatmul.mubr.msk.bf16.gmra.mrb[8].mxu1 %vm348_vm0, %v3070_v14  ;;  %v3232_v31 = vrot.slane %v4174_v45, 9  ;;  %v3071_v39 = vcombine.low %v4322_v26, %v4336_v47  ;;  %v4352_v45 = vld [vmem:[%s4107_s11 + $0x54] sm:$0xf]  ;;  %v613_v14 = vshll.u32 %v4296_v23, 16  ;;  %v623_v32 = vshrl.u32 %v4299_v29, 16 }
  0x35   : > { %v1459_v34 = vsel %vm4204_vm3, %v1454_v51, %v1458_v0  ;;  %3604 = vmatprep.mubr.msk.bf16.mxu0 %vm348_vm0, %v3213_v62  ;;  %v1469_v38 = vsel %vm4204_vm3, %v1464_v1, %v1468_v35  ;;  %v1779_v0 = vrot.slane %v1777_v24, 4  ;;  %v4355_v51 = vld [vmem:[%s4107_s11 + $0x58] sm:$0xf]  ;;  %v1771_v62 = vsel %vm4317_vm6, %v3231_v13, %v1770_v30  ;;  %v5159_v59 = vld [vmem:[%s5231_s2] ss:$0 sm:$0xff] }
  0x36   : > { %v3214_v35 = vcombine.low %v1459_v34, %v1469_v38  ;;  %v1772_v1 = vrot.slane %v1770_v30, 4  ;;  %3516 = vmatprep.mubr.msk.bf16.mxu1 %vm348_vm0, %v3071_v39  ;;  %v634_v40 = vshrl.u32 %v4322_v26, 16  ;;  %v502_v38 = vsel %vm4204_vm3, %v4170_v43, %v4135_v22  ;;  %v4388_v43 = vld [vmem:[%s4107_s11 + $0x8] sm:$0x1] }
  0x37   : > { %3621 = vmatpush3.bf16.msra.mxu0 %v3921_v42  ;;  %v526_v42 = vsel %vm4204_vm3, %v4200_v4, %v4158_v37  ;;  %v1778_v13 = vsel %vm4317_vm6, %v3232_v31, %v1777_v24  ;;  %v1781_v22 = vsel %vm4317_vm6, %v1779_v0, %v1780_v44  ;;  %v3072_v37 = vcombine.low %v4352_v45, %v4355_v51  ;;  %v4391_v4 = vld [vmem:[%s4107_s11 + $0x14] sm:$0x1] }
  0x38   : > { %3622 = vmatprep.subr.bf16.mxu0 %v3922_v36  ;;  %3605 = vmatmul.mubr.msk.bf16.gmra.mrb[4].mxu0 %vm348_vm0, %v3214_v35  ;;  %v1774_v34 = vsel %vm4317_vm6, %v1772_v1, %v1773_v16  ;;  %v637_v16 = vshll.u32 %v4322_v26, 16  ;;  %v3233_v50 = vrot.slane %v4238_v48, 9  ;;  %v1784_v24 = vrot.slane %v4241_v49, 5 }
  0x39   : > { %v3247_v41 = vcombine.low %v1771_v62, %v1774_v34  ;;  %v1787_v55 = vrot.slane %v4247_v57, 5  ;;  %v3234_v44 = vrot.slane %v4260_v63, 9  ;;  %v1791_v30 = vrot.slane %v4267_v3, 5  ;;  %v3163_v57 = vld [vmem:[%s4107_s11 + $0x3c] sm:$0xf] }
  0x3a   : > { %v1794_v31 = vrot.slane %v4270_v6, 5  ;;  %v1785_v48 = vsel %vm4317_vm6, %v3233_v50, %v1784_v24  ;;  %v1786_v49 = vrot.slane %v1784_v24, 4  ;;  %v533_v0 = vshll.u32 %v4391_v4, 16  ;;  %v3164_v3 = vld [vmem:[%s4107_s11 + $0x40] sm:$0xf] }
  0x3b   : > { %3623 = vmatpush3.bf16.msra.mxu0 %v3922_v36  ;;  %3624 = vmatprep.mubr.msk.bf16.mxu0 %vm348_vm0, %v3247_v41  ;;  %v509_v36 = vshll.u32 %v4388_v43, 16  ;;  %v3248_v39 = vcombine.low %v1778_v13, %v1781_v22  ;;  %v1793_v63 = vrot.slane %v1791_v30, 4  ;;  %v3165_v6 = vld [vmem:[%s4107_s11 + $0x44] sm:$0x1]  ;;  %v3235_v35 = vrot.slane %v3163_v57, 9 }
  0x3c   : > { %3640 = vmatprep.subr.bf16.mxu0 %v4347_v33  ;;  %3517 = vmatmul.mubr.msk.bf16.gmra.mrb[12].mxu1 %vm348_vm0, %v3072_v37  ;;  %v4416_v62 = vsel %vm4317_vm6, %v3113_v17, %v888_v18  ;;  %v1788_v1 = vsel %vm4317_vm6, %v1786_v49, %v1787_v55  ;;  %v535_v13 = vrot.slane %v533_v0, 5  ;;  %v1798_v22 = vrot.slane %v3164_v3, 5  ;;  %v4421_v37 = vld [vmem:[%s4107_s11 + $0x48] sm:$0xf]  ;;  %v4433_v18 = vld [vmem:[%s4107_s11 + $0x4c] sm:$0xf] }
  0x3d   : > { %v511_v34 = vrot.slane %v509_v36, 5  ;;  %v3249_v41 = vcombine.low %v1785_v48, %v1788_v1  ;;  %v4425_v50 = vsel %vm4317_vm6, %v3234_v44, %v1791_v30  ;;  %v1795_v7 = vsel %vm4317_vm6, %v1793_v63, %v1794_v31  ;;  %v4436_v24 = vld [vmem:[%s4107_s11 + $0x50] sm:$0x1] }
  0x3e   : > { %v1801_v17 = vrot.slane %v3165_v6, 5  ;;  %v647_v55 = vshrl.u32 %v4336_v47, 16  ;;  %v536_v44 = vsel %vm4204_vm3, %v4215_v21, %v535_v13  ;;  %v1495_v30 = vshrl.u32 %v4421_v37, 16  ;;  %v4465_v6 = vld [vmem:[%s4107_s11 + $0x20] sm:$0x1] }
  0x3f   : > { %v512_v48 = vsel %vm4204_vm3, %v4176_v46, %v511_v34  ;;  %v3094_v36 = vcombine.low %v526_v42, %v536_v44  ;;  %v1800_v0 = vrot.slane %v1798_v22, 4  ;;  %v3250_v21 = vcombine.low %v4425_v50, %v1795_v7  ;;  %v4486_v44 = vld [vmem:[%s4107_s11 + $0x54] sm:$0xf]  ;;  %v4517_v13 = vld [vmem:[%s4107_s11 + $0x60] sm:$0xf] }
  0x40   : > { %3625 = vmatmul.mubr.msk.bf16.vlgmr.msra.gmra.mrb[0].mxu0 %vm348_vm0, %v3248_v39  ;;  %v3093_v49 = vcombine.low %v502_v38, %v512_v48  ;;  %v1799_v63 = vsel %vm4317_vm6, %v3235_v35, %v1798_v22  ;;  %v3932_v38 = vld [vmem:[%s5230_s1 + $0xd0] sm:$0xff]   ;;  %v3236_v42 = vrot.slane %v4421_v37, 9  ;;  %v1805_v39 = vrot.slane %v4433_v18, 5  ;;  %v3933_v35 = vld [vmem:[%s5230_s1 + $0x48] sm:$0xff]   ;;  %5241 = vst [vmem:[#allocation3_spill] sm:$0xff] %v4517_v13 }
  0x41   : > { %3641 = vmatpush3.bf16.msra.mxu0 %v4347_v33  ;;  %3628 = vmatprep.mubr.msk.bf16.mxu0 %vm348_vm0, %v3249_v41  ;;  %v1802_v33 = vsel %vm4317_vm6, %v1800_v0, %v1801_v17  ;;  %v1808_v3 = vrot.slane %v4436_v24, 5  ;;  %v4470_v1 = vrot.slane %v1495_v30, 4  ;;  %v540_v17 = vrot.slane %v538_v53, 4  ;;  %v4483_v48 = vld [vmem:[%s4107_s11 + $0x2c] sm:$0x1]  ;;  %v3934_v30 = vld [vmem:[%s5230_s1 + $0xd8] sm:$0xff]  }
  0x42   : > { %3642 = vmatprep.subr.bf16.mxu0 %v3930_v8  ;;  %3528 = vmatprep.mubr.msk.bf16.mxu1 %vm348_vm0, %v3093_v49  ;;  %v3251_v41 = vcombine.low %v1799_v63, %v1802_v33  ;;  %v4478_v50 = vsel %vm4317_vm6, %v3236_v42, %v1805_v39  ;;  %v1807_v7 = vrot.slane %v1805_v39, 4  ;;  %v543_v49 = vrot.slane %v541_v54, 5  ;;  %v4499_v63 = vld [vmem:[%s4107_s11 + $0x58] sm:$0xf]  ;;  %v3171_v42 = vld [vmem:[%s4107_s11 + $0x5c] sm:$0x1] }
  0x43   : > { %5240 = vst [vmem:[#allocation2_spill] sm:$0xff] %v4470_v1  ;;  %v553_v53 = vrot.slane %v551_v56, 4  ;;  %v557_v0 = vshll.u32 %v4465_v6, 16  ;;  %v567_v54 = vrot.slane %v565_v10, 5  ;;  %v3935_v56 = vld [vmem:[%s5230_s1 + $0x50] sm:$0xff]   ;;  %v577_v34 = vrot.slane %v575_v19, 4 }
  0x44   : > { %3529 = vmatmul.mubr.msk.bf16.vlgmr.msra.gmra.mrb[0].mxu1 %vm348_vm0, %v3094_v36  ;;  %v547_v36 = vshll.u32 %v4213_v20, 16  ;;  %v4503_v33 = vsel %vm4317_vm6, %v1807_v7, %v1808_v3  ;;  %v544_v3 = vor.u32 %v543_v49, %v540_v17  ;;  %v581_v46 = vshll.u32 %v4483_v48, 16 }
  0x45   : > { %3643 = vmatpush3.bf16.msra.mxu0 %v3930_v8  ;;  %3545 = vmatpush3.bf16.msra.mxu1 %v4327_v11  ;;  %v564_v11 = vrot.slane %v562_v61, 4  ;;  %v571_v8 = vshll.u32 %v4224_v28, 16  ;;  %v3252_v39 = vcombine.low %v4478_v50, %v4503_v33  ;;  %v559_v22 = vrot.slane %v557_v0, 5 }
  0x46   : > { %3644 = vmatprep.subr.bf16.mxu0 %v3932_v38  ;;  %3546 = vmatprep.subr.bf16.mxu1 %v3933_v35  ;;  %v549_v7 = vrot.slane %v547_v36, 5  ;;  %v545_v50 = vrot.slane %v544_v3, 4  ;;  %v3237_v17 = vrot.slane %v4486_v44, 9  ;;  %v1812_v49 = vrot.slane %v4499_v63, 5  ;;  %v4527_v36 = vld [vmem:[%s4107_s11 + $0x64] sm:$0xf] }
  0x47   : > { %v568_v61 = vor.u32 %v567_v54, %v564_v11  ;;  %v573_v10 = vrot.slane %v571_v8, 5  ;;  %5242 = vst [vmem:[#allocation4_spill] sm:$0xff] %v4527_v36  ;;  %v583_v11 = vrot.slane %v581_v46, 5  ;;  %v1815_v54 = vrot.slane %v3171_v42, 5 }
  0x48   : > { %3629 = vmatmul.mubr.msk.bf16.gmra.mrb[4].mxu0 %vm348_vm0, %v3250_v21  ;;  %v554_v33 = vor.u32 %v553_v53, %v549_v7  ;;  %v4532_v21 = vld [vmem:[%s5230_s1 + $0xe0] sm:$0xff]   ;;  %v550_v53 = vsel %vm4204_vm3, %v545_v50, %v549_v7  ;;  %v1813_v3 = vsel %vm4317_vm6, %v3237_v17, %v1812_v49  ;;  %v1814_v57 = vrot.slane %v1812_v49, 4 }
  0x49   : > { %3632 = vmatprep.mubr.msk.bf16.mxu0 %vm348_vm0, %v3251_v41  ;;  %3645 = vmatpush3.bf16.msra.mxu0 %v3932_v38  ;;  %v569_v0 = vrot.slane %v568_v61, 4  ;;  %v578_v19 = vor.u32 %v577_v34, %v573_v10  ;;  %v3174_v41 = vld [vmem:[%s4107_s11 + $0x68] sm:$0x1]  ;;  %v3939_v38 = vld [vmem:[%s5230_s1 + $0x58] sm:$0xff]   ;;  %v3238_v34 = vrot.slane %v4517_v13, 9  ;;  %v1819_v42 = vrot.slane %v4527_v36, 5 }
  0x4a   : > { %3547 = vmatpush3.bf16.msra.mxu1 %v3933_v35  ;;  %3646 = vmatprep.subr.bf16.mxu0 %v3934_v30  ;;  %v555_v8 = vrot.slane %v554_v33, 4  ;;  %v1816_v7 = vsel %vm4317_vm6, %v1814_v57, %v1815_v54  ;;  %v1822_v50 = vrot.slane %v3174_v41, 5  ;;  %v4551_v33 = vld [vmem:[%s4107_s11 + $0x38] sm:$0x1]  ;;  %v588_v17 = vrot.slane %v586_v58, 4 }
  0x4b   : > { %3548 = vmatprep.subr.bf16.mxu1 %v3935_v56  ;;  %v574_v46 = vsel %vm4204_vm3, %v569_v0, %v573_v10  ;;  %v579_v35 = vrot.slane %v578_v19, 4  ;;  %v3253_v0 = vcombine.low %v1813_v3, %v1816_v7  ;;  %v1820_v19 = vsel %vm4317_vm6, %v3238_v34, %v1819_v42  ;;  %v4566_v58 = vld [vmem:[%s4107_s11 + $0x18] sm:$0xf] }
  0x4c   : > { %v560_v61 = vsel %vm4204_vm3, %v555_v8, %v559_v22  ;;  %v4560_v22 = vld [vmem:[%s4107_s11 + $0x44] sm:$0x1]  ;;  %v1821_v54 = vrot.slane %v1819_v42, 4  ;;  %v595_v8 = vshll.u32 %v4290_v2, 16  ;;  %v605_v3 = vshll.u32 %v4551_v33, 16 }
  0x4d   : > { %3647 = vmatpush3.bf16.msra.mxu0 %v3934_v30  ;;  %v3095_v10 = vcombine.low %v550_v53, %v560_v61  ;;  %v584_v49 = vsel %vm4204_vm3, %v579_v35, %v583_v11  ;;  %v5243_v30 = vshll.u32 %v4286_v60, 16  ;;  %v4572_v11 = vld [vmem:[%s5230_s1 + $0x60] sm:$0xff]   ;;  %v615_v34 = vrot.slane %v613_v14, 5  ;;  %v4584_v42 = vld [vmem:[%s4107_s11 + $0x1c] sm:$0xf] }
  0x4e   : > { %3549 = vmatpush3.bf16.msra.mxu1 %v3935_v56  ;;  %v3096_v57 = vcombine.low %v574_v46, %v584_v49  ;;  %3664 = vmatprep.subr.bf16.mxu0 %v4532_v21  ;;  %v5244_v56 = vshrl.u32 %v4290_v2, 16  ;;  %v5245_v46 = vshrl.u32 %v4296_v23, 16  ;;  %v597_v7 = vrot.slane %v595_v8, 5 }
  0x4f   : > { %v591_v41 = vrot.slane %v5243_v30, 5  ;;  %3550 = vmatprep.subr.bf16.mxu1 %v3939_v38  ;;  %3532 = vmatprep.mubr.msk.bf16.mxu1 %vm348_vm0, %v3095_v10  ;;  %v619_v10 = vshll.u32 %v4299_v29, 16  ;;  %v607_v30 = vrot.slane %v605_v3, 5  ;;  %v629_v31 = vshll.u32 %v4560_v22, 16  ;;  %v4603_v3 = vld [vmem:[%s4107_s11 + $0x28] sm:$0xf] }
  0x50   : > { %3633 = vmatmul.mubr.msk.bf16.gmra.mrb[8].mxu0 %vm348_vm0, %v3252_v39  ;;  %v601_v53 = vrot.slane %v5244_v56, 4  ;;  %v612_v35 = vrot.slane %v5245_v46, 4  ;;  %3533 = vmatmul.mubr.msk.bf16.gmra.mrb[4].mxu1 %vm348_vm0, %v3096_v57  ;;  %v1823_v39 = vsel %vm4317_vm6, %v1821_v54, %v1822_v50  ;;  %v625_v56 = vrot.slane %v623_v32, 4  ;;  %v4596_v50 = vld [vmem:[%s4107_s11 + $0x24] sm:$0xf] }
  0x51   : > { %3636 = vmatprep.mubr.msk.bf16.mxu0 %vm348_vm0, %v3253_v0  ;;  %v592_v61 = vor.u32 %v591_v41, %v588_v17  ;;  %v621_v0 = vrot.slane %v619_v10, 5  ;;  %v3254_v17 = vcombine.low %v1820_v19, %v1823_v39  ;;  %v3301_v41 = vcombine.low %v4566_v58, %v4584_v42  ;;  %v4606_v32 = vld [vmem:[%s4107_s11 + $0x50] sm:$0x1] }
  0x52   : > { %v616_v14 = vor.u32 %v615_v34, %v612_v35  ;;  %3551 = vmatpush3.bf16.msra.mxu1 %v3939_v38  ;;  %v602_v46 = vor.u32 %v601_v53, %v597_v7  ;;  %v631_v34 = vrot.slane %v629_v31, 5  ;;  %v3302_v49 = vcombine.low %v4596_v50, %v4603_v3 }
  0x53   : > { %v593_v57 = vrot.slane %v592_v61, 4  ;;  %3568 = vmatprep.subr.bf16.mxu1 %v4572_v11  ;;  %v626_v35 = vor.u32 %v625_v56, %v621_v0  ;;  %v636_v56 = vrot.slane %v634_v40, 4  ;;  %v5246_v40 = vshrl.u32 %v4352_v45, 16 }
  0x54   : > { %v617_v54 = vrot.slane %v616_v14, 4  ;;  %v603_v53 = vrot.slane %v602_v46, 4  ;;  %v643_v46 = vshll.u32 %v4336_v47, 16  ;;  %v5247_v61 = vshll.u32 %v4352_v45, 16 }
  0x55   : > { %v598_v38 = vsel %vm4204_vm3, %v593_v57, %v597_v7  ;;  %v627_v14 = vrot.slane %v626_v35, 4  ;;  %v4620_v57 = vld [vmem:[%s4107_s11 + $0x5c] sm:$0x1]  ;;  %v4640_v35 = vld [vmem:[%s4107_s11 + $0x34] sm:$0xf]  ;;  %v667_v39 = vshll.u32 %v4355_v51, 16 }
  0x56   : > { %v622_v19 = vsel %vm4204_vm3, %v617_v54, %v621_v0  ;;  %v608_v10 = vsel %vm4204_vm3, %v603_v53, %v607_v30  ;;  %v639_v30 = vrot.slane %v637_v16, 5  ;;  %v4629_v0 = vld [vmem:[%s4107_s11 + $0x30] sm:$0xf]  ;;  %v660_v53 = vrot.slane %v5246_v40, 4 }
  0x57   : > { %v3097_v31 = vcombine.low %v598_v38, %v608_v10  ;;  %v632_v54 = vsel %vm4204_vm3, %v627_v14, %v631_v34  ;;  %v653_v38 = vshll.u32 %v4606_v32, 16  ;;  %v645_v7 = vrot.slane %v643_v46, 5  ;;  %v4646_v14 = vld [vmem:[%s4107_s11 + $0x3c] sm:$0xf] }
  0x58   : > { %3637 = vmatmul.mubr.msk.bf16.gmra.mrb[12].mxu0 %vm348_vm0, %v3254_v17  ;;  %v649_v17 = vrot.slane %v647_v55, 4  ;;  %v3098_v16 = vcombine.low %v622_v19, %v632_v54  ;;  %v640_v10 = vor.u32 %v639_v30, %v636_v56  ;;  %v663_v34 = vrot.slane %v5247_v61, 5 }
  0x59   : > { %3648 = vmatprep.mubr.msk.bf16.mxu0 %vm348_vm0, %v3301_v41  ;;  %3536 = vmatprep.mubr.msk.bf16.mxu1 %vm348_vm0, %v3097_v31  ;;  %v4649_v41 = vld [vmem:[%s4107_s11 + $0x40] sm:$0xf]  ;;  %v5248_v40 = vshrl.u32 %v4355_v51, 16  ;;  %v677_v13 = vshll.u32 %v4620_v57, 16  ;;  %v655_v56 = vrot.slane %v653_v38, 5  ;;  %v2294_v30 = vshrl.u32 %v4603_v3, 16 }
  0x5a   : > { %3537 = vmatmul.mubr.msk.bf16.gmra.mrb[8].mxu1 %vm348_vm0, %v3098_v16  ;;  %v641_v19 = vrot.slane %v640_v10, 4  ;;  %v650_v31 = vor.u32 %v649_v17, %v645_v7  ;;  %v664_v61 = vor.u32 %v663_v34, %v660_v53  ;;  %v669_v46 = vrot.slane %v667_v39, 5  ;;  %v3942_v17 = vld [vmem:[%s5230_s1 + $0xe8] sm:$0xff]  }
  0x5b   : > { %v673_v8 = vrot.slane %v5248_v40, 4  ;;  %v679_v54 = vrot.slane %v677_v13, 5  ;;  %v3303_v55 = vcombine.low %v4629_v0, %v4640_v35  ;;  %v2305_v16 = vshrl.u32 %v4629_v0, 16  ;;  %v4671_v10 = vld [vmem:[%s4107_s11 + $0x48] sm:$0xf] }
  0x5c   : > { %v646_v40 = vsel %vm4204_vm3, %v641_v19, %v645_v7  ;;  %v651_v36 = vrot.slane %v650_v31, 4  ;;  %v665_v1 = vrot.slane %v664_v61, 4  ;;  %v2308_v53 = vshll.u32 %v4629_v0, 16  ;;  %v4674_v34 = vld [vmem:[%s4107_s11 + $0x4c] sm:$0xf]  ;;  %v3946_v61 = vld [vmem:[%s5230_s1 + $0xf0] sm:$0xff]  }
  0x5d   : > { %v674_v38 = vor.u32 %v673_v8, %v669_v46  ;;  %v3304_v13 = vcombine.low %v4646_v14, %v4649_v41  ;;  %v2329_v19 = vshrl.u32 %v4646_v14, 16  ;;  %v891_v31 = vrot.slane %v4388_v43, 5 }
  0x5e   : > { %v656_v7 = vsel %vm4204_vm3, %v651_v36, %v655_v56  ;;  %v670_v8 = vsel %vm4204_vm3, %v665_v1, %v669_v46  ;;  %v5249_v36 = vrot.slane %v4127_v15, 5  ;;  %v5250_v1 = vrot.slane %v4116_v9, 9  ;;  %v4705_v9 = vld [vmem:[%s4107_s11 + $0x54] sm:$0xf] }
  0x5f   : > { %v3099_v39 = vcombine.low %v646_v40, %v656_v7  ;;  %v898_v43 = vrot.slane %v4391_v4, 5  ;;  %v2332_v46 = vshll.u32 %v4646_v14, 16  ;;  %v3305_v15 = vcombine.low %v4671_v10, %v4674_v34  ;;  %v4708_v40 = vld [vmem:[%s4107_s11 + $0x58] sm:$0xf] }
  0x60   : > { %3649 = vmatmul.mubr.msk.bf16.vlgmr.msra.gmra.mrb[0].mxu0 %vm348_vm0, %v3302_v49  ;;  %v675_v49 = vrot.slane %v674_v38, 4  ;;  %v4694_v56 = vsel %vm4317_vm6, %v5250_v1, %v5249_v36  ;;  %v4722_v36 = vld [vmem:[%s4107_s11 + $0x64] sm:$0xf] }
  0x61   : > { %3665 = vmatpush3.bf16.msra.mxu0 %v4532_v21  ;;  %3652 = vmatprep.mubr.msk.bf16.mxu0 %vm348_vm0, %v3303_v55  ;;  %v892_v55 = vsel %vm4317_vm6, %v4140_v25, %v891_v31  ;;  %v899_v7 = vsel %vm4317_vm6, %v4188_v52, %v898_v43  ;;  %v2353_v25 = vshrl.u32 %v4671_v10, 16  ;;  %v4719_v31 = vld [vmem:[%s4107_s11 + $0x60] sm:$0xf]  ;;  %v3115_v43 = vrot.slane %v4209_v12, 9  ;;  %v4743_v52 = vld [vmem:[%s4107_s11 + $0x70] sm:$0xf] }
  0x62   : > { %3666 = vmatprep.subr.bf16.mxu0 %v3942_v17  ;;  %3540 = vmatprep.mubr.msk.bf16.mxu1 %vm348_vm0, %v3099_v39  ;;  %v680_v4 = vsel %vm4204_vm3, %v675_v49, %v679_v54  ;;  %v3129_v38 = vcombine.low %v4416_v62, %v892_v55  ;;  %v3130_v21 = vcombine.low %v4694_v56, %v899_v7  ;;  %v2356_v39 = vshll.u32 %v4671_v10, 16  ;;  %v3950_v62 = vld [vmem:[%s5230_s1 + $0xf8] sm:$0xff]   ;;  %v4735_v55 = vld [vmem:[%s4107_s11 + $0x6c] sm:$0xf] }
  0x63   : > { %v3100_v1 = vcombine.low %v670_v8, %v680_v4  ;;  %v902_v8 = vrot.slane %v4213_v20, 5  ;;  %v905_v56 = vrot.slane %v4465_v6, 5  ;;  %v3116_v4 = vrot.slane %v4221_v27, 9 }
  0x64   : > { %v909_v7 = vrot.slane %v4224_v28, 5  ;;  %v3306_v12 = vcombine.low %v4705_v9, %v4708_v40  ;;  %v3307_v6 = vcombine.low %v4719_v31, %v4722_v36  ;;  %v5253_v20 = vshrl.u32 %v4584_v42, 16 }
  0x65   : > { %3667 = vmatpush3.bf16.msra.mxu0 %v3942_v17  ;;  %3541 = vmatmul.mubr.msk.bf16.gmra.mrb[12].mxu1 %vm348_vm0, %v3100_v1  ;;  %v912_v17 = vrot.slane %v4483_v48, 5  ;;  %v903_v1 = vsel %vm4317_vm6, %v3115_v43, %v902_v8  ;;  %v904_v49 = vrot.slane %v902_v8, 4  ;;  %v3308_v8 = vcombine.low %v4735_v55, %v4743_v52 }
  0x66   : > { %3668 = vmatprep.subr.bf16.mxu0 %v3946_v61  ;;  %3552 = vmatprep.mubr.msk.bf16.mxu1 %vm348_vm0, %v3129_v38  ;;  %v4754_v27 = vsel %vm4317_vm6, %v3116_v4, %v909_v7  ;;  %v911_v28 = vrot.slane %v909_v7, 4  ;;  %v926_v48 = vrot.slane %v4560_v22, 5  ;;  %v2272_v54 = vrot.slane %v5253_v20, 4 }
  0x67   : > { %v906_v38 = vsel %vm4317_vm6, %v904_v49, %v905_v56  ;;  %v3947_v56 = vld [vmem:[%s5230_s1 + $0x68] sm:$0xff]  }
  0x68   : > { %3653 = vmatmul.mubr.msk.bf16.gmra.mrb[4].mxu0 %vm348_vm0, %v3304_v13  ;;  %v3131_v4 = vcombine.low %v903_v1, %v906_v38  ;;  %v4768_v7 = vsel %vm4317_vm6, %v911_v28, %v912_v17  ;;  %v916_v17 = vrot.slane %v4290_v2, 5  ;;  %v919_v1 = vrot.slane %v4551_v33, 5  ;;  %v4786_v38 = vld [vmem:[%s4107_s11 + $0x20] sm:$0x1] }
  0x69   : > { %3656 = vmatprep.mubr.msk.bf16.mxu0 %vm348_vm0, %v3305_v15  ;;  %3669 = vmatpush3.bf16.msra.mxu0 %v3946_v61  ;;  %v3117_v61 = vrot.slane %v4286_v60, 9  ;;  %v4775_v15 = vld [vmem:[%s5230_s1 + $0x100] sm:$0xff]   ;;  %v3132_v49 = vcombine.low %v4754_v27, %v4768_v7  ;;  %v3118_v28 = vrot.slane %v4296_v23, 9  ;;  %v923_v60 = vrot.slane %v4299_v29, 5 }
  0x6a   : > { %3670 = vmatprep.subr.bf16.mxu0 %v3950_v62  ;;  %v5251_v13 = vshrl.u32 %v4566_v58, 16  ;;  %v5252_v27 = vshll.u32 %v4566_v58, 16  ;;  %v918_v33 = vrot.slane %v916_v17, 4  ;;  %v2266_v23 = vshll.u32 %v4584_v42, 16 }
  0x6b   : > { %v917_v2 = vsel %vm4317_vm6, %v3117_v61, %v916_v17  ;;  %v4802_v29 = vsel %vm4317_vm6, %v3118_v28, %v923_v60  ;;  %v925_v22 = vrot.slane %v923_v60, 4  ;;  %v4811_v61 = vld [vmem:[%s4107_s11 + $0x2c] sm:$0x1]  ;;  %v5255_v28 = vshll.u32 %v4596_v50, 16 }
  0x6c   : > { %v2259_v43 = vrot.slane %v5251_v13, 4  ;;  %v2262_v7 = vrot.slane %v5252_v27, 5  ;;  %v2276_v27 = vshll.u32 %v4786_v38, 16  ;;  %v2268_v20 = vrot.slane %v2266_v23, 5 }
  0x6d   : > { %3671 = vmatpush3.bf16.msra.mxu0 %v3950_v62  ;;  %3553 = vmatmul.mubr.msk.bf16.vlgmr.msra.gmra.mrb[0].mxu1 %vm348_vm0, %v3130_v21  ;;  %v920_v62 = vsel %vm4317_vm6, %v918_v33, %v919_v1  ;;  %v5254_v21 = vshrl.u32 %v4596_v50, 16 }
  0x6e   : > { %v2263_v13 = vor.u32 %v2262_v7, %v2259_v43  ;;  %3688 = vmatprep.subr.bf16.mxu0 %v4775_v15  ;;  %3569 = vmatpush3.bf16.msra.mxu1 %v4572_v11  ;;  %v2286_v43 = vrot.slane %v5255_v28, 5  ;;  %v3133_v60 = vcombine.low %v917_v2, %v920_v62  ;;  %v4820_v11 = vsel %vm4317_vm6, %v925_v22, %v926_v48 }
  0x6f   : > { %3556 = vmatprep.mubr.msk.bf16.mxu1 %vm348_vm0, %v3131_v4  ;;  %v2283_v17 = vrot.slane %v5254_v21, 4  ;;  %3570 = vmatprep.subr.bf16.mxu1 %v3947_v56  ;;  %v3951_v4 = vld [vmem:[%s5230_s1 + $0x70] sm:$0xff]   ;;  %v2278_v7 = vrot.slane %v2276_v27, 5  ;;  %v3134_v33 = vcombine.low %v4802_v29, %v4820_v11  ;;  %v2273_v23 = vor.u32 %v2272_v54, %v2268_v20 }
  0x70   : > { %3657 = vmatmul.mubr.msk.bf16.gmra.mrb[8].mxu0 %vm348_vm0, %v3306_v12  ;;  %v2264_v1 = vrot.slane %v2263_v13, 4  ;;  %v2290_v12 = vshll.u32 %v4603_v3, 16  ;;  %v2296_v48 = vrot.slane %v2294_v30, 4  ;;  %v2300_v22 = vshll.u32 %v4811_v61, 16  ;;  %v3953_v30 = vld [vmem:[%s5230_s1 + $0x78] sm:$0xff]  }
  0x71   : > { %3660 = vmatprep.mubr.msk.bf16.mxu0 %vm348_vm0, %v3307_v6  ;;  %v2287_v21 = vor.u32 %v2286_v43, %v2283_v17  ;;  %v3119_v13 = vrot.slane %v4322_v26, 9  ;;  %v2274_v6 = vrot.slane %v2273_v23, 4  ;;  %v930_v54 = vrot.slane %v4336_v47, 5  ;;  %v4849_v23 = vld [vmem:[%s4107_s11 + $0x38] sm:$0x1] }
  0x72   : > { %v2269_v2 = vsel %vm4204_vm3, %v2264_v1, %v2268_v20  ;;  %3571 = vmatpush3.bf16.msra.mxu1 %v3947_v56  ;;  %v2292_v62 = vrot.slane %v2290_v12, 5  ;;  %v2302_v17 = vrot.slane %v2300_v22, 5  ;;  %v933_v28 = vrot.slane %v4606_v32, 5 }
  0x73   : > { %v2288_v27 = vrot.slane %v2287_v21, 4  ;;  %3572 = vmatprep.subr.bf16.mxu1 %v3951_v4  ;;  %v3120_v20 = vrot.slane %v4352_v45, 9  ;;  %v937_v43 = vrot.slane %v4355_v51, 5  ;;  %v2279_v26 = vsel %vm4204_vm3, %v2274_v6, %v2278_v7  ;;  %v4880_v6 = vld [vmem:[%s4107_s11 + $0x44] sm:$0x1] }
  0x74   : > { %v2297_v1 = vor.u32 %v2296_v48, %v2292_v62  ;;  %v931_v47 = vsel %vm4317_vm6, %v3119_v13, %v930_v54  ;;  %v3329_v45 = vcombine.low %v2269_v2, %v2279_v26  ;;  %v932_v51 = vrot.slane %v930_v54, 4 }
  0x75   : > { %v2293_v56 = vsel %vm4204_vm3, %v2288_v27, %v2292_v62  ;;  %3557 = vmatmul.mubr.msk.bf16.gmra.mrb[4].mxu1 %vm348_vm0, %v3132_v49  ;;  %v4854_v32 = vsel %vm4317_vm6, %v3120_v20, %v937_v43  ;;  %v939_v21 = vrot.slane %v937_v43, 4  ;;  %v940_v12 = vrot.slane %v4620_v57, 5 }
  0x76   : > { %3560 = vmatprep.mubr.msk.bf16.mxu1 %vm348_vm0, %v3133_v60  ;;  %3573 = vmatpush3.bf16.msra.mxu1 %v3951_v4  ;;  %v2298_v7 = vrot.slane %v2297_v1, 4  ;;  %v2307_v48 = vrot.slane %v2305_v16, 4  ;;  %v2310_v49 = vrot.slane %v2308_v53, 5  ;;  %v934_v2 = vsel %vm4317_vm6, %v932_v51, %v933_v28 }
  0x77   : > { %3574 = vmatprep.subr.bf16.mxu1 %v3953_v30  ;;  %v2314_v60 = vshll.u32 %v4640_v35, 16  ;;  %v5256_v4 = vshrl.u32 %v4640_v35, 16  ;;  %v2324_v22 = vshll.u32 %v4849_v23, 16  ;;  %v3135_v53 = vcombine.low %v931_v47, %v934_v2 }
  0x78   : > { %3661 = vmatmul.mubr.msk.bf16.gmra.mrb[12].mxu0 %vm348_vm0, %v3308_v8  ;;  %v2303_v16 = vsel %vm4204_vm3, %v2298_v7, %v2302_v17  ;;  %v4877_v8 = vsel %vm4317_vm6, %v939_v21, %v940_v12  ;;  %v2311_v13 = vor.u32 %v2310_v49, %v2307_v48  ;;  %v2428_v27 = vshll.u32 %v4735_v55, 16  ;;  %v3966_v7 = vld [vmem:[%s4107_s11 + $0xc] sm:$0xf]  ;;  %v3967_v12 = vld [vmem:[%s4107_s11 + $0x10] sm:$0xf] }
  0x79   : > { %v2320_v57 = vrot.slane %v5256_v4, 4  ;;  %3672 = vmatprep.mubr.msk.bf16.mxu0 %vm348_vm0, %v3329_v45  ;;  %v3330_v62 = vcombine.low %v2293_v56, %v2303_v16  ;;  %v3136_v54 = vcombine.low %v4854_v32, %v4877_v8  ;;  %v2316_v28 = vrot.slane %v2314_v60, 5  ;;  %v4904_v49 = vld [vmem:[%s4107_s11 + $0x50] sm:$0x1]  ;;  %v3954_v4 = vld [vmem:[%s5230_s1 + $0x108] sm:$0xff]  }
  0x7a   : > { %3575 = vmatpush3.bf16.msra.mxu1 %v3953_v30  ;;  %v2312_v20 = vrot.slane %v2311_v13, 4  ;;  %v2331_v17 = vrot.slane %v2329_v19, 4  ;;  %v2334_v43 = vrot.slane %v2332_v46, 5  ;;  %v2338_v26 = vshll.u32 %v4649_v41, 16  ;;  %v4896_v30 = vld [vmem:[%s5230_s1 + $0x80] sm:$0xff]  }
  0x7b   : > { %v2321_v1 = vor.u32 %v2320_v57, %v2316_v28  ;;  %v2326_v47 = vrot.slane %v2324_v22, 5  ;;  %v5257_v56 = vshrl.u32 %v4649_v41, 16  ;;  %v2348_v51 = vshll.u32 %v4880_v6, 16  ;;  %3712 = vmatprep.subr.bf16.mxu1 %v4896_v30 }
  0x7c   : > { %v2317_v19 = vsel %vm4204_vm3, %v2312_v20, %v2316_v28  ;;  %v2335_v46 = vor.u32 %v2334_v43, %v2331_v17  ;;  %v2340_v21 = vrot.slane %v2338_v26, 5  ;;  %v3183_v48 = vcombine.low %v3966_v7, %v3967_v12  ;;  %v4926_v17 = vld [vmem:[%s4107_s11 + $0x5c] sm:$0x1] }
  0x7d   : > { %v2344_v45 = vrot.slane %v5257_v56, 4  ;;  %3561 = vmatmul.mubr.msk.bf16.gmra.mrb[8].mxu1 %vm348_vm0, %v3134_v33  ;;  %v2322_v2 = vrot.slane %v2321_v1, 4  ;;  %v2350_v60 = vrot.slane %v2348_v51, 5  ;;  %v2355_v57 = vrot.slane %v2353_v25, 4 }
  0x7e   : > { %v2358_v22 = vrot.slane %v2356_v39, 5  ;;  %3564 = vmatprep.mubr.msk.bf16.mxu1 %vm348_vm0, %v3135_v53  ;;  %v2336_v16 = vrot.slane %v2335_v46, 4  ;;  %v2362_v29 = vshll.u32 %v4674_v34, 16  ;;  %v5258_v11 = vshrl.u32 %v4674_v34, 16 }
  0x7f   : > { %v2345_v13 = vor.u32 %v2344_v45, %v2340_v21  ;;  %v2327_v28 = vsel %vm4204_vm3, %v2322_v2, %v2326_v47  ;;  %v2372_v25 = vshll.u32 %v4904_v49, 16  ;;  %v5259_v39 = vshrl.u32 %v4705_v9, 16 }
  0x80   : > { %v2368_v33 = vrot.slane %v5258_v11, 4  ;;  %3673 = vmatmul.mubr.msk.bf16.vlgmr.msra.gmra.mrb[0].mxu0 %vm348_vm0, %v3330_v62  ;;  %v2359_v20 = vor.u32 %v2358_v22, %v2355_v57  ;;  %v3331_v43 = vcombine.low %v2317_v19, %v2327_v28  ;;  %v2341_v26 = vsel %vm4204_vm3, %v2336_v16, %v2340_v21  ;;  %v3968_v11 = vld [vmem:[%s4107_s11 + $0x18] sm:$0xf]  ;;  %v3969_v28 = vld [vmem:[%s4107_s11 + $0x1c] sm:$0xf] }
  0x81   : > { %v2379_v53 = vrot.slane %v5259_v39, 4  ;;  %3689 = vmatpush3.bf16.msra.mxu0 %v4775_v15  ;;  %v2346_v1 = vrot.slane %v2345_v13, 4  ;;  %v2364_v56 = vrot.slane %v2362_v29, 5  ;;  %v2374_v47 = vrot.slane %v2372_v25, 5  ;;  %v3957_v15 = vld [vmem:[%s5230_s1 + $0x110] sm:$0xff]  }
  0x82   : > { %3690 = vmatprep.subr.bf16.mxu0 %v3954_v4  ;;  %v2360_v62 = vrot.slane %v2359_v20, 4  ;;  %v5260_v45 = vshll.u32 %v4705_v9, 16  ;;  %v2386_v46 = vshll.u32 %v4708_v40, 16  ;;  %3676 = vmatprep.mubr.msk.bf16.mxu0 %vm348_vm0, %v3331_v43  ;;  %v5261_v7 = vshrl.u32 %v4708_v40, 16  ;;  %v4947_v29 = vld [vmem:[%s4107_s11 + $0x68] sm:$0x1] }
  0x83   : > { %v2351_v19 = vsel %vm4204_vm3, %v2346_v1, %v2350_v60  ;;  %v2369_v21 = vor.u32 %v2368_v33, %v2364_v56  ;;  %v2396_v2 = vshll.u32 %v4926_v17, 16  ;;  %v2438_v57 = vshrl.u32 %v4743_v52, 16 }
  0x84   : > { %v2382_v51 = vrot.slane %v5260_v45, 5  ;;  %v2392_v12 = vrot.slane %v5261_v7, 4  ;;  %v3332_v22 = vcombine.low %v2341_v26, %v2351_v19  ;;  %v2388_v13 = vrot.slane %v2386_v46, 5  ;;  %v3970_v19 = vld [vmem:[%s4107_s11 + $0x24] sm:$0xf] }
  0x85   : > { %3691 = vmatpush3.bf16.msra.mxu0 %v3954_v4  ;;  %v3184_v20 = vcombine.low %v3968_v11, %v3969_v28  ;;  %v2365_v60 = vsel %vm4204_vm3, %v2360_v62, %v2364_v56  ;;  %v2370_v33 = vrot.slane %v2369_v21, 4  ;;  %v2398_v25 = vrot.slane %v2396_v2, 5  ;;  %3565 = vmatmul.mubr.msk.bf16.gmra.mrb[12].mxu1 %vm348_vm0, %v3136_v54  ;;  %v3960_v56 = vld [vmem:[%s5230_s1 + $0x118] sm:$0xff]   ;;  %v3971_v21 = vld [vmem:[%s4107_s11 + $0x28] sm:$0xf] }
  0x86   : > { %v2383_v16 = vor.u32 %v2382_v51, %v2379_v53  ;;  %v2393_v53 = vor.u32 %v2392_v12, %v2388_v13  ;;  %3692 = vmatprep.subr.bf16.mxu0 %v3957_v15  ;;  %v5262_v4 = vshrl.u32 %v4719_v31, 16  ;;  %v5263_v26 = vshll.u32 %v4719_v31, 16  ;;  %3576 = vmatprep.mubr.msk.bf16.mxu1 %vm348_vm0, %v3183_v48  ;;  %v4975_v2 = vld [vmem:[%s4107_s11 + $0x74] sm:$0x1] }
  0x87   : > { %v2375_v32 = vsel %vm4204_vm3, %v2370_v33, %v2374_v47  ;;  %v2410_v8 = vshll.u32 %v4722_v36, 16  ;;  %v5264_v54 = vshrl.u32 %v4722_v36, 16  ;;  %v2420_v45 = vshll.u32 %v4947_v29, 16 }
  0x88   : > { %v2384_v39 = vrot.slane %v2383_v16, 4  ;;  %v2403_v43 = vrot.slane %v5262_v4, 4  ;;  %v2406_v1 = vrot.slane %v5263_v26, 5  ;;  %3677 = vmatmul.mubr.msk.bf16.gmra.mrb[4].mxu0 %vm348_vm0, %v3332_v22  ;;  %v3333_v51 = vcombine.low %v2365_v60, %v2375_v32 }
  0x89   : > { %v2416_v62 = vrot.slane %v5264_v54, 4  ;;  %v2394_v46 = vrot.slane %v2393_v53, 4  ;;  %v3185_v7 = vcombine.low %v3970_v19, %v3971_v21  ;;  %3693 = vmatpush3.bf16.msra.mxu0 %v3957_v15  ;;  %v2412_v47 = vrot.slane %v2410_v8, 5 }
  0x8a   : > { %v2407_v12 = vor.u32 %v2406_v1, %v2403_v43  ;;  %v2389_v48 = vsel %vm4204_vm3, %v2384_v39, %v2388_v13  ;;  %v5265_v16 = vshrl.u32 %v4735_v55, 16  ;;  %v2430_v28 = vrot.slane %v2428_v27, 5  ;;  %3680 = vmatprep.mubr.msk.bf16.mxu0 %vm348_vm0, %v3333_v51  ;;  %3694 = vmatprep.subr.bf16.mxu0 %v3960_v56 }
  0x8b   : > { %v2399_v22 = vsel %vm4204_vm3, %v2394_v46, %v2398_v25  ;;  %v2434_v33 = vshll.u32 %v4743_v52, 16  ;;  %v2440_v53 = vrot.slane %v2438_v57, 4  ;;  %v2417_v4 = vor.u32 %v2416_v62, %v2412_v47 }
  0x8c   : > { %v2427_v11 = vrot.slane %v5265_v16, 4  ;;  %v2408_v60 = vrot.slane %v2407_v12, 4  ;;  %v2422_v13 = vrot.slane %v2420_v45, 5  ;;  %v2444_v39 = vshll.u32 %v4975_v2, 16 }
  0x8d   : > { %v5266_v43 = vshll.u32 %v4421_v37, 16  ;;  %v5267_v27 = vshll.u32 %v4433_v18, 16  ;;  %v3334_v32 = vcombine.low %v2389_v48, %v2399_v22  ;;  %v2436_v25 = vrot.slane %v2434_v33, 5  ;;  %3695 = vmatpush3.bf16.msra.mxu0 %v3960_v56  ;;  %3577 = vmatmul.mubr.msk.bf16.vlgmr.msra.gmra.mrb[0].mxu1 %vm348_vm0, %v3184_v20 }
  0x8e   : > { %v2431_v15 = vor.u32 %v2430_v28, %v2427_v11  ;;  %v2413_v8 = vsel %vm4204_vm3, %v2408_v60, %v2412_v47  ;;  %v2418_v57 = vrot.slane %v2417_v4, 4  ;;  %v3349_v62 = vrot.slane %v4566_v58, 9  ;;  %3716 = vmatpush3.bf16.msra.mxu1 %v4896_v30  ;;  %3580 = vmatprep.mubr.msk.bf16.mxu1 %vm348_vm0, %v3185_v7  ;;  %v3974_v47 = vld [vmem:[%s4107_s11 + $0x34] sm:$0xf]  ;;  %v3976_v4 = vld [vmem:[%s4107_s11 + $0x40] sm:$0xf] }
  0x8f   : > { %v4990_v26 = vrot.slane %v5266_v43, 5  ;;  %v4994_v1 = vrot.slane %v5267_v27, 5  ;;  %v2441_v45 = vor.u32 %v2440_v53, %v2436_v25  ;;  %v2446_v37 = vrot.slane %v2444_v39, 5  ;;  %v3975_v53 = vld [vmem:[%s4107_s11 + $0x3c] sm:$0xf] }
  0x90   : > { %v2432_v54 = vrot.slane %v2431_v15, 4  ;;  %v2652_v51 = vrot.slane %v4584_v42, 5  ;;  %v2655_v46 = vrot.slane %v4786_v38, 5  ;;  %v5268_v19 = vshrl.u32 %v4433_v18, 16  ;;  %3681 = vmatmul.mubr.msk.bf16.gmra.mrb[8].mxu0 %vm348_vm0, %v3334_v32  ;;  %v3972_v38 = vld [vmem:[%s5230_s1 + $0x88] sm:$0xff]   ;;  %v3978_v32 = vld [vmem:[%s5230_s1 + $0x90] sm:$0xff]  }
  0x91   : > { %v2423_v58 = vsel %vm4204_vm3, %v2418_v57, %v2422_v13  ;;  %v3350_v20 = vrot.slane %v4596_v50, 9  ;;  %v2659_v56 = vrot.slane %v4603_v3, 5  ;;  %v5269_v42 = vshll.u32 %v4436_v24, 16  ;;  %3713 = vmatprep.subr.bf16.mxu1 %v3972_v38  ;;  %v3973_v50 = vld [vmem:[%s4107_s11 + $0x30] sm:$0xf] }
  0x92   : > { %v5004_v21 = vrot.slane %v5268_v19, 4  ;;  %v3335_v30 = vcombine.low %v2413_v8, %v2423_v58  ;;  %v2442_v7 = vrot.slane %v2441_v45, 4  ;;  %v2654_v48 = vrot.slane %v2652_v51, 4  ;;  %3717 = vmatpush3.bf16.msra.mxu1 %v3972_v38  ;;  %v3977_v15 = vld [vmem:[%s4107_s11 + $0x48] sm:$0xf]  ;;  %v3980_v58 = vld [vmem:[%s5230_s1 + $0x98] sm:$0xff]  }
  0x93   : > { %v5014_v12 = vrot.slane %v5269_v42, 5  ;;  %v3186_v3 = vcombine.low %v3973_v50, %v3974_v47  ;;  %v2437_v24 = vsel %vm4204_vm3, %v2432_v54, %v2436_v25  ;;  %v2653_v16 = vsel %vm4317_vm6, %v3349_v62, %v2652_v51  ;;  %3714 = vmatprep.subr.bf16.mxu1 %v3978_v32  ;;  %v5270_v38 = vld [vmem:[#allocation2_spill] sm:$0xff] }
  0x94   : > { %v2662_v11 = vrot.slane %v4811_v61, 5  ;;  %3684 = vmatprep.mubr.msk.bf16.mxu0 %vm348_vm0, %v3335_v30  ;;  %v2447_v28 = vsel %vm4204_vm3, %v2442_v7, %v2446_v37  ;;  %v2656_v22 = vsel %vm4317_vm6, %v2654_v48, %v2655_v46  ;;  %v2661_v60 = vrot.slane %v2659_v56, 4 }
  0x95   : > { %v2666_v33 = vrot.slane %v4640_v35, 5  ;;  %v3187_v13 = vcombine.low %v3975_v53, %v3976_v4  ;;  %v3188_v39 = vcombine.low %v3977_v15, %v4433_v18  ;;  %v5039_v61 = vsel %vm4317_vm6, %v3350_v20, %v2659_v56  ;;  %3581 = vmatmul.mubr.msk.bf16.gmra.mrb[4].mxu1 %vm348_vm0, %v3186_v3 }
  0x96   : > { %v3351_v43 = vrot.slane %v4629_v0, 9  ;;  %v3336_v27 = vcombine.low %v2437_v24, %v2447_v28  ;;  %v3365_v35 = vcombine.low %v2653_v16, %v2656_v22  ;;  %v2669_v8 = vrot.slane %v4849_v23, 5  ;;  %3718 = vmatpush3.bf16.msra.mxu1 %v3978_v32  ;;  %v3981_v32 = vld [vmem:[%s4107_s11 + $0x54] sm:$0xf] }
  0x97   : > { %v2668_v25 = vrot.slane %v2666_v33, 4  ;;  %v3352_v57 = vrot.slane %v4646_v14, 9  ;;  %v2673_v18 = vrot.slane %v4649_v41, 5  ;;  %v1471_v54 = vshrl.u32 %v3975_v53, 16  ;;  %3584 = vmatprep.mubr.msk.bf16.mxu1 %vm348_vm0, %v3187_v13  ;;  %v3979_v41 = vld [vmem:[%s4107_s11 + $0x44] sm:$0x1]  ;;  %3715 = vmatprep.subr.bf16.mxu1 %v3980_v58 }
  0x98   : > { %v1474_v62 = vshll.u32 %v3975_v53, 16  ;;  %v2663_v0 = vsel %vm4317_vm6, %v2661_v60, %v2662_v11  ;;  %v3189_v45 = vcombine.low %v4486_v44, %v4499_v63  ;;  %v1480_v37 = vshll.u32 %v3976_v4, 16  ;;  %3685 = vmatmul.mubr.msk.bf16.gmra.mrb[12].mxu0 %vm348_vm0, %v3336_v27  ;;  %v5271_v60 = vld [vmem:[#allocation4_spill] sm:$0xff] }
  0x99   : > { %v1484_v51 = vshrl.u32 %v3976_v4, 16  ;;  %v2675_v23 = vrot.slane %v2673_v18, 4  ;;  %v2676_v14 = vrot.slane %v4880_v6, 5  ;;  %v1473_v46 = vrot.slane %v1471_v54, 4  ;;  %3696 = vmatprep.mubr.msk.bf16.mxu0 %vm348_vm0, %v3365_v35  ;;  %v3983_v54 = vld [vmem:[%s4107_s11 + $0x5c] sm:$0x1] }
  0x9a   : > { %v1490_v19 = vshll.u32 %v3979_v41, 16  ;;  %v2667_v44 = vsel %vm4317_vm6, %v3351_v43, %v2666_v33  ;;  %v1476_v63 = vrot.slane %v1474_v62, 5  ;;  %v1482_v20 = vrot.slane %v1480_v37, 5  ;;  %3719 = vmatpush3.bf16.msra.mxu1 %v3980_v58  ;;  %v5272_v33 = vld [vmem:[#allocation3_spill] sm:$0xff] }
  0x9b   : > { %v1486_v56 = vrot.slane %v1484_v51, 4  ;;  %v2670_v6 = vsel %vm4317_vm6, %v2668_v25, %v2669_v8  ;;  %v5067_v42 = vsel %vm4317_vm6, %v3352_v57, %v2673_v18  ;;  %v1501_v30 = vor.u32 %v4990_v26, %v5270_v38  ;;  %v3982_v25 = vld [vmem:[%s4107_s11 + $0x58] sm:$0xf] }
  0x9c   : > { %v1511_v7 = vor.u32 %v5004_v21, %v4994_v1  ;;  %v1477_v48 = vor.u32 %v1476_v63, %v1473_v46  ;;  %v3353_v47 = vrot.slane %v4671_v10, 9  ;;  %v2680_v3 = vrot.slane %v4674_v34, 5  ;;  %v3985_v63 = vld [vmem:[%s4107_s11 + $0x64] sm:$0xf] }
  0x9d   : > { %v1487_v50 = vor.u32 %v1486_v56, %v1482_v20  ;;  %v5077_v24 = vsel %vm4317_vm6, %v2675_v23, %v2676_v14  ;;  %v1492_v16 = vrot.slane %v1490_v19, 5  ;;  %v5079_v11 = vrot.slane %v1501_v30, 4  ;;  %3585 = vmatmul.mubr.msk.bf16.gmra.mrb[8].mxu1 %vm348_vm0, %v3188_v39 }
  0x9e   : > { %v5081_v28 = vrot.slane %v1511_v7, 4  ;;  %v3366_v26 = vcombine.low %v5039_v61, %v2663_v0  ;;  %v1478_v22 = vrot.slane %v1477_v48, 4  ;;  %v3190_v10 = vcombine.low %v5272_v33, %v5271_v60  ;;  %3588 = vmatprep.mubr.msk.bf16.mxu1 %vm348_vm0, %v3189_v45  ;;  %v3984_v0 = vld [vmem:[%s4107_s11 + $0x60] sm:$0xf] }
  0x9f   : > { %v1488_v21 = vrot.slane %v1487_v50, 4  ;;  %v3367_v53 = vcombine.low %v2667_v44, %v2670_v6  ;;  %v2682_v34 = vrot.slane %v2680_v3, 4  ;;  %v2683_v4 = vrot.slane %v4904_v49, 5 }
  0xa0   : > { %v3368_v13 = vcombine.low %v5067_v42, %v5077_v24  ;;  %v1507_v15 = vsel %vm4204_vm3, %v5079_v11, %v4994_v1  ;;  %v2681_v61 = vsel %vm4317_vm6, %v3353_v47, %v2680_v3  ;;  %v3354_v43 = vrot.slane %v4705_v9, 9  ;;  %3697 = vmatmul.mubr.msk.bf16.vlgmr.msra.gmra.mrb[0].mxu0 %vm348_vm0, %v3366_v26  ;;  %v3986_v24 = vld [vmem:[%s4107_s11 + $0x68] sm:$0x1]  ;;  %s3058_s11 = sshll.u32 %s4009_s12, 4 }
  0xa1   : > { %v1483_v49 = vsel %vm4204_vm3, %v1478_v22, %v1482_v20  ;;  %v1493_v39 = vsel %vm4204_vm3, %v1488_v21, %v1492_v16  ;;  %v1517_v1 = vsel %vm4204_vm3, %v5081_v28, %v5014_v12  ;;  %v2687_v27 = vrot.slane %v4708_v40, 5  ;;  %3700 = vmatprep.mubr.msk.bf16.mxu0 %vm348_vm0, %v3367_v53  ;;  %p230_p6 = scmp.lt.s32.totalorder %s3058_s11, 31 }
  0xa2   : > { %v1519_v9 = vshrl.u32 %v3981_v32, 16  ;;  %v1522_v35 = vshll.u32 %v3981_v32, 16  ;;  %v1528_v8 = vshll.u32 %v3982_v25, 16  ;;  %v1532_v57 = vshrl.u32 %v3982_v25, 16 }
  0xa3   : > { %v2684_v18 = vsel %vm4317_vm6, %v2682_v34, %v2683_v4  ;;  %v1538_v62 = vshll.u32 %v3983_v54, 16  ;;  %v1543_v12 = vshrl.u32 %v3984_v0, 16  ;;  %v1546_v45 = vshll.u32 %v3984_v0, 16  ;;  %s5286_s11 = smov (!%p230_p6, %s3058_s11), 31 }
  0xa4   : > { %v2690_v40 = vrot.slane %v4926_v17, 5  ;;  %v1521_v37 = vrot.slane %v1519_v9, 4  ;;  %v1524_v51 = vrot.slane %v1522_v35, 5  ;;  %v1530_v23 = vrot.slane %v1528_v8, 5  ;;  %s236_s29 = sadd.s32 %s3059_s28, %s5286_s11 }
  0xa5   : > { %v3215_v14 = vcombine.low %v1483_v49, %v1493_v39  ;;  %v1534_v46 = vrot.slane %v1532_v57, 4  ;;  %v1545_v41 = vrot.slane %v1543_v12, 4  ;;  %v1548_v19 = vrot.slane %v1546_v45, 5  ;;  %3589 = vmatmul.mubr.msk.bf16.gmra.mrb[12].mxu1 %vm348_vm0, %v3190_v10  ;;  %s3060_s5 = sshll.u32 %s236_s29, 3 }
  0xa6   : > { %v3369_v58 = vcombine.low %v2681_v61, %v2684_v18  ;;  %v1525_v44 = vor.u32 %v1524_v51, %v1521_v37  ;;  %v1552_v20 = vshll.u32 %v3985_v63, 16  ;;  %v1556_v56 = vshrl.u32 %v3985_v63, 16  ;;  %s5166_s7 = scalar_lea.vmem %s5232_s3, %s3060_s5 }
  0xa7   : > { %v2689_v6 = vrot.slane %v2687_v27, 4  ;;  %v1535_v42 = vor.u32 %v1534_v46, %v1530_v23  ;;  %v1540_v38 = vrot.slane %v1538_v62, 5  ;;  %v2694_v30 = vrot.slane %v4722_v36, 5  ;;  %3608 = vmatprep.mubr.msk.bf16.mxu1 %vm348_vm0, %v3215_v14 }
  0xa8   : > { %v1526_v17 = vrot.slane %v1525_v44, 4  ;;  %v1554_v7 = vrot.slane %v1552_v20, 5  ;;  %v1558_v48 = vrot.slane %v1556_v56, 4  ;;  %v3355_v50 = vrot.slane %v4719_v31, 9  ;;  %3701 = vmatmul.mubr.msk.bf16.gmra.mrb[4].mxu0 %vm348_vm0, %v3368_v13 }
  0xa9   : > { %v1536_v47 = vrot.slane %v1535_v42, 4  ;;  %v1549_v3 = vor.u32 %v1548_v19, %v1545_v41  ;;  %v1562_v16 = vshll.u32 %v3986_v24, 16  ;;  %v2696_v11 = vrot.slane %v2694_v30, 4  ;;  %3704 = vmatprep.mubr.msk.bf16.mxu0 %vm348_vm0, %v3369_v58 }
  0xaa   : > { %v1531_v28 = vsel %vm4204_vm3, %v1526_v17, %v1530_v23  ;;  %v1559_v36 = vor.u32 %v1558_v48, %v1554_v7  ;;  %v2697_v26 = vrot.slane %v4947_v29, 5  ;;  %v2688_v31 = vsel %vm4317_vm6, %v3354_v43, %v2687_v27 }
  0xab   : > { %v2691_v22 = vsel %vm4317_vm6, %v2689_v6, %v2690_v40  ;;  %v1541_v21 = vsel %vm4204_vm3, %v1536_v47, %v1540_v38  ;;  %v2701_v60 = vrot.slane %v4743_v52, 5  ;;  %v3216_v33 = vcombine.low %v1507_v15, %v1517_v1 }
  0xac   : > { %v2695_v10 = vsel %vm4317_vm6, %v3355_v50, %v2694_v30  ;;  %v2698_v29 = vsel %vm4317_vm6, %v2696_v11, %v2697_v26  ;;  %v3217_v53 = vcombine.low %v1531_v28, %v1541_v21  ;;  %v1550_v34 = vrot.slane %v1549_v3, 4 }
  0xad   : > { %v1560_v4 = vrot.slane %v1559_v36, 4  ;;  %v1564_v13 = vrot.slane %v1562_v16, 5  ;;  %v3370_v61 = vcombine.low %v2688_v31, %v2691_v22  ;;  %v3371_v43 = vcombine.low %v2695_v10, %v2698_v29  ;;  %3609 = vmatmul.mubr.msk.bf16.vlgmr.msra.gmra.mrb[8].mxu1 %vm348_vm0, %v3216_v33 }
  0xae   : > { %v3356_v49 = vrot.slane %v4735_v55, 9  ;;  %v2703_v39 = vrot.slane %v2701_v60, 4  ;;  %v2704_v27 = vrot.slane %v4975_v2, 5  ;;  %3612 = vmatprep.mubr.msk.bf16.mxu1 %vm348_vm0, %v3217_v53  ;;  %v1555_v52 = vsel %vm4204_vm3, %v1550_v34, %v1554_v7 }
  0xaf   : > { %v1565_v15 = vsel %vm4204_vm3, %v1560_v4, %v1564_v13 }
  0xb0   : > { %3705 = vmatmul.mubr.msk.bf16.gmra.mrb[8].mxu0 %vm348_vm0, %v3370_v61  ;;  %v2702_v55 = vsel %vm4317_vm6, %v3356_v49, %v2701_v60  ;;  %v2705_v2 = vsel %vm4317_vm6, %v2703_v39, %v2704_v27  ;;  %v3218_v1 = vcombine.low %v1555_v52, %v1565_v15 }
  0xb1   : > { %3708 = vmatprep.mubr.msk.bf16.mxu0 %vm348_vm0, %v3371_v43  ;;  %v3372_v32 = vcombine.low %v2702_v55, %v2705_v2 }
  0xb5   : > { %3613 = vmatmul.mubr.msk.bf16.gmra.mrb[12].mxu1 %vm348_vm0, %v3218_v1 }
  0xb8   : > { %3709 = vmatmul.mubr.msk.bf16.gmra.mrb[12].mxu0 %vm348_vm0, %v3372_v32 }
 0x160   : > { %v3578_v9 = vpop.f32.mrb[0].mxu1 }
 0x161   : > { %v1295_v5 = vpop.f32.mrb[1].mxu1  ;;  %v3720_v62 = vadd.f32 %v3578_v9, %v5159_v59 }
 0x162   : > { %v3579_v35 = vpop.f32.mrb[2].mxu1  ;;  %v3722_v0 = vadd.f32 %v5159_v59, %v1295_v5 }
 0x163   : > { %v1298_v25 = vpop.f32.mrb[3].mxu1  ;;  %v3724_v45 = vadd.f32 %v3579_v35, %v5159_v59 }
 0x164   : > { %v3726_v51 = vadd.f32 %v5159_v59, %v1298_v25 }
 0x168   : > { %v3582_v8 = vpop.f32.mrb[4].mxu1 }
 0x169   : > { %v1311_v57 = vpop.f32.mrb[5].mxu1  ;;  %v3728_v58 = vadd.f32 %v3582_v8, %v5159_v59 }
 0x16a   : > { %v3583_v18 = vpop.f32.mrb[6].mxu1  ;;  %v3730_v44 = vadd.f32 %v5159_v59, %v1311_v57 }
 0x16b   : > { %v1314_v54 = vpop.f32.mrb[7].mxu1  ;;  %v3732_v20 = vadd.f32 %v3583_v18, %v5159_v59 }
 0x16c   : > { %v3734_v42 = vadd.f32 %v5159_v59, %v1314_v54 }
 0x173   : > { %v3698_v12 = vpop.f32.mrb[0].mxu0 }
 0x174   : > { %v3721_v40 = vadd.f32 %v3720_v62, %v3698_v12  ;;  %v2821_v37 = vpop.f32.mrb[1].mxu0 }
 0x175   : > { %v3723_v23 = vadd.f32 %v3722_v0, %v2821_v37  ;;  %v3699_v14 = vpop.f32.mrb[2].mxu0 }
 0x176   : > { %2902 = vst.msk [vmem:[%s5166_s7 + $0x10] sm:$0xff] %vm348_vm0, %v3721_v40  ;;  %v3725_v46 = vadd.f32 %v3724_v45, %v3699_v14  ;;  %v2824_v41 = vpop.f32.mrb[3].mxu0 }
 0x177   : > { %2900 = vst.msk [vmem:[%s5166_s7] sm:$0xff] %vm348_vm0, %v3723_v23  ;;  %v3727_v19 = vadd.f32 %v3726_v51, %v2824_v41 }
 0x178   : > { %2903 = vst.msk [vmem:[%s5166_s7 + $0x18] sm:$0xff] %vm348_vm0, %v3725_v46 }
 0x179   : > { %2901 = vst.msk [vmem:[%s5166_s7 + $0x8] sm:$0xff] %vm348_vm0, %v3727_v19 }
 0x17b   : > { %v3702_v63 = vpop.f32.mrb[4].mxu0 }
 0x17c   : > { %v3729_v56 = vadd.f32 %v3728_v58, %v3702_v63  ;;  %v2837_v6 = vpop.f32.mrb[5].mxu0 }
 0x17d   : > { %v3731_v38 = vadd.f32 %v3730_v44, %v2837_v6  ;;  %v3703_v30 = vpop.f32.mrb[6].mxu0 }
 0x17e   : > { %2906 = vst.msk [vmem:[%s5166_s7 + $0x30] sm:$0xff] %vm348_vm0, %v3729_v56  ;;  %v3733_v17 = vadd.f32 %v3732_v20, %v3703_v30  ;;  %v2840_v7 = vpop.f32.mrb[7].mxu0 }
 0x17f   : > { %2904 = vst.msk [vmem:[%s5166_s7 + $0x20] sm:$0xff] %vm348_vm0, %v3731_v38  ;;  %v3735_v48 = vadd.f32 %v3734_v42, %v2840_v7 }
 0x180   : > { %2907 = vst.msk [vmem:[%s5166_s7 + $0x38] sm:$0xff] %vm348_vm0, %v3733_v17  ;;  %v3610_v50 = vpop.f32.mrb[8].mxu1 }
 0x181   : > { %2905 = vst.msk [vmem:[%s5166_s7 + $0x28] sm:$0xff] %vm348_vm0, %v3735_v48  ;;  %v3736_v47 = vadd.f32 %v3610_v50, %v5159_v59  ;;  %v1713_v3 = vpop.f32.mrb[9].mxu1 }
 0x182   : > { %v3738_v24 = vadd.f32 %v5159_v59, %v1713_v3  ;;  %v3611_v16 = vpop.f32.mrb[10].mxu1 }
 0x183   : > { %v3706_v11 = vpop.f32.mrb[8].mxu0  ;;  %v3740_v28 = vadd.f32 %v3611_v16, %v5159_v59  ;;  %v1716_v26 = vpop.f32.mrb[11].mxu1 }
 0x184   : > { %v3737_v36 = vadd.f32 %v3736_v47, %v3706_v11  ;;  %v2853_v31 = vpop.f32.mrb[9].mxu0  ;;  %v3742_v22 = vadd.f32 %v5159_v59, %v1716_v26 }
 0x185   : > { %v3739_v21 = vadd.f32 %v3738_v24, %v2853_v31  ;;  %v3707_v60 = vpop.f32.mrb[10].mxu0 }
 0x186   : > { %2910 = vst.msk [vmem:[%s5166_s7 + $0x50] sm:$0xff] %vm348_vm0, %v3737_v36  ;;  %v3741_v33 = vadd.f32 %v3740_v28, %v3707_v60  ;;  %v2856_v10 = vpop.f32.mrb[11].mxu0 }
 0x187   : > { %2908 = vst.msk [vmem:[%s5166_s7 + $0x40] sm:$0xff] %vm348_vm0, %v3739_v21  ;;  %v3743_v29 = vadd.f32 %v3742_v22, %v2856_v10 }
 0x188   : > { %2911 = vst.msk [vmem:[%s5166_s7 + $0x58] sm:$0xff] %vm348_vm0, %v3741_v33  ;;  %v3614_v53 = vpop.f32.mrb[12].mxu1 }
 0x189   : > { %2909 = vst.msk [vmem:[%s5166_s7 + $0x48] sm:$0xff] %vm348_vm0, %v3743_v29  ;;  %v3744_v34 = vadd.f32 %v3614_v53, %v5159_v59  ;;  %v1729_v4 = vpop.f32.mrb[13].mxu1 }
 0x18a   : > { %v3746_v13 = vadd.f32 %v5159_v59, %v1729_v4  ;;  %v3615_v61 = vpop.f32.mrb[14].mxu1 }
 0x18b   : > { %v3710_v43 = vpop.f32.mrb[12].mxu0  ;;  %v3748_v49 = vadd.f32 %v3615_v61, %v5159_v59  ;;  %v1732_v27 = vpop.f32.mrb[15].mxu1 }
 0x18c   : > { %v3745_v39 = vadd.f32 %v3744_v34, %v3710_v43  ;;  %v2869_v52 = vpop.f32.mrb[13].mxu0  ;;  %v3750_v15 = vadd.f32 %v5159_v59, %v1732_v27 }
 0x18d   : > { %v3747_v55 = vadd.f32 %v3746_v13, %v2869_v52  ;;  %v3711_v2 = vpop.f32.mrb[14].mxu0 }
 0x18e   : > { %2914 = vst.msk [vmem:[%s5166_s7 + $0x70] sm:$0xff] %vm348_vm0, %v3745_v39  ;;  %v3749_v1 = vadd.f32 %v3748_v49, %v3711_v2  ;;  %v2872_v32 = vpop.f32.mrb[15].mxu0 }
 0x18f   : > { %2912 = vst.msk [vmem:[%s5166_s7 + $0x60] sm:$0xff] %vm348_vm0, %v3747_v55  ;;  %v3751_v9 = vadd.f32 %v3750_v15, %v2872_v32 }
 0x190   : > { %2915 = vst.msk [vmem:[%s5166_s7 + $0x78] sm:$0xff] %vm348_vm0, %v3749_v1 }
 0x191   : > { %2913 = vst.msk [vmem:[%s5166_s7 + $0x68] sm:$0xff] %vm348_vm0, %v3751_v9 }
 0x192 PF: > { %s13_s16 = sadd.s32 1, %s4025_s16   ;;  %s5273_s12 = smov %s4017_s14 }
 0x193   : > { %p10_p7 = scmp.ge.s32.totalorder %s13_s16, 6   ;;  %s5274_s13 = smov %s4021_s15 }
 0x194   : > { %s5275_s14 = smov %s5278_s17  ;;  %s5276_s15 = smov %s5282_s18 }
 0x195   :  { %12 = sbr.rel (!%p10_p7) target bundleno = 3 (0x3), region = 79 }

// kernel: vgg19_forward.12
= control target key start
LH: loop header
LB: loop body
LE: loop exit
PB: predicated region body
PF: predicated region fallthrough
CT: control target
= control target key end

     0   :  { %s2758_s12 = smov 0   ;;  %s2760_s13 = smov 0   ;;  %s3432_s0 = inlined_call_operand.vmem [shape: bf16[2,10,10,64], index: 0, kind: input, shape index: {}]   ;;  %s3433_s1 = inlined_call_operand.vmem [shape: bf16[9,64,128], index: 1, kind: input, shape index: {}]   ;;  %s3434_s2 = inlined_call_operand.vmem [shape: f32[1,128], index: 2, kind: input, shape index: {}]   ;;  %s3435_s3 = inlined_call_operand.vmem [shape: f32[2,64,128], index: 3, kind: output, shape index: {}]  }
   0x1   :  { %s2762_s14 = smov 0  }
   0x2 LB: > { %s32_s15 = sadd.s32 1, %s2732_s13  ;;  %p2109_p0 = scmp.ge.s32.totalorder %s2736_s14, 1  ;;  %s2736_s14 = sphi %s2762_s14, %s13_s14   ;;  %s2732_s13 = sphi %s2760_s13, %s3445_s13   ;;  %s2728_s12 = sphi %s2758_s12, %s3444_s12  }
   0x3   : > { %p34_p1 = scmp.ge.s32.totalorder %s32_s15, 2  ;;  %p177_p2 = scmp.lt.s32.totalorder %s2736_s14, 3 }
   0x5   : > { %s3447_s15 = smov (%p34_p1, %s32_s15), 0  ;;  %p178_p3 = pnand %p2109_p0, %p177_p2 }
   0x6   : > { %v2666_v0 = vld [vmem:[%s3433_s1] sm:$0xff] (!%p178_p3)   ;;  %p215_p4 = scmp.lt.s32.totalorder (!%p178_p3), %s2728_s12, 1  ;;  %v2668_v2 = vld [vmem:[%s3433_s1 + $0x8] sm:$0xff] (!%p178_p3)   ;;  %v2670_v4 = vld [vmem:[%s3433_s1 + $0x10] sm:$0xff] (!%p178_p3)   ;;  %vm320_vm0 = vcmask (!%p178_p3), 523264   ;;  %vm659_vm3 = vcmask (!%p178_p3), 1042432  }
   0x7   : > { %181 = sbr.rel (%p178_p3) target bundleno = 329 (0x149), region = 32  ;;  %v2667_v1 = vld [vmem:[%s3433_s1 + $0x80] sm:$0xff] (!%p178_p3)   ;;  %2417 = vmatprep.subr.bf16.mxu1 (!%p178_p3), %v2666_v0  ;;  %v2669_v3 = vld [vmem:[%s3433_s1 + $0x88] sm:$0xff] (!%p178_p3)   ;;  %v2671_v5 = vld [vmem:[%s3433_s1 + $0x90] sm:$0xff] (!%p178_p3)   ;;  %vm406_vm1 = vsmask.f32 (!%p178_p3), 3328 }
   0x8   : > { %2481 = vmatprep.subr.bf16.mxu0 (!%p178_p3), %v2667_v1  ;;  %2418 = vmatpush3.bf16.msra.mxu1 (!%p178_p3), %v2666_v0  ;;  %v2672_v6 = vld [vmem:[%s3433_s1 + $0x18] sm:$0xff] (!%p178_p3)   ;;  %v2676_v20 = vld [vmem:[%s3433_s1 + $0x20] sm:$0xff] (!%p178_p3)   ;;  %v2678_v41 = vld [vmem:[%s3433_s1 + $0x28] sm:$0xff] (!%p178_p3)   ;;  %vm407_vm2 = vsmask.f32 (!%p178_p3), 7440  ;;  %vm660_vm4 = vcmask (!%p178_p3), 1046532  }
   0x9   : > { %2482 = vmatpush3.bf16.msra.mxu0 (!%p178_p3), %v2667_v1  ;;  %2419 = vmatprep.subr.bf16.mxu1 (!%p178_p3), %v2668_v2  ;;  %v2673_v10 = vld [vmem:[%s3433_s1 + $0x98] sm:$0xff] (!%p178_p3)   ;;  %v2849_v35 = vld [vmem:[%s3433_s1 + $0xa0] sm:$0xff] (!%p178_p3)   ;;  %vm2892_vm5 = vmor (!%p178_p3), %vm406_vm1, %vm407_vm2 }
   0xa   : > { %2483 = vmatprep.subr.bf16.mxu0 (!%p178_p3), %v2669_v3  ;;  %vm2972_vm6 = vmor (!%p178_p3), %vm659_vm3, %vm660_vm4  ;;  %v2685_v32 = vld [vmem:[%s3433_s1 + $0xb8] sm:$0xff] (!%p178_p3)  }
   0xc   : > { %2420 = vmatpush3.bf16.msra.mxu1 (!%p178_p3), %v2668_v2 }
   0xd   : > { %2484 = vmatpush3.bf16.msra.mxu0 (!%p178_p3), %v2669_v3  ;;  %2421 = vmatprep.subr.bf16.mxu1 (!%p178_p3), %v2670_v4 }
   0xe   : > { %s3449_s12 = smov (!%p215_p4, %s2728_s12), 1  ;;  %2485 = vmatprep.subr.bf16.mxu0 %v2671_v5 }
   0xf   : > { %s2641_s26 = smul.u32 80, %s3449_s12 }
  0x10   : > { %2422 = vmatpush3.bf16.msra.mxu1 %v2670_v4 }
  0x11   : > { %s2803_s6 = scalar_lea.vmem %s3432_s0, %s2641_s26  ;;  %2486 = vmatpush3.bf16.msra.mxu0 %v2671_v5  ;;  %2423 = vmatprep.subr.bf16.mxu1 %v2672_v6  ;;  %s2344_s26 = sshll.u32 %s3449_s12, 6 }
  0x12   : > { %v2806_v7 = vld [vmem:[%s2803_s6] sm:$0xf]  ;;  %v2809_v8 = vld [vmem:[%s2803_s6 + $0x8] sm:$0xf]  ;;  %v2812_v9 = vld [vmem:[%s2803_s6 + $0x10] sm:$0xf]  ;;  %2487 = vmatprep.subr.bf16.mxu0 %v2673_v10  ;;  %s238_s29 = scalar_lea.vmem %s3435_s3, %s2344_s26 }
  0x13   : > { %v2114_v11 = vcombine.low %v2806_v7, %v2809_v8  ;;  %v410_v12 = vshrl.u32 %v2806_v7, 16  ;;  %v413_v13 = vshll.u32 %v2806_v7, 16  ;;  %v424_v14 = vshrl.u32 %v2809_v8, 16  ;;  %v2823_v15 = vld [vmem:[%s2803_s6 + $0x18] sm:$0xf] }
  0x14   : > { %v427_v16 = vshll.u32 %v2809_v8, 16  ;;  %v2115_v19 = vcombine.low %v2812_v9, %v2823_v15  ;;  %v438_v24 = vshrl.u32 %v2812_v9, 16  ;;  %v441_v26 = vshll.u32 %v2812_v9, 16  ;;  %v2839_v29 = vld [vmem:[%s2803_s6 + $0x8] sm:$0xf]  ;;  %2424 = vmatpush3.bf16.msra.mxu1 %v2672_v6 }
  0x15   : > { %2425 = vmatprep.mubr.msk.bf16.mxu1 %vm320_vm0, %v2114_v11  ;;  %v412_v21 = vrot.slane %v410_v12, 4  ;;  %v415_v22 = vrot.slane %v413_v13, 5  ;;  %v426_v23 = vrot.slane %v424_v14, 4  ;;  %v452_v27 = vshrl.u32 %v2823_v15, 16  ;;  %v2844_v34 = vld [vmem:[%s2803_s6 + $0xc] sm:$0x1]  ;;  %2488 = vmatpush3.bf16.msra.mxu0 %v2673_v10 }
  0x16   : > { %v429_v25 = vrot.slane %v427_v16, 5  ;;  %v455_v28 = vshll.u32 %v2823_v15, 16  ;;  %v440_v31 = vrot.slane %v438_v24, 4  ;;  %v443_v37 = vrot.slane %v441_v26, 5  ;;  %v2852_v40 = vld [vmem:[%s2803_s6 + $0x10] sm:$0xf]  ;;  %2433 = vmatprep.subr.bf16.mxu1 %v2676_v20  ;;  %2497 = vmatprep.subr.bf16.mxu0 %v2849_v35 }
  0x17   : > { %v416_v30 = vor.u32 %v415_v22, %v412_v21  ;;  %v454_v38 = vrot.slane %v452_v27, 4  ;;  %v983_v43 = vshrl.u32 %v2839_v29, 16  ;;  %v2863_v47 = vld [vmem:[%s2803_s6 + $0x14] sm:$0x1]  ;;  %v986_v48 = vshll.u32 %v2839_v29, 16  ;;  %2426 = vmatmul.mubr.msk.bf16.vlgmr.msra.gmra.mrb[0].mxu1 %vm320_vm0, %v2115_v19 }
  0x18   : > { %v430_v36 = vor.u32 %v429_v25, %v426_v23  ;;  %v457_v39 = vrot.slane %v455_v28, 5  ;;  %v444_v45 = vor.u32 %v443_v37, %v440_v31  ;;  %v992_v50 = vshll.u32 %v2844_v34, 16  ;;  %v2877_v57 = vld [vmem:[%s2803_s6 + $0x18] sm:$0xf]  ;;  %2434 = vmatpush3.bf16.msra.mxu1 %v2676_v20  ;;  %v2881_v62 = vld [vmem:[%s2803_s6 + $0x1c] sm:$0x1] }
  0x19   : > { %v2857_v42 = vrot.slane %v416_v30, 4  ;;  %v985_v49 = vrot.slane %v983_v43, 4  ;;  %v997_v51 = vshrl.u32 %v2852_v40, 16  ;;  %v1000_v52 = vshll.u32 %v2852_v40, 16  ;;  %v2885_v2 = vld [vmem:[%s2803_s6 + $0x20] sm:$0xf]  ;;  %2435 = vmatprep.subr.bf16.mxu1 %v2678_v41 }
  0x1a   : > { %v2860_v44 = vrot.slane %v430_v36, 4  ;;  %v458_v46 = vor.u32 %v457_v39, %v454_v38  ;;  %v2871_v53 = vrot.slane %v444_v45, 4  ;;  %v988_v55 = vrot.slane %v986_v48, 5  ;;  %v2888_v3 = vld [vmem:[%s2803_s6 + $0x24] sm:$0x1]  ;;  %v2682_v12 = vld [vmem:[%s3433_s1 + $0x30] sm:$0xff]  }
  0x1b   : > { %v1006_v56 = vshll.u32 %v2863_v47, 16  ;;  %v994_v58 = vrot.slane %v992_v50, 5  ;;  %v999_v59 = vrot.slane %v997_v51, 4  ;;  %v1002_v60 = vrot.slane %v1000_v52, 5  ;;  %v2912_v37 = vld [vmem:[%s2803_s6 + $0x20] sm:$0xf] }
  0x1c   : > { %v2873_v54 = vrot.slane %v458_v46, 4  ;;  %v1234_v61 = vrot.slane %v2844_v34, 5  ;;  %v989_v63 = vor.u32 %v988_v55, %v985_v49  ;;  %v1238_v1 = vrot.slane %v2863_v47, 5  ;;  %2436 = vmatpush3.bf16.msra.mxu1 %v2678_v41  ;;  %v2915_v38 = vld [vmem:[%s2803_s6 + $0x28] sm:$0xf]  ;;  %v2684_v49 = vld [vmem:[%s3433_s1 + $0x38] sm:$0xff]  }
  0x1d   : > { %v1008_v0 = vrot.slane %v1006_v56, 5  ;;  %v1003_v5 = vor.u32 %v1002_v60, %v999_v59  ;;  %v1011_v6 = vshrl.u32 %v2877_v57, 16  ;;  %v1014_v10 = vshll.u32 %v2877_v57, 16  ;;  %2437 = vmatprep.subr.bf16.mxu1 %v2682_v12  ;;  %v2921_v46 = vld [vmem:[%s2803_s6 + $0x30] sm:$0xf] }
  0x1e   : > { %v1020_v11 = vshll.u32 %v2881_v62, 16  ;;  %v990_v13 = vrot.slane %v989_v63, 4  ;;  %v1025_v14 = vshrl.u32 %v2885_v2, 16  ;;  %v1028_v16 = vshll.u32 %v2885_v2, 16  ;;  %v2924_v48 = vld [vmem:[%s2803_s6 + $0x38] sm:$0xf] }
  0x1f   : > { %v1034_v19 = vshll.u32 %v2888_v3, 16  ;;  %v1004_v20 = vrot.slane %v1003_v5, 4  ;;  %v1013_v21 = vrot.slane %v1011_v6, 4  ;;  %v1016_v22 = vrot.slane %v1014_v10, 5  ;;  %v2946_v10 = vld [vmem:[%s2803_s6 + $0x28] sm:$0xf] }
  0x20   : > { %v1022_v23 = vrot.slane %v1020_v11, 5  ;;  %v995_v24 = vsel %vm2892_vm5, %v990_v13, %v994_v58  ;;  %v1027_v25 = vrot.slane %v1025_v14, 4  ;;  %v1030_v26 = vrot.slane %v1028_v16, 5  ;;  %2438 = vmatpush3.bf16.msra.mxu1 %v2682_v12  ;;  %v2949_v11 = vld [vmem:[%s2803_s6 + $0x2c] sm:$0x1] }
  0x21   : > { %v1036_v27 = vrot.slane %v1034_v19, 5  ;;  %v1009_v28 = vsel %vm2892_vm5, %v1004_v20, %v1008_v0  ;;  %v1017_v30 = vor.u32 %v1016_v22, %v1013_v21  ;;  %v1242_v31 = vrot.slane %v2881_v62, 5  ;;  %v2679_v0 = vld [vmem:[%s3433_s1 + $0xa8] sm:$0xff]   ;;  %2439 = vmatprep.subr.bf16.mxu1 %v2684_v49  ;;  %v2955_v13 = vld [vmem:[%s2803_s6 + $0x30] sm:$0xf]  ;;  %v3059_v62 = vld [vmem:[%s3433_s1 + $0xc0] sm:$0xff]  }
  0x22   : > { %v1246_v36 = vrot.slane %v2888_v3, 5  ;;  %v2218_v39 = vcombine.low %v995_v24, %v1009_v28  ;;  %v1031_v41 = vor.u32 %v1030_v26, %v1027_v25  ;;  %v2116_v43 = vcombine.low %v2912_v37, %v2915_v38  ;;  %v2958_v14 = vld [vmem:[%s2803_s6 + $0x34] sm:$0x1]  ;;  %v2968_v24 = vld [vmem:[%s3433_s1 + $0x40] sm:$0xff]  }
  0x23   : > { %v466_v45 = vshrl.u32 %v2912_v37, 16  ;;  %v1018_v50 = vrot.slane %v1017_v30, 4  ;;  %v469_v51 = vshll.u32 %v2912_v37, 16  ;;  %v480_v52 = vshrl.u32 %v2915_v38, 16 }
  0x24   : > { %v483_v55 = vshll.u32 %v2915_v38, 16  ;;  %2489 = vmatprep.mubr.msk.bf16.mxu0 %vm320_vm0, %v2218_v39  ;;  %v1032_v56 = vrot.slane %v1031_v41, 4  ;;  %2429 = vmatprep.mubr.msk.bf16.mxu1 %vm320_vm0, %v2116_v43  ;;  %v2117_v58 = vcombine.low %v2921_v46, %v2924_v48  ;;  %v494_v59 = vshrl.u32 %v2921_v46, 16 }
  0x25   : > { %v497_v60 = vshll.u32 %v2921_v46, 16  ;;  %v1023_v63 = vsel %vm2892_vm5, %v1018_v50, %v1022_v23  ;;  %v508_v5 = vshrl.u32 %v2924_v48, 16  ;;  %v511_v6 = vshll.u32 %v2924_v48, 16  ;;  %2440 = vmatpush3.bf16.msra.mxu1 %v2684_v49  ;;  %v2980_v49 = vld [vmem:[%s2803_s6 + $0x38] sm:$0xf] }
  0x26   : > { %v1037_v12 = vsel %vm2892_vm5, %v1032_v56, %v1036_v27  ;;  %2430 = vmatmul.mubr.msk.bf16.gmra.mrb[4].mxu1 %vm320_vm0, %v2117_v58  ;;  %v1039_v16 = vshrl.u32 %v2946_v10, 16  ;;  %v1042_v19 = vshll.u32 %v2946_v10, 16  ;;  %v1048_v21 = vshll.u32 %v2949_v11, 16  ;;  %2449 = vmatprep.subr.bf16.mxu1 %v2968_v24 }
  0x27   : > { %v2219_v20 = vcombine.low %v1023_v63, %v1037_v12  ;;  %v1053_v22 = vshrl.u32 %v2955_v13, 16  ;;  %v1056_v23 = vshll.u32 %v2955_v13, 16  ;;  %v1062_v28 = vshll.u32 %v2958_v14, 16  ;;  %v2986_v63 = vld [vmem:[%s2803_s6 + $0x3c] sm:$0x1] }
  0x28   : > { %v1041_v26 = vrot.slane %v1039_v16, 4  ;;  %v1044_v27 = vrot.slane %v1042_v19, 5  ;;  %v2230_v30 = vrot.slane %v2839_v29, 9  ;;  %v1050_v39 = vrot.slane %v1048_v21, 5  ;;  %v2989_v12 = vld [vmem:[%s2803_s6 + $0x40] sm:$0xf] }
  0x29   : > { %2490 = vmatmul.mubr.msk.bf16.vlgmr.msra.gmra.mrb[0].mxu0 %vm320_vm0, %v2219_v20  ;;  %v1055_v41 = vrot.slane %v1053_v22, 4  ;;  %v1058_v43 = vrot.slane %v1056_v23, 5  ;;  %v2231_v50 = vrot.slane %v2852_v40, 9  ;;  %v1064_v58 = vrot.slane %v1062_v28, 5  ;;  %v3002_v21 = vld [vmem:[%s2803_s6 + $0x44] sm:$0x1] }
  0x2a   : > { %2498 = vmatpush3.bf16.msra.mxu0 %v2849_v35  ;;  %v1045_v56 = vor.u32 %v1044_v27, %v1041_v26  ;;  %v1067_v16 = vshrl.u32 %v2980_v49, 16  ;;  %v2996_v19 = vsel %vm2972_vm6, %v2230_v30, %v1234_v61  ;;  %v2683_v35 = vld [vmem:[%s3433_s1 + $0xb0] sm:$0xff]   ;;  %v1070_v22 = vshll.u32 %v2980_v49, 16 }
  0x2b   : > { %2499 = vmatprep.subr.bf16.mxu0 %v2679_v0  ;;  %v1059_v20 = vor.u32 %v1058_v43, %v1055_v41  ;;  %v1076_v23 = vshll.u32 %v2986_v63, 16  ;;  %v1081_v26 = vshrl.u32 %v2989_v12, 16  ;;  %v1084_v61 = vshll.u32 %v2989_v12, 16 }
  0x2c   : > { %v1046_v27 = vrot.slane %v1045_v56, 4  ;;  %v1069_v34 = vrot.slane %v1067_v16, 4  ;;  %v1090_v28 = vshll.u32 %v3002_v21, 16  ;;  %v1072_v41 = vrot.slane %v1070_v22, 5 }
  0x2d   : > { %v1060_v30 = vrot.slane %v1059_v20, 4  ;;  %v1078_v43 = vrot.slane %v1076_v23, 5  ;;  %v1083_v33 = vrot.slane %v1081_v26, 4  ;;  %v1086_v16 = vrot.slane %v1084_v61, 5  ;;  %v3021_v23 = vld [vmem:[%s2803_s6 + $0x4] sm:$0x1] }
  0x2e   : > { %2500 = vmatpush3.bf16.msra.mxu0 %v2679_v0  ;;  %v1051_v56 = vsel %vm2892_vm5, %v1046_v27, %v1050_v39  ;;  %v1092_v18 = vrot.slane %v1090_v28, 5  ;;  %v1239_v17 = vsel %vm2972_vm6, %v2231_v50, %v1238_v1  ;;  %v1073_v22 = vor.u32 %v1072_v41, %v1069_v34  ;;  %v3024_v26 = vld [vmem:[%s2803_s6 + $0xc] sm:$0x1]  ;;  %v3027_v0 = vld [vmem:[%s2803_s6 + $0x14] sm:$0x1] }
  0x2f   : > { %v1065_v20 = vsel %vm2892_vm5, %v1060_v30, %v1064_v58  ;;  %2501 = vmatprep.subr.bf16.mxu0 %v2683_v35  ;;  %v2246_v39 = vcombine.low %v2996_v19, %v1239_v17  ;;  %v1087_v61 = vor.u32 %v1086_v16, %v1083_v33  ;;  %v419_v47 = vshll.u32 %v3021_v23, 16  ;;  %v3033_v1 = vld [vmem:[%s2803_s6 + $0x1c] sm:$0x1] }
  0x30   : > { %v2220_v27 = vcombine.low %v1051_v56, %v1065_v20  ;;  %v433_v28 = vshll.u32 %v3024_v26, 16  ;;  %v1074_v50 = vrot.slane %v1073_v22, 4  ;;  %v447_v58 = vshll.u32 %v3027_v0, 16 }
  0x31   : > { %v461_v34 = vshll.u32 %v3033_v1, 16  ;;  %v2232_v30 = vrot.slane %v2877_v57, 9  ;;  %v1088_v41 = vrot.slane %v1087_v61, 4  ;;  %v421_v17 = vrot.slane %v419_v47, 5  ;;  %v2688_v47 = vld [vmem:[%s3433_s1 + $0x48] sm:$0xff]  }
  0x32   : > { %2493 = vmatprep.mubr.msk.bf16.mxu0 %vm320_vm0, %v2220_v27  ;;  %2502 = vmatpush3.bf16.msra.mxu0 %v2683_v35  ;;  %v435_v19 = vrot.slane %v433_v28, 5  ;;  %v2233_v33 = vrot.slane %v2885_v2, 9  ;;  %v1079_v56 = vsel %vm2892_vm5, %v1074_v50, %v1078_v43  ;;  %v449_v16 = vrot.slane %v447_v58, 5  ;;  %v3075_v28 = vld [vmem:[%s2803_s6 + $0x24] sm:$0x1] }
  0x33   : > { %2503 = vmatprep.subr.bf16.mxu0 %v2685_v32  ;;  %v463_v20 = vrot.slane %v461_v34, 5  ;;  %v3046_v22 = vsel %vm2972_vm6, %v2232_v30, %v1242_v31  ;;  %v1093_v35 = vsel %vm2892_vm5, %v1088_v41, %v1092_v18  ;;  %v422_v27 = vsel %vm2892_vm5, %v2857_v42, %v421_v17  ;;  %v3079_v50 = vld [vmem:[%s2803_s6 + $0x2c] sm:$0x1] }
  0x34   : > { %v436_v43 = vsel %vm2892_vm5, %v2860_v44, %v435_v19  ;;  %v1247_v31 = vsel %vm2972_vm6, %v2233_v33, %v1246_v36  ;;  %v2221_v18 = vcombine.low %v1079_v56, %v1093_v35  ;;  %v450_v42 = vsel %vm2892_vm5, %v2871_v53, %v449_v16 }
  0x35   : > { %v2134_v61 = vcombine.low %v422_v27, %v436_v43  ;;  %v464_v44 = vsel %vm2892_vm5, %v2873_v54, %v463_v20  ;;  %v2247_v36 = vcombine.low %v3046_v22, %v1247_v31  ;;  %v468_v53 = vrot.slane %v466_v45, 4  ;;  %v3086_v54 = vld [vmem:[%s2803_s6 + $0x34] sm:$0x1]  ;;  %v3097_v45 = vld [vmem:[%s2803_s6 + $0x3c] sm:$0x1] }
  0x36   : > { %2504 = vmatpush3.bf16.msra.mxu0 %v2685_v32  ;;  %v2135_v3 = vcombine.low %v450_v42, %v464_v44  ;;  %v471_v58 = vrot.slane %v469_v51, 5  ;;  %v475_v34 = vshll.u32 %v3075_v28, 16  ;;  %v482_v32 = vrot.slane %v480_v52, 4 }
  0x37   : > { %2494 = vmatmul.mubr.msk.bf16.gmra.mrb[4].mxu0 %vm320_vm0, %v2221_v18  ;;  %2441 = vmatprep.mubr.msk.bf16.mxu1 %vm320_vm0, %v2134_v61  ;;  %v485_v30 = vrot.slane %v483_v55, 5  ;;  %v489_v41 = vshll.u32 %v3079_v50, 16  ;;  %v496_v17 = vrot.slane %v494_v59, 4  ;;  %v499_v19 = vrot.slane %v497_v60, 5  ;;  %v2690_v60 = vld [vmem:[%s3433_s1 + $0x50] sm:$0xff]  }
  0x38   : > { %2442 = vmatmul.mubr.msk.bf16.vlgmr.msra.gmra.mrb[0].mxu1 %vm320_vm0, %v2135_v3  ;;  %2505 = vmatprep.mubr.msk.bf16.mxu0 %vm320_vm0, %v2246_v39  ;;  %v472_v51 = vor.u32 %v471_v58, %v468_v53  ;;  %v503_v52 = vshll.u32 %v3086_v54, 16  ;;  %v477_v55 = vrot.slane %v475_v34, 5  ;;  %v510_v16 = vrot.slane %v508_v5, 4 }
  0x39   : > { %2513 = vmatprep.subr.bf16.mxu0 %v3059_v62  ;;  %2450 = vmatpush3.bf16.msra.mxu1 %v2968_v24  ;;  %v486_v33 = vor.u32 %v485_v30, %v482_v32  ;;  %v491_v56 = vrot.slane %v489_v41, 5  ;;  %v500_v20 = vor.u32 %v499_v19, %v496_v17  ;;  %v513_v59 = vrot.slane %v511_v6, 5  ;;  %v2689_v24 = vld [vmem:[%s3433_s1 + $0xc8] sm:$0xff]  }
  0x3a   : > { %2451 = vmatprep.subr.bf16.mxu1 %v2688_v47  ;;  %v473_v39 = vrot.slane %v472_v51, 4  ;;  %v505_v22 = vrot.slane %v503_v52, 5  ;;  %v517_v27 = vshll.u32 %v3097_v45, 16  ;;  %v2234_v5 = vrot.slane %v2946_v10, 9 }
  0x3b   : > { %v487_v35 = vrot.slane %v486_v33, 4  ;;  %v1250_v43 = vrot.slane %v2949_v11, 5  ;;  %v501_v18 = vrot.slane %v500_v20, 4  ;;  %v514_v6 = vor.u32 %v513_v59, %v510_v16  ;;  %v2694_v59 = vld [vmem:[%s3433_s1 + $0x60] sm:$0xff]  }
  0x3c   : > { %v478_v31 = vsel %vm2892_vm5, %v473_v39, %v477_v55  ;;  %v2235_v61 = vrot.slane %v2955_v13, 9  ;;  %v519_v44 = vrot.slane %v517_v27, 5  ;;  %v1254_v53 = vrot.slane %v2958_v14, 5  ;;  %v3148_v55 = vld [vmem:[%s2803_s6 + $0x10] sm:$0xf] }
  0x3d   : > { %2452 = vmatpush3.bf16.msra.mxu1 %v2688_v47  ;;  %v492_v42 = vsel %vm2892_vm5, %v487_v35, %v491_v56  ;;  %v1251_v3 = vsel %vm2972_vm6, %v2234_v5, %v1250_v43  ;;  %v506_v11 = vsel %vm2892_vm5, %v501_v18, %v505_v22  ;;  %v515_v34 = vrot.slane %v514_v6, 4  ;;  %v2692_v47 = vld [vmem:[%s3433_s1 + $0x58] sm:$0xff]   ;;  %v3185_v5 = vld [vmem:[%s2803_s6 + $0x28] sm:$0xf] }
  0x3e   : > { %v2136_v58 = vcombine.low %v478_v31, %v492_v42  ;;  %2453 = vmatprep.subr.bf16.mxu1 %v2690_v60  ;;  %v2236_v32 = vrot.slane %v2980_v49, 9  ;;  %v1255_v30 = vsel %vm2972_vm6, %v2235_v61, %v1254_v53  ;;  %v1258_v14 = vrot.slane %v2986_v63, 5  ;;  %v3151_v63 = vld [vmem:[%s2803_s6 + $0x18] sm:$0xf] }
  0x3f   : > { %2506 = vmatmul.mubr.msk.bf16.vlgmr.msra.gmra.mrb[0].mxu0 %vm320_vm0, %v2247_v36  ;;  %v2237_v41 = vrot.slane %v2989_v12, 9  ;;  %v1262_v51 = vrot.slane %v3002_v21, 5  ;;  %v520_v17 = vsel %vm2892_vm5, %v515_v34, %v519_v44  ;;  %v2248_v19 = vcombine.low %v1251_v3, %v1255_v30  ;;  %v2691_v21 = vld [vmem:[%s3433_s1 + $0xd0] sm:$0xff]  }
  0x40   : > { %2514 = vmatpush3.bf16.msra.mxu0 %v3059_v62  ;;  %2445 = vmatprep.mubr.msk.bf16.mxu1 %vm320_vm0, %v2136_v58  ;;  %v664_v52 = vrot.slane %v3021_v23, 5  ;;  %v668_v36 = vrot.slane %v3024_v26, 5  ;;  %v2137_v33 = vcombine.low %v506_v11, %v520_v17  ;;  %v1259_v62 = vsel %vm2972_vm6, %v2236_v32, %v1258_v14  ;;  %v2696_v58 = vld [vmem:[%s3433_s1 + $0xe0] sm:$0xff]   ;;  %v2698_v11 = vld [vmem:[%s3433_s1 + $0x68] sm:$0xff]  }
  0x41   : > { %2515 = vmatprep.subr.bf16.mxu0 %v2689_v24  ;;  %2454 = vmatpush3.bf16.msra.mxu1 %v2690_v60  ;;  %v1263_v23 = vsel %vm2972_vm6, %v2237_v41, %v1262_v51  ;;  %v672_v26 = vrot.slane %v3027_v0, 5  ;;  %v3440_v56 = vrot.slane %v2806_v7, 9  ;;  %v3441_v39 = vrot.slane %v2809_v8, 9  ;;  %v3175_v0 = vld [vmem:[%s2803_s6 + $0x20] sm:$0xf] }
  0x42   : > { %2509 = vmatprep.mubr.msk.bf16.mxu0 %vm320_vm0, %v2248_v19  ;;  %2455 = vmatprep.subr.bf16.mxu1 %v2692_v47  ;;  %v676_v22 = vrot.slane %v3033_v1, 5  ;;  %v2249_v60 = vcombine.low %v1259_v62, %v1263_v23  ;;  %v3442_v35 = vrot.slane %v2812_v9, 9  ;;  %v2282_v27 = vcombine.low %v3148_v55, %v3151_v63  ;;  %v2693_v1 = vld [vmem:[%s3433_s1 + $0xd8] sm:$0xff]   ;;  %v3221_v41 = vld [vmem:[%s2803_s6 + $0x30] sm:$0xf] }
  0x43   : > { %v665_v16 = vsel %vm2972_vm6, %v3440_v56, %v664_v52  ;;  %v669_v20 = vsel %vm2972_vm6, %v3441_v39, %v668_v36  ;;  %2446 = vmatmul.mubr.msk.bf16.gmra.mrb[4].mxu1 %vm320_vm0, %v2137_v33  ;;  %v3443_v43 = vrot.slane %v2823_v15, 9  ;;  %v1553_v9 = vshrl.u32 %v3148_v55, 16  ;;  %v3237_v52 = vld [vmem:[%s2803_s6 + $0x40] sm:$0xf]  ;;  %v3240_v36 = vld [vmem:[%s2803_s6 + $0x48] sm:$0xf] }
  0x44   : > { %v2162_v7 = vcombine.low %v665_v16, %v669_v20  ;;  %v673_v8 = vsel %vm2972_vm6, %v3442_v35, %v672_v26  ;;  %2516 = vmatpush3.bf16.msra.mxu0 %v2689_v24  ;;  %v1556_v18 = vshll.u32 %v3148_v55, 16  ;;  %v1567_v6 = vshrl.u32 %v3151_v63, 16  ;;  %v2700_v62 = vld [vmem:[%s3433_s1 + $0x70] sm:$0xff]  }
  0x45   : > { %v677_v31 = vsel %vm2972_vm6, %v3443_v43, %v676_v22  ;;  %2517 = vmatprep.subr.bf16.mxu0 %v2691_v21  ;;  %2456 = vmatpush3.bf16.msra.mxu1 %v2692_v47  ;;  %v1570_v24 = vshll.u32 %v3151_v63, 16  ;;  %v1581_v42 = vshrl.u32 %v3175_v0, 16  ;;  %v1584_v15 = vshll.u32 %v3175_v0, 16  ;;  %v3262_v35 = vld [vmem:[%s2803_s6 + $0x14] sm:$0x1] }
  0x46   : > { %v2163_v61 = vcombine.low %v673_v8, %v677_v31  ;;  %2457 = vmatprep.mubr.msk.bf16.mxu1 %vm320_vm0, %v2162_v7  ;;  %2465 = vmatprep.subr.bf16.mxu1 %v2694_v59  ;;  %v1595_v44 = vshrl.u32 %v3185_v5, 16  ;;  %v2150_v3 = vrot.slane %v2912_v37, 9  ;;  %v680_v53 = vrot.slane %v3075_v28, 5  ;;  %v2702_v31 = vld [vmem:[%s3433_s1 + $0xf0] sm:$0xff]  }
  0x47   : > { %2510 = vmatmul.mubr.msk.bf16.gmra.mrb[4].mxu0 %vm320_vm0, %v2249_v60  ;;  %v2151_v34 = vrot.slane %v2915_v38, 9  ;;  %v684_v32 = vrot.slane %v3079_v50, 5  ;;  %v2152_v47 = vrot.slane %v2921_v46, 9  ;;  %v688_v37 = vrot.slane %v3086_v54, 5  ;;  %v3224_v38 = vld [vmem:[%s2803_s6 + $0x38] sm:$0xf] }
  0x48   : > { %2518 = vmatpush3.bf16.msra.mxu0 %v2691_v21  ;;  %2521 = vmatprep.mubr.msk.bf16.mxu0 %vm320_vm0, %v2282_v27  ;;  %v681_v28 = vsel %vm2972_vm6, %v2150_v3, %v680_v53  ;;  %v2153_v30 = vrot.slane %v2924_v48, 9  ;;  %v692_v14 = vrot.slane %v3097_v45, 5  ;;  %v1598_v46 = vshll.u32 %v3185_v5, 16  ;;  %v2699_v21 = vld [vmem:[%s3433_s1 + $0xe8] sm:$0xff]  }
  0x49   : > { %2519 = vmatprep.subr.bf16.mxu0 %v2693_v1  ;;  %v685_v50 = vsel %vm2972_vm6, %v2151_v34, %v684_v32  ;;  %v689_v54 = vsel %vm2972_vm6, %v2152_v47, %v688_v37  ;;  %v1609_v51 = vshrl.u32 %v3221_v41, 16  ;;  %v1612_v45 = vshll.u32 %v3221_v41, 16  ;;  %v3281_v34 = vld [vmem:[%s2803_s6 + $0x2c] sm:$0x1] }
  0x4a   : > { %v2164_v17 = vcombine.low %v681_v28, %v685_v50  ;;  %v693_v48 = vsel %vm2972_vm6, %v2153_v30, %v692_v14  ;;  %v1623_v19 = vshrl.u32 %v3224_v38, 16  ;;  %v2283_v33 = vcombine.low %v3175_v0, %v3185_v5 }
  0x4b   : > { %2458 = vmatmul.mubr.msk.bf16.vlgmr.msra.gmra.mrb[0].mxu1 %vm320_vm0, %v2163_v61  ;;  %v1626_v23 = vshll.u32 %v3224_v38, 16  ;;  %v1637_v26 = vshrl.u32 %v3237_v52, 16  ;;  %v1640_v56 = vshll.u32 %v3237_v52, 16  ;;  %v1651_v16 = vshrl.u32 %v3240_v36, 16 }
  0x4c   : > { %2520 = vmatpush3.bf16.msra.mxu0 %v2693_v1  ;;  %2466 = vmatpush3.bf16.msra.mxu1 %v2694_v59  ;;  %v1654_v39 = vshll.u32 %v3240_v36, 16  ;;  %v2320_v20 = vrot.slane %v3237_v52, 9  ;;  %v2165_v22 = vcombine.low %v689_v54, %v693_v48  ;;  %v2284_v60 = vcombine.low %v3221_v41, %v3224_v38  ;;  %v3265_v59 = vld [vmem:[%s2803_s6 + $0x1c] sm:$0x1]  ;;  %v3299_v48 = vld [vmem:[%s2803_s6 + $0x34] sm:$0x1] }
  0x4d   : > { %2529 = vmatprep.subr.bf16.mxu0 %v2696_v58  ;;  %2467 = vmatprep.subr.bf16.mxu1 %v2698_v11  ;;  %v2198_v7 = vcombine.low %v2839_v29, %v2852_v40  ;;  %v1555_v8 = vrot.slane %v1553_v9, 4  ;;  %v1558_v27 = vrot.slane %v1556_v18, 5  ;;  %v1562_v1 = vshll.u32 %v3262_v35, 16 }
  0x4e   : > { %2461 = vmatprep.mubr.msk.bf16.mxu1 %vm320_vm0, %v2164_v17  ;;  %v1569_v43 = vrot.slane %v1567_v6, 4  ;;  %v2321_v29 = vrot.slane %v3240_v36, 9  ;;  %v1572_v40 = vrot.slane %v1570_v24, 5  ;;  %v1576_v61 = vshll.u32 %v3265_v59, 16  ;;  %v3278_v6 = vld [vmem:[%s2803_s6 + $0x24] sm:$0x1] }
  0x4f   : > { %2522 = vmatmul.mubr.msk.bf16.vlgmr.msra.gmra.mrb[0].mxu0 %vm320_vm0, %v2283_v33  ;;  %v1583_v3 = vrot.slane %v1581_v42, 4  ;;  %v2199_v9 = vcombine.low %v2877_v57, %v2885_v2  ;;  %v1559_v18 = vor.u32 %v1558_v27, %v1555_v8  ;;  %v1564_v53 = vrot.slane %v1562_v1, 5  ;;  %v2704_v24 = vld [vmem:[%s3433_s1 + $0x78] sm:$0xff]  }
  0x50   : > { %2530 = vmatpush3.bf16.msra.mxu0 %v2696_v58  ;;  %2468 = vmatpush3.bf16.msra.mxu1 %v2698_v11  ;;  %v1586_v32 = vrot.slane %v1584_v15, 5  ;;  %v1573_v42 = vor.u32 %v1572_v40, %v1569_v43  ;;  %v1578_v58 = vrot.slane %v1576_v61, 5  ;;  %v1590_v11 = vshll.u32 %v3278_v6, 16  ;;  %v2705_v8 = vld [vmem:[%s3433_s1 + $0xf8] sm:$0xff]   ;;  %v3317_v43 = vld [vmem:[%s2803_s6 + $0x44] sm:$0x1] }
  0x51   : > { %2531 = vmatprep.subr.bf16.mxu0 %v2699_v21  ;;  %2469 = vmatprep.subr.bf16.mxu1 %v2700_v62  ;;  %v1597_v47 = vrot.slane %v1595_v44, 4  ;;  %v1560_v37 = vrot.slane %v1559_v18, 4  ;;  %v1600_v15 = vrot.slane %v1598_v46, 5  ;;  %v1604_v30 = vshll.u32 %v3281_v34, 16  ;;  %v3302_v44 = vld [vmem:[%s2803_s6 + $0x3c] sm:$0x1] }
  0x52   : > { %2525 = vmatprep.mubr.msk.bf16.mxu0 %vm320_vm0, %v2284_v60  ;;  %v1587_v28 = vor.u32 %v1586_v32, %v1583_v3  ;;  %v2285_v14 = vcombine.low %v3237_v52, %v3240_v36  ;;  %v1574_v50 = vrot.slane %v1573_v42, 4  ;;  %v1592_v54 = vrot.slane %v1590_v11, 5  ;;  %v2708_v61 = vld [vmem:[%s3433_s1 + $0x100] sm:$0xff]  }
  0x53   : > { %2462 = vmatmul.mubr.msk.bf16.gmra.mrb[4].mxu1 %vm320_vm0, %v2165_v22  ;;  %v2200_v17 = vcombine.low %v2946_v10, %v2955_v13  ;;  %v1565_v46 = vsel %vm2892_vm5, %v1560_v37, %v1564_v53  ;;  %v1601_v22 = vor.u32 %v1600_v15, %v1597_v47  ;;  %v1606_v60 = vrot.slane %v1604_v30, 5 }
  0x54   : > { %2532 = vmatpush3.bf16.msra.mxu0 %v2699_v21  ;;  %2470 = vmatpush3.bf16.msra.mxu1 %v2700_v62  ;;  %v1588_v33 = vrot.slane %v1587_v28, 4  ;;  %v1579_v27 = vsel %vm2892_vm5, %v1574_v50, %v1578_v58  ;;  %v1611_v1 = vrot.slane %v1609_v51, 4  ;;  %v1614_v21 = vrot.slane %v1612_v45, 5  ;;  %v3334_v58 = vld [vmem:[%s2803_s6 + $0x4c] sm:$0x1] }
  0x55   : > { %2533 = vmatprep.subr.bf16.mxu0 %v2702_v31  ;;  %2471 = vmatprep.subr.bf16.mxu1 %v2704_v24  ;;  %v1618_v62 = vshll.u32 %v3299_v48, 16  ;;  %v2302_v40 = vcombine.low %v1565_v46, %v1579_v27  ;;  %v1602_v18 = vrot.slane %v1601_v22, 4  ;;  %v1625_v51 = vrot.slane %v1623_v19, 4 }
  0x56   : > { %2473 = vmatprep.mubr.msk.bf16.mxu1 %vm320_vm0, %v2198_v7  ;;  %v1593_v3 = vsel %vm2892_vm5, %v1588_v33, %v1592_v54  ;;  %v1615_v45 = vor.u32 %v1614_v21, %v1611_v1  ;;  %v1628_v32 = vrot.slane %v1626_v23, 5  ;;  %v1632_v7 = vshll.u32 %v3302_v44, 16  ;;  %v2709_v23 = vld [vmem:[%s3433_s1 + $0x108] sm:$0xff]  }
  0x57   : > { %2526 = vmatmul.mubr.msk.bf16.gmra.mrb[4].mxu0 %vm320_vm0, %v2285_v14  ;;  %v1620_v53 = vrot.slane %v1618_v62, 5  ;;  %v1607_v42 = vsel %vm2892_vm5, %v1602_v18, %v1606_v60  ;;  %v1639_v11 = vrot.slane %v1637_v26, 4  ;;  %v1642_v19 = vrot.slane %v1640_v56, 5 }
  0x58   : > { %2534 = vmatpush3.bf16.msra.mxu0 %v2702_v31  ;;  %2472 = vmatpush3.bf16.msra.mxu1 %v2704_v24  ;;  %v1646_v47 = vshll.u32 %v3317_v43, 16  ;;  %v2201_v31 = vcombine.low %v2980_v49, %v2989_v12  ;;  %v1616_v24 = vrot.slane %v1615_v45, 4  ;;  %v1629_v37 = vor.u32 %v1628_v32, %v1625_v51  ;;  %v2113_v45 = vld [vmem:[%s3434_s2] ss:$0 sm:$0xff] }
  0x59   : > { %2535 = vmatprep.subr.bf16.mxu0 %v2705_v8  ;;  %2537 = vmatprep.mubr.msk.bf16.mxu0 %vm320_vm0, %v2302_v40  ;;  %v1634_v28 = vrot.slane %v1632_v7, 5  ;;  %v2303_v26 = vcombine.low %v1593_v3, %v1607_v42  ;;  %v1643_v15 = vor.u32 %v1642_v19, %v1639_v11  ;;  %v1653_v56 = vrot.slane %v1651_v16, 4 }
  0x5a   : > { %2561 = vmatprep.subr.bf16.mxu1 %v2708_v61  ;;  %v1656_v30 = vrot.slane %v1654_v39, 5  ;;  %v1621_v49 = vsel %vm2892_vm5, %v1616_v24, %v1620_v53  ;;  %v1630_v12 = vrot.slane %v1629_v37, 4  ;;  %v1648_v14 = vrot.slane %v1646_v47, 5 }
  0x5b   : > { %2474 = vmatmul.mubr.msk.bf16.vlgmr.msra.gmra.mrb[0].mxu1 %vm320_vm0, %v2199_v9  ;;  %v1660_v50 = vshll.u32 %v3334_v58, 16  ;;  %v1644_v54 = vrot.slane %v1643_v15, 4  ;;  %v1828_v16 = vrot.slane %v3317_v43, 5  ;;  %v2318_v39 = vrot.slane %v3221_v41, 9  ;;  %v2712_v41 = vld [vmem:[%s3433_s1 + $0x110] sm:$0xff]  }
  0x5c   : > { %2536 = vmatpush3.bf16.msra.mxu0 %v2705_v8  ;;  %2565 = vmatpush3.bf16.msra.mxu1 %v2708_v61  ;;  %v1657_v46 = vor.u32 %v1656_v30, %v1653_v56  ;;  %v1635_v57 = vsel %vm2892_vm5, %v1630_v12, %v1634_v28  ;;  %v1820_v9 = vrot.slane %v3299_v48, 5  ;;  %v2319_v33 = vrot.slane %v3224_v38, 9 }
  0x5d   : > { %2545 = vmatprep.subr.bf16.mxu0 %v2708_v61  ;;  %2562 = vmatprep.subr.bf16.mxu1 %v2709_v23  ;;  %v1662_v2 = vrot.slane %v1660_v50, 5  ;;  %v2304_v22 = vcombine.low %v1621_v49, %v1635_v57  ;;  %v1832_v8 = vrot.slane %v3334_v58, 5  ;;  %v1824_v27 = vrot.slane %v3302_v44, 5 }
  0x5e   : > { %2477 = vmatprep.mubr.msk.bf16.mxu1 %vm320_vm0, %v2200_v17  ;;  %v1658_v60 = vrot.slane %v1657_v46, 4  ;;  %v1821_v38 = vsel %vm2972_vm6, %v2318_v39, %v1820_v9  ;;  %v2314_v48 = vrot.slane %v3148_v55, 9  ;;  %v1804_v10 = vrot.slane %v3262_v35, 5  ;;  %v2713_v55 = vld [vmem:[%s3433_s1 + $0x118] sm:$0xff]  }
  0x5f   : > { %2538 = vmatmul.mubr.msk.bf16.vlgmr.msra.gmra.mrb[0].mxu0 %vm320_vm0, %v2303_v26  ;;  %v2315_v13 = vrot.slane %v3151_v63, 9  ;;  %v1649_v17 = vsel %vm2892_vm5, %v1644_v54, %v1648_v14  ;;  %v1825_v44 = vsel %vm2972_vm6, %v2319_v33, %v1824_v27  ;;  %v1808_v21 = vrot.slane %v3265_v59, 5 }
  0x60   : > { %2546 = vmatpush3.bf16.msra.mxu0 %v2708_v61  ;;  %2566 = vmatpush3.bf16.msra.mxu1 %v2709_v23  ;;  %v1663_v1 = vsel %vm2892_vm5, %v1658_v60, %v1662_v2  ;;  %v2332_v63 = vcombine.low %v1821_v38, %v1825_v44  ;;  %v1805_v35 = vsel %vm2972_vm6, %v2314_v48, %v1804_v10  ;;  %v2316_v43 = vrot.slane %v3175_v0, 9 }
  0x61   : > { %2547 = vmatprep.subr.bf16.mxu0 %v2709_v23  ;;  %2541 = vmatprep.mubr.msk.bf16.mxu0 %vm320_vm0, %v2304_v22  ;;  %v1809_v4 = vsel %vm2972_vm6, %v2315_v13, %v1808_v21  ;;  %v2305_v62 = vcombine.low %v1649_v17, %v1663_v1  ;;  %v1829_v59 = vsel %vm2972_vm6, %v2320_v20, %v1828_v16  ;;  %v1812_v61 = vrot.slane %v3278_v6, 5 }
  0x62   : > { %2563 = vmatprep.subr.bf16.mxu1 %v2712_v41  ;;  %v1833_v40 = vsel %vm2972_vm6, %v2321_v29, %v1832_v8  ;;  %v2317_v3 = vrot.slane %v3185_v5, 9  ;;  %v1816_v18 = vrot.slane %v3281_v34, 5  ;;  %v2330_v52 = vcombine.low %v1805_v35, %v1809_v4 }
  0x63   : > { %2478 = vmatmul.mubr.msk.bf16.gmra.mrb[4].mxu1 %vm320_vm0, %v2201_v31  ;;  %v2333_v0 = vcombine.low %v1829_v59, %v1833_v40  ;;  %v1813_v36 = vsel %vm2972_vm6, %v2316_v43, %v1812_v61 }
  0x64   : > { %2548 = vmatpush3.bf16.msra.mxu0 %v2709_v23  ;;  %2567 = vmatpush3.bf16.msra.mxu1 %v2712_v41  ;;  %v1817_v20 = vsel %vm2972_vm6, %v2317_v3, %v1816_v18 }
  0x65   : > { %2549 = vmatprep.subr.bf16.mxu0 %v2712_v41  ;;  %2564 = vmatprep.subr.bf16.mxu1 %v2713_v55  ;;  %v2331_v5 = vcombine.low %v1813_v36, %v1817_v20 }
  0x66   : > { %2557 = vmatprep.mubr.msk.bf16.mxu1 %vm320_vm0, %v2332_v63 }
  0x67   : > { %2542 = vmatmul.mubr.msk.bf16.gmra.mrb[4].mxu0 %vm320_vm0, %v2305_v62 }
  0x68   : > { %2550 = vmatpush3.bf16.msra.mxu0 %v2712_v41  ;;  %2568 = vmatpush3.bf16.msra.mxu1 %v2713_v55 }
  0x69   : > { %2551 = vmatprep.subr.bf16.mxu0 %v2713_v55  ;;  %2553 = vmatprep.mubr.msk.bf16.mxu0 %vm320_vm0, %v2330_v52 }
  0x6b   : > { %2558 = vmatmul.mubr.msk.bf16.vlgmr.msra.gmra.mrb[8].mxu1 %vm320_vm0, %v2333_v0 }
  0x6c   : > { %2552 = vmatpush3.bf16.msra.mxu0 %v2713_v55 }
  0x6f   : > { %2554 = vmatmul.mubr.msk.bf16.vlgmr.msra.gmra.mrb[0].mxu0 %vm320_vm0, %v2331_v5 }
 0x12e   : > { %v2475_v29 = vpop.f32.mrb[0].mxu1 }
 0x12f   : > { %v943_v6 = vpop.f32.mrb[1].mxu1  ;;  %v2569_v50 = vadd.f32 %v2475_v29, %v2113_v45 }
 0x130   : > { %v2476_v34 = vpop.f32.mrb[2].mxu1  ;;  %v2571_v16 = vadd.f32 %v2113_v45, %v943_v6 }
 0x131   : > { %v946_v51 = vpop.f32.mrb[3].mxu1  ;;  %v2573_v2 = vadd.f32 %v2476_v34, %v2113_v45 }
 0x132   : > { %v2575_v22 = vadd.f32 %v2113_v45, %v946_v51 }
 0x136   : > { %v2479_v25 = vpop.f32.mrb[4].mxu1 }
 0x137   : > { %v2577_v53 = vadd.f32 %v2479_v25, %v2113_v45  ;;  %v959_v32 = vpop.f32.mrb[5].mxu1 }
 0x138   : > { %v2580_v7 = vadd.f32 %v2113_v45, %v959_v32  ;;  %v2480_v42 = vpop.f32.mrb[6].mxu1 }
 0x139   : > { %v2583_v58 = vadd.f32 %v2480_v42, %v2113_v45  ;;  %v962_v11 = vpop.f32.mrb[7].mxu1 }
 0x13a   : > { %v2543_v19 = vpop.f32.mrb[4].mxu0  ;;  %v2586_v47 = vadd.f32 %v2113_v45, %v962_v11 }
 0x13b   : > { %v2578_v23 = vadd.f32 %v2577_v53, %v2543_v19  ;;  %v1771_v31 = vpop.f32.mrb[5].mxu0 }
 0x13c   : > { %v2581_v24 = vadd.f32 %v2580_v7, %v1771_v31  ;;  %v2544_v37 = vpop.f32.mrb[6].mxu0 }
 0x13d   : > { %v2584_v28 = vadd.f32 %v2583_v58, %v2544_v37  ;;  %v1774_v26 = vpop.f32.mrb[7].mxu0 }
 0x13e   : > { %v2587_v15 = vadd.f32 %v2586_v47, %v1774_v26  ;;  %v2559_v56 = vpop.f32.mrb[8].mxu1 }
 0x13f   : > { %v2579_v30 = vadd.f32 %v2578_v23, %v2559_v56  ;;  %v1941_v49 = vpop.f32.mrb[9].mxu1 }
 0x140   : > { %v2582_v12 = vadd.f32 %v2581_v24, %v1941_v49  ;;  %v2560_v14 = vpop.f32.mrb[10].mxu1 }
 0x141   : > { %1970 = vst [vmem:[%s238_s29 + $0x30] sm:$0xff] %v2579_v30  ;;  %v2585_v54 = vadd.f32 %v2584_v28, %v2560_v14  ;;  %v1944_v46 = vpop.f32.mrb[11].mxu1 }
 0x142   : > { %v2555_v39 = vpop.f32.mrb[0].mxu0  ;;  %1968 = vst [vmem:[%s238_s29 + $0x20] sm:$0xff] %v2582_v12  ;;  %v2588_v57 = vadd.f32 %v2587_v15, %v1944_v46 }
 0x143   : > { %v2570_v9 = vadd.f32 %v2569_v50, %v2555_v39  ;;  %v1925_v33 = vpop.f32.mrb[1].mxu0  ;;  %1971 = vst [vmem:[%s238_s29 + $0x38] sm:$0xff] %v2585_v54 }
 0x144   : > { %v2572_v41 = vadd.f32 %v2571_v16, %v1925_v33  ;;  %v2556_v60 = vpop.f32.mrb[2].mxu0  ;;  %1969 = vst [vmem:[%s238_s29 + $0x28] sm:$0xff] %v2588_v57 }
 0x145   : > { %1966 = vst [vmem:[%s238_s29 + $0x10] sm:$0xff] %v2570_v9  ;;  %v2574_v8 = vadd.f32 %v2573_v2, %v2556_v60  ;;  %v1928_v27 = vpop.f32.mrb[3].mxu0 }
 0x146   : > { %1964 = vst [vmem:[%s238_s29] sm:$0xff] %v2572_v41  ;;  %v2576_v38 = vadd.f32 %v2575_v22, %v1928_v27 }
 0x147   : > { %1967 = vst [vmem:[%s238_s29 + $0x18] sm:$0xff] %v2574_v8 }
 0x148   : > { %1965 = vst [vmem:[%s238_s29 + $0x8] sm:$0xff] %v2576_v38 }
 0x149 PF: > { %s13_s14 = sadd.s32 1, %s2736_s14   ;;  %s3444_s12 = smov %s2732_s13 }
 0x14a   : > { %p10_p5 = scmp.ge.s32.totalorder %s13_s14, 4   ;;  %s3445_s13 = smov %s3447_s15 }
 0x14c   :  { %12 = sbr.rel (!%p10_p5) target bundleno = 2 (0x2), region = 79 }

// kernel: vgg19_forward.14
= control target key start
LH: loop header
LB: loop body
LE: loop exit
PB: predicated region body
PF: predicated region fallthrough
CT: control target
= control target key end

     0   :  { %v95_v12 = vmov 0   ;;  %s178_s0 = inlined_call_operand.vmem [shape: bf16[8,2,4,256], index: 0, kind: input, shape index: {}]   ;;  %s179_s1 = inlined_call_operand.vmem [shape: bf16[8,4,128], index: 1, kind: output, shape index: {}]  }
   0x1   :  { %v9_v0 = vld [vmem:[%s178_s0] sm:$0xf]  ;;  %v86_v1 = vld [vmem:[%s178_s0 + $0x4] sm:$0xf]  ;;  %v10_v2 = vld [vmem:[%s178_s0 + $0x8] sm:$0xf] }
   0x2   :  { %v26_v3 = vmax.bf16 %v86_v1, %v9_v0  ;;  %v87_v4 = vld [vmem:[%s178_s0 + $0xc] sm:$0xf]  ;;  %v11_v5 = vld [vmem:[%s178_s0 + $0x10] sm:$0xf]  ;;  %v88_v6 = vld [vmem:[%s178_s0 + $0x14] sm:$0xf] }
   0x3   :  { %v27_v7 = vmax.bf16 %v87_v4, %v10_v2  ;;  %v28_v8 = vmax.bf16 %v88_v6, %v11_v5  ;;  %v12_v9 = vld [vmem:[%s178_s0 + $0x18] sm:$0xf]  ;;  %v89_v10 = vld [vmem:[%s178_s0 + $0x1c] sm:$0xf]  ;;  %v13_v11 = vld [vmem:[%s178_s0 + $0x20] sm:$0xf] }
   0x4   :  { %v34_v13 = vmax.bf16 %v95_v12, %v26_v3  ;;  %v29_v14 = vmax.bf16 %v89_v10, %v12_v9  ;;  %v90_v15 = vld [vmem:[%s178_s0 + $0x24] sm:$0xf]  ;;  %v14_v16 = vld [vmem:[%s178_s0 + $0x28] sm:$0xf]  ;;  %v91_v17 = vld [vmem:[%s178_s0 + $0x2c] sm:$0xf] }
   0x5   :  { %v35_v18 = vmax.bf16 %v95_v12, %v27_v7  ;;  %v36_v19 = vmax.bf16 %v95_v12, %v28_v8  ;;  %v30_v20 = vmax.bf16 %v90_v15, %v13_v11  ;;  %v31_v21 = vmax.bf16 %v91_v17, %v14_v16  ;;  %v15_v22 = vld [vmem:[%s178_s0 + $0x30] sm:$0xf]  ;;  %v92_v23 = vld [vmem:[%s178_s0 + $0x34] sm:$0xf]  ;;  %v16_v24 = vld [vmem:[%s178_s0 + $0x38] sm:$0xf] }
   0x6   :  { %v50_v25 = vrot.slane %v34_v13, 2  ;;  %v37_v26 = vmax.bf16 %v95_v12, %v29_v14  ;;  %v32_v27 = vmax.bf16 %v92_v23, %v15_v22  ;;  %v93_v28 = vld [vmem:[%s178_s0 + $0x3c] sm:$0xf] }
   0x7   :  { %v51_v29 = vrot.slane %v35_v18, 2  ;;  %v52_v30 = vrot.slane %v36_v19, 2  ;;  %v38_v31 = vmax.bf16 %v95_v12, %v30_v20  ;;  %v39_v32 = vmax.bf16 %v95_v12, %v31_v21 }
   0x8   :  { %v66_v33 = vmax.bf16 %v50_v25, %v34_v13  ;;  %v53_v34 = vrot.slane %v37_v26, 2  ;;  %v40_v35 = vmax.bf16 %v95_v12, %v32_v27  ;;  %v33_v36 = vmax.bf16 %v93_v28, %v16_v24 }
   0x9   :  { %v67_v37 = vmax.bf16 %v51_v29, %v35_v18  ;;  %v68_v38 = vmax.bf16 %v52_v30, %v36_v19  ;;  %v54_v39 = vrot.slane %v38_v31, 2  ;;  %v55_v40 = vrot.slane %v39_v32, 2 }
   0xa   :  { %74 = vst [vmem:[%s179_s1] sm:$0x3] %v66_v33  ;;  %v69_v41 = vmax.bf16 %v53_v34, %v37_v26  ;;  %v56_v42 = vrot.slane %v40_v35, 2  ;;  %v41_v43 = vmax.bf16 %v95_v12, %v33_v36 }
   0xb   :  { %75 = vst [vmem:[%s179_s1 + $0x2] sm:$0x3] %v67_v37  ;;  %76 = vst [vmem:[%s179_s1 + $0x4] sm:$0x3] %v68_v38  ;;  %v70_v44 = vmax.bf16 %v54_v39, %v38_v31  ;;  %v71_v45 = vmax.bf16 %v55_v40, %v39_v32 }
   0xc   :  { %77 = vst [vmem:[%s179_s1 + $0x6] sm:$0x3] %v69_v41  ;;  %v72_v46 = vmax.bf16 %v56_v42, %v40_v35  ;;  %v57_v47 = vrot.slane %v41_v43, 2 }
   0xd   :  { %78 = vst [vmem:[%s179_s1 + $0x8] sm:$0x3] %v70_v44  ;;  %79 = vst [vmem:[%s179_s1 + $0xa] sm:$0x3] %v71_v45 }
   0xe   :  { %80 = vst [vmem:[%s179_s1 + $0xc] sm:$0x3] %v72_v46  ;;  %v73_v48 = vmax.bf16 %v57_v47, %v41_v43 }
  0x10   :  { %81 = vst [vmem:[%s179_s1 + $0xe] sm:$0x3] %v73_v48 }

// kernel: vgg19_forward.13
= control target key start
LH: loop header
LB: loop body
LE: loop exit
PB: predicated region body
PF: predicated region fallthrough
CT: control target
= control target key end

     0   :  { %s3268_s12 = smov 0   ;;  %s3270_s13 = smov 0   ;;  %s3975_s0 = inlined_call_operand.vmem [shape: bf16[2,10,10,128], index: 0, kind: input, shape index: {}]   ;;  %s3976_s1 = inlined_call_operand.vmem [shape: bf16[9,128,128], index: 1, kind: input, shape index: {}]   ;;  %s3977_s2 = inlined_call_operand.vmem [shape: f32[1,128], index: 2, kind: input, shape index: {}]   ;;  %s3978_s3 = inlined_call_operand.vmem [shape: bf16[2,64,128], index: 3, kind: output, shape index: {}]  }
   0x1   :  { %s3272_s14 = smov 0  }
   0x2 LB: > { %s32_s15 = sadd.s32 1, %s3242_s13  ;;  %p2364_p0 = scmp.ge.s32.totalorder %s3246_s14, 1  ;;  %s3246_s14 = sphi %s3272_s14, %s13_s14   ;;  %s3242_s13 = sphi %s3270_s13, %s3986_s13   ;;  %s3238_s12 = sphi %s3268_s12, %s3985_s12  }
   0x3   : > { %p34_p1 = scmp.ge.s32.totalorder %s32_s15, 2  ;;  %p177_p2 = scmp.lt.s32.totalorder %s3246_s14, 3 }
   0x5   : > { %s3988_s15 = smov (%p34_p1, %s32_s15), 0  ;;  %p178_p3 = pnand %p2364_p0, %p177_p2 }
   0x6   : > { %v3140_v0 = vld [vmem:[%s3976_s1] sm:$0xff] (!%p178_p3)   ;;  %v3142_v2 = vld [vmem:[%s3976_s1 + $0x8] sm:$0xff] (!%p178_p3)   ;;  %p215_p4 = scmp.lt.s32.totalorder (!%p178_p3), %s3238_s12, 1  ;;  %v3144_v4 = vld [vmem:[%s3976_s1 + $0x10] sm:$0xff] (!%p178_p3)   ;;  %vm429_vm0 = vsmask.f32 (!%p178_p3), 3328 }
   0x7   : > { %181 = sbr.rel (%p178_p3) target bundleno = 394 (0x18a), region = 32  ;;  %v3141_v1 = vld [vmem:[%s3976_s1 + $0x100] sm:$0xff] (!%p178_p3)   ;;  %2811 = vmatprep.subr.bf16.mxu1 (!%p178_p3), %v3140_v0  ;;  %v3143_v3 = vld [vmem:[%s3976_s1 + $0x108] sm:$0xff] (!%p178_p3)   ;;  %v3145_v5 = vld [vmem:[%s3976_s1 + $0x110] sm:$0xff] (!%p178_p3)   ;;  %vm430_vm1 = vsmask.f32 (!%p178_p3), 7440 }
   0x8   : > { %2907 = vmatprep.subr.bf16.mxu0 (!%p178_p3), %v3141_v1  ;;  %2812 = vmatpush3.bf16.msra.mxu1 (!%p178_p3), %v3140_v0  ;;  %v3146_v6 = vld [vmem:[%s3976_s1 + $0x18] sm:$0xff] (!%p178_p3)   ;;  %v3148_v8 = vld [vmem:[%s3976_s1 + $0x20] sm:$0xff] (!%p178_p3)   ;;  %v3150_v10 = vld [vmem:[%s3976_s1 + $0x28] sm:$0xff] (!%p178_p3)   ;;  %vm706_vm3 = vcmask (!%p178_p3), 1042432   ;;  %vm707_vm4 = vcmask (!%p178_p3), 1046532  }
   0x9   : > { %2908 = vmatpush3.bf16.msra.mxu0 (!%p178_p3), %v3141_v1  ;;  %2813 = vmatprep.subr.bf16.mxu1 (!%p178_p3), %v3142_v2  ;;  %v3147_v7 = vld [vmem:[%s3976_s1 + $0x118] sm:$0xff] (!%p178_p3)   ;;  %v3149_v9 = vld [vmem:[%s3976_s1 + $0x120] sm:$0xff] (!%p178_p3)   ;;  %v3151_v13 = vld [vmem:[%s3976_s1 + $0x128] sm:$0xff] (!%p178_p3)  }
   0xa   : > { %2909 = vmatprep.subr.bf16.mxu0 (!%p178_p3), %v3143_v3  ;;  %v3152_v15 = vld [vmem:[%s3976_s1 + $0x30] sm:$0xff] (!%p178_p3)   ;;  %v3154_v32 = vld [vmem:[%s3976_s1 + $0x38] sm:$0xff] (!%p178_p3)   ;;  %vm3378_vm2 = vmor (!%p178_p3), %vm429_vm0, %vm430_vm1 }
   0xb   : > { %v3153_v16 = vld [vmem:[%s3976_s1 + $0x130] sm:$0xff] (!%p178_p3)   ;;  %v3155_v37 = vld [vmem:[%s3976_s1 + $0x138] sm:$0xff] (!%p178_p3)   ;;  %v3157_v44 = vld [vmem:[%s3976_s1 + $0x40] sm:$0xff] (!%p178_p3)  }
   0xc   : > { %2814 = vmatpush3.bf16.msra.mxu1 (!%p178_p3), %v3142_v2  ;;  %v3402_v51 = vld [vmem:[%s3976_s1 + $0x140] sm:$0xff] (!%p178_p3)   ;;  %vm3545_vm5 = vmor (!%p178_p3), %vm706_vm3, %vm707_vm4  ;;  %v3221_v39 = vld [vmem:[%s3976_s1 + $0x228] sm:$0xff] (!%p178_p3)  }
   0xd   : > { %2910 = vmatpush3.bf16.msra.mxu0 (!%p178_p3), %v3143_v3  ;;  %2815 = vmatprep.subr.bf16.mxu1 (!%p178_p3), %v3144_v4 }
   0xe   : > { %s3990_s12 = smov (!%p215_p4, %s3238_s12), 1  ;;  %2911 = vmatprep.subr.bf16.mxu0 %v3145_v5 }
   0xf   : > { %s3115_s5 = smul.u32 80, %s3990_s12 }
  0x10   : > { %2816 = vmatpush3.bf16.msra.mxu1 %v3144_v4 }
  0x11   : > { %2912 = vmatpush3.bf16.msra.mxu0 %v3145_v5  ;;  %2817 = vmatprep.subr.bf16.mxu1 %v3146_v6  ;;  %s3325_s18 = scalar_lea.vmem %s3975_s0, %s3115_s5  ;;  %s2671_s5 = sshll.u32 %s3990_s12, 5 }
  0x12   : > { %2913 = vmatprep.subr.bf16.mxu0 %v3147_v7  ;;  %v3328_v11 = vld [vmem:[%s3325_s18] sm:$0xf]  ;;  %v3331_v12 = vld [vmem:[%s3325_s18 + $0x8] sm:$0xf]  ;;  %v3350_v20 = vld [vmem:[%s3325_s18 + $0xc] sm:$0x1]  ;;  %s238_s8 = scalar_lea.vmem %s3978_s3, %s2671_s5 }
  0x13   : > { %v2369_v14 = vcombine.low %v3328_v11, %v3331_v12  ;;  %v433_v17 = vshrl.u32 %v3328_v11, 16  ;;  %v436_v18 = vshll.u32 %v3328_v11, 16  ;;  %v3347_v19 = vld [vmem:[%s3325_s18 + $0x8] sm:$0xf]  ;;  %v3353_v21 = vld [vmem:[%s3325_s18 + $0x10] sm:$0xf] }
  0x14   : > { %2818 = vmatpush3.bf16.msra.mxu1 %v3146_v6  ;;  %v3356_v22 = vld [vmem:[%s3325_s18 + $0x14] sm:$0x1]  ;;  %v1078_v23 = vshrl.u32 %v3347_v19, 16  ;;  %v1081_v24 = vshll.u32 %v3347_v19, 16  ;;  %v1087_v25 = vshll.u32 %v3350_v20, 16  ;;  %v1092_v26 = vshrl.u32 %v3353_v21, 16 }
  0x15   : > { %2914 = vmatpush3.bf16.msra.mxu0 %v3147_v7  ;;  %2819 = vmatprep.subr.bf16.mxu1 %v3148_v8  ;;  %v1095_v27 = vshll.u32 %v3353_v21, 16  ;;  %v1101_v28 = vshll.u32 %v3356_v22, 16  ;;  %v447_v29 = vshrl.u32 %v3331_v12, 16  ;;  %v3368_v33 = vrot.slane %v433_v17, 4  ;;  %v3383_v43 = vld [vmem:[%s3325_s18 + $0x10] sm:$0xf] }
  0x16   : > { %2915 = vmatprep.subr.bf16.mxu0 %v3149_v9  ;;  %2827 = vmatprep.mubr.bf16.mxu1 %v2369_v14  ;;  %v1080_v30 = vrot.slane %v1078_v23, 4  ;;  %v1083_v31 = vrot.slane %v1081_v24, 5  ;;  %v450_v34 = vshll.u32 %v3331_v12, 16  ;;  %v1094_v35 = vrot.slane %v1092_v26, 4  ;;  %v3389_v46 = vld [vmem:[%s3325_s18 + $0x18] sm:$0xf] }
  0x17   : > { %v1097_v36 = vrot.slane %v1095_v27, 5  ;;  %v3374_v38 = vrot.slane %v436_v18, 5  ;;  %v1089_v41 = vrot.slane %v1087_v25, 5  ;;  %v1103_v42 = vrot.slane %v1101_v28, 5  ;;  %v3392_v47 = vld [vmem:[%s3325_s18 + $0x18] sm:$0xf] }
  0x18   : > { %2820 = vmatpush3.bf16.msra.mxu1 %v3148_v8  ;;  %v1084_v40 = vor.u32 %v1083_v31, %v1080_v30  ;;  %v3395_v48 = vld [vmem:[%s3325_s18 + $0x1c] sm:$0x1]  ;;  %v3397_v49 = vrot.slane %v447_v29, 4  ;;  %v461_v52 = vshrl.u32 %v3383_v43, 16  ;;  %v464_v53 = vshll.u32 %v3383_v43, 16  ;;  %v3160_v7 = vld [vmem:[%s3976_s1 + $0x48] sm:$0xff]  }
  0x19   : > { %2916 = vmatpush3.bf16.msra.mxu0 %v3149_v9  ;;  %2821 = vmatprep.subr.bf16.mxu1 %v3150_v10  ;;  %v1098_v45 = vor.u32 %v1097_v36, %v1094_v35  ;;  %v3407_v54 = vld [vmem:[%s3325_s18 + $0x20] sm:$0xf]  ;;  %v475_v56 = vshrl.u32 %v3389_v46, 16  ;;  %v478_v57 = vshll.u32 %v3389_v46, 16  ;;  %v3412_v58 = vld [vmem:[%s3325_s18 + $0x24] sm:$0x1]  ;;  %v2370_v0 = vcombine.low %v3383_v43, %v3389_v46 }
  0x1a   : > { %2917 = vmatprep.subr.bf16.mxu0 %v3151_v13  ;;  %v1085_v50 = vrot.slane %v1084_v40, 4  ;;  %v1106_v59 = vshrl.u32 %v3392_v47, 16  ;;  %v1109_v61 = vshll.u32 %v3392_v47, 16  ;;  %v1115_v62 = vshll.u32 %v3395_v48, 16  ;;  %v3162_v23 = vld [vmem:[%s3976_s1 + $0x50] sm:$0xff]  }
  0x1b   : > { %v1099_v55 = vrot.slane %v1098_v45, 4  ;;  %v1120_v2 = vshrl.u32 %v3407_v54, 16  ;;  %v452_v3 = vrot.slane %v450_v34, 5  ;;  %v463_v5 = vrot.slane %v461_v52, 4  ;;  %v3457_v45 = vld [vmem:[%s3325_s18 + $0x20] sm:$0xf] }
  0x1c   : > { %2822 = vmatpush3.bf16.msra.mxu1 %v3150_v10  ;;  %v1090_v60 = vsel %vm3378_vm2, %v1085_v50, %v1089_v41  ;;  %v1108_v1 = vrot.slane %v1106_v59, 4  ;;  %v1111_v6 = vrot.slane %v1109_v61, 5  ;;  %v466_v8 = vrot.slane %v464_v53, 5  ;;  %v3472_v59 = vld [vmem:[%s3325_s18 + $0x28] sm:$0xf] }
  0x1d   : > { %2918 = vmatpush3.bf16.msra.mxu0 %v3151_v13  ;;  %2823 = vmatprep.subr.bf16.mxu1 %v3152_v15  ;;  %v1104_v63 = vsel %vm3378_vm2, %v1099_v55, %v1103_v42  ;;  %v1122_v9 = vrot.slane %v1120_v2, 4  ;;  %v1123_v10 = vshll.u32 %v3407_v54, 16  ;;  %v1129_v13 = vshll.u32 %v3412_v58, 16  ;;  %v3161_v42 = vld [vmem:[%s3976_s1 + $0x148] sm:$0xff]  }
  0x1e   : > { %2919 = vmatprep.subr.bf16.mxu0 %v3153_v16  ;;  %v2505_v4 = vcombine.low %v1090_v60, %v1104_v63  ;;  %v477_v14 = vrot.slane %v475_v56, 4  ;;  %v1117_v17 = vrot.slane %v1115_v62, 5  ;;  %v2477_v24 = vcombine.low %v3347_v19, %v3353_v21  ;;  %v3163_v62 = vld [vmem:[%s3976_s1 + $0x150] sm:$0xff]   ;;  %v3482_v63 = vld [vmem:[%s3325_s18 + $0x2c] sm:$0x1] }
  0x1f   : > { %v1125_v18 = vrot.slane %v1123_v10, 5  ;;  %v1131_v27 = vrot.slane %v1129_v13, 5  ;;  %v467_v28 = vor.u32 %v466_v8, %v463_v5  ;;  %v2409_v30 = vrot.slane %v3328_v11, 9  ;;  %v3498_v8 = vld [vmem:[%s3325_s18 + $0x30] sm:$0xf]  ;;  %v3186_v11 = vld [vmem:[%s3976_s1 + $0xa8] sm:$0xff]  }
  0x20   : > { %2824 = vmatpush3.bf16.msra.mxu1 %v3152_v15  ;;  %2923 = vmatprep.mubr.bf16.mxu0 %v2505_v4  ;;  %v480_v15 = vrot.slane %v478_v57, 5  ;;  %v2410_v31 = vrot.slane %v3331_v12, 9  ;;  %v439_v34 = vor.u32 %v3374_v38, %v3368_v33  ;;  %v1353_v35 = vrot.slane %v3350_v20, 5  ;;  %v3164_v38 = vld [vmem:[%s3976_s1 + $0x58] sm:$0xff]   ;;  %v3166_v57 = vld [vmem:[%s3976_s1 + $0x60] sm:$0xff]  }
  0x21   : > { %2920 = vmatpush3.bf16.msra.mxu0 %v3153_v16  ;;  %2825 = vmatprep.subr.bf16.mxu1 %v3154_v32  ;;  %v1112_v16 = vor.u32 %v1111_v6, %v1108_v1  ;;  %v1126_v29 = vor.u32 %v1125_v18, %v1122_v9  ;;  %v453_v40 = vor.u32 %v452_v3, %v3397_v49  ;;  %v1357_v41 = vrot.slane %v3356_v22, 5  ;;  %v3460_v49 = vld [vmem:[%s3325_s18 + $0x28] sm:$0xf]  ;;  %v3488_v1 = vld [vmem:[%s3325_s18 + $0x34] sm:$0x1] }
  0x22   : > { %2921 = vmatprep.subr.bf16.mxu0 %v3155_v37  ;;  %v1361_v53 = vrot.slane %v3395_v48, 5  ;;  %v2371_v55 = vcombine.low %v3457_v45, %v3460_v49  ;;  %v1365_v56 = vrot.slane %v3412_v58, 5  ;;  %v3474_v60 = vrot.slane %v439_v34, 4 }
  0x23   : > { %v1113_v26 = vrot.slane %v1112_v16, 4  ;;  %v3476_v61 = vrot.slane %v453_v40, 4  ;;  %v1134_v2 = vshrl.u32 %v3472_v59, 16  ;;  %v1137_v3 = vshll.u32 %v3472_v59, 16  ;;  %v3165_v16 = vld [vmem:[%s3976_s1 + $0x158] sm:$0xff]  }
  0x24   : > { %2826 = vmatpush3.bf16.msra.mxu1 %v3154_v32  ;;  %v481_v32 = vor.u32 %v480_v15, %v477_v14  ;;  %v1143_v4 = vshll.u32 %v3482_v63, 16  ;;  %v3503_v14 = vld [vmem:[%s3325_s18 + $0x38] sm:$0xf]  ;;  %v2517_v15 = vrot.slane %v3347_v19, 9  ;;  %v492_v18 = vshll.u32 %v3457_v45, 16 }
  0x25   : > { %2922 = vmatpush3.bf16.msra.mxu0 %v3155_v37  ;;  %2835 = vmatprep.subr.bf16.mxu1 %v3157_v44  ;;  %v1118_v36 = vsel %vm3378_vm2, %v1113_v26, %v1117_v17  ;;  %v1127_v37 = vrot.slane %v1126_v29, 4  ;;  %v1136_v9 = vrot.slane %v1134_v2, 4  ;;  %v1139_v10 = vrot.slane %v1137_v3, 5  ;;  %v3201_v19 = vld [vmem:[%s3976_s1 + $0x1d8] sm:$0xff]  }
  0x26   : > { %2931 = vmatprep.subr.bf16.mxu0 %v3402_v51  ;;  %v3462_v50 = vrot.slane %v481_v32, 4  ;;  %v489_v17 = vshrl.u32 %v3457_v45, 16  ;;  %v2372_v26 = vcombine.low %v3498_v8, %v3503_v14  ;;  %v503_v29 = vshrl.u32 %v3460_v49, 16 }
  0x27   : > { %2828 = vmatmul.mubr.bf16.vlgmr.msra.gmra.mrb[0].mxu1 %v2370_v0  ;;  %v1132_v33 = vsel %vm3378_vm2, %v1127_v37, %v1131_v27  ;;  %v3485_v0 = vld [vmem:[%s3325_s18 + $0x30] sm:$0xf]  ;;  %v3514_v27 = vld [vmem:[%s3325_s18 + $0x38] sm:$0xf]  ;;  %v1140_v32 = vor.u32 %v1139_v10, %v1136_v9  ;;  %v1145_v34 = vrot.slane %v1143_v4, 5  ;;  %v2518_v25 = vrot.slane %v3353_v21, 9 }
  0x28   : > { %2836 = vmatpush3.bf16.msra.mxu1 %v3157_v44  ;;  %v3449_v44 = vrot.slane %v467_v28, 4  ;;  %v2506_v52 = vcombine.low %v1118_v36, %v1132_v33  ;;  %v1148_v5 = vshrl.u32 %v3485_v0, 16  ;;  %2831 = vmatprep.mubr.bf16.mxu1 %v2371_v55  ;;  %v1151_v6 = vshll.u32 %v3485_v0, 16  ;;  %v3168_v28 = vld [vmem:[%s3976_s1 + $0x68] sm:$0xff]   ;;  %v3521_v37 = vld [vmem:[%s3325_s18 + $0x3c] sm:$0x1] }
  0x29   : > { %2837 = vmatprep.subr.bf16.mxu1 %v3160_v7  ;;  %v3524_v33 = vld [vmem:[%s3325_s18 + $0x40] sm:$0xf]  ;;  %v1141_v55 = vrot.slane %v1140_v32, 4  ;;  %v1171_v2 = vshll.u32 %v3521_v37, 16  ;;  %v506_v20 = vshll.u32 %v3460_v49, 16 }
  0x2a   : > { %2924 = vmatmul.mubr.bf16.vlgmr.msra.gmra.mrb[0].mxu0 %v2506_v52  ;;  %v1150_v13 = vrot.slane %v1148_v5, 4  ;;  %v1165_v52 = vshll.u32 %v3514_v27, 16  ;;  %v1176_v3 = vshrl.u32 %v3524_v33, 16  ;;  %v1179_v4 = vshll.u32 %v3524_v33, 16  ;;  %v3167_v5 = vld [vmem:[%s3976_s1 + $0x160] sm:$0xff]  }
  0x2b   : > { %2932 = vmatpush3.bf16.msra.mxu0 %v3402_v51 }
  0x2c   : > { %2838 = vmatpush3.bf16.msra.mxu1 %v3160_v7  ;;  %2933 = vmatprep.subr.bf16.mxu0 %v3161_v42  ;;  %v1157_v7 = vshll.u32 %v3488_v1, 16  ;;  %v1167_v9 = vrot.slane %v1165_v52, 5  ;;  %v1178_v32 = vrot.slane %v1176_v3, 4  ;;  %v1181_v51 = vrot.slane %v1179_v4, 5  ;;  %v3552_v52 = vld [vmem:[%s3325_s18 + $0x4] sm:$0x1] }
  0x2d   : > { %2839 = vmatprep.subr.bf16.mxu1 %v3162_v23  ;;  %v3559_v3 = vld [vmem:[%s3325_s18 + $0xc] sm:$0x1]  ;;  %v442_v4 = vshll.u32 %v3552_v52, 16 }
  0x2e   : > { %v1159_v36 = vrot.slane %v1157_v7, 5 }
  0x2f   : > { %2934 = vmatpush3.bf16.msra.mxu0 %v3161_v42  ;;  %2832 = vmatmul.mubr.bf16.gmra.mrb[4].mxu1 %v2372_v26  ;;  %v1162_v42 = vshrl.u32 %v3514_v27, 16  ;;  %v1173_v26 = vrot.slane %v1171_v2, 5  ;;  %v3174_v2 = vld [vmem:[%s3976_s1 + $0x78] sm:$0xff]  }
  0x30   : > { %2840 = vmatpush3.bf16.msra.mxu1 %v3162_v23  ;;  %v1153_v23 = vrot.slane %v1151_v6, 5  ;;  %2935 = vmatprep.subr.bf16.mxu0 %v3163_v62 }
  0x31   : > { %2841 = vmatprep.subr.bf16.mxu1 %v3164_v38  ;;  %v1164_v7 = vrot.slane %v1162_v42, 4 }
  0x32   : > { %v1154_v40 = vor.u32 %v1153_v23, %v1150_v13  ;;  %v3171_v13 = vld [vmem:[%s3976_s1 + $0x70] sm:$0xff]   ;;  %v1146_v23 = vsel %vm3378_vm2, %v1141_v55, %v1145_v34  ;;  %v1182_v55 = vor.u32 %v1181_v51, %v1178_v32  ;;  %v1354_v51 = vsel %vm3545_vm5, %v2517_v15, %v1353_v35  ;;  %v3583_v15 = vld [vmem:[%s3325_s18 + $0x1c] sm:$0x1] }
  0x33   : > { %2936 = vmatpush3.bf16.msra.mxu0 %v3163_v62  ;;  %v3574_v32 = vld [vmem:[%s3325_s18 + $0x14] sm:$0x1] }
  0x34   : > { %2842 = vmatpush3.bf16.msra.mxu1 %v3164_v38  ;;  %v3527_v38 = vld [vmem:[%s3325_s18 + $0x44] sm:$0x1]  ;;  %v1155_v6 = vrot.slane %v1154_v40, 4  ;;  %2937 = vmatprep.subr.bf16.mxu0 %v3165_v16  ;;  %v1168_v40 = vor.u32 %v1167_v9, %v1164_v7  ;;  %v456_v7 = vshll.u32 %v3559_v3, 16  ;;  %v1358_v9 = vsel %vm3545_vm5, %v2518_v25, %v1357_v41 }
  0x35   : > { %2843 = vmatprep.subr.bf16.mxu1 %v3166_v57  ;;  %v1185_v10 = vshll.u32 %v3527_v38, 16  ;;  %v470_v25 = vshll.u32 %v3574_v32, 16 }
  0x36   : > { %v1160_v62 = vsel %vm3378_vm2, %v1155_v6, %v1159_v36  ;;  %v2480_v36 = vcombine.low %v3514_v27, %v3524_v33  ;;  %v1169_v6 = vrot.slane %v1168_v40, 4  ;;  %v458_v35 = vrot.slane %v456_v7, 5 }
  0x37   : > { %v1187_v42 = vrot.slane %v1185_v10, 5  ;;  %v2507_v34 = vcombine.low %v1146_v23, %v1160_v62  ;;  %2938 = vmatpush3.bf16.msra.mxu0 %v3165_v16  ;;  %v1183_v10 = vrot.slane %v1182_v55, 4  ;;  %v444_v23 = vrot.slane %v442_v4, 5 }
  0x38   : > { %2844 = vmatpush3.bf16.msra.mxu1 %v3166_v57  ;;  %2939 = vmatprep.subr.bf16.mxu0 %v3167_v5  ;;  %v1174_v22 = vsel %vm3378_vm2, %v1169_v6, %v1173_v26  ;;  %v2541_v62 = vcombine.low %v1354_v51, %v1358_v9  ;;  %v484_v40 = vshll.u32 %v3583_v15, 16  ;;  %v517_v26 = vshrl.u32 %v3498_v8, 16 }
  0x39   : > { %2845 = vmatprep.subr.bf16.mxu1 %v3168_v28  ;;  %2927 = vmatprep.mubr.bf16.mxu0 %v2507_v34  ;;  %v1188_v41 = vsel %vm3378_vm2, %v1183_v10, %v1187_v42  ;;  %v445_v16 = vsel %vm3378_vm2, %v3474_v60, %v444_v23  ;;  %v3172_v34 = vld [vmem:[%s3976_s1 + $0x170] sm:$0xff]   ;;  %v459_v4 = vsel %vm3378_vm2, %v3476_v61, %v458_v35  ;;  %v472_v42 = vrot.slane %v470_v25, 5  ;;  %v3176_v60 = vld [vmem:[%s3976_s1 + $0x80] sm:$0xff]  }
  0x3a   : > { %v2508_v55 = vcombine.low %v1174_v22, %v1188_v41  ;;  %v2397_v6 = vcombine.low %v445_v16, %v459_v4  ;;  %v486_v7 = vrot.slane %v484_v40, 5  ;;  %v520_v51 = vshll.u32 %v3498_v8, 16  ;;  %v3645_v4 = vld [vmem:[%s3325_s18 + $0x2c] sm:$0x1] }
  0x3b   : > { %2940 = vmatpush3.bf16.msra.mxu0 %v3167_v5  ;;  %v491_v61 = vrot.slane %v489_v17, 4  ;;  %v2519_v9 = vrot.slane %v3392_v47, 9  ;;  %v494_v10 = vrot.slane %v492_v18, 5  ;;  %v505_v17 = vrot.slane %v503_v29, 4 }
  0x3c   : > { %2846 = vmatpush3.bf16.msra.mxu1 %v3168_v28  ;;  %v3169_v28 = vld [vmem:[%s3976_s1 + $0x168] sm:$0xff]   ;;  %2928 = vmatmul.mubr.bf16.gmra.mrb[4].mxu0 %v2508_v55  ;;  %v487_v5 = vsel %vm3378_vm2, %v3462_v50, %v486_v7  ;;  %v2520_v22 = vrot.slane %v3407_v54, 9  ;;  %v508_v50 = vrot.slane %v506_v20, 5  ;;  %v531_v18 = vshrl.u32 %v3503_v14, 16  ;;  %v3180_v20 = vld [vmem:[%s3976_s1 + $0x90] sm:$0xff]  }
  0x3d   : > { %2847 = vmatprep.subr.bf16.mxu1 %v3171_v13  ;;  %2941 = vmatprep.subr.bf16.mxu0 %v3169_v28  ;;  %v495_v35 = vor.u32 %v494_v10, %v491_v61  ;;  %v534_v25 = vshll.u32 %v3503_v14, 16  ;;  %v2521_v29 = vrot.slane %v3472_v59, 9  ;;  %v1369_v16 = vrot.slane %v3482_v63, 5  ;;  %v3642_v55 = vld [vmem:[%s3325_s18 + $0x24] sm:$0x1] }
  0x3e   : > { %2851 = vmatprep.mubr.bf16.mxu1 %v2397_v6  ;;  %2947 = vmatprep.mubr.bf16.mxu0 %v2541_v62  ;;  %v509_v41 = vor.u32 %v508_v50, %v505_v17  ;;  %v1362_v62 = vsel %vm3545_vm5, %v2519_v9, %v1361_v53  ;;  %v1366_v40 = vsel %vm3545_vm5, %v2520_v22, %v1365_v56  ;;  %v498_v48 = vshll.u32 %v3642_v55, 16  ;;  %v3662_v10 = vld [vmem:[%s3325_s18 + $0x3c] sm:$0x1] }
  0x3f   : > { %2942 = vmatpush3.bf16.msra.mxu0 %v3169_v28  ;;  %v3177_v28 = vld [vmem:[%s3976_s1 + $0x180] sm:$0xff]   ;;  %v512_v63 = vshll.u32 %v3645_v4, 16  ;;  %v1370_v58 = vsel %vm3545_vm5, %v2521_v29, %v1369_v16  ;;  %v2522_v53 = vrot.slane %v3485_v0, 9  ;;  %v1373_v56 = vrot.slane %v3488_v1, 5 }
  0x40   : > { %2848 = vmatpush3.bf16.msra.mxu1 %v3171_v13  ;;  %v473_v13 = vsel %vm3378_vm2, %v3449_v44, %v472_v42  ;;  %v3178_v44 = vld [vmem:[%s3976_s1 + $0x88] sm:$0xff]   ;;  %2943 = vmatprep.subr.bf16.mxu0 %v3172_v34  ;;  %v496_v42 = vrot.slane %v495_v35, 4  ;;  %v510_v6 = vrot.slane %v509_v41, 4  ;;  %v519_v61 = vrot.slane %v517_v26, 4 }
  0x41   : > { %2849 = vmatprep.subr.bf16.mxu1 %v3174_v2  ;;  %v2398_v23 = vcombine.low %v473_v13, %v487_v5  ;;  %v514_v7 = vrot.slane %v512_v63, 5  ;;  %v3654_v13 = vld [vmem:[%s3325_s18 + $0x34] sm:$0x1]  ;;  %v3182_v5 = vld [vmem:[%s3976_s1 + $0x98] sm:$0xff]   ;;  %v1374_v9 = vsel %vm3545_vm5, %v2522_v53, %v1373_v56  ;;  %v3179_v26 = vld [vmem:[%s3976_s1 + $0x188] sm:$0xff]   ;;  %v536_v50 = vrot.slane %v534_v25, 5 }
  0x42   : > { %v526_v1 = vshll.u32 %v3654_v13, 16  ;;  %v2543_v35 = vcombine.low %v1370_v58, %v1374_v9  ;;  %v3181_v63 = vld [vmem:[%s3976_s1 + $0x190] sm:$0xff]  }
  0x43   : > { %2944 = vmatpush3.bf16.msra.mxu0 %v3172_v34  ;;  %v2542_v34 = vcombine.low %v1362_v62, %v1366_v40  ;;  %v515_v22 = vsel %vm3378_vm2, %v510_v6, %v514_v7  ;;  %v2523_v62 = vrot.slane %v3514_v27, 9  ;;  %v1377_v40 = vrot.slane %v3521_v37, 5  ;;  %v3705_v7 = vld [vmem:[%s3325_s18 + $0x18] sm:$0xf]  ;;  %v3188_v9 = vld [vmem:[%s3976_s1 + $0xb0] sm:$0xff]   ;;  %v3220_v27 = vld [vmem:[%s3976_s1 + $0x220] sm:$0xff]  }
  0x44   : > { %2850 = vmatpush3.bf16.msra.mxu1 %v3174_v2  ;;  %v3175_v2 = vld [vmem:[%s3976_s1 + $0x178] sm:$0xff]   ;;  %v528_v29 = vrot.slane %v526_v1, 5  ;;  %v3185_v1 = vld [vmem:[%s3976_s1 + $0x1a0] sm:$0xff]  }
  0x45   : > { %2859 = vmatprep.subr.bf16.mxu1 %v3176_v60  ;;  %2945 = vmatprep.subr.bf16.mxu0 %v3175_v2  ;;  %v1378_v37 = vsel %vm3545_vm5, %v2523_v62, %v1377_v40  ;;  %v1734_v62 = vshrl.u32 %v3705_v7, 16  ;;  %v1737_v40 = vshll.u32 %v3705_v7, 16 }
  0x47   : > { %2852 = vmatmul.mubr.bf16.vlgmr.msra.gmra.mrb[0].mxu1 %v2398_v23  ;;  %2946 = vmatpush3.bf16.msra.mxu0 %v3175_v2  ;;  %v522_v23 = vrot.slane %v520_v51, 5  ;;  %v540_v51 = vshll.u32 %v3662_v10, 16 }
  0x48   : > { %2860 = vmatpush3.bf16.msra.mxu1 %v3176_v60  ;;  %v500_v60 = vrot.slane %v498_v48, 5  ;;  %2955 = vmatprep.subr.bf16.mxu0 %v3177_v28  ;;  %v1381_v48 = vrot.slane %v3527_v38, 5 }
  0x49   : > { %2861 = vmatprep.subr.bf16.mxu1 %v3178_v44  ;;  %v523_v41 = vor.u32 %v522_v23, %v519_v61  ;;  %v542_v6 = vrot.slane %v540_v51, 5  ;;  %v3183_v61 = vld [vmem:[%s3976_s1 + $0x198] sm:$0xff]   ;;  %v2412_v23 = vrot.slane %v3389_v46, 9  ;;  %v727_v46 = vrot.slane %v3642_v55, 5 }
  0x4a   : > { %v501_v17 = vsel %vm3378_vm2, %v496_v42, %v500_v60  ;;  %2948 = vmatmul.mubr.bf16.vlgmr.msra.gmra.mrb[0].mxu0 %v2542_v34  ;;  %v2524_v42 = vrot.slane %v3524_v33, 9  ;;  %v3702_v60 = vld [vmem:[%s3325_s18 + $0x10] sm:$0xf]  ;;  %v735_v51 = vrot.slane %v3654_v13, 5 }
  0x4b   : > { %v2399_v2 = vcombine.low %v501_v17, %v515_v22  ;;  %2956 = vmatpush3.bf16.msra.mxu0 %v3177_v28  ;;  %v524_v25 = vrot.slane %v523_v41, 4  ;;  %v715_v28 = vrot.slane %v3559_v3, 5  ;;  %2951 = vmatprep.mubr.bf16.mxu0 %v2543_v35  ;;  %v2413_v17 = vrot.slane %v3457_v45, 9  ;;  %v3189_v41 = vld [vmem:[%s3976_s1 + $0x1b0] sm:$0xff]  }
  0x4c   : > { %2862 = vmatpush3.bf16.msra.mxu1 %v3178_v44  ;;  %v533_v44 = vrot.slane %v531_v18, 4  ;;  %v3184_v18 = vld [vmem:[%s3976_s1 + $0xa0] sm:$0xff]   ;;  %2957 = vmatprep.subr.bf16.mxu0 %v3179_v26  ;;  %v2414_v22 = vrot.slane %v3460_v49, 9  ;;  %v731_v35 = vrot.slane %v3645_v4, 5  ;;  %v1723_v55 = vshll.u32 %v3702_v60, 16 }
  0x4d   : > { %2863 = vmatprep.subr.bf16.mxu1 %v3180_v20  ;;  %2855 = vmatprep.mubr.bf16.mxu1 %v2399_v2  ;;  %v529_v38 = vsel %vm3378_vm2, %v524_v25, %v528_v29  ;;  %v716_v3 = vsel %vm3545_vm5, %v2410_v31, %v715_v28  ;;  %v2585_v31 = vcombine.low %v3702_v60, %v3705_v7  ;;  %v3192_v49 = vld [vmem:[%s3976_s1 + $0xc0] sm:$0xff]   ;;  %v2415_v29 = vrot.slane %v3498_v8, 9  ;;  %v3196_v8 = vld [vmem:[%s3976_s1 + $0xc8] sm:$0xff]   ;;  %v3774_v28 = vld [vmem:[%s3325_s18 + $0x1c] sm:$0x1] }
  0x4e   : > { %v537_v16 = vor.u32 %v536_v50, %v533_v44  ;;  %v3190_v44 = vld [vmem:[%s3976_s1 + $0xb8] sm:$0xff]   ;;  %v3187_v50 = vld [vmem:[%s3976_s1 + $0x1a8] sm:$0xff]   ;;  %v728_v4 = vsel %vm3545_vm5, %v2413_v17, %v727_v46  ;;  %v732_v2 = vsel %vm3545_vm5, %v2414_v22, %v731_v35  ;;  %v3202_v17 = vld [vmem:[%s3976_s1 + $0xe0] sm:$0xff]  }
  0x4f   : > { %2958 = vmatpush3.bf16.msra.mxu0 %v3179_v26  ;;  %v723_v26 = vrot.slane %v3583_v15, 5  ;;  %v1720_v15 = vshrl.u32 %v3702_v60, 16  ;;  %v2435_v25 = vcombine.low %v728_v4, %v732_v2  ;;  %v736_v13 = vsel %vm3545_vm5, %v2415_v29, %v735_v51  ;;  %v3807_v46 = vld [vmem:[%s3325_s18 + $0x40] sm:$0xf]  ;;  %v3810_v22 = vld [vmem:[%s3325_s18 + $0x48] sm:$0xf] }
  0x50   : > { %2864 = vmatpush3.bf16.msra.mxu1 %v3180_v20  ;;  %v711_v20 = vrot.slane %v3552_v52, 5  ;;  %v538_v58 = vrot.slane %v537_v16, 4  ;;  %v1382_v52 = vsel %vm3545_vm5, %v2524_v42, %v1381_v48  ;;  %2959 = vmatprep.subr.bf16.mxu0 %v3181_v63  ;;  %v739_v16 = vrot.slane %v3662_v10, 5  ;;  %v3199_v35 = vld [vmem:[%s3976_s1 + $0x1d0] sm:$0xff]  }
  0x51   : > { %2865 = vmatprep.subr.bf16.mxu1 %v3182_v5  ;;  %v2544_v34 = vcombine.low %v1378_v37, %v1382_v52  ;;  %v724_v45 = vsel %vm3545_vm5, %v2412_v23, %v723_v26  ;;  %v1725_v48 = vrot.slane %v1723_v55, 5  ;;  %v3771_v37 = vld [vmem:[%s3325_s18 + $0x14] sm:$0x1] }
  0x52   : > { %v712_v53 = vsel %vm3545_vm5, %v2409_v30, %v711_v20  ;;  %v543_v56 = vsel %vm3378_vm2, %v538_v58, %v542_v6  ;;  %v1722_v6 = vrot.slane %v1720_v15, 4  ;;  %v1736_v20 = vrot.slane %v1734_v62, 4  ;;  %v3768_v58 = vld [vmem:[%s3325_s18 + $0x20] sm:$0xf]  ;;  %v3198_v52 = vld [vmem:[%s3976_s1 + $0xd0] sm:$0xff]  }
  0x53   : > { %v2400_v30 = vcombine.low %v529_v38, %v543_v56  ;;  %v2433_v12 = vcombine.low %v712_v53, %v716_v3  ;;  %2952 = vmatmul.mubr.bf16.gmra.mrb[4].mxu0 %v2544_v34  ;;  %v3777_v38 = vld [vmem:[%s3325_s18 + $0x28] sm:$0xf]  ;;  %v3194_v53 = vld [vmem:[%s3976_s1 + $0x1c0] sm:$0xff]   ;;  %v3786_v56 = vld [vmem:[%s3325_s18 + $0x30] sm:$0xf]  ;;  %v1751_v15 = vshll.u32 %v3768_v58, 16 }
  0x54   : > { %2866 = vmatpush3.bf16.msra.mxu1 %v3182_v5  ;;  %v2411_v5 = vrot.slane %v3383_v43, 9  ;;  %2960 = vmatpush3.bf16.msra.mxu0 %v3181_v63  ;;  %v719_v43 = vrot.slane %v3574_v32, 5  ;;  %v1739_v63 = vrot.slane %v1737_v40, 5  ;;  %v3789_v3 = vld [vmem:[%s3325_s18 + $0x38] sm:$0xf]  ;;  %v1762_v55 = vshrl.u32 %v3777_v38, 16 }
  0x55   : > { %2867 = vmatprep.subr.bf16.mxu1 %v3184_v18  ;;  %2856 = vmatmul.mubr.bf16.gmra.mrb[4].mxu1 %v2400_v30  ;;  %v1729_v30 = vshll.u32 %v3771_v37, 16  ;;  %v2587_v23 = vcombine.low %v3786_v56, %v3789_v3  ;;  %v1765_v4 = vshll.u32 %v3777_v38, 16  ;;  %v3207_v2 = vld [vmem:[%s3976_s1 + $0xf0] sm:$0xff]   ;;  %v1776_v29 = vshrl.u32 %v3786_v56, 16 }
  0x56   : > { %2961 = vmatprep.subr.bf16.mxu0 %v3183_v61  ;;  %2875 = vmatprep.mubr.bf16.mxu1 %v2433_v12  ;;  %v720_v32 = vsel %vm3545_vm5, %v2411_v5, %v719_v43  ;;  %v1743_v12 = vshll.u32 %v3774_v28, 16  ;;  %v3200_v5 = vld [vmem:[%s3976_s1 + $0xd8] sm:$0xff]   ;;  %v1779_v51 = vshll.u32 %v3786_v56, 16  ;;  %v1753_v40 = vrot.slane %v1751_v15, 5 }
  0x57   : > { %2971 = vmatprep.mubr.bf16.mxu0 %v2585_v31  ;;  %v2434_v42 = vcombine.low %v720_v32, %v724_v45  ;;  %v2586_v31 = vcombine.low %v3768_v58, %v3777_v38  ;;  %v2588_v45 = vcombine.low %v3807_v46, %v3810_v22 }
  0x58   : > { %2868 = vmatpush3.bf16.msra.mxu1 %v3184_v18  ;;  %2962 = vmatpush3.bf16.msra.mxu0 %v3183_v61  ;;  %v2416_v18 = vrot.slane %v3503_v14, 9  ;;  %v3191_v14 = vld [vmem:[%s3976_s1 + $0x1b8] sm:$0xff]   ;;  %v1740_v61 = vor.u32 %v1739_v63, %v1736_v20  ;;  %v1745_v26 = vrot.slane %v1743_v12, 5  ;;  %v1804_v12 = vshrl.u32 %v3807_v46, 16 }
  0x59   : > { %2869 = vmatprep.subr.bf16.mxu1 %v3186_v11  ;;  %2963 = vmatprep.subr.bf16.mxu0 %v3185_v1 }
  0x5a   : > { %v740_v10 = vsel %vm3545_vm5, %v2416_v18, %v739_v16  ;;  %v1741_v43 = vrot.slane %v1740_v61, 4  ;;  %v1790_v18 = vshrl.u32 %v3789_v3, 16  ;;  %v1793_v16 = vshll.u32 %v3789_v3, 16 }
  0x5b   : > { %v2436_v34 = vcombine.low %v736_v13, %v740_v10  ;;  %v3851_v13 = vld [vmem:[%s3325_s18 + $0x2c] sm:$0x1] }
  0x5c   : > { %2870 = vmatpush3.bf16.msra.mxu1 %v3186_v11  ;;  %2964 = vmatpush3.bf16.msra.mxu0 %v3185_v1  ;;  %v1726_v11 = vor.u32 %v1725_v48, %v1722_v6  ;;  %v1746_v32 = vsel %vm3378_vm2, %v1741_v43, %v1745_v26  ;;  %v3205_v10 = vld [vmem:[%s3976_s1 + $0x1e8] sm:$0xff]   ;;  %v1778_v6 = vrot.slane %v1776_v29, 4  ;;  %v1781_v48 = vrot.slane %v1779_v51, 5 }
  0x5d   : > { %2871 = vmatprep.subr.bf16.mxu1 %v3188_v9  ;;  %2965 = vmatprep.subr.bf16.mxu0 %v3187_v50  ;;  %v1792_v20 = vrot.slane %v1790_v18, 4  ;;  %v1795_v63 = vrot.slane %v1793_v16, 5  ;;  %v1771_v61 = vshll.u32 %v3851_v13, 16  ;;  %v3883_v18 = vld [vmem:[%s3325_s18 + $0x4c] sm:$0x1]  ;;  %v3983_v16 = vcombine.low %v3392_v47, %v3407_v54 }
  0x5e   : > { %v1727_v1 = vrot.slane %v1726_v11, 4  ;;  %v2564_v11 = vld [vmem:[%s3325_s18 + $0x3c] sm:$0x1] }
  0x5f   : > { %v1796_v26 = vor.u32 %v1795_v63, %v1792_v20  ;;  %v1827_v20 = vshll.u32 %v3883_v18, 16 }
  0x60   : > { %2872 = vmatpush3.bf16.msra.mxu1 %v3188_v9  ;;  %2966 = vmatpush3.bf16.msra.mxu0 %v3187_v50  ;;  %v3197_v9 = vld [vmem:[%s3976_s1 + $0x1c8] sm:$0xff]  }
  0x61   : > { %2873 = vmatprep.subr.bf16.mxu1 %v3190_v44  ;;  %2967 = vmatprep.subr.bf16.mxu0 %v3189_v41  ;;  %v1797_v29 = vrot.slane %v1796_v26, 4  ;;  %v2632_v26 = vrot.slane %v3810_v22, 9 }
  0x64   : > { %2874 = vmatpush3.bf16.msra.mxu1 %v3190_v44  ;;  %2968 = vmatpush3.bf16.msra.mxu0 %v3189_v41  ;;  %v1731_v44 = vrot.slane %v1729_v30, 5  ;;  %v3203_v41 = vld [vmem:[%s3976_s1 + $0x1e0] sm:$0xff]  }
  0x65   : > { %2883 = vmatprep.subr.bf16.mxu1 %v3192_v49  ;;  %2969 = vmatprep.subr.bf16.mxu0 %v3191_v14 }
  0x66   : > { %v1732_v50 = vsel %vm3378_vm2, %v1727_v1, %v1731_v44  ;;  %v3209_v1 = vld [vmem:[%s3976_s1 + $0x1f0] sm:$0xff]   ;;  %v1782_v44 = vor.u32 %v1781_v48, %v1778_v6  ;;  %v2015_v6 = vrot.slane %v2564_v11, 5 }
  0x67   : > { %2876 = vmatmul.mubr.bf16.vlgmr.msra.gmra.mrb[0].mxu1 %v2434_v42  ;;  %v2613_v21 = vcombine.low %v1732_v50, %v1746_v32  ;;  %v3845_v42 = vld [vmem:[%s3325_s18 + $0x24] sm:$0x1] }
  0x68   : > { %2884 = vmatpush3.bf16.msra.mxu1 %v3192_v49  ;;  %2879 = vmatprep.mubr.bf16.mxu1 %v2435_v25  ;;  %v3204_v49 = vld [vmem:[%s3976_s1 + $0xe8] sm:$0xff]   ;;  %v1764_v25 = vrot.slane %v1762_v55, 4 }
  0x69   : > { %2885 = vmatprep.subr.bf16.mxu1 %v3196_v8  ;;  %2970 = vmatpush3.bf16.msra.mxu0 %v3191_v14  ;;  %v3210_v14 = vld [vmem:[%s3976_s1 + $0xf8] sm:$0xff]  }
  0x6a   : > { %2979 = vmatprep.subr.bf16.mxu0 %v3194_v53 }
  0x6c   : > { %2886 = vmatpush3.bf16.msra.mxu1 %v3196_v8  ;;  %2972 = vmatmul.mubr.bf16.vlgmr.msra.gmra.mrb[0].mxu0 %v2586_v31  ;;  %v1767_v8 = vrot.slane %v1765_v4, 5  ;;  %v1807_v31 = vshll.u32 %v3807_v46, 16 }
  0x6d   : > { %2887 = vmatprep.subr.bf16.mxu1 %v3198_v52  ;;  %2980 = vmatpush3.bf16.msra.mxu0 %v3194_v53  ;;  %v1757_v53 = vshll.u32 %v3845_v42, 16 }
  0x6e   : > { %2981 = vmatprep.subr.bf16.mxu0 %v3197_v9  ;;  %2975 = vmatprep.mubr.bf16.mxu0 %v2587_v23  ;;  %v1768_v30 = vor.u32 %v1767_v8, %v1764_v25  ;;  %v3867_v23 = vld [vmem:[%s3976_s1 + $0x200] sm:$0xff]   ;;  %v1809_v15 = vrot.slane %v1807_v31, 5  ;;  %v3984_v25 = vcombine.low %v3472_v59, %v3485_v0  ;;  %v2629_v8 = vrot.slane %v3786_v56, 9  ;;  %v3218_v59 = vld [vmem:[%s3976_s1 + $0x210] sm:$0xff]  }
  0x6f   : > { %2880 = vmatmul.mubr.bf16.gmra.mrb[4].mxu1 %v2436_v34  ;;  %v2562_v34 = vld [vmem:[%s3325_s18 + $0x34] sm:$0x1]  ;;  %v1759_v50 = vrot.slane %v1757_v53, 5  ;;  %v2625_v31 = vrot.slane %v3702_v60, 9 }
  0x70   : > { %2888 = vmatpush3.bf16.msra.mxu1 %v3198_v52  ;;  %2899 = vmatprep.mubr.bf16.mxu1 %v2477_v24  ;;  %v1748_v24 = vshrl.u32 %v3768_v58, 16  ;;  %v1785_v43 = vshll.u32 %v2562_v34, 16  ;;  %v1769_v32 = vrot.slane %v1768_v30, 4 }
  0x71   : > { %2889 = vmatprep.subr.bf16.mxu1 %v3200_v5  ;;  %2982 = vmatpush3.bf16.msra.mxu0 %v3197_v9  ;;  %v1821_v9 = vshll.u32 %v3810_v22, 16 }
  0x72   : > { %2983 = vmatprep.subr.bf16.mxu0 %v3199_v35  ;;  %v1750_v62 = vrot.slane %v1748_v24, 4  ;;  %v1806_v24 = vrot.slane %v1804_v12, 4  ;;  %v3219_v12 = vld [vmem:[%s3976_s1 + $0x218] sm:$0xff]  }
  0x73   : > { %v1823_v4 = vrot.slane %v1821_v9, 5  ;;  %v2626_v9 = vrot.slane %v3705_v7, 9 }
  0x74   : > { %2890 = vmatpush3.bf16.msra.mxu1 %v3200_v5  ;;  %2976 = vmatmul.mubr.bf16.gmra.mrb[4].mxu0 %v2588_v45  ;;  %v1754_v52 = vor.u32 %v1753_v40, %v1750_v62  ;;  %v1818_v5 = vshrl.u32 %v3810_v22, 16  ;;  %v1773_v45 = vrot.slane %v1771_v61, 5  ;;  %v1810_v54 = vor.u32 %v1809_v15, %v1806_v24 }
  0x75   : > { %2891 = vmatprep.subr.bf16.mxu1 %v3202_v17  ;;  %2984 = vmatpush3.bf16.msra.mxu0 %v3199_v35  ;;  %v1829_v61 = vrot.slane %v1827_v20, 5 }
  0x76   : > { %2985 = vmatprep.subr.bf16.mxu0 %v3201_v19  ;;  %2995 = vmatprep.mubr.bf16.mxu0 %v2613_v21  ;;  %v1755_v35 = vrot.slane %v1754_v52, 4  ;;  %v3215_v21 = vld [vmem:[%s3976_s1 + $0x208] sm:$0xff]   ;;  %v1820_v55 = vrot.slane %v1818_v5, 4  ;;  %v1774_v47 = vsel %vm3378_vm2, %v1769_v32, %v1773_v45  ;;  %v1995_v5 = vrot.slane %v3771_v37, 5 }
  0x77   : > { %v2627_v45 = vrot.slane %v3768_v58, 9 }
  0x78   : > { %2892 = vmatpush3.bf16.msra.mxu1 %v3202_v17  ;;  %v1799_v17 = vshll.u32 %v2564_v11, 16  ;;  %v1760_v62 = vsel %vm3378_vm2, %v1755_v35, %v1759_v50  ;;  %v1824_v48 = vor.u32 %v1823_v4, %v1820_v55  ;;  %v1811_v11 = vrot.slane %v1810_v54, 4  ;;  %v3223_v50 = vld [vmem:[%s3976_s1 + $0x238] sm:$0xff]  }
  0x79   : > { %2893 = vmatprep.subr.bf16.mxu1 %v3204_v49  ;;  %2986 = vmatpush3.bf16.msra.mxu0 %v3201_v19  ;;  %v3211_v19 = vld [vmem:[%s3976_s1 + $0x1f8] sm:$0xff]   ;;  %v1996_v33 = vsel %vm3545_vm5, %v2625_v31, %v1995_v5  ;;  %v2023_v35 = vrot.slane %v3883_v18, 5 }
  0x7a   : > { %2987 = vmatprep.subr.bf16.mxu0 %v3203_v41  ;;  %v1801_v51 = vrot.slane %v1799_v17, 5  ;;  %v1825_v30 = vrot.slane %v1824_v48, 4 }
  0x7c   : > { %2894 = vmatpush3.bf16.msra.mxu1 %v3204_v49  ;;  %v3873_v49 = vld [vmem:[%s3325_s18 + $0x44] sm:$0x1]  ;;  %v1802_v56 = vsel %vm3378_vm2, %v1797_v29, %v1801_v51  ;;  %v1830_v60 = vsel %vm3378_vm2, %v1825_v30, %v1829_v61  ;;  %v2368_v51 = vld [vmem:[%s3977_s2] ss:$0 sm:$0xff] }
  0x7d   : > { %2895 = vmatprep.subr.bf16.mxu1 %v3207_v2  ;;  %2988 = vmatpush3.bf16.msra.mxu0 %v3203_v41  ;;  %v1787_v41 = vrot.slane %v1785_v43, 5  ;;  %v1813_v40 = vshll.u32 %v3873_v49, 16  ;;  %v2019_v17 = vrot.slane %v3873_v49, 5  ;;  %v2003_v49 = vrot.slane %v3845_v42, 5 }
  0x7e   : > { %2989 = vmatprep.subr.bf16.mxu0 %v3205_v10 }
  0x7f   : > { %v1815_v63 = vrot.slane %v1813_v40, 5  ;;  %v2004_v24 = vsel %vm3545_vm5, %v2627_v45, %v2003_v49 }
  0x80   : > { %2896 = vmatpush3.bf16.msra.mxu1 %v3207_v2  ;;  %v1783_v2 = vrot.slane %v1782_v44, 4 }
  0x81   : > { %2897 = vmatprep.subr.bf16.mxu1 %v3210_v14  ;;  %2990 = vmatpush3.bf16.msra.mxu0 %v3205_v10  ;;  %v2630_v10 = vrot.slane %v3789_v3, 9  ;;  %v2614_v3 = vcombine.low %v1760_v62, %v1774_v47  ;;  %v1816_v43 = vsel %vm3378_vm2, %v1811_v11, %v1815_v63 }
  0x82   : > { %2991 = vmatprep.subr.bf16.mxu0 %v3209_v1  ;;  %v1788_v0 = vsel %vm3378_vm2, %v1783_v2, %v1787_v41  ;;  %v2616_v7 = vcombine.low %v1816_v43, %v1830_v60 }
  0x83   : > { %v2016_v53 = vsel %vm3545_vm5, %v2630_v10, %v2015_v6 }
  0x84   : > { %2898 = vmatpush3.bf16.msra.mxu1 %v3210_v14  ;;  %v2011_v14 = vrot.slane %v2562_v34, 5  ;;  %v2615_v34 = vcombine.low %v1788_v0, %v1802_v56 }
  0x85   : > { %3027 = vmatprep.subr.bf16.mxu1 %v3867_v23  ;;  %2992 = vmatpush3.bf16.msra.mxu0 %v3209_v1  ;;  %v1999_v1 = vrot.slane %v3774_v28, 5  ;;  %v3222_v28 = vld [vmem:[%s3976_s1 + $0x230] sm:$0xff]  }
  0x86   : > { %2993 = vmatprep.subr.bf16.mxu0 %v3211_v19  ;;  %v2012_v52 = vsel %vm3545_vm5, %v2629_v8, %v2011_v14 }
  0x87   : > { %2900 = vmatmul.mubr.bf16.vlgmr.msra.gmra.mrb[0].mxu1 %v3983_v16  ;;  %v2651_v44 = vcombine.low %v2012_v52, %v2016_v53 }
  0x88   : > { %3035 = vmatpush3.bf16.msra.mxu1 %v3867_v23  ;;  %2903 = vmatprep.mubr.bf16.mxu1 %v3984_v25 }
  0x89   : > { %3028 = vmatprep.subr.bf16.mxu1 %v3215_v21  ;;  %2994 = vmatpush3.bf16.msra.mxu0 %v3211_v19  ;;  %v2628_v19 = vrot.slane %v3777_v38, 9 }
  0x8a   : > { %3003 = vmatprep.subr.bf16.mxu0 %v3867_v23 }
  0x8c   : > { %3036 = vmatpush3.bf16.msra.mxu1 %v3215_v21  ;;  %2996 = vmatmul.mubr.bf16.vlgmr.msra.gmra.mrb[0].mxu0 %v2614_v3 }
  0x8d   : > { %3029 = vmatprep.subr.bf16.mxu1 %v3218_v59  ;;  %3004 = vmatpush3.bf16.msra.mxu0 %v3867_v23  ;;  %v2631_v23 = vrot.slane %v3807_v46, 9  ;;  %v2024_v46 = vsel %vm3545_vm5, %v2632_v26, %v2023_v35 }
  0x8e   : > { %2999 = vmatprep.mubr.bf16.mxu0 %v2615_v34  ;;  %3005 = vmatprep.subr.bf16.mxu0 %v3215_v21 }
  0x8f   : > { %2904 = vmatmul.mubr.bf16.gmra.mrb[4].mxu1 %v2480_v36  ;;  %v2000_v36 = vsel %vm3545_vm5, %v2626_v9, %v1999_v1  ;;  %v2020_v32 = vsel %vm3545_vm5, %v2631_v23, %v2019_v17 }
  0x90   : > { %3037 = vmatpush3.bf16.msra.mxu1 %v3218_v59  ;;  %3023 = vmatprep.mubr.bf16.mxu1 %v2651_v44  ;;  %v2649_v37 = vcombine.low %v1996_v33, %v2000_v36  ;;  %v2652_v22 = vcombine.low %v2020_v32, %v2024_v46 }
  0x91   : > { %3030 = vmatprep.subr.bf16.mxu1 %v3219_v12  ;;  %3006 = vmatpush3.bf16.msra.mxu0 %v3215_v21  ;;  %v2007_v21 = vrot.slane %v3851_v13, 5 }
  0x92   : > { %3007 = vmatprep.subr.bf16.mxu0 %v3218_v59 }
  0x93   : > { %v2008_v15 = vsel %vm3545_vm5, %v2628_v19, %v2007_v21 }
  0x94   : > { %3038 = vmatpush3.bf16.msra.mxu1 %v3219_v12  ;;  %3000 = vmatmul.mubr.bf16.gmra.mrb[4].mxu0 %v2616_v7  ;;  %v2650_v55 = vcombine.low %v2004_v24, %v2008_v15 }
  0x95   : > { %3031 = vmatprep.subr.bf16.mxu1 %v3220_v27  ;;  %3008 = vmatpush3.bf16.msra.mxu0 %v3218_v59 }
  0x96   : > { %3009 = vmatprep.subr.bf16.mxu0 %v3219_v12  ;;  %3019 = vmatprep.mubr.bf16.mxu0 %v2649_v37 }
  0x98   : > { %3039 = vmatpush3.bf16.msra.mxu1 %v3220_v27 }
  0x99   : > { %3032 = vmatprep.subr.bf16.mxu1 %v3221_v39  ;;  %3010 = vmatpush3.bf16.msra.mxu0 %v3219_v12 }
  0x9a   : > { %3011 = vmatprep.subr.bf16.mxu0 %v3220_v27 }
  0x9c   : > { %3040 = vmatpush3.bf16.msra.mxu1 %v3221_v39 }
  0x9d   : > { %3033 = vmatprep.subr.bf16.mxu1 %v3222_v28  ;;  %3012 = vmatpush3.bf16.msra.mxu0 %v3220_v27 }
  0x9e   : > { %3013 = vmatprep.subr.bf16.mxu0 %v3221_v39 }
  0xa0   : > { %3041 = vmatpush3.bf16.msra.mxu1 %v3222_v28 }
  0xa1   : > { %3034 = vmatprep.subr.bf16.mxu1 %v3223_v50  ;;  %3014 = vmatpush3.bf16.msra.mxu0 %v3221_v39 }
  0xa2   : > { %3015 = vmatprep.subr.bf16.mxu0 %v3222_v28 }
  0xa4   : > { %3042 = vmatpush3.bf16.msra.mxu1 %v3223_v50 }
  0xa5   : > { %3016 = vmatpush3.bf16.msra.mxu0 %v3222_v28 }
  0xa6   : > { %3017 = vmatprep.subr.bf16.mxu0 %v3223_v50 }
  0xa7   : > { %3024 = vmatmul.mubr.bf16.vlgmr.msra.gmra.mrb[8].mxu1 %v2652_v22 }
  0xa9   : > { %3018 = vmatpush3.bf16.msra.mxu0 %v3223_v50 }
  0xac   : > { %3020 = vmatmul.mubr.bf16.vlgmr.msra.gmra.mrb[0].mxu0 %v2650_v55 }
 0x15a   : > { %v2901_v58 = vpop.f32.mrb[0].mxu1 }
 0x15b   : > { %v1038_v4 = vpop.f32.mrb[1].mxu1  ;;  %v3043_v12 = vadd.f32 %v2901_v58, %v2368_v51 }
 0x15c   : > { %v2902_v42 = vpop.f32.mrb[2].mxu1  ;;  %v3045_v5 = vadd.f32 %v2368_v51, %v1038_v4 }
 0x15d   : > { %v1041_v2 = vpop.f32.mrb[3].mxu1  ;;  %v3047_v1 = vadd.f32 %v2902_v42, %v2368_v51 }
 0x15e   : > { %v3049_v60 = vadd.f32 %v2368_v51, %v1041_v2 }
 0x162   : > { %v2905_v38 = vpop.f32.mrb[4].mxu1 }
 0x163   : > { %v1054_v41 = vpop.f32.mrb[5].mxu1  ;;  %v3051_v18 = vadd.f32 %v2905_v38, %v2368_v51 }
 0x164   : > { %v2906_v13 = vpop.f32.mrb[6].mxu1  ;;  %v3054_v16 = vadd.f32 %v2368_v51, %v1054_v41 }
 0x165   : > { %v1057_v29 = vpop.f32.mrb[7].mxu1  ;;  %v3057_v57 = vadd.f32 %v2906_v13, %v2368_v51 }
 0x166   : > { %v3060_v40 = vadd.f32 %v2368_v51, %v1057_v29 }
 0x167   : > { %v3001_v62 = vpop.f32.mrb[4].mxu0 }
 0x168   : > { %v3052_v25 = vadd.f32 %v3051_v18, %v3001_v62  ;;  %v1962_v8 = vpop.f32.mrb[5].mxu0 }
 0x169   : > { %v3055_v14 = vadd.f32 %v3054_v16, %v1962_v8  ;;  %v3002_v10 = vpop.f32.mrb[6].mxu0 }
 0x16a   : > { %v3058_v6 = vadd.f32 %v3057_v57, %v3002_v10  ;;  %v1965_v47 = vpop.f32.mrb[7].mxu0 }
 0x16b   : > { %v3061_v54 = vadd.f32 %v3060_v40, %v1965_v47 }
 0x17a   : > { %v3025_v48 = vpop.f32.mrb[8].mxu1 }
 0x17b   : > { %v3053_v20 = vadd.f32 %v3052_v25, %v3025_v48  ;;  %v2156_v59 = vpop.f32.mrb[9].mxu1 }
 0x17c   : > { %v3056_v0 = vadd.f32 %v3055_v14, %v2156_v59  ;;  %v3026_v56 = vpop.f32.mrb[10].mxu1 }
 0x17d   : > { %v3059_v3 = vadd.f32 %v3058_v6, %v3026_v56  ;;  %v2159_v63 = vpop.f32.mrb[11].mxu1  ;;  %v2185_v53 = vmax.f32 %v3053_v20, 0.0 }
 0x17e   : > { %v3062_v52 = vadd.f32 %v3061_v54, %v2159_v63  ;;  %v2183_v11 = vmax.f32 %v3056_v0, 0.0 }
 0x17f   : > { %v2186_v34 = vmax.f32 %v3059_v3, 0.0  ;;  %v3021_v9 = vpop.f32.mrb[0].mxu0 }
 0x180   : > { %v2184_v30 = vmax.f32 %v3062_v52, 0.0  ;;  %v3044_v44 = vadd.f32 %v3043_v12, %v3021_v9  ;;  %v2140_v43 = vpop.f32.mrb[1].mxu0 }
 0x181   : > { %v2698_v61 = vpack.c.bf16 %v2186_v34, %v2185_v53  ;;  %v3046_v27 = vadd.f32 %v3045_v5, %v2140_v43  ;;  %v3022_v33 = vpop.f32.mrb[2].mxu0 }
 0x182   : > { %v2693_v31 = vpack.c.bf16 %v2184_v30, %v2183_v11  ;;  %v3048_v36 = vadd.f32 %v3047_v1, %v3022_v33  ;;  %v2143_v7 = vpop.f32.mrb[3].mxu0  ;;  %v2181_v37 = vmax.f32 %v3044_v44, 0.0 }
 0x183   : > { %2702 = vst [vmem:[%s238_s8 + $0x18] sm:$0xff] %v2698_v61   ;;  %v3050_v39 = vadd.f32 %v3049_v60, %v2143_v7  ;;  %v2179_v23 = vmax.f32 %v3046_v27, 0.0 }
 0x184   : > { %2701 = vst [vmem:[%s238_s8 + $0x10] sm:$0xff] %v2693_v31   ;;  %v2182_v28 = vmax.f32 %v3048_v36, 0.0 }
 0x185   : > { %v2180_v26 = vmax.f32 %v3050_v39, 0.0 }
 0x186   : > { %v2688_v17 = vpack.c.bf16 %v2182_v28, %v2181_v37 }
 0x187   : > { %v2683_v35 = vpack.c.bf16 %v2180_v26, %v2179_v23 }
 0x188   : > { %2700 = vst [vmem:[%s238_s8 + $0x8] sm:$0xff] %v2688_v17  }
 0x189   : > { %2684 = vst [vmem:[%s238_s8] sm:$0xff] %v2683_v35  }
 0x18a PF: > { %s13_s14 = sadd.s32 1, %s3246_s14   ;;  %s3985_s12 = smov %s3242_s13 }
 0x18b   : > { %p10_p5 = scmp.ge.s32.totalorder %s13_s14, 4   ;;  %s3986_s13 = smov %s3988_s15 }
 0x18d   :  { %12 = sbr.rel (!%p10_p5) target bundleno = 2 (0x2), region = 79 }

// kernel: vgg19_forward.15
= control target key start
LH: loop header
LB: loop body
LE: loop exit
PB: predicated region body
PF: predicated region fallthrough
CT: control target
= control target key end

     0   :  { %s2051_s12 = smov 0   ;;  %s2053_s13 = smov 0   ;;  %s2538_s0 = inlined_call_operand.vmem [shape: bf16[2,16,1152], index: 0, kind: input, shape index: {}]   ;;  %s2539_s1 = inlined_call_operand.vmem [shape: bf16[1152,256], index: 1, kind: input, shape index: {}]   ;;  %s2540_s2 = inlined_call_operand.vmem [shape: f32[1,256], index: 2, kind: input, shape index: {}]   ;;  %s2541_s3 = inlined_call_operand.vmem [shape: f32[2,16,256], index: 3, kind: output, shape index: {}]  }
   0x1   :  { %s2055_s14 = smov 0  }
   0x2 LB: > { %s32_s15 = sadd.s32 1, %s2024_s13  ;;  %p1571_p0 = scmp.ge.s32.totalorder %s2028_s14, 1  ;;  %s2028_s14 = sphi %s2055_s14, %s13_s14   ;;  %s2024_s13 = sphi %s2053_s13, %s2543_s13   ;;  %s2020_s12 = sphi %s2051_s12, %s2542_s12  }
   0x3   : > { %p34_p1 = scmp.ge.s32.totalorder %s32_s15, 2  ;;  %p189_p2 = scmp.lt.s32.totalorder %s2028_s14, 3 }
   0x5   : > { %s2545_s15 = smov (%p34_p1, %s32_s15), 0  ;;  %p190_p3 = pnand %p1571_p0, %p189_p2 }
   0x6   : > { %v1777_v0 = vld [vmem:[%s2539_s1 + $0x4] ss:$8 sps:$4 sm:$0xff] (!%p190_p3)   ;;  %v1781_v2 = vld [vmem:[%s2539_s1] ss:$8 sps:$4 sm:$0xff] (!%p190_p3)   ;;  %v1783_v4 = vld [vmem:[%s2539_s1 + $0x14] ss:$8 sps:$4 sm:$0xff] (!%p190_p3)  }
   0x7   : > { %193 = sbr.rel (%p190_p3) target bundleno = 386 (0x182), region = 32  ;;  %v1779_v1 = vld [vmem:[%s2539_s1 + $0x204] ss:$8 sps:$4 sm:$0xff] (!%p190_p3)   ;;  %1207 = vmatprep.subr.bf16.mxu1 (!%p190_p3), %v1777_v0  ;;  %v1782_v3 = vld [vmem:[%s2539_s1 + $0x200] ss:$8 sps:$4 sm:$0xff] (!%p190_p3)   ;;  %p237_p4 = scmp.lt.s32.totalorder (!%p190_p3), %s2020_s12, 1 }
   0x8   : > { %1293 = vmatprep.subr.bf16.mxu0 (!%p190_p3), %v1779_v1  ;;  %1208 = vmatpush1.bf16.msra.mxu1 (!%p190_p3), %v1781_v2  ;;  %v1785_v5 = vld [vmem:[%s2539_s1 + $0x214] ss:$8 sps:$4 sm:$0xff] (!%p190_p3)   ;;  %v1787_v6 = vld [vmem:[%s2539_s1 + $0x10] ss:$8 sps:$4 sm:$0xff] (!%p190_p3)   ;;  %v1789_v8 = vld [vmem:[%s2539_s1 + $0x24] ss:$8 sps:$4 sm:$0xff] (!%p190_p3)  }
   0x9   : > { %1294 = vmatpush1.bf16.msra.mxu0 (!%p190_p3), %v1782_v3  ;;  %1209 = vmatprep.subr.bf16.mxu1 (!%p190_p3), %v1783_v4  ;;  %v1788_v7 = vld [vmem:[%s2539_s1 + $0x210] ss:$8 sps:$4 sm:$0xff] (!%p190_p3)   ;;  %v1791_v9 = vld [vmem:[%s2539_s1 + $0x224] ss:$8 sps:$4 sm:$0xff] (!%p190_p3)   ;;  %v1793_v10 = vld [vmem:[%s2539_s1 + $0x20] ss:$8 sps:$4 sm:$0xff] (!%p190_p3)  }
   0xa   : > { %1295 = vmatprep.subr.bf16.mxu0 (!%p190_p3), %v1785_v5  ;;  %v1794_v11 = vld [vmem:[%s2539_s1 + $0x220] ss:$8 sps:$4 sm:$0xff] (!%p190_p3)   ;;  %v1795_v12 = vld [vmem:[%s2539_s1 + $0x34] ss:$8 sps:$4 sm:$0xff] (!%p190_p3)   ;;  %v1799_v14 = vld [vmem:[%s2539_s1 + $0x30] ss:$8 sps:$4 sm:$0xff] (!%p190_p3)  }
   0xb   : > { %v1797_v13 = vld [vmem:[%s2539_s1 + $0x234] ss:$8 sps:$4 sm:$0xff] (!%p190_p3)   ;;  %v1800_v15 = vld [vmem:[%s2539_s1 + $0x230] ss:$8 sps:$4 sm:$0xff] (!%p190_p3)   ;;  %v1801_v16 = vld [vmem:[%s2539_s1 + $0x44] ss:$8 sps:$4 sm:$0xff] (!%p190_p3)  }
   0xc   : > { %1210 = vmatpush1.bf16.msra.mxu1 (!%p190_p3), %v1787_v6  ;;  %v1803_v17 = vld [vmem:[%s2539_s1 + $0x244] ss:$8 sps:$4 sm:$0xff] (!%p190_p3)   ;;  %v1805_v18 = vld [vmem:[%s2539_s1 + $0x40] ss:$8 sps:$4 sm:$0xff] (!%p190_p3)   ;;  %v1807_v20 = vld [vmem:[%s2539_s1 + $0x54] ss:$8 sps:$4 sm:$0xff] (!%p190_p3)  }
   0xd   : > { %1296 = vmatpush1.bf16.msra.mxu0 (!%p190_p3), %v1788_v7  ;;  %1211 = vmatprep.subr.bf16.mxu1 (!%p190_p3), %v1789_v8  ;;  %v1806_v19 = vld [vmem:[%s2539_s1 + $0x240] ss:$8 sps:$4 sm:$0xff] (!%p190_p3)   ;;  %v1809_v21 = vld [vmem:[%s2539_s1 + $0x254] ss:$8 sps:$4 sm:$0xff] (!%p190_p3)   ;;  %v1811_v22 = vld [vmem:[%s2539_s1 + $0x50] ss:$8 sps:$4 sm:$0xff] (!%p190_p3)  }
   0xe   : > { %1297 = vmatprep.subr.bf16.mxu0 %v1791_v9  ;;  %v1812_v23 = vld [vmem:[%s2539_s1 + $0x250] ss:$8 sps:$4 sm:$0xff]   ;;  %v1813_v24 = vld [vmem:[%s2539_s1 + $0x64] ss:$8 sps:$4 sm:$0xff]   ;;  %v1817_v26 = vld [vmem:[%s2539_s1 + $0x60] ss:$8 sps:$4 sm:$0xff]  }
   0xf   : > { %v1815_v25 = vld [vmem:[%s2539_s1 + $0x264] ss:$8 sps:$4 sm:$0xff]   ;;  %v1818_v27 = vld [vmem:[%s2539_s1 + $0x260] ss:$8 sps:$4 sm:$0xff]   ;;  %v1819_v28 = vld [vmem:[%s2539_s1 + $0x74] ss:$8 sps:$4 sm:$0xff]  }
  0x10   : > { %1212 = vmatpush1.bf16.msra.mxu1 %v1793_v10  ;;  %v1821_v29 = vld [vmem:[%s2539_s1 + $0x274] ss:$8 sps:$4 sm:$0xff]   ;;  %v1823_v30 = vld [vmem:[%s2539_s1 + $0x70] ss:$8 sps:$4 sm:$0xff]   ;;  %v1825_v32 = vld [vmem:[%s2539_s1 + $0x84] ss:$8 sps:$4 sm:$0xff]  }
  0x11   : > { %1298 = vmatpush1.bf16.msra.mxu0 %v1794_v11  ;;  %1213 = vmatprep.subr.bf16.mxu1 %v1795_v12  ;;  %v1824_v31 = vld [vmem:[%s2539_s1 + $0x270] ss:$8 sps:$4 sm:$0xff]   ;;  %v1827_v33 = vld [vmem:[%s2539_s1 + $0x284] ss:$8 sps:$4 sm:$0xff]   ;;  %v1829_v34 = vld [vmem:[%s2539_s1 + $0x80] ss:$8 sps:$4 sm:$0xff]  }
  0x12   : > { %1299 = vmatprep.subr.bf16.mxu0 %v1797_v13  ;;  %v1830_v35 = vld [vmem:[%s2539_s1 + $0x280] ss:$8 sps:$4 sm:$0xff]   ;;  %v1831_v36 = vld [vmem:[%s2539_s1 + $0x94] ss:$8 sps:$4 sm:$0xff]   ;;  %s2547_s12 = smov (!%p237_p4, %s2020_s12), 1 }
  0x13   : > { %v1833_v37 = vld [vmem:[%s2539_s1 + $0x294] ss:$8 sps:$4 sm:$0xff]   ;;  %v1835_v38 = vld [vmem:[%s2539_s1 + $0x90] ss:$8 sps:$4 sm:$0xff]   ;;  %v1837_v40 = vld [vmem:[%s2539_s1 + $0xa4] ss:$8 sps:$4 sm:$0xff]  }
  0x14   : > { %1214 = vmatpush1.bf16.msra.mxu1 %v1799_v14  ;;  %v1836_v39 = vld [vmem:[%s2539_s1 + $0x290] ss:$8 sps:$4 sm:$0xff]   ;;  %s1751_s29 = smul.u32 72, %s2547_s12  ;;  %v1839_v41 = vld [vmem:[%s2539_s1 + $0x2a4] ss:$8 sps:$4 sm:$0xff]   ;;  %s1730_s20 = sshll.u32 %s2547_s12, 5 }
  0x15   : > { %1300 = vmatpush1.bf16.msra.mxu0 %v1800_v15  ;;  %1215 = vmatprep.subr.bf16.mxu1 %v1801_v16  ;;  %v1841_v42 = vld [vmem:[%s2539_s1 + $0xa0] ss:$8 sps:$4 sm:$0xff]   ;;  %v1843_v44 = vld [vmem:[%s2539_s1 + $0xb4] ss:$8 sps:$4 sm:$0xff]   ;;  %v1847_v46 = vld [vmem:[%s2539_s1 + $0xb0] ss:$8 sps:$4 sm:$0xff]   ;;  %s271_s22 = scalar_lea.vmem %s2541_s3, %s1730_s20 }
  0x16   : > { %1301 = vmatprep.subr.bf16.mxu0 %v1803_v17  ;;  %v1842_v43 = vld [vmem:[%s2539_s1 + $0x2a0] ss:$8 sps:$4 sm:$0xff]   ;;  %s2214_s17 = scalar_lea.vmem %s2538_s0, %s1751_s29  ;;  %v1845_v45 = vld [vmem:[%s2539_s1 + $0x2b4] ss:$8 sps:$4 sm:$0xff]   ;;  %v1848_v47 = vld [vmem:[%s2539_s1 + $0x2b0] ss:$8 sps:$4 sm:$0xff]  }
  0x17   : > { %v1875_v48 = vld [vmem:[%s2214_s17 + $0x4] ss:$36 sps:$4 sm:$0xff]   ;;  %v1881_v51 = vld [vmem:[%s2214_s17 + $0x14] ss:$36 sps:$4 sm:$0xff]  }
  0x18   : > { %1216 = vmatpush1.bf16.msra.mxu1 %v1805_v18  ;;  %v1849_v49 = vld [vmem:[%s2539_s1 + $0xc4] ss:$8 sps:$4 sm:$0xff]   ;;  %1239 = vmatprep.mubr.bf16.mxu1 %v1875_v48  ;;  %v1853_v52 = vld [vmem:[%s2539_s1 + $0xc0] ss:$8 sps:$4 sm:$0xff]   ;;  %v1855_v54 = vld [vmem:[%s2539_s1 + $0xd4] ss:$8 sps:$4 sm:$0xff]  }
  0x19   : > { %1302 = vmatpush1.bf16.msra.mxu0 %v1806_v19  ;;  %1217 = vmatprep.subr.bf16.mxu1 %v1807_v20  ;;  %v1851_v50 = vld [vmem:[%s2539_s1 + $0x2c4] ss:$8 sps:$4 sm:$0xff]   ;;  %v1854_v53 = vld [vmem:[%s2539_s1 + $0x2c0] ss:$8 sps:$4 sm:$0xff]   ;;  %v1857_v55 = vld [vmem:[%s2539_s1 + $0x2d4] ss:$8 sps:$4 sm:$0xff]  }
  0x1a   : > { %1303 = vmatprep.subr.bf16.mxu0 %v1809_v21  ;;  %1325 = vmatprep.mubr.bf16.mxu0 %v1881_v51  ;;  %v1859_v56 = vld [vmem:[%s2539_s1 + $0xd0] ss:$8 sps:$4 sm:$0xff]   ;;  %v1861_v58 = vld [vmem:[%s2539_s1 + $0xe4] ss:$8 sps:$4 sm:$0xff]   ;;  %v1865_v60 = vld [vmem:[%s2539_s1 + $0xe0] ss:$8 sps:$4 sm:$0xff]  }
  0x1b   : > { %v1860_v57 = vld [vmem:[%s2539_s1 + $0x2d0] ss:$8 sps:$4 sm:$0xff]   ;;  %v1863_v59 = vld [vmem:[%s2539_s1 + $0x2e4] ss:$8 sps:$4 sm:$0xff]   ;;  %v1866_v61 = vld [vmem:[%s2539_s1 + $0x2e0] ss:$8 sps:$4 sm:$0xff]  }
  0x1c   : > { %1218 = vmatpush1.bf16.msra.mxu1 %v1811_v22  ;;  %v1867_v62 = vld [vmem:[%s2539_s1 + $0xf4] ss:$8 sps:$4 sm:$0xff]   ;;  %v1871_v0 = vld [vmem:[%s2539_s1 + $0xf0] ss:$8 sps:$4 sm:$0xff]   ;;  %v1878_v2 = vld [vmem:[%s2539_s1 + $0x104] ss:$8 sps:$4 sm:$0xff]  }
  0x1d   : > { %1304 = vmatpush1.bf16.msra.mxu0 %v1812_v23  ;;  %1219 = vmatprep.subr.bf16.mxu1 %v1813_v24  ;;  %v1869_v63 = vld [vmem:[%s2539_s1 + $0x2f4] ss:$8 sps:$4 sm:$0xff]   ;;  %v1872_v1 = vld [vmem:[%s2539_s1 + $0x2f0] ss:$8 sps:$4 sm:$0xff]   ;;  %v1884_v3 = vld [vmem:[%s2539_s1 + $0x304] ss:$8 sps:$4 sm:$0xff]  }
  0x1e   : > { %1305 = vmatprep.subr.bf16.mxu0 %v1815_v25  ;;  %v1873_v4 = vld [vmem:[%s2214_s17] ss:$36 sps:$4 sm:$0xff]   ;;  %v1879_v6 = vld [vmem:[%s2214_s17 + $0x10] ss:$36 sps:$4 sm:$0xff]  }
  0x1f   : > { %v1876_v5 = vld [vmem:[%s2539_s1 + $0x100] ss:$8 sps:$4 sm:$0xff]   ;;  %v1887_v8 = vld [vmem:[%s2539_s1 + $0x114] ss:$8 sps:$4 sm:$0xff]   ;;  %v1885_v10 = vld [vmem:[%s2539_s1 + $0x110] ss:$8 sps:$4 sm:$0xff]  }
  0x20   : > { %1220 = vmatpush1.bf16.msra.mxu1 %v1817_v26  ;;  %v1882_v7 = vld [vmem:[%s2539_s1 + $0x300] ss:$8 sps:$4 sm:$0xff]   ;;  %v1890_v9 = vld [vmem:[%s2539_s1 + $0x314] ss:$8 sps:$4 sm:$0xff]   ;;  %v1888_v11 = vld [vmem:[%s2539_s1 + $0x310] ss:$8 sps:$4 sm:$0xff]  }
  0x21   : > { %1306 = vmatpush1.bf16.msra.mxu0 %v1818_v27  ;;  %1221 = vmatprep.subr.bf16.mxu1 %v1819_v28  ;;  %v1893_v12 = vld [vmem:[%s2539_s1 + $0x124] ss:$8 sps:$4 sm:$0xff]   ;;  %v1891_v14 = vld [vmem:[%s2539_s1 + $0x120] ss:$8 sps:$4 sm:$0xff]   ;;  %v1899_v16 = vld [vmem:[%s2539_s1 + $0x134] ss:$8 sps:$4 sm:$0xff]  }
  0x22   : > { %1307 = vmatprep.subr.bf16.mxu0 %v1821_v29  ;;  %v1896_v13 = vld [vmem:[%s2539_s1 + $0x324] ss:$8 sps:$4 sm:$0xff]   ;;  %v1894_v15 = vld [vmem:[%s2539_s1 + $0x320] ss:$8 sps:$4 sm:$0xff]   ;;  %v1902_v17 = vld [vmem:[%s2539_s1 + $0x334] ss:$8 sps:$4 sm:$0xff]  }
  0x23   : > { %v1897_v18 = vld [vmem:[%s2539_s1 + $0x130] ss:$8 sps:$4 sm:$0xff]   ;;  %v1905_v20 = vld [vmem:[%s2539_s1 + $0x144] ss:$8 sps:$4 sm:$0xff]   ;;  %v1903_v22 = vld [vmem:[%s2539_s1 + $0x140] ss:$8 sps:$4 sm:$0xff]  }
  0x24   : > { %1222 = vmatpush1.bf16.msra.mxu1 %v1823_v30  ;;  %v1900_v19 = vld [vmem:[%s2539_s1 + $0x330] ss:$8 sps:$4 sm:$0xff]   ;;  %v1908_v21 = vld [vmem:[%s2539_s1 + $0x344] ss:$8 sps:$4 sm:$0xff]   ;;  %v1906_v23 = vld [vmem:[%s2539_s1 + $0x340] ss:$8 sps:$4 sm:$0xff]  }
  0x25   : > { %1308 = vmatpush1.bf16.msra.mxu0 %v1824_v31  ;;  %1223 = vmatprep.subr.bf16.mxu1 %v1825_v32  ;;  %v1911_v24 = vld [vmem:[%s2539_s1 + $0x154] ss:$8 sps:$4 sm:$0xff]   ;;  %v1909_v26 = vld [vmem:[%s2539_s1 + $0x150] ss:$8 sps:$4 sm:$0xff]   ;;  %v1917_v28 = vld [vmem:[%s2539_s1 + $0x164] ss:$8 sps:$4 sm:$0xff]  }
  0x26   : > { %1309 = vmatprep.subr.bf16.mxu0 %v1827_v33  ;;  %v1914_v25 = vld [vmem:[%s2539_s1 + $0x354] ss:$8 sps:$4 sm:$0xff]   ;;  %v1912_v27 = vld [vmem:[%s2539_s1 + $0x350] ss:$8 sps:$4 sm:$0xff]   ;;  %v1920_v29 = vld [vmem:[%s2539_s1 + $0x364] ss:$8 sps:$4 sm:$0xff]  }
  0x27   : > { %v1915_v30 = vld [vmem:[%s2539_s1 + $0x160] ss:$8 sps:$4 sm:$0xff]   ;;  %v1923_v32 = vld [vmem:[%s2539_s1 + $0x174] ss:$8 sps:$4 sm:$0xff]  }
  0x28   : > { %1224 = vmatpush1.bf16.msra.mxu1 %v1829_v34  ;;  %v1918_v31 = vld [vmem:[%s2539_s1 + $0x360] ss:$8 sps:$4 sm:$0xff]   ;;  %v1926_v33 = vld [vmem:[%s2539_s1 + $0x374] ss:$8 sps:$4 sm:$0xff]   ;;  %v1977_v34 = vld [vmem:[%s2214_s17 + $0xc] ss:$36 sps:$4 sm:$0xff]  }
  0x29   : > { %1310 = vmatpush1.bf16.msra.mxu0 %v1830_v35  ;;  %1225 = vmatprep.subr.bf16.mxu1 %v1831_v36  ;;  %v1980_v35 = vld [vmem:[%s2214_s17 + $0x1c] ss:$36 sps:$4 sm:$0xff]   ;;  %v1921_v36 = vld [vmem:[%s2539_s1 + $0x170] ss:$8 sps:$4 sm:$0xff]  }
  0x2a   : > { %1311 = vmatprep.subr.bf16.mxu0 %v1833_v37  ;;  %v1924_v37 = vld [vmem:[%s2539_s1 + $0x370] ss:$8 sps:$4 sm:$0xff]   ;;  %v1939_v48 = vld [vmem:[%s2539_s1 + $0x1a0] ss:$8 sps:$4 sm:$0xff]   ;;  %v1950_v51 = vld [vmem:[%s2539_s1 + $0x3b4] ss:$8 sps:$4 sm:$0xff]  }
  0x2c   : > { %1226 = vmatpush1.bf16.msra.mxu1 %v1835_v38  ;;  %v1929_v38 = vld [vmem:[%s2539_s1 + $0x184] ss:$8 sps:$4 sm:$0xff]  }
  0x2d   : > { %1312 = vmatpush1.bf16.msra.mxu0 %v1836_v39  ;;  %1227 = vmatprep.subr.bf16.mxu1 %v1837_v40  ;;  %v1932_v39 = vld [vmem:[%s2539_s1 + $0x384] ss:$8 sps:$4 sm:$0xff]   ;;  %v1927_v40 = vld [vmem:[%s2539_s1 + $0x180] ss:$8 sps:$4 sm:$0xff]  }
  0x2e   : > { %1313 = vmatprep.subr.bf16.mxu0 %v1839_v41  ;;  %v1930_v41 = vld [vmem:[%s2539_s1 + $0x380] ss:$8 sps:$4 sm:$0xff]  }
  0x30   : > { %1228 = vmatpush1.bf16.msra.mxu1 %v1841_v42  ;;  %v1935_v42 = vld [vmem:[%s2539_s1 + $0x194] ss:$8 sps:$4 sm:$0xff]  }
  0x31   : > { %1314 = vmatpush1.bf16.msra.mxu0 %v1842_v43  ;;  %1229 = vmatprep.subr.bf16.mxu1 %v1843_v44  ;;  %v1938_v43 = vld [vmem:[%s2539_s1 + $0x394] ss:$8 sps:$4 sm:$0xff]   ;;  %v1933_v44 = vld [vmem:[%s2539_s1 + $0x190] ss:$8 sps:$4 sm:$0xff]  }
  0x32   : > { %1315 = vmatprep.subr.bf16.mxu0 %v1845_v45  ;;  %v1936_v45 = vld [vmem:[%s2539_s1 + $0x390] ss:$8 sps:$4 sm:$0xff]  }
  0x34   : > { %1230 = vmatpush1.bf16.msra.mxu1 %v1847_v46  ;;  %v1941_v46 = vld [vmem:[%s2539_s1 + $0x1a4] ss:$8 sps:$4 sm:$0xff]  }
  0x35   : > { %1316 = vmatpush1.bf16.msra.mxu0 %v1848_v47  ;;  %1231 = vmatprep.subr.bf16.mxu1 %v1849_v49  ;;  %v1944_v47 = vld [vmem:[%s2539_s1 + $0x3a4] ss:$8 sps:$4 sm:$0xff]   ;;  %v1942_v49 = vld [vmem:[%s2539_s1 + $0x3a0] ss:$8 sps:$4 sm:$0xff]  }
  0x36   : > { %1317 = vmatprep.subr.bf16.mxu0 %v1851_v50  ;;  %v1947_v50 = vld [vmem:[%s2539_s1 + $0x1b4] ss:$8 sps:$4 sm:$0xff]  }
  0x38   : > { %1232 = vmatpush1.bf16.msra.mxu1 %v1853_v52  ;;  %v1945_v52 = vld [vmem:[%s2539_s1 + $0x1b0] ss:$8 sps:$4 sm:$0xff]  }
  0x39   : > { %1318 = vmatpush1.bf16.msra.mxu0 %v1854_v53  ;;  %1233 = vmatprep.subr.bf16.mxu1 %v1855_v54  ;;  %v1948_v53 = vld [vmem:[%s2539_s1 + $0x3b0] ss:$8 sps:$4 sm:$0xff]   ;;  %v1953_v54 = vld [vmem:[%s2539_s1 + $0x1c4] ss:$8 sps:$4 sm:$0xff]  }
  0x3a   : > { %1319 = vmatprep.subr.bf16.mxu0 %v1857_v55  ;;  %v1956_v55 = vld [vmem:[%s2539_s1 + $0x3c4] ss:$8 sps:$4 sm:$0xff]  }
  0x3c   : > { %1234 = vmatpush1.bf16.msra.mxu1 %v1859_v56  ;;  %v1951_v56 = vld [vmem:[%s2539_s1 + $0x1c0] ss:$8 sps:$4 sm:$0xff]  }
  0x3d   : > { %1320 = vmatpush1.bf16.msra.mxu0 %v1860_v57  ;;  %1235 = vmatprep.subr.bf16.mxu1 %v1861_v58  ;;  %v1954_v57 = vld [vmem:[%s2539_s1 + $0x3c0] ss:$8 sps:$4 sm:$0xff]   ;;  %v1959_v58 = vld [vmem:[%s2539_s1 + $0x1d4] ss:$8 sps:$4 sm:$0xff]  }
  0x3e   : > { %1321 = vmatprep.subr.bf16.mxu0 %v1863_v59  ;;  %v1962_v59 = vld [vmem:[%s2539_s1 + $0x3d4] ss:$8 sps:$4 sm:$0xff]  }
  0x40   : > { %1236 = vmatpush1.bf16.msra.mxu1 %v1865_v60  ;;  %v1957_v60 = vld [vmem:[%s2539_s1 + $0x1d0] ss:$8 sps:$4 sm:$0xff]  }
  0x41   : > { %1322 = vmatpush1.bf16.msra.mxu0 %v1866_v61  ;;  %1237 = vmatprep.subr.bf16.mxu1 %v1867_v62  ;;  %v1960_v61 = vld [vmem:[%s2539_s1 + $0x3d0] ss:$8 sps:$4 sm:$0xff]   ;;  %v1965_v62 = vld [vmem:[%s2539_s1 + $0x1e4] ss:$8 sps:$4 sm:$0xff]  }
  0x42   : > { %1323 = vmatprep.subr.bf16.mxu0 %v1869_v63  ;;  %v1968_v63 = vld [vmem:[%s2539_s1 + $0x3e4] ss:$8 sps:$4 sm:$0xff]  }
  0x44   : > { %1238 = vmatpush1.bf16.msra.mxu1 %v1871_v0  ;;  %v1963_v0 = vld [vmem:[%s2539_s1 + $0x1e0] ss:$8 sps:$4 sm:$0xff]  }
  0x45   : > { %1324 = vmatpush1.bf16.msra.mxu0 %v1872_v1  ;;  %1250 = vmatprep.subr.bf16.mxu1 %v1878_v2  ;;  %v1966_v1 = vld [vmem:[%s2539_s1 + $0x3e0] ss:$8 sps:$4 sm:$0xff]   ;;  %v1971_v2 = vld [vmem:[%s2539_s1 + $0x1f4] ss:$8 sps:$4 sm:$0xff]  }
  0x46   : > { %1336 = vmatprep.subr.bf16.mxu0 %v1884_v3  ;;  %v1974_v3 = vld [vmem:[%s2539_s1 + $0x3f4] ss:$8 sps:$4 sm:$0xff]  }
  0x47   : > { %1240 = vmatmul.mubr.bf16.vlgmr.msra.gmra.mrb[0].mxu1 %v1873_v4  ;;  %v1969_v4 = vld [vmem:[%s2539_s1 + $0x1f0] ss:$8 sps:$4 sm:$0xff]  }
  0x48   : > { %1326 = vmatmul.mubr.bf16.vlgmr.msra.gmra.mrb[0].mxu0 %v1879_v6  ;;  %1251 = vmatpush1.bf16.msra.mxu1 %v1876_v5  ;;  %v1972_v5 = vld [vmem:[%s2539_s1 + $0x3f0] ss:$8 sps:$4 sm:$0xff]   ;;  %v1983_v6 = vld [vmem:[%s2539_s1 + $0x404] ss:$8 sps:$4 sm:$0xff]  }
  0x49   : > { %1337 = vmatpush1.bf16.msra.mxu0 %v1882_v7  ;;  %1252 = vmatprep.subr.bf16.mxu1 %v1887_v8  ;;  %v1975_v7 = vld [vmem:[%s2214_s17 + $0x8] ss:$36 sps:$4 sm:$0xff]   ;;  %v1978_v8 = vld [vmem:[%s2214_s17 + $0x18] ss:$36 sps:$4 sm:$0xff]  }
  0x4a   : > { %1338 = vmatprep.subr.bf16.mxu0 %v1890_v9  ;;  %1282 = vmatprep.mubr.bf16.mxu1 %v1977_v34  ;;  %v1981_v9 = vld [vmem:[%s2539_s1 + $0x400] ss:$8 sps:$4 sm:$0xff]  }
  0x4b   : > { %1368 = vmatprep.mubr.bf16.mxu0 %v1980_v35 }
  0x4c   : > { %1253 = vmatpush1.bf16.msra.mxu1 %v1885_v10  ;;  %v1986_v10 = vld [vmem:[%s2539_s1 + $0x414] ss:$8 sps:$4 sm:$0xff]  }
  0x4d   : > { %1339 = vmatpush1.bf16.msra.mxu0 %v1888_v11  ;;  %1254 = vmatprep.subr.bf16.mxu1 %v1893_v12  ;;  %v1984_v11 = vld [vmem:[%s2539_s1 + $0x410] ss:$8 sps:$4 sm:$0xff]   ;;  %v2030_v12 = vmov 0  }
  0x4e   : > { %1340 = vmatprep.subr.bf16.mxu0 %v1896_v13  ;;  %v1989_v13 = vld [vmem:[%s2539_s1 + $0x424] ss:$8 sps:$4 sm:$0xff]  }
  0x50   : > { %1255 = vmatpush1.bf16.msra.mxu1 %v1891_v14  ;;  %v1987_v14 = vld [vmem:[%s2539_s1 + $0x420] ss:$8 sps:$4 sm:$0xff]  }
  0x51   : > { %1341 = vmatpush1.bf16.msra.mxu0 %v1894_v15  ;;  %1256 = vmatprep.subr.bf16.mxu1 %v1899_v16  ;;  %v1992_v15 = vld [vmem:[%s2539_s1 + $0x434] ss:$8 sps:$4 sm:$0xff]   ;;  %v1990_v16 = vld [vmem:[%s2539_s1 + $0x430] ss:$8 sps:$4 sm:$0xff]  }
  0x52   : > { %1342 = vmatprep.subr.bf16.mxu0 %v1902_v17  ;;  %v1995_v17 = vld [vmem:[%s2539_s1 + $0x444] ss:$8 sps:$4 sm:$0xff]  }
  0x54   : > { %1257 = vmatpush1.bf16.msra.mxu1 %v1897_v18  ;;  %v1993_v18 = vld [vmem:[%s2539_s1 + $0x440] ss:$8 sps:$4 sm:$0xff]  }
  0x55   : > { %1343 = vmatpush1.bf16.msra.mxu0 %v1900_v19  ;;  %1258 = vmatprep.subr.bf16.mxu1 %v1905_v20  ;;  %v1998_v19 = vld [vmem:[%s2539_s1 + $0x454] ss:$8 sps:$4 sm:$0xff]   ;;  %v1996_v20 = vld [vmem:[%s2539_s1 + $0x450] ss:$8 sps:$4 sm:$0xff]  }
  0x56   : > { %1344 = vmatprep.subr.bf16.mxu0 %v1908_v21  ;;  %v2001_v21 = vld [vmem:[%s2539_s1 + $0x464] ss:$8 sps:$4 sm:$0xff]  }
  0x58   : > { %1259 = vmatpush1.bf16.msra.mxu1 %v1903_v22  ;;  %v1999_v22 = vld [vmem:[%s2539_s1 + $0x460] ss:$8 sps:$4 sm:$0xff]  }
  0x59   : > { %1345 = vmatpush1.bf16.msra.mxu0 %v1906_v23  ;;  %1260 = vmatprep.subr.bf16.mxu1 %v1911_v24  ;;  %v2004_v23 = vld [vmem:[%s2539_s1 + $0x474] ss:$8 sps:$4 sm:$0xff]   ;;  %v2002_v24 = vld [vmem:[%s2539_s1 + $0x470] ss:$8 sps:$4 sm:$0xff]  }
  0x5a   : > { %1346 = vmatprep.subr.bf16.mxu0 %v1914_v25  ;;  %v2005_v25 = vld [vmem:[%s2214_s17 + $0x20] ss:$36 sps:$4 sm:$0xff]  }
  0x5c   : > { %1261 = vmatpush1.bf16.msra.mxu1 %v1909_v26 }
  0x5d   : > { %1347 = vmatpush1.bf16.msra.mxu0 %v1912_v27  ;;  %1262 = vmatprep.subr.bf16.mxu1 %v1917_v28 }
  0x5e   : > { %1348 = vmatprep.subr.bf16.mxu0 %v1920_v29 }
  0x60   : > { %1263 = vmatpush1.bf16.msra.mxu1 %v1915_v30  ;;  %v431_v30 = vlaneseq }
  0x61   : > { %1349 = vmatpush1.bf16.msra.mxu0 %v1918_v31  ;;  %1264 = vmatprep.subr.bf16.mxu1 %v1923_v32 }
  0x62   : > { %1350 = vmatprep.subr.bf16.mxu0 %v1926_v33  ;;  %v432_v31 = vshrl.u32 %v431_v30, 7  ;;  %v429_v33 = vld [vmem:[%s2540_s2] sm:$0x3] }
  0x64   : > { %1265 = vmatpush1.bf16.msra.mxu1 %v1921_v36  ;;  %v433_v32 = vsub.s32 0, %v432_v31  ;;  %v437_v34 = vsub.s32 1, %v432_v31 }
  0x65   : > { %1351 = vmatpush1.bf16.msra.mxu0 %v1924_v37  ;;  %1266 = vmatprep.subr.bf16.mxu1 %v1929_v38 }
  0x66   : > { %1352 = vmatprep.subr.bf16.mxu0 %v1932_v39  ;;  %v434_v35 = vrot.slane %v429_v33, %v433_v32  ;;  %v438_v36 = vrot.slane %v429_v33, %v437_v34 }
  0x68   : > { %1267 = vmatpush1.bf16.msra.mxu1 %v1927_v40 }
  0x69   : > { %1353 = vmatpush1.bf16.msra.mxu0 %v1930_v41  ;;  %1268 = vmatprep.subr.bf16.mxu1 %v1935_v42 }
  0x6a   : > { %1354 = vmatprep.subr.bf16.mxu0 %v1938_v43 }
  0x6c   : > { %1269 = vmatpush1.bf16.msra.mxu1 %v1933_v44 }
  0x6d   : > { %1355 = vmatpush1.bf16.msra.mxu0 %v1936_v45  ;;  %1270 = vmatprep.subr.bf16.mxu1 %v1941_v46 }
  0x6e   : > { %1356 = vmatprep.subr.bf16.mxu0 %v1944_v47 }
  0x70   : > { %1271 = vmatpush1.bf16.msra.mxu1 %v1939_v48 }
  0x71   : > { %1357 = vmatpush1.bf16.msra.mxu0 %v1942_v49  ;;  %1272 = vmatprep.subr.bf16.mxu1 %v1947_v50 }
  0x72   : > { %1358 = vmatprep.subr.bf16.mxu0 %v1950_v51 }
  0x74   : > { %1273 = vmatpush1.bf16.msra.mxu1 %v1945_v52 }
  0x75   : > { %1359 = vmatpush1.bf16.msra.mxu0 %v1948_v53  ;;  %1274 = vmatprep.subr.bf16.mxu1 %v1953_v54 }
  0x76   : > { %1360 = vmatprep.subr.bf16.mxu0 %v1956_v55 }
  0x78   : > { %1275 = vmatpush1.bf16.msra.mxu1 %v1951_v56 }
  0x79   : > { %1361 = vmatpush1.bf16.msra.mxu0 %v1954_v57  ;;  %1276 = vmatprep.subr.bf16.mxu1 %v1959_v58 }
  0x7a   : > { %1362 = vmatprep.subr.bf16.mxu0 %v1962_v59 }
  0x7c   : > { %1277 = vmatpush1.bf16.msra.mxu1 %v1957_v60 }
  0x7d   : > { %1363 = vmatpush1.bf16.msra.mxu0 %v1960_v61  ;;  %1278 = vmatprep.subr.bf16.mxu1 %v1965_v62 }
  0x7e   : > { %1364 = vmatprep.subr.bf16.mxu0 %v1968_v63 }
  0x80   : > { %1279 = vmatpush1.bf16.msra.mxu1 %v1963_v0 }
  0x81   : > { %1365 = vmatpush1.bf16.msra.mxu0 %v1966_v1  ;;  %1280 = vmatprep.subr.bf16.mxu1 %v1971_v2 }
  0x82   : > { %1366 = vmatprep.subr.bf16.mxu0 %v1974_v3 }
  0x84   : > { %1281 = vmatpush1.bf16.msra.mxu1 %v1969_v4 }
  0x85   : > { %1367 = vmatpush1.bf16.msra.mxu0 %v1972_v5 }
  0x86   : > { %1379 = vmatprep.subr.bf16.mxu0 %v1983_v6 }
  0x87   : > { %1283 = vmatmul.mubr.bf16.vlgmr.msra.gmra.mrb[0].mxu1 %v1975_v7 }
  0x88   : > { %1369 = vmatmul.mubr.bf16.vlgmr.msra.gmra.mrb[0].mxu0 %v1978_v8 }
  0x89   : > { %1380 = vmatpush1.bf16.msra.mxu0 %v1981_v9  ;;  %1411 = vmatprep.mubr.bf16.mxu0 %v2030_v12 }
  0x8a   : > { %1381 = vmatprep.subr.bf16.mxu0 %v1986_v10 }
  0x8d   : > { %1382 = vmatpush1.bf16.msra.mxu0 %v1984_v11 }
  0x8e   : > { %1383 = vmatprep.subr.bf16.mxu0 %v1989_v13 }
  0x91   : > { %1384 = vmatpush1.bf16.msra.mxu0 %v1987_v14 }
  0x92   : > { %1385 = vmatprep.subr.bf16.mxu0 %v1992_v15 }
  0x95   : > { %1386 = vmatpush1.bf16.msra.mxu0 %v1990_v16 }
  0x96   : > { %1387 = vmatprep.subr.bf16.mxu0 %v1995_v17 }
  0x99   : > { %1388 = vmatpush1.bf16.msra.mxu0 %v1993_v18 }
  0x9a   : > { %1389 = vmatprep.subr.bf16.mxu0 %v1998_v19 }
  0x9d   : > { %1390 = vmatpush1.bf16.msra.mxu0 %v1996_v20 }
  0x9e   : > { %1391 = vmatprep.subr.bf16.mxu0 %v2001_v21 }
  0xa1   : > { %1392 = vmatpush1.bf16.msra.mxu0 %v1999_v22 }
  0xa2   : > { %1393 = vmatprep.subr.bf16.mxu0 %v2004_v23 }
  0xa5   : > { %1394 = vmatpush1.bf16.msra.mxu0 %v2002_v24 }
  0xa8   : > { %1412 = vmatmul.mubr.bf16.vlgmr.msra.gmra.mrb[0].mxu0 %v2005_v25 }
 0x15a   : > { %v1284_v26 = vpop.f32.mrb[0].mxu1 }
 0x15b   : > { %v1286_v27 = vpop.f32.mrb[1].mxu1  ;;  %v1731_v37 = vadd.f32 %v1284_v26, %v434_v35 }
 0x15c   : > { %v1288_v28 = vpop.f32.mrb[2].mxu1  ;;  %v1733_v38 = vadd.f32 %v1286_v27, %v438_v36 }
 0x15d   : > { %v1290_v29 = vpop.f32.mrb[3].mxu1  ;;  %v1735_v40 = vadd.f32 %v1288_v28, %v434_v35 }
 0x15e   : > { %v1737_v43 = vadd.f32 %v1290_v29, %v438_v36 }
 0x17b   : > { %v1413_v39 = vpop.f32.mrb[0].mxu0 }
 0x17c   : > { %v1732_v41 = vadd.f32 %v1731_v37, %v1413_v39  ;;  %v1415_v42 = vpop.f32.mrb[1].mxu0 }
 0x17d   : > { %v1734_v44 = vadd.f32 %v1733_v38, %v1415_v42  ;;  %v1417_v45 = vpop.f32.mrb[2].mxu0 }
 0x17e   : > { %1422 = vst [vmem:[%s271_s22] sm:$0xff] %v1732_v41  ;;  %v1736_v46 = vadd.f32 %v1735_v40, %v1417_v45  ;;  %v1419_v47 = vpop.f32.mrb[3].mxu0 }
 0x17f   : > { %1423 = vst [vmem:[%s271_s22 + $0x8] sm:$0xff] %v1734_v44  ;;  %v1738_v48 = vadd.f32 %v1737_v43, %v1419_v47 }
 0x180   : > { %1424 = vst [vmem:[%s271_s22 + $0x10] sm:$0xff] %v1736_v46 }
 0x181   : > { %1425 = vst [vmem:[%s271_s22 + $0x18] sm:$0xff] %v1738_v48 }
 0x182 PF: > { %s13_s14 = sadd.s32 1, %s2028_s14   ;;  %s2542_s12 = smov %s2024_s13 }
 0x183   : > { %p10_p5 = scmp.ge.s32.totalorder %s13_s14, 4   ;;  %s2543_s13 = smov %s2545_s15 }
 0x185   :  { %12 = sbr.rel (!%p10_p5) target bundleno = 2 (0x2), region = 68 }

// kernel: vgg19_forward.16
= control target key start
LH: loop header
LB: loop body
LE: loop exit
PB: predicated region body
PF: predicated region fallthrough
CT: control target
= control target key end

     0   :  { %s3553_s12 = smov 0   ;;  %s3555_s13 = smov 0   ;;  %s4481_s0 = inlined_call_operand.vmem [shape: bf16[2,16,2304], index: 0, kind: input, shape index: {}]   ;;  %s4482_s1 = inlined_call_operand.vmem [shape: bf16[2304,256], index: 1, kind: input, shape index: {}]   ;;  %s4483_s2 = inlined_call_operand.vmem [shape: f32[1,256], index: 2, kind: input, shape index: {}]   ;;  %s4484_s3 = inlined_call_operand.vmem [shape: bf16[2,16,256], index: 3, kind: output, shape index: {}]  }
   0x1   :  { %s3557_s14 = smov 0  }
   0x2 LB: > { %s32_s15 = sadd.s32 1, %s3527_s13  ;;  %p2672_p0 = scmp.ge.s32.totalorder %s3531_s14, 1  ;;  %s3531_s14 = sphi %s3557_s14, %s13_s14   ;;  %s3527_s13 = sphi %s3555_s13, %s4486_s13   ;;  %s3523_s12 = sphi %s3553_s12, %s4485_s12  }
   0x3   : > { %p34_p1 = scmp.ge.s32.totalorder %s32_s15, 2  ;;  %p189_p2 = scmp.lt.s32.totalorder %s3531_s14, 3 }
   0x5   : > { %s4488_s15 = smov (%p34_p1, %s32_s15), 0  ;;  %p190_p3 = pnand %p2672_p0, %p189_p2 }
   0x6   : > { %v3050_v0 = vld [vmem:[%s4482_s1 + $0x4] ss:$8 sps:$4 sm:$0xff] (!%p190_p3)   ;;  %v3054_v2 = vld [vmem:[%s4482_s1] ss:$8 sps:$4 sm:$0xff] (!%p190_p3)   ;;  %v3056_v4 = vld [vmem:[%s4482_s1 + $0x14] ss:$8 sps:$4 sm:$0xff] (!%p190_p3)  }
   0x7   : > { %193 = sbr.rel (%p190_p3) target bundleno = 550 (0x226), region = 32  ;;  %v3052_v1 = vld [vmem:[%s4482_s1 + $0x404] ss:$8 sps:$4 sm:$0xff] (!%p190_p3)   ;;  %2122 = vmatprep.subr.bf16.mxu1 (!%p190_p3), %v3050_v0  ;;  %v3055_v3 = vld [vmem:[%s4482_s1 + $0x400] ss:$8 sps:$4 sm:$0xff] (!%p190_p3)   ;;  %p237_p4 = scmp.lt.s32.totalorder (!%p190_p3), %s3523_s12, 1 }
   0x8   : > { %2294 = vmatprep.subr.bf16.mxu0 (!%p190_p3), %v3052_v1  ;;  %2123 = vmatpush1.bf16.msra.mxu1 (!%p190_p3), %v3054_v2  ;;  %v3058_v5 = vld [vmem:[%s4482_s1 + $0x414] ss:$8 sps:$4 sm:$0xff] (!%p190_p3)   ;;  %v3060_v6 = vld [vmem:[%s4482_s1 + $0x10] ss:$8 sps:$4 sm:$0xff] (!%p190_p3)   ;;  %v3062_v8 = vld [vmem:[%s4482_s1 + $0x24] ss:$8 sps:$4 sm:$0xff] (!%p190_p3)  }
   0x9   : > { %2295 = vmatpush1.bf16.msra.mxu0 (!%p190_p3), %v3055_v3  ;;  %2124 = vmatprep.subr.bf16.mxu1 (!%p190_p3), %v3056_v4  ;;  %v3061_v7 = vld [vmem:[%s4482_s1 + $0x410] ss:$8 sps:$4 sm:$0xff] (!%p190_p3)   ;;  %v3064_v9 = vld [vmem:[%s4482_s1 + $0x424] ss:$8 sps:$4 sm:$0xff] (!%p190_p3)   ;;  %v3066_v10 = vld [vmem:[%s4482_s1 + $0x20] ss:$8 sps:$4 sm:$0xff] (!%p190_p3)  }
   0xa   : > { %2296 = vmatprep.subr.bf16.mxu0 (!%p190_p3), %v3058_v5  ;;  %v3067_v11 = vld [vmem:[%s4482_s1 + $0x420] ss:$8 sps:$4 sm:$0xff] (!%p190_p3)   ;;  %v3068_v12 = vld [vmem:[%s4482_s1 + $0x34] ss:$8 sps:$4 sm:$0xff] (!%p190_p3)   ;;  %v3072_v14 = vld [vmem:[%s4482_s1 + $0x30] ss:$8 sps:$4 sm:$0xff] (!%p190_p3)  }
   0xb   : > { %v3070_v13 = vld [vmem:[%s4482_s1 + $0x434] ss:$8 sps:$4 sm:$0xff] (!%p190_p3)   ;;  %v3073_v15 = vld [vmem:[%s4482_s1 + $0x430] ss:$8 sps:$4 sm:$0xff] (!%p190_p3)   ;;  %v3074_v16 = vld [vmem:[%s4482_s1 + $0x44] ss:$8 sps:$4 sm:$0xff] (!%p190_p3)  }
   0xc   : > { %2125 = vmatpush1.bf16.msra.mxu1 (!%p190_p3), %v3060_v6  ;;  %v3076_v17 = vld [vmem:[%s4482_s1 + $0x444] ss:$8 sps:$4 sm:$0xff] (!%p190_p3)   ;;  %v3078_v18 = vld [vmem:[%s4482_s1 + $0x40] ss:$8 sps:$4 sm:$0xff] (!%p190_p3)   ;;  %v3080_v20 = vld [vmem:[%s4482_s1 + $0x54] ss:$8 sps:$4 sm:$0xff] (!%p190_p3)  }
   0xd   : > { %2297 = vmatpush1.bf16.msra.mxu0 (!%p190_p3), %v3061_v7  ;;  %2126 = vmatprep.subr.bf16.mxu1 (!%p190_p3), %v3062_v8  ;;  %v3079_v19 = vld [vmem:[%s4482_s1 + $0x440] ss:$8 sps:$4 sm:$0xff] (!%p190_p3)   ;;  %v3082_v21 = vld [vmem:[%s4482_s1 + $0x454] ss:$8 sps:$4 sm:$0xff] (!%p190_p3)   ;;  %v3084_v22 = vld [vmem:[%s4482_s1 + $0x50] ss:$8 sps:$4 sm:$0xff] (!%p190_p3)  }
   0xe   : > { %2298 = vmatprep.subr.bf16.mxu0 %v3064_v9  ;;  %v3085_v23 = vld [vmem:[%s4482_s1 + $0x450] ss:$8 sps:$4 sm:$0xff]   ;;  %v3086_v24 = vld [vmem:[%s4482_s1 + $0x64] ss:$8 sps:$4 sm:$0xff]   ;;  %v3090_v26 = vld [vmem:[%s4482_s1 + $0x60] ss:$8 sps:$4 sm:$0xff]  }
   0xf   : > { %v3088_v25 = vld [vmem:[%s4482_s1 + $0x464] ss:$8 sps:$4 sm:$0xff]   ;;  %v3091_v27 = vld [vmem:[%s4482_s1 + $0x460] ss:$8 sps:$4 sm:$0xff]   ;;  %v3092_v28 = vld [vmem:[%s4482_s1 + $0x74] ss:$8 sps:$4 sm:$0xff]  }
  0x10   : > { %2127 = vmatpush1.bf16.msra.mxu1 %v3066_v10  ;;  %v3094_v29 = vld [vmem:[%s4482_s1 + $0x474] ss:$8 sps:$4 sm:$0xff]   ;;  %v3096_v30 = vld [vmem:[%s4482_s1 + $0x70] ss:$8 sps:$4 sm:$0xff]   ;;  %v3098_v32 = vld [vmem:[%s4482_s1 + $0x84] ss:$8 sps:$4 sm:$0xff]  }
  0x11   : > { %2299 = vmatpush1.bf16.msra.mxu0 %v3067_v11  ;;  %2128 = vmatprep.subr.bf16.mxu1 %v3068_v12  ;;  %v3097_v31 = vld [vmem:[%s4482_s1 + $0x470] ss:$8 sps:$4 sm:$0xff]   ;;  %v3100_v33 = vld [vmem:[%s4482_s1 + $0x484] ss:$8 sps:$4 sm:$0xff]   ;;  %v3102_v34 = vld [vmem:[%s4482_s1 + $0x80] ss:$8 sps:$4 sm:$0xff]  }
  0x12   : > { %2300 = vmatprep.subr.bf16.mxu0 %v3070_v13  ;;  %v3103_v35 = vld [vmem:[%s4482_s1 + $0x480] ss:$8 sps:$4 sm:$0xff]   ;;  %v3104_v36 = vld [vmem:[%s4482_s1 + $0x94] ss:$8 sps:$4 sm:$0xff]   ;;  %s4490_s12 = smov (!%p237_p4, %s3523_s12), 1 }
  0x13   : > { %v3106_v37 = vld [vmem:[%s4482_s1 + $0x494] ss:$8 sps:$4 sm:$0xff]   ;;  %v3108_v38 = vld [vmem:[%s4482_s1 + $0x90] ss:$8 sps:$4 sm:$0xff]   ;;  %v3110_v40 = vld [vmem:[%s4482_s1 + $0xa4] ss:$8 sps:$4 sm:$0xff]  }
  0x14   : > { %2129 = vmatpush1.bf16.msra.mxu1 %v3072_v14  ;;  %v3109_v39 = vld [vmem:[%s4482_s1 + $0x490] ss:$8 sps:$4 sm:$0xff]   ;;  %s3025_s29 = smul.u32 144, %s4490_s12  ;;  %v3112_v41 = vld [vmem:[%s4482_s1 + $0x4a4] ss:$8 sps:$4 sm:$0xff]  }
  0x15   : > { %2301 = vmatpush1.bf16.msra.mxu0 %v3073_v15  ;;  %2130 = vmatprep.subr.bf16.mxu1 %v3074_v16  ;;  %v3114_v42 = vld [vmem:[%s4482_s1 + $0xa0] ss:$8 sps:$4 sm:$0xff]   ;;  %v3116_v44 = vld [vmem:[%s4482_s1 + $0xb4] ss:$8 sps:$4 sm:$0xff]   ;;  %v3120_v46 = vld [vmem:[%s4482_s1 + $0xb0] ss:$8 sps:$4 sm:$0xff]  }
  0x16   : > { %2302 = vmatprep.subr.bf16.mxu0 %v3076_v17  ;;  %v3115_v43 = vld [vmem:[%s4482_s1 + $0x4a0] ss:$8 sps:$4 sm:$0xff]   ;;  %s3716_s17 = scalar_lea.vmem %s4481_s0, %s3025_s29  ;;  %v3118_v45 = vld [vmem:[%s4482_s1 + $0x4b4] ss:$8 sps:$4 sm:$0xff]   ;;  %v3121_v47 = vld [vmem:[%s4482_s1 + $0x4b0] ss:$8 sps:$4 sm:$0xff]  }
  0x17   : > { %v3148_v48 = vld [vmem:[%s3716_s17 + $0x4] ss:$72 sps:$4 sm:$0xff]   ;;  %v3126_v52 = vld [vmem:[%s4482_s1 + $0xc0] ss:$8 sps:$4 sm:$0xff]   ;;  %v3128_v54 = vld [vmem:[%s4482_s1 + $0xd4] ss:$8 sps:$4 sm:$0xff]  }
  0x18   : > { %2131 = vmatpush1.bf16.msra.mxu1 %v3078_v18  ;;  %v3122_v49 = vld [vmem:[%s4482_s1 + $0xc4] ss:$8 sps:$4 sm:$0xff]   ;;  %2154 = vmatprep.mubr.bf16.mxu1 %v3148_v48  ;;  %v3127_v53 = vld [vmem:[%s4482_s1 + $0x4c0] ss:$8 sps:$4 sm:$0xff]   ;;  %v3130_v55 = vld [vmem:[%s4482_s1 + $0x4d4] ss:$8 sps:$4 sm:$0xff]  }
  0x19   : > { %2303 = vmatpush1.bf16.msra.mxu0 %v3079_v19  ;;  %2132 = vmatprep.subr.bf16.mxu1 %v3080_v20  ;;  %v3124_v50 = vld [vmem:[%s4482_s1 + $0x4c4] ss:$8 sps:$4 sm:$0xff]   ;;  %v3132_v56 = vld [vmem:[%s4482_s1 + $0xd0] ss:$8 sps:$4 sm:$0xff]   ;;  %v3138_v60 = vld [vmem:[%s4482_s1 + $0xe0] ss:$8 sps:$4 sm:$0xff]  }
  0x1a   : > { %2304 = vmatprep.subr.bf16.mxu0 %v3082_v21  ;;  %v3154_v51 = vld [vmem:[%s3716_s17 + $0x24] ss:$72 sps:$4 sm:$0xff]   ;;  %v3133_v57 = vld [vmem:[%s4482_s1 + $0x4d0] ss:$8 sps:$4 sm:$0xff]   ;;  %v3139_v61 = vld [vmem:[%s4482_s1 + $0x4e0] ss:$8 sps:$4 sm:$0xff]  }
  0x1b   : > { %2326 = vmatprep.mubr.bf16.mxu0 %v3154_v51  ;;  %v3134_v58 = vld [vmem:[%s4482_s1 + $0xe4] ss:$8 sps:$4 sm:$0xff]   ;;  %v3140_v62 = vld [vmem:[%s4482_s1 + $0xf4] ss:$8 sps:$4 sm:$0xff]   ;;  %v3144_v0 = vld [vmem:[%s4482_s1 + $0xf0] ss:$8 sps:$4 sm:$0xff]  }
  0x1c   : > { %2133 = vmatpush1.bf16.msra.mxu1 %v3084_v22  ;;  %v3136_v59 = vld [vmem:[%s4482_s1 + $0x4e4] ss:$8 sps:$4 sm:$0xff]   ;;  %v3142_v63 = vld [vmem:[%s4482_s1 + $0x4f4] ss:$8 sps:$4 sm:$0xff]   ;;  %v3145_v1 = vld [vmem:[%s4482_s1 + $0x4f0] ss:$8 sps:$4 sm:$0xff]  }
  0x1d   : > { %2305 = vmatpush1.bf16.msra.mxu0 %v3085_v23  ;;  %2134 = vmatprep.subr.bf16.mxu1 %v3086_v24  ;;  %v3151_v2 = vld [vmem:[%s4482_s1 + $0x104] ss:$8 sps:$4 sm:$0xff]   ;;  %v3146_v4 = vld [vmem:[%s3716_s17] ss:$72 sps:$4 sm:$0xff]   ;;  %v3160_v8 = vld [vmem:[%s4482_s1 + $0x114] ss:$8 sps:$4 sm:$0xff]  }
  0x1e   : > { %2306 = vmatprep.subr.bf16.mxu0 %v3088_v25  ;;  %v3157_v3 = vld [vmem:[%s4482_s1 + $0x504] ss:$8 sps:$4 sm:$0xff]   ;;  %v3149_v5 = vld [vmem:[%s4482_s1 + $0x100] ss:$8 sps:$4 sm:$0xff]   ;;  %v3163_v9 = vld [vmem:[%s4482_s1 + $0x514] ss:$8 sps:$4 sm:$0xff]  }
  0x1f   : > { %v3152_v6 = vld [vmem:[%s3716_s17 + $0x20] ss:$72 sps:$4 sm:$0xff]   ;;  %v3158_v10 = vld [vmem:[%s4482_s1 + $0x110] ss:$8 sps:$4 sm:$0xff]   ;;  %v3166_v12 = vld [vmem:[%s4482_s1 + $0x124] ss:$8 sps:$4 sm:$0xff]  }
  0x20   : > { %2135 = vmatpush1.bf16.msra.mxu1 %v3090_v26  ;;  %v3155_v7 = vld [vmem:[%s4482_s1 + $0x500] ss:$8 sps:$4 sm:$0xff]   ;;  %v3161_v11 = vld [vmem:[%s4482_s1 + $0x510] ss:$8 sps:$4 sm:$0xff]   ;;  %v3169_v13 = vld [vmem:[%s4482_s1 + $0x524] ss:$8 sps:$4 sm:$0xff]  }
  0x21   : > { %2307 = vmatpush1.bf16.msra.mxu0 %v3091_v27  ;;  %2136 = vmatprep.subr.bf16.mxu1 %v3092_v28  ;;  %v3164_v14 = vld [vmem:[%s4482_s1 + $0x120] ss:$8 sps:$4 sm:$0xff]   ;;  %v3172_v16 = vld [vmem:[%s4482_s1 + $0x134] ss:$8 sps:$4 sm:$0xff]   ;;  %v3170_v18 = vld [vmem:[%s4482_s1 + $0x130] ss:$8 sps:$4 sm:$0xff]  }
  0x22   : > { %2308 = vmatprep.subr.bf16.mxu0 %v3094_v29  ;;  %v3167_v15 = vld [vmem:[%s4482_s1 + $0x520] ss:$8 sps:$4 sm:$0xff]   ;;  %v3175_v17 = vld [vmem:[%s4482_s1 + $0x534] ss:$8 sps:$4 sm:$0xff]   ;;  %v3173_v19 = vld [vmem:[%s4482_s1 + $0x530] ss:$8 sps:$4 sm:$0xff]  }
  0x23   : > { %v3178_v20 = vld [vmem:[%s4482_s1 + $0x144] ss:$8 sps:$4 sm:$0xff]   ;;  %v3176_v22 = vld [vmem:[%s4482_s1 + $0x140] ss:$8 sps:$4 sm:$0xff]   ;;  %v3184_v24 = vld [vmem:[%s4482_s1 + $0x154] ss:$8 sps:$4 sm:$0xff]  }
  0x24   : > { %2137 = vmatpush1.bf16.msra.mxu1 %v3096_v30  ;;  %v3181_v21 = vld [vmem:[%s4482_s1 + $0x544] ss:$8 sps:$4 sm:$0xff]   ;;  %v3179_v23 = vld [vmem:[%s4482_s1 + $0x540] ss:$8 sps:$4 sm:$0xff]   ;;  %v3187_v25 = vld [vmem:[%s4482_s1 + $0x554] ss:$8 sps:$4 sm:$0xff]  }
  0x25   : > { %2309 = vmatpush1.bf16.msra.mxu0 %v3097_v31  ;;  %2138 = vmatprep.subr.bf16.mxu1 %v3098_v32  ;;  %v3182_v26 = vld [vmem:[%s4482_s1 + $0x150] ss:$8 sps:$4 sm:$0xff]   ;;  %v3190_v28 = vld [vmem:[%s4482_s1 + $0x164] ss:$8 sps:$4 sm:$0xff]   ;;  %v3188_v30 = vld [vmem:[%s4482_s1 + $0x160] ss:$8 sps:$4 sm:$0xff]  }
  0x26   : > { %2310 = vmatprep.subr.bf16.mxu0 %v3100_v33  ;;  %v3185_v27 = vld [vmem:[%s4482_s1 + $0x550] ss:$8 sps:$4 sm:$0xff]   ;;  %v3193_v29 = vld [vmem:[%s4482_s1 + $0x564] ss:$8 sps:$4 sm:$0xff]   ;;  %v3191_v31 = vld [vmem:[%s4482_s1 + $0x560] ss:$8 sps:$4 sm:$0xff]  }
  0x27   : > { %v3196_v32 = vld [vmem:[%s4482_s1 + $0x174] ss:$8 sps:$4 sm:$0xff]   ;;  %v3212_v48 = vld [vmem:[%s4482_s1 + $0x1a0] ss:$8 sps:$4 sm:$0xff]  }
  0x28   : > { %2139 = vmatpush1.bf16.msra.mxu1 %v3102_v34  ;;  %v3199_v33 = vld [vmem:[%s4482_s1 + $0x574] ss:$8 sps:$4 sm:$0xff]  }
  0x29   : > { %2311 = vmatpush1.bf16.msra.mxu0 %v3103_v35  ;;  %2140 = vmatprep.subr.bf16.mxu1 %v3104_v36  ;;  %v3250_v34 = vld [vmem:[%s3716_s17 + $0xc] ss:$72 sps:$4 sm:$0xff]   ;;  %v3194_v35 = vld [vmem:[%s4482_s1 + $0x170] ss:$8 sps:$4 sm:$0xff]  }
  0x2a   : > { %2312 = vmatprep.subr.bf16.mxu0 %v3106_v37  ;;  %v3197_v36 = vld [vmem:[%s4482_s1 + $0x570] ss:$8 sps:$4 sm:$0xff]   ;;  %v3256_v37 = vld [vmem:[%s3716_s17 + $0x2c] ss:$72 sps:$4 sm:$0xff]  }
  0x2b   : > { %v3223_v51 = vld [vmem:[%s4482_s1 + $0x5b4] ss:$8 sps:$4 sm:$0xff]  }
  0x2c   : > { %2141 = vmatpush1.bf16.msra.mxu1 %v3108_v38  ;;  %v3202_v38 = vld [vmem:[%s4482_s1 + $0x184] ss:$8 sps:$4 sm:$0xff]  }
  0x2d   : > { %2313 = vmatpush1.bf16.msra.mxu0 %v3109_v39  ;;  %2142 = vmatprep.subr.bf16.mxu1 %v3110_v40  ;;  %v3205_v39 = vld [vmem:[%s4482_s1 + $0x584] ss:$8 sps:$4 sm:$0xff]   ;;  %v3200_v40 = vld [vmem:[%s4482_s1 + $0x180] ss:$8 sps:$4 sm:$0xff]  }
  0x2e   : > { %2314 = vmatprep.subr.bf16.mxu0 %v3112_v41  ;;  %v3203_v41 = vld [vmem:[%s4482_s1 + $0x580] ss:$8 sps:$4 sm:$0xff]  }
  0x30   : > { %2143 = vmatpush1.bf16.msra.mxu1 %v3114_v42  ;;  %v3208_v42 = vld [vmem:[%s4482_s1 + $0x194] ss:$8 sps:$4 sm:$0xff]  }
  0x31   : > { %2315 = vmatpush1.bf16.msra.mxu0 %v3115_v43  ;;  %2144 = vmatprep.subr.bf16.mxu1 %v3116_v44  ;;  %v3211_v43 = vld [vmem:[%s4482_s1 + $0x594] ss:$8 sps:$4 sm:$0xff]   ;;  %v3206_v44 = vld [vmem:[%s4482_s1 + $0x190] ss:$8 sps:$4 sm:$0xff]  }
  0x32   : > { %2316 = vmatprep.subr.bf16.mxu0 %v3118_v45  ;;  %v3209_v45 = vld [vmem:[%s4482_s1 + $0x590] ss:$8 sps:$4 sm:$0xff]  }
  0x34   : > { %2145 = vmatpush1.bf16.msra.mxu1 %v3120_v46  ;;  %v3214_v46 = vld [vmem:[%s4482_s1 + $0x1a4] ss:$8 sps:$4 sm:$0xff]  }
  0x35   : > { %2317 = vmatpush1.bf16.msra.mxu0 %v3121_v47  ;;  %2146 = vmatprep.subr.bf16.mxu1 %v3122_v49  ;;  %v3217_v47 = vld [vmem:[%s4482_s1 + $0x5a4] ss:$8 sps:$4 sm:$0xff]   ;;  %v3215_v49 = vld [vmem:[%s4482_s1 + $0x5a0] ss:$8 sps:$4 sm:$0xff]  }
  0x36   : > { %2318 = vmatprep.subr.bf16.mxu0 %v3124_v50  ;;  %v3220_v50 = vld [vmem:[%s4482_s1 + $0x1b4] ss:$8 sps:$4 sm:$0xff]  }
  0x38   : > { %2147 = vmatpush1.bf16.msra.mxu1 %v3126_v52  ;;  %v3218_v52 = vld [vmem:[%s4482_s1 + $0x1b0] ss:$8 sps:$4 sm:$0xff]  }
  0x39   : > { %2319 = vmatpush1.bf16.msra.mxu0 %v3127_v53  ;;  %2148 = vmatprep.subr.bf16.mxu1 %v3128_v54  ;;  %v3221_v53 = vld [vmem:[%s4482_s1 + $0x5b0] ss:$8 sps:$4 sm:$0xff]   ;;  %v3226_v54 = vld [vmem:[%s4482_s1 + $0x1c4] ss:$8 sps:$4 sm:$0xff]  }
  0x3a   : > { %2320 = vmatprep.subr.bf16.mxu0 %v3130_v55  ;;  %v3229_v55 = vld [vmem:[%s4482_s1 + $0x5c4] ss:$8 sps:$4 sm:$0xff]  }
  0x3c   : > { %2149 = vmatpush1.bf16.msra.mxu1 %v3132_v56  ;;  %v3224_v56 = vld [vmem:[%s4482_s1 + $0x1c0] ss:$8 sps:$4 sm:$0xff]  }
  0x3d   : > { %2321 = vmatpush1.bf16.msra.mxu0 %v3133_v57  ;;  %2150 = vmatprep.subr.bf16.mxu1 %v3134_v58  ;;  %v3227_v57 = vld [vmem:[%s4482_s1 + $0x5c0] ss:$8 sps:$4 sm:$0xff]   ;;  %v3232_v58 = vld [vmem:[%s4482_s1 + $0x1d4] ss:$8 sps:$4 sm:$0xff]  }
  0x3e   : > { %2322 = vmatprep.subr.bf16.mxu0 %v3136_v59  ;;  %v3235_v59 = vld [vmem:[%s4482_s1 + $0x5d4] ss:$8 sps:$4 sm:$0xff]  }
  0x40   : > { %2151 = vmatpush1.bf16.msra.mxu1 %v3138_v60  ;;  %v3230_v60 = vld [vmem:[%s4482_s1 + $0x1d0] ss:$8 sps:$4 sm:$0xff]  }
  0x41   : > { %2323 = vmatpush1.bf16.msra.mxu0 %v3139_v61  ;;  %2152 = vmatprep.subr.bf16.mxu1 %v3140_v62  ;;  %v3233_v61 = vld [vmem:[%s4482_s1 + $0x5d0] ss:$8 sps:$4 sm:$0xff]   ;;  %v3238_v62 = vld [vmem:[%s4482_s1 + $0x1e4] ss:$8 sps:$4 sm:$0xff]  }
  0x42   : > { %2324 = vmatprep.subr.bf16.mxu0 %v3142_v63  ;;  %v3241_v63 = vld [vmem:[%s4482_s1 + $0x5e4] ss:$8 sps:$4 sm:$0xff]  }
  0x44   : > { %2153 = vmatpush1.bf16.msra.mxu1 %v3144_v0  ;;  %v3236_v0 = vld [vmem:[%s4482_s1 + $0x1e0] ss:$8 sps:$4 sm:$0xff]  }
  0x45   : > { %2325 = vmatpush1.bf16.msra.mxu0 %v3145_v1  ;;  %2165 = vmatprep.subr.bf16.mxu1 %v3151_v2  ;;  %v3239_v1 = vld [vmem:[%s4482_s1 + $0x5e0] ss:$8 sps:$4 sm:$0xff]   ;;  %v3244_v2 = vld [vmem:[%s4482_s1 + $0x1f4] ss:$8 sps:$4 sm:$0xff]  }
  0x46   : > { %2337 = vmatprep.subr.bf16.mxu0 %v3157_v3  ;;  %v3247_v3 = vld [vmem:[%s4482_s1 + $0x5f4] ss:$8 sps:$4 sm:$0xff]  }
  0x47   : > { %2155 = vmatmul.mubr.bf16.vlgmr.msra.gmra.mrb[0].mxu1 %v3146_v4  ;;  %v3242_v4 = vld [vmem:[%s4482_s1 + $0x1f0] ss:$8 sps:$4 sm:$0xff]  }
  0x48   : > { %2327 = vmatmul.mubr.bf16.vlgmr.msra.gmra.mrb[0].mxu0 %v3152_v6  ;;  %2166 = vmatpush1.bf16.msra.mxu1 %v3149_v5  ;;  %v3245_v5 = vld [vmem:[%s4482_s1 + $0x5f0] ss:$8 sps:$4 sm:$0xff]   ;;  %v3253_v6 = vld [vmem:[%s4482_s1 + $0x204] ss:$8 sps:$4 sm:$0xff]  }
  0x49   : > { %2338 = vmatpush1.bf16.msra.mxu0 %v3155_v7  ;;  %2167 = vmatprep.subr.bf16.mxu1 %v3160_v8  ;;  %v3259_v7 = vld [vmem:[%s4482_s1 + $0x604] ss:$8 sps:$4 sm:$0xff]   ;;  %v3248_v8 = vld [vmem:[%s3716_s17 + $0x8] ss:$72 sps:$4 sm:$0xff]  }
  0x4a   : > { %2339 = vmatprep.subr.bf16.mxu0 %v3163_v9  ;;  %2197 = vmatprep.mubr.bf16.mxu1 %v3250_v34  ;;  %v3251_v9 = vld [vmem:[%s4482_s1 + $0x200] ss:$8 sps:$4 sm:$0xff]   ;;  %v3292_v34 = vld [vmem:[%s4482_s1 + $0x264] ss:$8 sps:$4 sm:$0xff]  }
  0x4b   : > { %2369 = vmatprep.mubr.bf16.mxu0 %v3256_v37  ;;  %v3293_v37 = vld [vmem:[%s4482_s1 + $0x660] ss:$8 sps:$4 sm:$0xff]  }
  0x4c   : > { %2168 = vmatpush1.bf16.msra.mxu1 %v3158_v10  ;;  %v3254_v10 = vld [vmem:[%s3716_s17 + $0x28] ss:$72 sps:$4 sm:$0xff]  }
  0x4d   : > { %2340 = vmatpush1.bf16.msra.mxu0 %v3161_v11  ;;  %2169 = vmatprep.subr.bf16.mxu1 %v3166_v12  ;;  %v3257_v11 = vld [vmem:[%s4482_s1 + $0x600] ss:$8 sps:$4 sm:$0xff]   ;;  %v3262_v12 = vld [vmem:[%s4482_s1 + $0x214] ss:$8 sps:$4 sm:$0xff]  }
  0x4e   : > { %2341 = vmatprep.subr.bf16.mxu0 %v3169_v13  ;;  %v3265_v13 = vld [vmem:[%s4482_s1 + $0x614] ss:$8 sps:$4 sm:$0xff]  }
  0x50   : > { %2170 = vmatpush1.bf16.msra.mxu1 %v3164_v14  ;;  %v3260_v14 = vld [vmem:[%s4482_s1 + $0x210] ss:$8 sps:$4 sm:$0xff]  }
  0x51   : > { %2342 = vmatpush1.bf16.msra.mxu0 %v3167_v15  ;;  %2171 = vmatprep.subr.bf16.mxu1 %v3172_v16  ;;  %v3263_v15 = vld [vmem:[%s4482_s1 + $0x610] ss:$8 sps:$4 sm:$0xff]   ;;  %v3268_v16 = vld [vmem:[%s4482_s1 + $0x224] ss:$8 sps:$4 sm:$0xff]  }
  0x52   : > { %2343 = vmatprep.subr.bf16.mxu0 %v3175_v17  ;;  %v3271_v17 = vld [vmem:[%s4482_s1 + $0x624] ss:$8 sps:$4 sm:$0xff]  }
  0x54   : > { %2172 = vmatpush1.bf16.msra.mxu1 %v3170_v18  ;;  %v3266_v18 = vld [vmem:[%s4482_s1 + $0x220] ss:$8 sps:$4 sm:$0xff]  }
  0x55   : > { %2344 = vmatpush1.bf16.msra.mxu0 %v3173_v19  ;;  %2173 = vmatprep.subr.bf16.mxu1 %v3178_v20  ;;  %v3352_v19 = vld [vmem:[%s3716_s17 + $0x14] ss:$72 sps:$4 sm:$0xff]   ;;  %v3269_v20 = vld [vmem:[%s4482_s1 + $0x620] ss:$8 sps:$4 sm:$0xff]  }
  0x56   : > { %2345 = vmatprep.subr.bf16.mxu0 %v3181_v21  ;;  %v3274_v21 = vld [vmem:[%s4482_s1 + $0x234] ss:$8 sps:$4 sm:$0xff]  }
  0x58   : > { %2174 = vmatpush1.bf16.msra.mxu1 %v3176_v22  ;;  %v3277_v22 = vld [vmem:[%s4482_s1 + $0x634] ss:$8 sps:$4 sm:$0xff]  }
  0x59   : > { %2346 = vmatpush1.bf16.msra.mxu0 %v3179_v23  ;;  %2175 = vmatprep.subr.bf16.mxu1 %v3184_v24  ;;  %v3358_v23 = vld [vmem:[%s3716_s17 + $0x34] ss:$72 sps:$4 sm:$0xff]   ;;  %v3272_v24 = vld [vmem:[%s4482_s1 + $0x230] ss:$8 sps:$4 sm:$0xff]  }
  0x5a   : > { %2347 = vmatprep.subr.bf16.mxu0 %v3187_v25  ;;  %v3275_v25 = vld [vmem:[%s4482_s1 + $0x630] ss:$8 sps:$4 sm:$0xff]  }
  0x5c   : > { %2176 = vmatpush1.bf16.msra.mxu1 %v3182_v26  ;;  %v3280_v26 = vld [vmem:[%s4482_s1 + $0x244] ss:$8 sps:$4 sm:$0xff]  }
  0x5d   : > { %2348 = vmatpush1.bf16.msra.mxu0 %v3185_v27  ;;  %2177 = vmatprep.subr.bf16.mxu1 %v3190_v28  ;;  %v3283_v27 = vld [vmem:[%s4482_s1 + $0x644] ss:$8 sps:$4 sm:$0xff]   ;;  %v3278_v28 = vld [vmem:[%s4482_s1 + $0x240] ss:$8 sps:$4 sm:$0xff]  }
  0x5e   : > { %2349 = vmatprep.subr.bf16.mxu0 %v3193_v29  ;;  %v3281_v29 = vld [vmem:[%s4482_s1 + $0x640] ss:$8 sps:$4 sm:$0xff]  }
  0x60   : > { %2178 = vmatpush1.bf16.msra.mxu1 %v3188_v30  ;;  %v3286_v30 = vld [vmem:[%s4482_s1 + $0x254] ss:$8 sps:$4 sm:$0xff]  }
  0x61   : > { %2350 = vmatpush1.bf16.msra.mxu0 %v3191_v31  ;;  %2179 = vmatprep.subr.bf16.mxu1 %v3196_v32  ;;  %v3289_v31 = vld [vmem:[%s4482_s1 + $0x654] ss:$8 sps:$4 sm:$0xff]   ;;  %v3284_v32 = vld [vmem:[%s4482_s1 + $0x250] ss:$8 sps:$4 sm:$0xff]  }
  0x62   : > { %2351 = vmatprep.subr.bf16.mxu0 %v3199_v33  ;;  %v3287_v33 = vld [vmem:[%s4482_s1 + $0x650] ss:$8 sps:$4 sm:$0xff]  }
  0x64   : > { %2180 = vmatpush1.bf16.msra.mxu1 %v3194_v35  ;;  %v3295_v35 = vld [vmem:[%s4482_s1 + $0x664] ss:$8 sps:$4 sm:$0xff]  }
  0x65   : > { %2352 = vmatpush1.bf16.msra.mxu0 %v3197_v36  ;;  %2181 = vmatprep.subr.bf16.mxu1 %v3202_v38  ;;  %v3290_v36 = vld [vmem:[%s4482_s1 + $0x260] ss:$8 sps:$4 sm:$0xff]   ;;  %v3298_v38 = vld [vmem:[%s4482_s1 + $0x274] ss:$8 sps:$4 sm:$0xff]  }
  0x66   : > { %2353 = vmatprep.subr.bf16.mxu0 %v3205_v39  ;;  %v3301_v39 = vld [vmem:[%s4482_s1 + $0x674] ss:$8 sps:$4 sm:$0xff]  }
  0x68   : > { %2182 = vmatpush1.bf16.msra.mxu1 %v3200_v40  ;;  %v3296_v40 = vld [vmem:[%s4482_s1 + $0x270] ss:$8 sps:$4 sm:$0xff]  }
  0x69   : > { %2354 = vmatpush1.bf16.msra.mxu0 %v3203_v41  ;;  %2183 = vmatprep.subr.bf16.mxu1 %v3208_v42  ;;  %v3299_v41 = vld [vmem:[%s4482_s1 + $0x670] ss:$8 sps:$4 sm:$0xff]   ;;  %v3304_v42 = vld [vmem:[%s4482_s1 + $0x284] ss:$8 sps:$4 sm:$0xff]  }
  0x6a   : > { %2355 = vmatprep.subr.bf16.mxu0 %v3211_v43  ;;  %v3307_v43 = vld [vmem:[%s4482_s1 + $0x684] ss:$8 sps:$4 sm:$0xff]  }
  0x6c   : > { %2184 = vmatpush1.bf16.msra.mxu1 %v3206_v44  ;;  %v3302_v44 = vld [vmem:[%s4482_s1 + $0x280] ss:$8 sps:$4 sm:$0xff]  }
  0x6d   : > { %2356 = vmatpush1.bf16.msra.mxu0 %v3209_v45  ;;  %2185 = vmatprep.subr.bf16.mxu1 %v3214_v46  ;;  %v3305_v45 = vld [vmem:[%s4482_s1 + $0x680] ss:$8 sps:$4 sm:$0xff]   ;;  %v3310_v46 = vld [vmem:[%s4482_s1 + $0x294] ss:$8 sps:$4 sm:$0xff]  }
  0x6e   : > { %2357 = vmatprep.subr.bf16.mxu0 %v3217_v47  ;;  %v3313_v47 = vld [vmem:[%s4482_s1 + $0x694] ss:$8 sps:$4 sm:$0xff]  }
  0x70   : > { %2186 = vmatpush1.bf16.msra.mxu1 %v3212_v48  ;;  %v3308_v48 = vld [vmem:[%s4482_s1 + $0x290] ss:$8 sps:$4 sm:$0xff]  }
  0x71   : > { %2358 = vmatpush1.bf16.msra.mxu0 %v3215_v49  ;;  %2187 = vmatprep.subr.bf16.mxu1 %v3220_v50  ;;  %v3311_v49 = vld [vmem:[%s4482_s1 + $0x690] ss:$8 sps:$4 sm:$0xff]   ;;  %v3316_v50 = vld [vmem:[%s4482_s1 + $0x2a4] ss:$8 sps:$4 sm:$0xff]  }
  0x72   : > { %2359 = vmatprep.subr.bf16.mxu0 %v3223_v51  ;;  %v3319_v51 = vld [vmem:[%s4482_s1 + $0x6a4] ss:$8 sps:$4 sm:$0xff]  }
  0x74   : > { %2188 = vmatpush1.bf16.msra.mxu1 %v3218_v52  ;;  %v3314_v52 = vld [vmem:[%s4482_s1 + $0x2a0] ss:$8 sps:$4 sm:$0xff]  }
  0x75   : > { %2360 = vmatpush1.bf16.msra.mxu0 %v3221_v53  ;;  %2189 = vmatprep.subr.bf16.mxu1 %v3226_v54  ;;  %v3317_v53 = vld [vmem:[%s4482_s1 + $0x6a0] ss:$8 sps:$4 sm:$0xff]   ;;  %v3322_v54 = vld [vmem:[%s4482_s1 + $0x2b4] ss:$8 sps:$4 sm:$0xff]  }
  0x76   : > { %2361 = vmatprep.subr.bf16.mxu0 %v3229_v55  ;;  %v3325_v55 = vld [vmem:[%s4482_s1 + $0x6b4] ss:$8 sps:$4 sm:$0xff]  }
  0x78   : > { %2190 = vmatpush1.bf16.msra.mxu1 %v3224_v56  ;;  %v3320_v56 = vld [vmem:[%s4482_s1 + $0x2b0] ss:$8 sps:$4 sm:$0xff]  }
  0x79   : > { %2362 = vmatpush1.bf16.msra.mxu0 %v3227_v57  ;;  %2191 = vmatprep.subr.bf16.mxu1 %v3232_v58  ;;  %v3323_v57 = vld [vmem:[%s4482_s1 + $0x6b0] ss:$8 sps:$4 sm:$0xff]   ;;  %v3328_v58 = vld [vmem:[%s4482_s1 + $0x2c4] ss:$8 sps:$4 sm:$0xff]  }
  0x7a   : > { %2363 = vmatprep.subr.bf16.mxu0 %v3235_v59  ;;  %v3331_v59 = vld [vmem:[%s4482_s1 + $0x6c4] ss:$8 sps:$4 sm:$0xff]  }
  0x7c   : > { %2192 = vmatpush1.bf16.msra.mxu1 %v3230_v60  ;;  %v3326_v60 = vld [vmem:[%s4482_s1 + $0x2c0] ss:$8 sps:$4 sm:$0xff]  }
  0x7d   : > { %2364 = vmatpush1.bf16.msra.mxu0 %v3233_v61  ;;  %2193 = vmatprep.subr.bf16.mxu1 %v3238_v62  ;;  %v3329_v61 = vld [vmem:[%s4482_s1 + $0x6c0] ss:$8 sps:$4 sm:$0xff]   ;;  %v3334_v62 = vld [vmem:[%s4482_s1 + $0x2d4] ss:$8 sps:$4 sm:$0xff]  }
  0x7e   : > { %2365 = vmatprep.subr.bf16.mxu0 %v3241_v63  ;;  %v3337_v63 = vld [vmem:[%s4482_s1 + $0x6d4] ss:$8 sps:$4 sm:$0xff]  }
  0x80   : > { %2194 = vmatpush1.bf16.msra.mxu1 %v3236_v0  ;;  %v3332_v0 = vld [vmem:[%s4482_s1 + $0x2d0] ss:$8 sps:$4 sm:$0xff]  }
  0x81   : > { %2366 = vmatpush1.bf16.msra.mxu0 %v3239_v1  ;;  %2195 = vmatprep.subr.bf16.mxu1 %v3244_v2  ;;  %v3335_v1 = vld [vmem:[%s4482_s1 + $0x6d0] ss:$8 sps:$4 sm:$0xff]   ;;  %v3340_v2 = vld [vmem:[%s4482_s1 + $0x2e4] ss:$8 sps:$4 sm:$0xff]  }
  0x82   : > { %2367 = vmatprep.subr.bf16.mxu0 %v3247_v3  ;;  %v3343_v3 = vld [vmem:[%s4482_s1 + $0x6e4] ss:$8 sps:$4 sm:$0xff]  }
  0x84   : > { %2196 = vmatpush1.bf16.msra.mxu1 %v3242_v4  ;;  %v3338_v4 = vld [vmem:[%s4482_s1 + $0x2e0] ss:$8 sps:$4 sm:$0xff]  }
  0x85   : > { %2368 = vmatpush1.bf16.msra.mxu0 %v3245_v5  ;;  %2208 = vmatprep.subr.bf16.mxu1 %v3253_v6  ;;  %v3341_v5 = vld [vmem:[%s4482_s1 + $0x6e0] ss:$8 sps:$4 sm:$0xff]   ;;  %v3346_v6 = vld [vmem:[%s4482_s1 + $0x2f4] ss:$8 sps:$4 sm:$0xff]  }
  0x86   : > { %2380 = vmatprep.subr.bf16.mxu0 %v3259_v7  ;;  %v3349_v7 = vld [vmem:[%s4482_s1 + $0x6f4] ss:$8 sps:$4 sm:$0xff]  }
  0x87   : > { %2198 = vmatmul.mubr.bf16.vlgmr.msra.gmra.mrb[0].mxu1 %v3248_v8  ;;  %v3344_v8 = vld [vmem:[%s4482_s1 + $0x2f0] ss:$8 sps:$4 sm:$0xff]  }
  0x88   : > { %2370 = vmatmul.mubr.bf16.vlgmr.msra.gmra.mrb[0].mxu0 %v3254_v10  ;;  %2209 = vmatpush1.bf16.msra.mxu1 %v3251_v9  ;;  %v3347_v9 = vld [vmem:[%s4482_s1 + $0x6f0] ss:$8 sps:$4 sm:$0xff]   ;;  %v3355_v10 = vld [vmem:[%s4482_s1 + $0x304] ss:$8 sps:$4 sm:$0xff]  }
  0x89   : > { %2381 = vmatpush1.bf16.msra.mxu0 %v3257_v11  ;;  %2210 = vmatprep.subr.bf16.mxu1 %v3262_v12  ;;  %v3361_v11 = vld [vmem:[%s4482_s1 + $0x704] ss:$8 sps:$4 sm:$0xff]   ;;  %v3350_v12 = vld [vmem:[%s3716_s17 + $0x10] ss:$72 sps:$4 sm:$0xff]  }
  0x8a   : > { %2382 = vmatprep.subr.bf16.mxu0 %v3265_v13  ;;  %2240 = vmatprep.mubr.bf16.mxu1 %v3352_v19  ;;  %v3353_v13 = vld [vmem:[%s4482_s1 + $0x300] ss:$8 sps:$4 sm:$0xff]   ;;  %v3457_v19 = vld [vmem:[%s3716_s17 + $0x3c] ss:$72 sps:$4 sm:$0xff]  }
  0x8b   : > { %2412 = vmatprep.mubr.bf16.mxu0 %v3358_v23  ;;  %v3373_v23 = vld [vmem:[%s4482_s1 + $0x724] ss:$8 sps:$4 sm:$0xff]  }
  0x8c   : > { %2211 = vmatpush1.bf16.msra.mxu1 %v3260_v14  ;;  %v3356_v14 = vld [vmem:[%s3716_s17 + $0x30] ss:$72 sps:$4 sm:$0xff]  }
  0x8d   : > { %2383 = vmatpush1.bf16.msra.mxu0 %v3263_v15  ;;  %2212 = vmatprep.subr.bf16.mxu1 %v3268_v16  ;;  %v3359_v15 = vld [vmem:[%s4482_s1 + $0x700] ss:$8 sps:$4 sm:$0xff]   ;;  %v3364_v16 = vld [vmem:[%s4482_s1 + $0x314] ss:$8 sps:$4 sm:$0xff]  }
  0x8e   : > { %2384 = vmatprep.subr.bf16.mxu0 %v3271_v17  ;;  %v3367_v17 = vld [vmem:[%s4482_s1 + $0x714] ss:$8 sps:$4 sm:$0xff]  }
  0x90   : > { %2213 = vmatpush1.bf16.msra.mxu1 %v3266_v18  ;;  %v3454_v18 = vld [vmem:[%s3716_s17 + $0x1c] ss:$72 sps:$4 sm:$0xff]  }
  0x91   : > { %2385 = vmatpush1.bf16.msra.mxu0 %v3269_v20  ;;  %2214 = vmatprep.subr.bf16.mxu1 %v3274_v21  ;;  %v3362_v20 = vld [vmem:[%s4482_s1 + $0x310] ss:$8 sps:$4 sm:$0xff]  }
  0x92   : > { %2386 = vmatprep.subr.bf16.mxu0 %v3277_v22  ;;  %v3365_v21 = vld [vmem:[%s4482_s1 + $0x710] ss:$8 sps:$4 sm:$0xff]   ;;  %v3370_v22 = vld [vmem:[%s4482_s1 + $0x324] ss:$8 sps:$4 sm:$0xff]  }
  0x94   : > { %2215 = vmatpush1.bf16.msra.mxu1 %v3272_v24  ;;  %v3368_v24 = vld [vmem:[%s4482_s1 + $0x320] ss:$8 sps:$4 sm:$0xff]  }
  0x95   : > { %2387 = vmatpush1.bf16.msra.mxu0 %v3275_v25  ;;  %2216 = vmatprep.subr.bf16.mxu1 %v3280_v26  ;;  %v3371_v25 = vld [vmem:[%s4482_s1 + $0x720] ss:$8 sps:$4 sm:$0xff]   ;;  %v3376_v26 = vld [vmem:[%s4482_s1 + $0x334] ss:$8 sps:$4 sm:$0xff]  }
  0x96   : > { %2388 = vmatprep.subr.bf16.mxu0 %v3283_v27  ;;  %v3379_v27 = vld [vmem:[%s4482_s1 + $0x734] ss:$8 sps:$4 sm:$0xff]  }
  0x98   : > { %2217 = vmatpush1.bf16.msra.mxu1 %v3278_v28  ;;  %v3374_v28 = vld [vmem:[%s4482_s1 + $0x330] ss:$8 sps:$4 sm:$0xff]  }
  0x99   : > { %2389 = vmatpush1.bf16.msra.mxu0 %v3281_v29  ;;  %2218 = vmatprep.subr.bf16.mxu1 %v3286_v30  ;;  %v3377_v29 = vld [vmem:[%s4482_s1 + $0x730] ss:$8 sps:$4 sm:$0xff]   ;;  %v3382_v30 = vld [vmem:[%s4482_s1 + $0x344] ss:$8 sps:$4 sm:$0xff]  }
  0x9a   : > { %2390 = vmatprep.subr.bf16.mxu0 %v3289_v31  ;;  %v3385_v31 = vld [vmem:[%s4482_s1 + $0x744] ss:$8 sps:$4 sm:$0xff]  }
  0x9c   : > { %2219 = vmatpush1.bf16.msra.mxu1 %v3284_v32  ;;  %v3380_v32 = vld [vmem:[%s4482_s1 + $0x340] ss:$8 sps:$4 sm:$0xff]  }
  0x9d   : > { %2391 = vmatpush1.bf16.msra.mxu0 %v3287_v33  ;;  %2220 = vmatprep.subr.bf16.mxu1 %v3292_v34  ;;  %v3383_v33 = vld [vmem:[%s4482_s1 + $0x740] ss:$8 sps:$4 sm:$0xff]   ;;  %v3388_v34 = vld [vmem:[%s4482_s1 + $0x354] ss:$8 sps:$4 sm:$0xff]  }
  0x9e   : > { %2392 = vmatprep.subr.bf16.mxu0 %v3295_v35  ;;  %v3391_v35 = vld [vmem:[%s4482_s1 + $0x754] ss:$8 sps:$4 sm:$0xff]  }
  0xa0   : > { %2221 = vmatpush1.bf16.msra.mxu1 %v3290_v36  ;;  %v3386_v36 = vld [vmem:[%s4482_s1 + $0x350] ss:$8 sps:$4 sm:$0xff]  }
  0xa1   : > { %2393 = vmatpush1.bf16.msra.mxu0 %v3293_v37  ;;  %2222 = vmatprep.subr.bf16.mxu1 %v3298_v38  ;;  %v3389_v37 = vld [vmem:[%s4482_s1 + $0x750] ss:$8 sps:$4 sm:$0xff]   ;;  %v3394_v38 = vld [vmem:[%s4482_s1 + $0x364] ss:$8 sps:$4 sm:$0xff]  }
  0xa2   : > { %2394 = vmatprep.subr.bf16.mxu0 %v3301_v39  ;;  %v3397_v39 = vld [vmem:[%s4482_s1 + $0x764] ss:$8 sps:$4 sm:$0xff]  }
  0xa4   : > { %2223 = vmatpush1.bf16.msra.mxu1 %v3296_v40  ;;  %v3392_v40 = vld [vmem:[%s4482_s1 + $0x360] ss:$8 sps:$4 sm:$0xff]  }
  0xa5   : > { %2395 = vmatpush1.bf16.msra.mxu0 %v3299_v41  ;;  %2224 = vmatprep.subr.bf16.mxu1 %v3304_v42  ;;  %v3395_v41 = vld [vmem:[%s4482_s1 + $0x760] ss:$8 sps:$4 sm:$0xff]   ;;  %v3400_v42 = vld [vmem:[%s4482_s1 + $0x374] ss:$8 sps:$4 sm:$0xff]  }
  0xa6   : > { %2396 = vmatprep.subr.bf16.mxu0 %v3307_v43  ;;  %v3403_v43 = vld [vmem:[%s4482_s1 + $0x774] ss:$8 sps:$4 sm:$0xff]  }
  0xa8   : > { %2225 = vmatpush1.bf16.msra.mxu1 %v3302_v44  ;;  %v3398_v44 = vld [vmem:[%s4482_s1 + $0x370] ss:$8 sps:$4 sm:$0xff]  }
  0xa9   : > { %2397 = vmatpush1.bf16.msra.mxu0 %v3305_v45  ;;  %2226 = vmatprep.subr.bf16.mxu1 %v3310_v46  ;;  %v3401_v45 = vld [vmem:[%s4482_s1 + $0x770] ss:$8 sps:$4 sm:$0xff]   ;;  %v3406_v46 = vld [vmem:[%s4482_s1 + $0x384] ss:$8 sps:$4 sm:$0xff]  }
  0xaa   : > { %2398 = vmatprep.subr.bf16.mxu0 %v3313_v47  ;;  %v3409_v47 = vld [vmem:[%s4482_s1 + $0x784] ss:$8 sps:$4 sm:$0xff]  }
  0xac   : > { %2227 = vmatpush1.bf16.msra.mxu1 %v3308_v48  ;;  %v3404_v48 = vld [vmem:[%s4482_s1 + $0x380] ss:$8 sps:$4 sm:$0xff]  }
  0xad   : > { %2399 = vmatpush1.bf16.msra.mxu0 %v3311_v49  ;;  %2228 = vmatprep.subr.bf16.mxu1 %v3316_v50  ;;  %v3407_v49 = vld [vmem:[%s4482_s1 + $0x780] ss:$8 sps:$4 sm:$0xff]   ;;  %v3412_v50 = vld [vmem:[%s4482_s1 + $0x394] ss:$8 sps:$4 sm:$0xff]  }
  0xae   : > { %2400 = vmatprep.subr.bf16.mxu0 %v3319_v51  ;;  %v3415_v51 = vld [vmem:[%s4482_s1 + $0x794] ss:$8 sps:$4 sm:$0xff]  }
  0xb0   : > { %2229 = vmatpush1.bf16.msra.mxu1 %v3314_v52  ;;  %v3410_v52 = vld [vmem:[%s4482_s1 + $0x390] ss:$8 sps:$4 sm:$0xff]  }
  0xb1   : > { %2401 = vmatpush1.bf16.msra.mxu0 %v3317_v53  ;;  %2230 = vmatprep.subr.bf16.mxu1 %v3322_v54  ;;  %v3413_v53 = vld [vmem:[%s4482_s1 + $0x790] ss:$8 sps:$4 sm:$0xff]   ;;  %v3418_v54 = vld [vmem:[%s4482_s1 + $0x3a4] ss:$8 sps:$4 sm:$0xff]  }
  0xb2   : > { %2402 = vmatprep.subr.bf16.mxu0 %v3325_v55  ;;  %v3421_v55 = vld [vmem:[%s4482_s1 + $0x7a4] ss:$8 sps:$4 sm:$0xff]  }
  0xb4   : > { %2231 = vmatpush1.bf16.msra.mxu1 %v3320_v56  ;;  %v3416_v56 = vld [vmem:[%s4482_s1 + $0x3a0] ss:$8 sps:$4 sm:$0xff]  }
  0xb5   : > { %2403 = vmatpush1.bf16.msra.mxu0 %v3323_v57  ;;  %2232 = vmatprep.subr.bf16.mxu1 %v3328_v58  ;;  %v3419_v57 = vld [vmem:[%s4482_s1 + $0x7a0] ss:$8 sps:$4 sm:$0xff]   ;;  %v3424_v58 = vld [vmem:[%s4482_s1 + $0x3b4] ss:$8 sps:$4 sm:$0xff]  }
  0xb6   : > { %2404 = vmatprep.subr.bf16.mxu0 %v3331_v59  ;;  %v3427_v59 = vld [vmem:[%s4482_s1 + $0x7b4] ss:$8 sps:$4 sm:$0xff]  }
  0xb8   : > { %2233 = vmatpush1.bf16.msra.mxu1 %v3326_v60  ;;  %v3422_v60 = vld [vmem:[%s4482_s1 + $0x3b0] ss:$8 sps:$4 sm:$0xff]  }
  0xb9   : > { %2405 = vmatpush1.bf16.msra.mxu0 %v3329_v61  ;;  %2234 = vmatprep.subr.bf16.mxu1 %v3334_v62  ;;  %v3425_v61 = vld [vmem:[%s4482_s1 + $0x7b0] ss:$8 sps:$4 sm:$0xff]   ;;  %v3430_v62 = vld [vmem:[%s4482_s1 + $0x3c4] ss:$8 sps:$4 sm:$0xff]  }
  0xba   : > { %2406 = vmatprep.subr.bf16.mxu0 %v3337_v63  ;;  %v3433_v63 = vld [vmem:[%s4482_s1 + $0x7c4] ss:$8 sps:$4 sm:$0xff]  }
  0xbc   : > { %2235 = vmatpush1.bf16.msra.mxu1 %v3332_v0  ;;  %v3428_v0 = vld [vmem:[%s4482_s1 + $0x3c0] ss:$8 sps:$4 sm:$0xff]  }
  0xbd   : > { %2407 = vmatpush1.bf16.msra.mxu0 %v3335_v1  ;;  %2236 = vmatprep.subr.bf16.mxu1 %v3340_v2  ;;  %v3431_v1 = vld [vmem:[%s4482_s1 + $0x7c0] ss:$8 sps:$4 sm:$0xff]   ;;  %v3436_v2 = vld [vmem:[%s4482_s1 + $0x3d4] ss:$8 sps:$4 sm:$0xff]  }
  0xbe   : > { %2408 = vmatprep.subr.bf16.mxu0 %v3343_v3  ;;  %v3439_v3 = vld [vmem:[%s4482_s1 + $0x7d4] ss:$8 sps:$4 sm:$0xff]  }
  0xc0   : > { %2237 = vmatpush1.bf16.msra.mxu1 %v3338_v4  ;;  %v3434_v4 = vld [vmem:[%s4482_s1 + $0x3d0] ss:$8 sps:$4 sm:$0xff]  }
  0xc1   : > { %2409 = vmatpush1.bf16.msra.mxu0 %v3341_v5  ;;  %2238 = vmatprep.subr.bf16.mxu1 %v3346_v6  ;;  %v3437_v5 = vld [vmem:[%s4482_s1 + $0x7d0] ss:$8 sps:$4 sm:$0xff]   ;;  %v3442_v6 = vld [vmem:[%s4482_s1 + $0x3e4] ss:$8 sps:$4 sm:$0xff]  }
  0xc2   : > { %2410 = vmatprep.subr.bf16.mxu0 %v3349_v7  ;;  %v3445_v7 = vld [vmem:[%s4482_s1 + $0x7e4] ss:$8 sps:$4 sm:$0xff]  }
  0xc4   : > { %2239 = vmatpush1.bf16.msra.mxu1 %v3344_v8  ;;  %v3440_v8 = vld [vmem:[%s4482_s1 + $0x3e0] ss:$8 sps:$4 sm:$0xff]  }
  0xc5   : > { %2411 = vmatpush1.bf16.msra.mxu0 %v3347_v9  ;;  %2251 = vmatprep.subr.bf16.mxu1 %v3355_v10  ;;  %v3443_v9 = vld [vmem:[%s4482_s1 + $0x7e0] ss:$8 sps:$4 sm:$0xff]   ;;  %v3448_v10 = vld [vmem:[%s4482_s1 + $0x3f4] ss:$8 sps:$4 sm:$0xff]  }
  0xc6   : > { %2423 = vmatprep.subr.bf16.mxu0 %v3361_v11  ;;  %v3451_v11 = vld [vmem:[%s4482_s1 + $0x7f4] ss:$8 sps:$4 sm:$0xff]  }
  0xc7   : > { %2241 = vmatmul.mubr.bf16.vlgmr.msra.gmra.mrb[0].mxu1 %v3350_v12  ;;  %v3446_v12 = vld [vmem:[%s4482_s1 + $0x3f0] ss:$8 sps:$4 sm:$0xff]  }
  0xc8   : > { %2413 = vmatmul.mubr.bf16.vlgmr.msra.gmra.mrb[0].mxu0 %v3356_v14  ;;  %2252 = vmatpush1.bf16.msra.mxu1 %v3353_v13  ;;  %v3449_v13 = vld [vmem:[%s4482_s1 + $0x7f0] ss:$8 sps:$4 sm:$0xff]   ;;  %v3460_v14 = vld [vmem:[%s4482_s1 + $0x804] ss:$8 sps:$4 sm:$0xff]  }
  0xc9   : > { %2424 = vmatpush1.bf16.msra.mxu0 %v3359_v15  ;;  %2253 = vmatprep.subr.bf16.mxu1 %v3364_v16  ;;  %v3452_v15 = vld [vmem:[%s3716_s17 + $0x18] ss:$72 sps:$4 sm:$0xff]  }
  0xca   : > { %2425 = vmatprep.subr.bf16.mxu0 %v3367_v17  ;;  %2283 = vmatprep.mubr.bf16.mxu1 %v3454_v18  ;;  %v3455_v16 = vld [vmem:[%s3716_s17 + $0x38] ss:$72 sps:$4 sm:$0xff]   ;;  %v3508_v18 = vld [vmem:[%s3716_s17 + $0x44] ss:$72 sps:$4 sm:$0xff]  }
  0xcb   : > { %2455 = vmatprep.mubr.bf16.mxu0 %v3457_v19  ;;  %v3458_v17 = vld [vmem:[%s4482_s1 + $0x800] ss:$8 sps:$4 sm:$0xff]   ;;  %v3463_v19 = vld [vmem:[%s4482_s1 + $0x814] ss:$8 sps:$4 sm:$0xff]  }
  0xcc   : > { %2254 = vmatpush1.bf16.msra.mxu1 %v3362_v20  ;;  %v3461_v20 = vld [vmem:[%s4482_s1 + $0x810] ss:$8 sps:$4 sm:$0xff]  }
  0xcd   : > { %2426 = vmatpush1.bf16.msra.mxu0 %v3365_v21  ;;  %2255 = vmatprep.subr.bf16.mxu1 %v3370_v22  ;;  %v3466_v21 = vld [vmem:[%s4482_s1 + $0x824] ss:$8 sps:$4 sm:$0xff]   ;;  %v3464_v22 = vld [vmem:[%s4482_s1 + $0x820] ss:$8 sps:$4 sm:$0xff]  }
  0xce   : > { %2427 = vmatprep.subr.bf16.mxu0 %v3373_v23  ;;  %v3469_v23 = vld [vmem:[%s4482_s1 + $0x834] ss:$8 sps:$4 sm:$0xff]  }
  0xd0   : > { %2256 = vmatpush1.bf16.msra.mxu1 %v3368_v24  ;;  %v3467_v24 = vld [vmem:[%s4482_s1 + $0x830] ss:$8 sps:$4 sm:$0xff]  }
  0xd1   : > { %2428 = vmatpush1.bf16.msra.mxu0 %v3371_v25  ;;  %2257 = vmatprep.subr.bf16.mxu1 %v3376_v26  ;;  %v3472_v25 = vld [vmem:[%s4482_s1 + $0x844] ss:$8 sps:$4 sm:$0xff]   ;;  %v3470_v26 = vld [vmem:[%s4482_s1 + $0x840] ss:$8 sps:$4 sm:$0xff]  }
  0xd2   : > { %2429 = vmatprep.subr.bf16.mxu0 %v3379_v27  ;;  %v3475_v27 = vld [vmem:[%s4482_s1 + $0x854] ss:$8 sps:$4 sm:$0xff]  }
  0xd4   : > { %2258 = vmatpush1.bf16.msra.mxu1 %v3374_v28  ;;  %v3473_v28 = vld [vmem:[%s4482_s1 + $0x850] ss:$8 sps:$4 sm:$0xff]  }
  0xd5   : > { %2430 = vmatpush1.bf16.msra.mxu0 %v3377_v29  ;;  %2259 = vmatprep.subr.bf16.mxu1 %v3382_v30  ;;  %v3478_v29 = vld [vmem:[%s4482_s1 + $0x864] ss:$8 sps:$4 sm:$0xff]   ;;  %v3476_v30 = vld [vmem:[%s4482_s1 + $0x860] ss:$8 sps:$4 sm:$0xff]  }
  0xd6   : > { %2431 = vmatprep.subr.bf16.mxu0 %v3385_v31  ;;  %v3481_v31 = vld [vmem:[%s4482_s1 + $0x874] ss:$8 sps:$4 sm:$0xff]  }
  0xd8   : > { %2260 = vmatpush1.bf16.msra.mxu1 %v3380_v32  ;;  %v3479_v32 = vld [vmem:[%s4482_s1 + $0x870] ss:$8 sps:$4 sm:$0xff]  }
  0xd9   : > { %2432 = vmatpush1.bf16.msra.mxu0 %v3383_v33  ;;  %2261 = vmatprep.subr.bf16.mxu1 %v3388_v34  ;;  %v3484_v33 = vld [vmem:[%s4482_s1 + $0x884] ss:$8 sps:$4 sm:$0xff]   ;;  %v3482_v34 = vld [vmem:[%s4482_s1 + $0x880] ss:$8 sps:$4 sm:$0xff]  }
  0xda   : > { %2433 = vmatprep.subr.bf16.mxu0 %v3391_v35  ;;  %v3487_v35 = vld [vmem:[%s4482_s1 + $0x894] ss:$8 sps:$4 sm:$0xff]  }
  0xdc   : > { %2262 = vmatpush1.bf16.msra.mxu1 %v3386_v36  ;;  %v3485_v36 = vld [vmem:[%s4482_s1 + $0x890] ss:$8 sps:$4 sm:$0xff]  }
  0xdd   : > { %2434 = vmatpush1.bf16.msra.mxu0 %v3389_v37  ;;  %2263 = vmatprep.subr.bf16.mxu1 %v3394_v38  ;;  %v3490_v37 = vld [vmem:[%s4482_s1 + $0x8a4] ss:$8 sps:$4 sm:$0xff]   ;;  %v3488_v38 = vld [vmem:[%s4482_s1 + $0x8a0] ss:$8 sps:$4 sm:$0xff]  }
  0xde   : > { %2435 = vmatprep.subr.bf16.mxu0 %v3397_v39  ;;  %v3493_v39 = vld [vmem:[%s4482_s1 + $0x8b4] ss:$8 sps:$4 sm:$0xff]  }
  0xe0   : > { %2264 = vmatpush1.bf16.msra.mxu1 %v3392_v40  ;;  %v3491_v40 = vld [vmem:[%s4482_s1 + $0x8b0] ss:$8 sps:$4 sm:$0xff]  }
  0xe1   : > { %2436 = vmatpush1.bf16.msra.mxu0 %v3395_v41  ;;  %2265 = vmatprep.subr.bf16.mxu1 %v3400_v42  ;;  %v3496_v41 = vld [vmem:[%s4482_s1 + $0x8c4] ss:$8 sps:$4 sm:$0xff]   ;;  %v3494_v42 = vld [vmem:[%s4482_s1 + $0x8c0] ss:$8 sps:$4 sm:$0xff]  }
  0xe2   : > { %2437 = vmatprep.subr.bf16.mxu0 %v3403_v43  ;;  %v3499_v43 = vld [vmem:[%s4482_s1 + $0x8d4] ss:$8 sps:$4 sm:$0xff]  }
  0xe4   : > { %2266 = vmatpush1.bf16.msra.mxu1 %v3398_v44  ;;  %v3497_v44 = vld [vmem:[%s4482_s1 + $0x8d0] ss:$8 sps:$4 sm:$0xff]  }
  0xe5   : > { %2438 = vmatpush1.bf16.msra.mxu0 %v3401_v45  ;;  %2267 = vmatprep.subr.bf16.mxu1 %v3406_v46  ;;  %v3502_v45 = vld [vmem:[%s4482_s1 + $0x8e4] ss:$8 sps:$4 sm:$0xff]   ;;  %v3500_v46 = vld [vmem:[%s4482_s1 + $0x8e0] ss:$8 sps:$4 sm:$0xff]  }
  0xe6   : > { %2439 = vmatprep.subr.bf16.mxu0 %v3409_v47  ;;  %v3505_v47 = vld [vmem:[%s4482_s1 + $0x8f4] ss:$8 sps:$4 sm:$0xff]  }
  0xe8   : > { %2268 = vmatpush1.bf16.msra.mxu1 %v3404_v48  ;;  %v3503_v48 = vld [vmem:[%s4482_s1 + $0x8f0] ss:$8 sps:$4 sm:$0xff]  }
  0xe9   : > { %2440 = vmatpush1.bf16.msra.mxu0 %v3407_v49  ;;  %2269 = vmatprep.subr.bf16.mxu1 %v3412_v50  ;;  %v3506_v49 = vld [vmem:[%s3716_s17 + $0x40] ss:$72 sps:$4 sm:$0xff]   ;;  %s2986_s17 = sshll.u32 %s4490_s12, 4 }
  0xea   : > { %2441 = vmatprep.subr.bf16.mxu0 %v3415_v51  ;;  %s271_s24 = scalar_lea.vmem %s4484_s3, %s2986_s17 }
  0xec   : > { %2270 = vmatpush1.bf16.msra.mxu1 %v3410_v52 }
  0xed   : > { %2442 = vmatpush1.bf16.msra.mxu0 %v3413_v53  ;;  %2271 = vmatprep.subr.bf16.mxu1 %v3418_v54  ;;  %v582_v54 = vlaneseq }
  0xee   : > { %2443 = vmatprep.subr.bf16.mxu0 %v3421_v55 }
  0xef   : > { %v583_v55 = vshrl.u32 %v582_v54, 7 }
  0xf0   : > { %2272 = vmatpush1.bf16.msra.mxu1 %v3416_v56 }
  0xf1   : > { %2444 = vmatpush1.bf16.msra.mxu0 %v3419_v57  ;;  %2273 = vmatprep.subr.bf16.mxu1 %v3424_v58  ;;  %v584_v56 = vsub.s32 0, %v583_v55  ;;  %v580_v57 = vld [vmem:[%s4483_s2] sm:$0x3]  ;;  %v588_v58 = vsub.s32 1, %v583_v55 }
  0xf2   : > { %2445 = vmatprep.subr.bf16.mxu0 %v3427_v59 }
  0xf3   : > { %v585_v59 = vrot.slane %v580_v57, %v584_v56 }
  0xf4   : > { %2274 = vmatpush1.bf16.msra.mxu1 %v3422_v60  ;;  %v589_v60 = vrot.slane %v580_v57, %v588_v58 }
  0xf5   : > { %2446 = vmatpush1.bf16.msra.mxu0 %v3425_v61  ;;  %2275 = vmatprep.subr.bf16.mxu1 %v3430_v62 }
  0xf6   : > { %2447 = vmatprep.subr.bf16.mxu0 %v3433_v63 }
  0xf8   : > { %2276 = vmatpush1.bf16.msra.mxu1 %v3428_v0 }
  0xf9   : > { %2448 = vmatpush1.bf16.msra.mxu0 %v3431_v1  ;;  %2277 = vmatprep.subr.bf16.mxu1 %v3436_v2 }
  0xfa   : > { %2449 = vmatprep.subr.bf16.mxu0 %v3439_v3 }
  0xfc   : > { %2278 = vmatpush1.bf16.msra.mxu1 %v3434_v4 }
  0xfd   : > { %2450 = vmatpush1.bf16.msra.mxu0 %v3437_v5  ;;  %2279 = vmatprep.subr.bf16.mxu1 %v3442_v6 }
  0xfe   : > { %2451 = vmatprep.subr.bf16.mxu0 %v3445_v7 }
 0x100   : > { %2280 = vmatpush1.bf16.msra.mxu1 %v3440_v8 }
 0x101   : > { %2452 = vmatpush1.bf16.msra.mxu0 %v3443_v9  ;;  %2281 = vmatprep.subr.bf16.mxu1 %v3448_v10 }
 0x102   : > { %2453 = vmatprep.subr.bf16.mxu0 %v3451_v11 }
 0x104   : > { %2282 = vmatpush1.bf16.msra.mxu1 %v3446_v12 }
 0x105   : > { %2454 = vmatpush1.bf16.msra.mxu0 %v3449_v13 }
 0x106   : > { %2466 = vmatprep.subr.bf16.mxu0 %v3460_v14 }
 0x107   : > { %2284 = vmatmul.mubr.bf16.vlgmr.msra.gmra.mrb[0].mxu1 %v3452_v15 }
 0x108   : > { %2456 = vmatmul.mubr.bf16.vlgmr.msra.gmra.mrb[0].mxu0 %v3455_v16 }
 0x109   : > { %2467 = vmatpush1.bf16.msra.mxu0 %v3458_v17  ;;  %2498 = vmatprep.mubr.bf16.mxu0 %v3508_v18 }
 0x10a   : > { %2468 = vmatprep.subr.bf16.mxu0 %v3463_v19 }
 0x10d   : > { %2469 = vmatpush1.bf16.msra.mxu0 %v3461_v20 }
 0x10e   : > { %2470 = vmatprep.subr.bf16.mxu0 %v3466_v21 }
 0x111   : > { %2471 = vmatpush1.bf16.msra.mxu0 %v3464_v22 }
 0x112   : > { %2472 = vmatprep.subr.bf16.mxu0 %v3469_v23 }
 0x115   : > { %2473 = vmatpush1.bf16.msra.mxu0 %v3467_v24 }
 0x116   : > { %2474 = vmatprep.subr.bf16.mxu0 %v3472_v25 }
 0x119   : > { %2475 = vmatpush1.bf16.msra.mxu0 %v3470_v26 }
 0x11a   : > { %2476 = vmatprep.subr.bf16.mxu0 %v3475_v27 }
 0x11d   : > { %2477 = vmatpush1.bf16.msra.mxu0 %v3473_v28 }
 0x11e   : > { %2478 = vmatprep.subr.bf16.mxu0 %v3478_v29 }
 0x121   : > { %2479 = vmatpush1.bf16.msra.mxu0 %v3476_v30 }
 0x122   : > { %2480 = vmatprep.subr.bf16.mxu0 %v3481_v31 }
 0x125   : > { %2481 = vmatpush1.bf16.msra.mxu0 %v3479_v32 }
 0x126   : > { %2482 = vmatprep.subr.bf16.mxu0 %v3484_v33 }
 0x129   : > { %2483 = vmatpush1.bf16.msra.mxu0 %v3482_v34 }
 0x12a   : > { %2484 = vmatprep.subr.bf16.mxu0 %v3487_v35 }
 0x12d   : > { %2485 = vmatpush1.bf16.msra.mxu0 %v3485_v36 }
 0x12e   : > { %2486 = vmatprep.subr.bf16.mxu0 %v3490_v37 }
 0x131   : > { %2487 = vmatpush1.bf16.msra.mxu0 %v3488_v38 }
 0x132   : > { %2488 = vmatprep.subr.bf16.mxu0 %v3493_v39 }
 0x135   : > { %2489 = vmatpush1.bf16.msra.mxu0 %v3491_v40 }
 0x136   : > { %2490 = vmatprep.subr.bf16.mxu0 %v3496_v41 }
 0x139   : > { %2491 = vmatpush1.bf16.msra.mxu0 %v3494_v42 }
 0x13a   : > { %2492 = vmatprep.subr.bf16.mxu0 %v3499_v43 }
 0x13d   : > { %2493 = vmatpush1.bf16.msra.mxu0 %v3497_v44 }
 0x13e   : > { %2494 = vmatprep.subr.bf16.mxu0 %v3502_v45 }
 0x141   : > { %2495 = vmatpush1.bf16.msra.mxu0 %v3500_v46 }
 0x142   : > { %2496 = vmatprep.subr.bf16.mxu0 %v3505_v47 }
 0x145   : > { %2497 = vmatpush1.bf16.msra.mxu0 %v3503_v48 }
 0x148   : > { %2499 = vmatmul.mubr.bf16.vlgmr.msra.gmra.mrb[0].mxu0 %v3506_v49 }
 0x1da   : > { %v2285_v50 = vpop.f32.mrb[0].mxu1 }
 0x1db   : > { %v2287_v51 = vpop.f32.mrb[1].mxu1  ;;  %v2989_v61 = vadd.f32 %v2285_v50, %v585_v59 }
 0x1dc   : > { %v2289_v52 = vpop.f32.mrb[2].mxu1  ;;  %v2991_v62 = vadd.f32 %v2287_v51, %v589_v60 }
 0x1dd   : > { %v2291_v53 = vpop.f32.mrb[3].mxu1  ;;  %v2993_v0 = vadd.f32 %v2289_v52, %v585_v59 }
 0x1de   : > { %v2995_v3 = vadd.f32 %v2291_v53, %v589_v60 }
 0x21b   : > { %v2500_v63 = vpop.f32.mrb[0].mxu0 }
 0x21c   : > { %v2990_v1 = vadd.f32 %v2989_v61, %v2500_v63  ;;  %v2502_v2 = vpop.f32.mrb[1].mxu0 }
 0x21d   : > { %v2992_v4 = vadd.f32 %v2991_v62, %v2502_v2  ;;  %v2504_v5 = vpop.f32.mrb[2].mxu0 }
 0x21e   : > { %v2509_v6 = vmax.f32 %v2990_v1, 0.0  ;;  %v2994_v7 = vadd.f32 %v2993_v0, %v2504_v5  ;;  %v2506_v8 = vpop.f32.mrb[3].mxu0 }
 0x21f   : > { %v2510_v9 = vmax.f32 %v2992_v4, 0.0  ;;  %v2996_v10 = vadd.f32 %v2995_v3, %v2506_v8 }
 0x220   : > { %v2511_v11 = vmax.f32 %v2994_v7, 0.0 }
 0x221   : > { %v2987_v12 = vpack.c.bf16 %v2510_v9, %v2509_v6  ;;  %v2512_v13 = vmax.f32 %v2996_v10, 0.0 }
 0x223   : > { %2525 = vst [vmem:[%s271_s24] sm:$0xff] %v2987_v12  ;;  %v2988_v14 = vpack.c.bf16 %v2512_v13, %v2511_v11 }
 0x225   : > { %2526 = vst [vmem:[%s271_s24 + $0x8] sm:$0xff] %v2988_v14 }
 0x226 PF: > { %s13_s14 = sadd.s32 1, %s3531_s14   ;;  %s4485_s12 = smov %s3527_s13 }
 0x227   : > { %p10_p5 = scmp.ge.s32.totalorder %s13_s14, 4   ;;  %s4486_s13 = smov %s4488_s15 }
 0x229   :  { %12 = sbr.rel (!%p10_p5) target bundleno = 2 (0x2), region = 68 }

// kernel: vgg19_forward.17
= control target key start
LH: loop header
LB: loop body
LE: loop exit
PB: predicated region body
PF: predicated region fallthrough
CT: control target
= control target key end

     0   :  { %s3539_s12 = smov 0   ;;  %s3541_s13 = smov 0   ;;  %s4467_s0 = inlined_call_operand.vmem [shape: bf16[2,16,2304], index: 0, kind: input, shape index: {}]   ;;  %s4468_s1 = inlined_call_operand.vmem [shape: bf16[2304,256], index: 1, kind: input, shape index: {}]   ;;  %s4469_s2 = inlined_call_operand.vmem [shape: f32[1,256], index: 2, kind: input, shape index: {}]   ;;  %s4470_s3 = inlined_call_operand.vmem [shape: f32[2,16,256], index: 3, kind: output, shape index: {}]  }
   0x1   :  { %s3543_s14 = smov 0  }
   0x2 LB: > { %s32_s15 = sadd.s32 1, %s3513_s13  ;;  %p2662_p0 = scmp.ge.s32.totalorder %s3517_s14, 1  ;;  %s3517_s14 = sphi %s3543_s14, %s13_s14   ;;  %s3513_s13 = sphi %s3541_s13, %s4472_s13   ;;  %s3509_s12 = sphi %s3539_s12, %s4471_s12  }
   0x3   : > { %p34_p1 = scmp.ge.s32.totalorder %s32_s15, 2  ;;  %p189_p2 = scmp.lt.s32.totalorder %s3517_s14, 3 }
   0x5   : > { %s4474_s15 = smov (%p34_p1, %s32_s15), 0  ;;  %p190_p3 = pnand %p2662_p0, %p189_p2 }
   0x6   : > { %v3036_v0 = vld [vmem:[%s4468_s1 + $0x4] ss:$8 sps:$4 sm:$0xff] (!%p190_p3)   ;;  %v3040_v2 = vld [vmem:[%s4468_s1] ss:$8 sps:$4 sm:$0xff] (!%p190_p3)   ;;  %v3042_v4 = vld [vmem:[%s4468_s1 + $0x14] ss:$8 sps:$4 sm:$0xff] (!%p190_p3)  }
   0x7   : > { %193 = sbr.rel (%p190_p3) target bundleno = 548 (0x224), region = 32  ;;  %v3038_v1 = vld [vmem:[%s4468_s1 + $0x404] ss:$8 sps:$4 sm:$0xff] (!%p190_p3)   ;;  %2122 = vmatprep.subr.bf16.mxu1 (!%p190_p3), %v3036_v0  ;;  %v3041_v3 = vld [vmem:[%s4468_s1 + $0x400] ss:$8 sps:$4 sm:$0xff] (!%p190_p3)   ;;  %p237_p4 = scmp.lt.s32.totalorder (!%p190_p3), %s3509_s12, 1 }
   0x8   : > { %2294 = vmatprep.subr.bf16.mxu0 (!%p190_p3), %v3038_v1  ;;  %2123 = vmatpush1.bf16.msra.mxu1 (!%p190_p3), %v3040_v2  ;;  %v3044_v5 = vld [vmem:[%s4468_s1 + $0x414] ss:$8 sps:$4 sm:$0xff] (!%p190_p3)   ;;  %v3046_v6 = vld [vmem:[%s4468_s1 + $0x10] ss:$8 sps:$4 sm:$0xff] (!%p190_p3)   ;;  %v3048_v8 = vld [vmem:[%s4468_s1 + $0x24] ss:$8 sps:$4 sm:$0xff] (!%p190_p3)  }
   0x9   : > { %2295 = vmatpush1.bf16.msra.mxu0 (!%p190_p3), %v3041_v3  ;;  %2124 = vmatprep.subr.bf16.mxu1 (!%p190_p3), %v3042_v4  ;;  %v3047_v7 = vld [vmem:[%s4468_s1 + $0x410] ss:$8 sps:$4 sm:$0xff] (!%p190_p3)   ;;  %v3050_v9 = vld [vmem:[%s4468_s1 + $0x424] ss:$8 sps:$4 sm:$0xff] (!%p190_p3)   ;;  %v3052_v10 = vld [vmem:[%s4468_s1 + $0x20] ss:$8 sps:$4 sm:$0xff] (!%p190_p3)  }
   0xa   : > { %2296 = vmatprep.subr.bf16.mxu0 (!%p190_p3), %v3044_v5  ;;  %v3053_v11 = vld [vmem:[%s4468_s1 + $0x420] ss:$8 sps:$4 sm:$0xff] (!%p190_p3)   ;;  %v3054_v12 = vld [vmem:[%s4468_s1 + $0x34] ss:$8 sps:$4 sm:$0xff] (!%p190_p3)   ;;  %v3058_v14 = vld [vmem:[%s4468_s1 + $0x30] ss:$8 sps:$4 sm:$0xff] (!%p190_p3)  }
   0xb   : > { %v3056_v13 = vld [vmem:[%s4468_s1 + $0x434] ss:$8 sps:$4 sm:$0xff] (!%p190_p3)   ;;  %v3059_v15 = vld [vmem:[%s4468_s1 + $0x430] ss:$8 sps:$4 sm:$0xff] (!%p190_p3)   ;;  %v3060_v16 = vld [vmem:[%s4468_s1 + $0x44] ss:$8 sps:$4 sm:$0xff] (!%p190_p3)  }
   0xc   : > { %2125 = vmatpush1.bf16.msra.mxu1 (!%p190_p3), %v3046_v6  ;;  %v3062_v17 = vld [vmem:[%s4468_s1 + $0x444] ss:$8 sps:$4 sm:$0xff] (!%p190_p3)   ;;  %v3064_v18 = vld [vmem:[%s4468_s1 + $0x40] ss:$8 sps:$4 sm:$0xff] (!%p190_p3)   ;;  %v3066_v20 = vld [vmem:[%s4468_s1 + $0x54] ss:$8 sps:$4 sm:$0xff] (!%p190_p3)  }
   0xd   : > { %2297 = vmatpush1.bf16.msra.mxu0 (!%p190_p3), %v3047_v7  ;;  %2126 = vmatprep.subr.bf16.mxu1 (!%p190_p3), %v3048_v8  ;;  %v3065_v19 = vld [vmem:[%s4468_s1 + $0x440] ss:$8 sps:$4 sm:$0xff] (!%p190_p3)   ;;  %v3068_v21 = vld [vmem:[%s4468_s1 + $0x454] ss:$8 sps:$4 sm:$0xff] (!%p190_p3)   ;;  %v3070_v22 = vld [vmem:[%s4468_s1 + $0x50] ss:$8 sps:$4 sm:$0xff] (!%p190_p3)  }
   0xe   : > { %2298 = vmatprep.subr.bf16.mxu0 %v3050_v9  ;;  %v3071_v23 = vld [vmem:[%s4468_s1 + $0x450] ss:$8 sps:$4 sm:$0xff]   ;;  %v3072_v24 = vld [vmem:[%s4468_s1 + $0x64] ss:$8 sps:$4 sm:$0xff]   ;;  %v3076_v26 = vld [vmem:[%s4468_s1 + $0x60] ss:$8 sps:$4 sm:$0xff]  }
   0xf   : > { %v3074_v25 = vld [vmem:[%s4468_s1 + $0x464] ss:$8 sps:$4 sm:$0xff]   ;;  %v3077_v27 = vld [vmem:[%s4468_s1 + $0x460] ss:$8 sps:$4 sm:$0xff]   ;;  %v3078_v28 = vld [vmem:[%s4468_s1 + $0x74] ss:$8 sps:$4 sm:$0xff]  }
  0x10   : > { %2127 = vmatpush1.bf16.msra.mxu1 %v3052_v10  ;;  %v3080_v29 = vld [vmem:[%s4468_s1 + $0x474] ss:$8 sps:$4 sm:$0xff]   ;;  %v3082_v30 = vld [vmem:[%s4468_s1 + $0x70] ss:$8 sps:$4 sm:$0xff]   ;;  %v3084_v32 = vld [vmem:[%s4468_s1 + $0x84] ss:$8 sps:$4 sm:$0xff]  }
  0x11   : > { %2299 = vmatpush1.bf16.msra.mxu0 %v3053_v11  ;;  %2128 = vmatprep.subr.bf16.mxu1 %v3054_v12  ;;  %v3083_v31 = vld [vmem:[%s4468_s1 + $0x470] ss:$8 sps:$4 sm:$0xff]   ;;  %v3086_v33 = vld [vmem:[%s4468_s1 + $0x484] ss:$8 sps:$4 sm:$0xff]   ;;  %v3088_v34 = vld [vmem:[%s4468_s1 + $0x80] ss:$8 sps:$4 sm:$0xff]  }
  0x12   : > { %2300 = vmatprep.subr.bf16.mxu0 %v3056_v13  ;;  %v3089_v35 = vld [vmem:[%s4468_s1 + $0x480] ss:$8 sps:$4 sm:$0xff]   ;;  %v3090_v36 = vld [vmem:[%s4468_s1 + $0x94] ss:$8 sps:$4 sm:$0xff]   ;;  %s4476_s12 = smov (!%p237_p4, %s3509_s12), 1 }
  0x13   : > { %v3092_v37 = vld [vmem:[%s4468_s1 + $0x494] ss:$8 sps:$4 sm:$0xff]   ;;  %v3094_v38 = vld [vmem:[%s4468_s1 + $0x90] ss:$8 sps:$4 sm:$0xff]   ;;  %v3096_v40 = vld [vmem:[%s4468_s1 + $0xa4] ss:$8 sps:$4 sm:$0xff]  }
  0x14   : > { %2129 = vmatpush1.bf16.msra.mxu1 %v3058_v14  ;;  %v3095_v39 = vld [vmem:[%s4468_s1 + $0x490] ss:$8 sps:$4 sm:$0xff]   ;;  %s3011_s29 = smul.u32 144, %s4476_s12  ;;  %v3098_v41 = vld [vmem:[%s4468_s1 + $0x4a4] ss:$8 sps:$4 sm:$0xff]   ;;  %s2974_s22 = sshll.u32 %s4476_s12, 5 }
  0x15   : > { %2301 = vmatpush1.bf16.msra.mxu0 %v3059_v15  ;;  %2130 = vmatprep.subr.bf16.mxu1 %v3060_v16  ;;  %v3100_v42 = vld [vmem:[%s4468_s1 + $0xa0] ss:$8 sps:$4 sm:$0xff]   ;;  %v3102_v44 = vld [vmem:[%s4468_s1 + $0xb4] ss:$8 sps:$4 sm:$0xff]   ;;  %v3106_v46 = vld [vmem:[%s4468_s1 + $0xb0] ss:$8 sps:$4 sm:$0xff]   ;;  %s271_s24 = scalar_lea.vmem %s4470_s3, %s2974_s22 }
  0x16   : > { %2302 = vmatprep.subr.bf16.mxu0 %v3062_v17  ;;  %v3101_v43 = vld [vmem:[%s4468_s1 + $0x4a0] ss:$8 sps:$4 sm:$0xff]   ;;  %s3702_s17 = scalar_lea.vmem %s4467_s0, %s3011_s29  ;;  %v3104_v45 = vld [vmem:[%s4468_s1 + $0x4b4] ss:$8 sps:$4 sm:$0xff]   ;;  %v3107_v47 = vld [vmem:[%s4468_s1 + $0x4b0] ss:$8 sps:$4 sm:$0xff]  }
  0x17   : > { %v3134_v48 = vld [vmem:[%s3702_s17 + $0x4] ss:$72 sps:$4 sm:$0xff]   ;;  %v3112_v52 = vld [vmem:[%s4468_s1 + $0xc0] ss:$8 sps:$4 sm:$0xff]   ;;  %v3114_v54 = vld [vmem:[%s4468_s1 + $0xd4] ss:$8 sps:$4 sm:$0xff]  }
  0x18   : > { %2131 = vmatpush1.bf16.msra.mxu1 %v3064_v18  ;;  %v3108_v49 = vld [vmem:[%s4468_s1 + $0xc4] ss:$8 sps:$4 sm:$0xff]   ;;  %2154 = vmatprep.mubr.bf16.mxu1 %v3134_v48  ;;  %v3113_v53 = vld [vmem:[%s4468_s1 + $0x4c0] ss:$8 sps:$4 sm:$0xff]   ;;  %v3116_v55 = vld [vmem:[%s4468_s1 + $0x4d4] ss:$8 sps:$4 sm:$0xff]  }
  0x19   : > { %2303 = vmatpush1.bf16.msra.mxu0 %v3065_v19  ;;  %2132 = vmatprep.subr.bf16.mxu1 %v3066_v20  ;;  %v3110_v50 = vld [vmem:[%s4468_s1 + $0x4c4] ss:$8 sps:$4 sm:$0xff]   ;;  %v3118_v56 = vld [vmem:[%s4468_s1 + $0xd0] ss:$8 sps:$4 sm:$0xff]   ;;  %v3124_v60 = vld [vmem:[%s4468_s1 + $0xe0] ss:$8 sps:$4 sm:$0xff]  }
  0x1a   : > { %2304 = vmatprep.subr.bf16.mxu0 %v3068_v21  ;;  %v3140_v51 = vld [vmem:[%s3702_s17 + $0x24] ss:$72 sps:$4 sm:$0xff]   ;;  %v3119_v57 = vld [vmem:[%s4468_s1 + $0x4d0] ss:$8 sps:$4 sm:$0xff]   ;;  %v3125_v61 = vld [vmem:[%s4468_s1 + $0x4e0] ss:$8 sps:$4 sm:$0xff]  }
  0x1b   : > { %2326 = vmatprep.mubr.bf16.mxu0 %v3140_v51  ;;  %v3120_v58 = vld [vmem:[%s4468_s1 + $0xe4] ss:$8 sps:$4 sm:$0xff]   ;;  %v3126_v62 = vld [vmem:[%s4468_s1 + $0xf4] ss:$8 sps:$4 sm:$0xff]   ;;  %v3130_v0 = vld [vmem:[%s4468_s1 + $0xf0] ss:$8 sps:$4 sm:$0xff]  }
  0x1c   : > { %2133 = vmatpush1.bf16.msra.mxu1 %v3070_v22  ;;  %v3122_v59 = vld [vmem:[%s4468_s1 + $0x4e4] ss:$8 sps:$4 sm:$0xff]   ;;  %v3128_v63 = vld [vmem:[%s4468_s1 + $0x4f4] ss:$8 sps:$4 sm:$0xff]   ;;  %v3131_v1 = vld [vmem:[%s4468_s1 + $0x4f0] ss:$8 sps:$4 sm:$0xff]  }
  0x1d   : > { %2305 = vmatpush1.bf16.msra.mxu0 %v3071_v23  ;;  %2134 = vmatprep.subr.bf16.mxu1 %v3072_v24  ;;  %v3137_v2 = vld [vmem:[%s4468_s1 + $0x104] ss:$8 sps:$4 sm:$0xff]   ;;  %v3132_v4 = vld [vmem:[%s3702_s17] ss:$72 sps:$4 sm:$0xff]   ;;  %v3146_v8 = vld [vmem:[%s4468_s1 + $0x114] ss:$8 sps:$4 sm:$0xff]  }
  0x1e   : > { %2306 = vmatprep.subr.bf16.mxu0 %v3074_v25  ;;  %v3143_v3 = vld [vmem:[%s4468_s1 + $0x504] ss:$8 sps:$4 sm:$0xff]   ;;  %v3135_v5 = vld [vmem:[%s4468_s1 + $0x100] ss:$8 sps:$4 sm:$0xff]   ;;  %v3149_v9 = vld [vmem:[%s4468_s1 + $0x514] ss:$8 sps:$4 sm:$0xff]  }
  0x1f   : > { %v3138_v6 = vld [vmem:[%s3702_s17 + $0x20] ss:$72 sps:$4 sm:$0xff]   ;;  %v3144_v10 = vld [vmem:[%s4468_s1 + $0x110] ss:$8 sps:$4 sm:$0xff]   ;;  %v3152_v12 = vld [vmem:[%s4468_s1 + $0x124] ss:$8 sps:$4 sm:$0xff]  }
  0x20   : > { %2135 = vmatpush1.bf16.msra.mxu1 %v3076_v26  ;;  %v3141_v7 = vld [vmem:[%s4468_s1 + $0x500] ss:$8 sps:$4 sm:$0xff]   ;;  %v3147_v11 = vld [vmem:[%s4468_s1 + $0x510] ss:$8 sps:$4 sm:$0xff]   ;;  %v3155_v13 = vld [vmem:[%s4468_s1 + $0x524] ss:$8 sps:$4 sm:$0xff]  }
  0x21   : > { %2307 = vmatpush1.bf16.msra.mxu0 %v3077_v27  ;;  %2136 = vmatprep.subr.bf16.mxu1 %v3078_v28  ;;  %v3150_v14 = vld [vmem:[%s4468_s1 + $0x120] ss:$8 sps:$4 sm:$0xff]   ;;  %v3158_v16 = vld [vmem:[%s4468_s1 + $0x134] ss:$8 sps:$4 sm:$0xff]   ;;  %v3156_v18 = vld [vmem:[%s4468_s1 + $0x130] ss:$8 sps:$4 sm:$0xff]  }
  0x22   : > { %2308 = vmatprep.subr.bf16.mxu0 %v3080_v29  ;;  %v3153_v15 = vld [vmem:[%s4468_s1 + $0x520] ss:$8 sps:$4 sm:$0xff]   ;;  %v3161_v17 = vld [vmem:[%s4468_s1 + $0x534] ss:$8 sps:$4 sm:$0xff]   ;;  %v3159_v19 = vld [vmem:[%s4468_s1 + $0x530] ss:$8 sps:$4 sm:$0xff]  }
  0x23   : > { %v3164_v20 = vld [vmem:[%s4468_s1 + $0x144] ss:$8 sps:$4 sm:$0xff]   ;;  %v3162_v22 = vld [vmem:[%s4468_s1 + $0x140] ss:$8 sps:$4 sm:$0xff]   ;;  %v3170_v24 = vld [vmem:[%s4468_s1 + $0x154] ss:$8 sps:$4 sm:$0xff]  }
  0x24   : > { %2137 = vmatpush1.bf16.msra.mxu1 %v3082_v30  ;;  %v3167_v21 = vld [vmem:[%s4468_s1 + $0x544] ss:$8 sps:$4 sm:$0xff]   ;;  %v3165_v23 = vld [vmem:[%s4468_s1 + $0x540] ss:$8 sps:$4 sm:$0xff]   ;;  %v3173_v25 = vld [vmem:[%s4468_s1 + $0x554] ss:$8 sps:$4 sm:$0xff]  }
  0x25   : > { %2309 = vmatpush1.bf16.msra.mxu0 %v3083_v31  ;;  %2138 = vmatprep.subr.bf16.mxu1 %v3084_v32  ;;  %v3168_v26 = vld [vmem:[%s4468_s1 + $0x150] ss:$8 sps:$4 sm:$0xff]   ;;  %v3176_v28 = vld [vmem:[%s4468_s1 + $0x164] ss:$8 sps:$4 sm:$0xff]   ;;  %v3174_v30 = vld [vmem:[%s4468_s1 + $0x160] ss:$8 sps:$4 sm:$0xff]  }
  0x26   : > { %2310 = vmatprep.subr.bf16.mxu0 %v3086_v33  ;;  %v3171_v27 = vld [vmem:[%s4468_s1 + $0x550] ss:$8 sps:$4 sm:$0xff]   ;;  %v3179_v29 = vld [vmem:[%s4468_s1 + $0x564] ss:$8 sps:$4 sm:$0xff]   ;;  %v3177_v31 = vld [vmem:[%s4468_s1 + $0x560] ss:$8 sps:$4 sm:$0xff]  }
  0x27   : > { %v3182_v32 = vld [vmem:[%s4468_s1 + $0x174] ss:$8 sps:$4 sm:$0xff]   ;;  %v3198_v48 = vld [vmem:[%s4468_s1 + $0x1a0] ss:$8 sps:$4 sm:$0xff]  }
  0x28   : > { %2139 = vmatpush1.bf16.msra.mxu1 %v3088_v34  ;;  %v3185_v33 = vld [vmem:[%s4468_s1 + $0x574] ss:$8 sps:$4 sm:$0xff]  }
  0x29   : > { %2311 = vmatpush1.bf16.msra.mxu0 %v3089_v35  ;;  %2140 = vmatprep.subr.bf16.mxu1 %v3090_v36  ;;  %v3236_v34 = vld [vmem:[%s3702_s17 + $0xc] ss:$72 sps:$4 sm:$0xff]   ;;  %v3180_v35 = vld [vmem:[%s4468_s1 + $0x170] ss:$8 sps:$4 sm:$0xff]  }
  0x2a   : > { %2312 = vmatprep.subr.bf16.mxu0 %v3092_v37  ;;  %v3183_v36 = vld [vmem:[%s4468_s1 + $0x570] ss:$8 sps:$4 sm:$0xff]   ;;  %v3242_v37 = vld [vmem:[%s3702_s17 + $0x2c] ss:$72 sps:$4 sm:$0xff]  }
  0x2b   : > { %v3209_v51 = vld [vmem:[%s4468_s1 + $0x5b4] ss:$8 sps:$4 sm:$0xff]  }
  0x2c   : > { %2141 = vmatpush1.bf16.msra.mxu1 %v3094_v38  ;;  %v3188_v38 = vld [vmem:[%s4468_s1 + $0x184] ss:$8 sps:$4 sm:$0xff]  }
  0x2d   : > { %2313 = vmatpush1.bf16.msra.mxu0 %v3095_v39  ;;  %2142 = vmatprep.subr.bf16.mxu1 %v3096_v40  ;;  %v3191_v39 = vld [vmem:[%s4468_s1 + $0x584] ss:$8 sps:$4 sm:$0xff]   ;;  %v3186_v40 = vld [vmem:[%s4468_s1 + $0x180] ss:$8 sps:$4 sm:$0xff]  }
  0x2e   : > { %2314 = vmatprep.subr.bf16.mxu0 %v3098_v41  ;;  %v3189_v41 = vld [vmem:[%s4468_s1 + $0x580] ss:$8 sps:$4 sm:$0xff]  }
  0x30   : > { %2143 = vmatpush1.bf16.msra.mxu1 %v3100_v42  ;;  %v3194_v42 = vld [vmem:[%s4468_s1 + $0x194] ss:$8 sps:$4 sm:$0xff]  }
  0x31   : > { %2315 = vmatpush1.bf16.msra.mxu0 %v3101_v43  ;;  %2144 = vmatprep.subr.bf16.mxu1 %v3102_v44  ;;  %v3197_v43 = vld [vmem:[%s4468_s1 + $0x594] ss:$8 sps:$4 sm:$0xff]   ;;  %v3192_v44 = vld [vmem:[%s4468_s1 + $0x190] ss:$8 sps:$4 sm:$0xff]  }
  0x32   : > { %2316 = vmatprep.subr.bf16.mxu0 %v3104_v45  ;;  %v3195_v45 = vld [vmem:[%s4468_s1 + $0x590] ss:$8 sps:$4 sm:$0xff]  }
  0x34   : > { %2145 = vmatpush1.bf16.msra.mxu1 %v3106_v46  ;;  %v3200_v46 = vld [vmem:[%s4468_s1 + $0x1a4] ss:$8 sps:$4 sm:$0xff]  }
  0x35   : > { %2317 = vmatpush1.bf16.msra.mxu0 %v3107_v47  ;;  %2146 = vmatprep.subr.bf16.mxu1 %v3108_v49  ;;  %v3203_v47 = vld [vmem:[%s4468_s1 + $0x5a4] ss:$8 sps:$4 sm:$0xff]   ;;  %v3201_v49 = vld [vmem:[%s4468_s1 + $0x5a0] ss:$8 sps:$4 sm:$0xff]  }
  0x36   : > { %2318 = vmatprep.subr.bf16.mxu0 %v3110_v50  ;;  %v3206_v50 = vld [vmem:[%s4468_s1 + $0x1b4] ss:$8 sps:$4 sm:$0xff]  }
  0x38   : > { %2147 = vmatpush1.bf16.msra.mxu1 %v3112_v52  ;;  %v3204_v52 = vld [vmem:[%s4468_s1 + $0x1b0] ss:$8 sps:$4 sm:$0xff]  }
  0x39   : > { %2319 = vmatpush1.bf16.msra.mxu0 %v3113_v53  ;;  %2148 = vmatprep.subr.bf16.mxu1 %v3114_v54  ;;  %v3207_v53 = vld [vmem:[%s4468_s1 + $0x5b0] ss:$8 sps:$4 sm:$0xff]   ;;  %v3212_v54 = vld [vmem:[%s4468_s1 + $0x1c4] ss:$8 sps:$4 sm:$0xff]  }
  0x3a   : > { %2320 = vmatprep.subr.bf16.mxu0 %v3116_v55  ;;  %v3215_v55 = vld [vmem:[%s4468_s1 + $0x5c4] ss:$8 sps:$4 sm:$0xff]  }
  0x3c   : > { %2149 = vmatpush1.bf16.msra.mxu1 %v3118_v56  ;;  %v3210_v56 = vld [vmem:[%s4468_s1 + $0x1c0] ss:$8 sps:$4 sm:$0xff]  }
  0x3d   : > { %2321 = vmatpush1.bf16.msra.mxu0 %v3119_v57  ;;  %2150 = vmatprep.subr.bf16.mxu1 %v3120_v58  ;;  %v3213_v57 = vld [vmem:[%s4468_s1 + $0x5c0] ss:$8 sps:$4 sm:$0xff]   ;;  %v3218_v58 = vld [vmem:[%s4468_s1 + $0x1d4] ss:$8 sps:$4 sm:$0xff]  }
  0x3e   : > { %2322 = vmatprep.subr.bf16.mxu0 %v3122_v59  ;;  %v3221_v59 = vld [vmem:[%s4468_s1 + $0x5d4] ss:$8 sps:$4 sm:$0xff]  }
  0x40   : > { %2151 = vmatpush1.bf16.msra.mxu1 %v3124_v60  ;;  %v3216_v60 = vld [vmem:[%s4468_s1 + $0x1d0] ss:$8 sps:$4 sm:$0xff]  }
  0x41   : > { %2323 = vmatpush1.bf16.msra.mxu0 %v3125_v61  ;;  %2152 = vmatprep.subr.bf16.mxu1 %v3126_v62  ;;  %v3219_v61 = vld [vmem:[%s4468_s1 + $0x5d0] ss:$8 sps:$4 sm:$0xff]   ;;  %v3224_v62 = vld [vmem:[%s4468_s1 + $0x1e4] ss:$8 sps:$4 sm:$0xff]  }
  0x42   : > { %2324 = vmatprep.subr.bf16.mxu0 %v3128_v63  ;;  %v3227_v63 = vld [vmem:[%s4468_s1 + $0x5e4] ss:$8 sps:$4 sm:$0xff]  }
  0x44   : > { %2153 = vmatpush1.bf16.msra.mxu1 %v3130_v0  ;;  %v3222_v0 = vld [vmem:[%s4468_s1 + $0x1e0] ss:$8 sps:$4 sm:$0xff]  }
  0x45   : > { %2325 = vmatpush1.bf16.msra.mxu0 %v3131_v1  ;;  %2165 = vmatprep.subr.bf16.mxu1 %v3137_v2  ;;  %v3225_v1 = vld [vmem:[%s4468_s1 + $0x5e0] ss:$8 sps:$4 sm:$0xff]   ;;  %v3230_v2 = vld [vmem:[%s4468_s1 + $0x1f4] ss:$8 sps:$4 sm:$0xff]  }
  0x46   : > { %2337 = vmatprep.subr.bf16.mxu0 %v3143_v3  ;;  %v3233_v3 = vld [vmem:[%s4468_s1 + $0x5f4] ss:$8 sps:$4 sm:$0xff]  }
  0x47   : > { %2155 = vmatmul.mubr.bf16.vlgmr.msra.gmra.mrb[0].mxu1 %v3132_v4  ;;  %v3228_v4 = vld [vmem:[%s4468_s1 + $0x1f0] ss:$8 sps:$4 sm:$0xff]  }
  0x48   : > { %2327 = vmatmul.mubr.bf16.vlgmr.msra.gmra.mrb[0].mxu0 %v3138_v6  ;;  %2166 = vmatpush1.bf16.msra.mxu1 %v3135_v5  ;;  %v3231_v5 = vld [vmem:[%s4468_s1 + $0x5f0] ss:$8 sps:$4 sm:$0xff]   ;;  %v3239_v6 = vld [vmem:[%s4468_s1 + $0x204] ss:$8 sps:$4 sm:$0xff]  }
  0x49   : > { %2338 = vmatpush1.bf16.msra.mxu0 %v3141_v7  ;;  %2167 = vmatprep.subr.bf16.mxu1 %v3146_v8  ;;  %v3245_v7 = vld [vmem:[%s4468_s1 + $0x604] ss:$8 sps:$4 sm:$0xff]   ;;  %v3234_v8 = vld [vmem:[%s3702_s17 + $0x8] ss:$72 sps:$4 sm:$0xff]  }
  0x4a   : > { %2339 = vmatprep.subr.bf16.mxu0 %v3149_v9  ;;  %2197 = vmatprep.mubr.bf16.mxu1 %v3236_v34  ;;  %v3237_v9 = vld [vmem:[%s4468_s1 + $0x200] ss:$8 sps:$4 sm:$0xff]   ;;  %v3278_v34 = vld [vmem:[%s4468_s1 + $0x264] ss:$8 sps:$4 sm:$0xff]  }
  0x4b   : > { %2369 = vmatprep.mubr.bf16.mxu0 %v3242_v37  ;;  %v3279_v37 = vld [vmem:[%s4468_s1 + $0x660] ss:$8 sps:$4 sm:$0xff]  }
  0x4c   : > { %2168 = vmatpush1.bf16.msra.mxu1 %v3144_v10  ;;  %v3240_v10 = vld [vmem:[%s3702_s17 + $0x28] ss:$72 sps:$4 sm:$0xff]  }
  0x4d   : > { %2340 = vmatpush1.bf16.msra.mxu0 %v3147_v11  ;;  %2169 = vmatprep.subr.bf16.mxu1 %v3152_v12  ;;  %v3243_v11 = vld [vmem:[%s4468_s1 + $0x600] ss:$8 sps:$4 sm:$0xff]   ;;  %v3248_v12 = vld [vmem:[%s4468_s1 + $0x214] ss:$8 sps:$4 sm:$0xff]  }
  0x4e   : > { %2341 = vmatprep.subr.bf16.mxu0 %v3155_v13  ;;  %v3251_v13 = vld [vmem:[%s4468_s1 + $0x614] ss:$8 sps:$4 sm:$0xff]  }
  0x50   : > { %2170 = vmatpush1.bf16.msra.mxu1 %v3150_v14  ;;  %v3246_v14 = vld [vmem:[%s4468_s1 + $0x210] ss:$8 sps:$4 sm:$0xff]  }
  0x51   : > { %2342 = vmatpush1.bf16.msra.mxu0 %v3153_v15  ;;  %2171 = vmatprep.subr.bf16.mxu1 %v3158_v16  ;;  %v3249_v15 = vld [vmem:[%s4468_s1 + $0x610] ss:$8 sps:$4 sm:$0xff]   ;;  %v3254_v16 = vld [vmem:[%s4468_s1 + $0x224] ss:$8 sps:$4 sm:$0xff]  }
  0x52   : > { %2343 = vmatprep.subr.bf16.mxu0 %v3161_v17  ;;  %v3257_v17 = vld [vmem:[%s4468_s1 + $0x624] ss:$8 sps:$4 sm:$0xff]  }
  0x54   : > { %2172 = vmatpush1.bf16.msra.mxu1 %v3156_v18  ;;  %v3252_v18 = vld [vmem:[%s4468_s1 + $0x220] ss:$8 sps:$4 sm:$0xff]  }
  0x55   : > { %2344 = vmatpush1.bf16.msra.mxu0 %v3159_v19  ;;  %2173 = vmatprep.subr.bf16.mxu1 %v3164_v20  ;;  %v3338_v19 = vld [vmem:[%s3702_s17 + $0x14] ss:$72 sps:$4 sm:$0xff]   ;;  %v3255_v20 = vld [vmem:[%s4468_s1 + $0x620] ss:$8 sps:$4 sm:$0xff]  }
  0x56   : > { %2345 = vmatprep.subr.bf16.mxu0 %v3167_v21  ;;  %v3260_v21 = vld [vmem:[%s4468_s1 + $0x234] ss:$8 sps:$4 sm:$0xff]  }
  0x58   : > { %2174 = vmatpush1.bf16.msra.mxu1 %v3162_v22  ;;  %v3263_v22 = vld [vmem:[%s4468_s1 + $0x634] ss:$8 sps:$4 sm:$0xff]  }
  0x59   : > { %2346 = vmatpush1.bf16.msra.mxu0 %v3165_v23  ;;  %2175 = vmatprep.subr.bf16.mxu1 %v3170_v24  ;;  %v3344_v23 = vld [vmem:[%s3702_s17 + $0x34] ss:$72 sps:$4 sm:$0xff]   ;;  %v3258_v24 = vld [vmem:[%s4468_s1 + $0x230] ss:$8 sps:$4 sm:$0xff]  }
  0x5a   : > { %2347 = vmatprep.subr.bf16.mxu0 %v3173_v25  ;;  %v3261_v25 = vld [vmem:[%s4468_s1 + $0x630] ss:$8 sps:$4 sm:$0xff]  }
  0x5c   : > { %2176 = vmatpush1.bf16.msra.mxu1 %v3168_v26  ;;  %v3266_v26 = vld [vmem:[%s4468_s1 + $0x244] ss:$8 sps:$4 sm:$0xff]  }
  0x5d   : > { %2348 = vmatpush1.bf16.msra.mxu0 %v3171_v27  ;;  %2177 = vmatprep.subr.bf16.mxu1 %v3176_v28  ;;  %v3269_v27 = vld [vmem:[%s4468_s1 + $0x644] ss:$8 sps:$4 sm:$0xff]   ;;  %v3264_v28 = vld [vmem:[%s4468_s1 + $0x240] ss:$8 sps:$4 sm:$0xff]  }
  0x5e   : > { %2349 = vmatprep.subr.bf16.mxu0 %v3179_v29  ;;  %v3267_v29 = vld [vmem:[%s4468_s1 + $0x640] ss:$8 sps:$4 sm:$0xff]  }
  0x60   : > { %2178 = vmatpush1.bf16.msra.mxu1 %v3174_v30  ;;  %v3272_v30 = vld [vmem:[%s4468_s1 + $0x254] ss:$8 sps:$4 sm:$0xff]  }
  0x61   : > { %2350 = vmatpush1.bf16.msra.mxu0 %v3177_v31  ;;  %2179 = vmatprep.subr.bf16.mxu1 %v3182_v32  ;;  %v3275_v31 = vld [vmem:[%s4468_s1 + $0x654] ss:$8 sps:$4 sm:$0xff]   ;;  %v3270_v32 = vld [vmem:[%s4468_s1 + $0x250] ss:$8 sps:$4 sm:$0xff]  }
  0x62   : > { %2351 = vmatprep.subr.bf16.mxu0 %v3185_v33  ;;  %v3273_v33 = vld [vmem:[%s4468_s1 + $0x650] ss:$8 sps:$4 sm:$0xff]  }
  0x64   : > { %2180 = vmatpush1.bf16.msra.mxu1 %v3180_v35  ;;  %v3281_v35 = vld [vmem:[%s4468_s1 + $0x664] ss:$8 sps:$4 sm:$0xff]  }
  0x65   : > { %2352 = vmatpush1.bf16.msra.mxu0 %v3183_v36  ;;  %2181 = vmatprep.subr.bf16.mxu1 %v3188_v38  ;;  %v3276_v36 = vld [vmem:[%s4468_s1 + $0x260] ss:$8 sps:$4 sm:$0xff]   ;;  %v3284_v38 = vld [vmem:[%s4468_s1 + $0x274] ss:$8 sps:$4 sm:$0xff]  }
  0x66   : > { %2353 = vmatprep.subr.bf16.mxu0 %v3191_v39  ;;  %v3287_v39 = vld [vmem:[%s4468_s1 + $0x674] ss:$8 sps:$4 sm:$0xff]  }
  0x68   : > { %2182 = vmatpush1.bf16.msra.mxu1 %v3186_v40  ;;  %v3282_v40 = vld [vmem:[%s4468_s1 + $0x270] ss:$8 sps:$4 sm:$0xff]  }
  0x69   : > { %2354 = vmatpush1.bf16.msra.mxu0 %v3189_v41  ;;  %2183 = vmatprep.subr.bf16.mxu1 %v3194_v42  ;;  %v3285_v41 = vld [vmem:[%s4468_s1 + $0x670] ss:$8 sps:$4 sm:$0xff]   ;;  %v3290_v42 = vld [vmem:[%s4468_s1 + $0x284] ss:$8 sps:$4 sm:$0xff]  }
  0x6a   : > { %2355 = vmatprep.subr.bf16.mxu0 %v3197_v43  ;;  %v3293_v43 = vld [vmem:[%s4468_s1 + $0x684] ss:$8 sps:$4 sm:$0xff]  }
  0x6c   : > { %2184 = vmatpush1.bf16.msra.mxu1 %v3192_v44  ;;  %v3288_v44 = vld [vmem:[%s4468_s1 + $0x280] ss:$8 sps:$4 sm:$0xff]  }
  0x6d   : > { %2356 = vmatpush1.bf16.msra.mxu0 %v3195_v45  ;;  %2185 = vmatprep.subr.bf16.mxu1 %v3200_v46  ;;  %v3291_v45 = vld [vmem:[%s4468_s1 + $0x680] ss:$8 sps:$4 sm:$0xff]   ;;  %v3296_v46 = vld [vmem:[%s4468_s1 + $0x294] ss:$8 sps:$4 sm:$0xff]  }
  0x6e   : > { %2357 = vmatprep.subr.bf16.mxu0 %v3203_v47  ;;  %v3299_v47 = vld [vmem:[%s4468_s1 + $0x694] ss:$8 sps:$4 sm:$0xff]  }
  0x70   : > { %2186 = vmatpush1.bf16.msra.mxu1 %v3198_v48  ;;  %v3294_v48 = vld [vmem:[%s4468_s1 + $0x290] ss:$8 sps:$4 sm:$0xff]  }
  0x71   : > { %2358 = vmatpush1.bf16.msra.mxu0 %v3201_v49  ;;  %2187 = vmatprep.subr.bf16.mxu1 %v3206_v50  ;;  %v3297_v49 = vld [vmem:[%s4468_s1 + $0x690] ss:$8 sps:$4 sm:$0xff]   ;;  %v3302_v50 = vld [vmem:[%s4468_s1 + $0x2a4] ss:$8 sps:$4 sm:$0xff]  }
  0x72   : > { %2359 = vmatprep.subr.bf16.mxu0 %v3209_v51  ;;  %v3305_v51 = vld [vmem:[%s4468_s1 + $0x6a4] ss:$8 sps:$4 sm:$0xff]  }
  0x74   : > { %2188 = vmatpush1.bf16.msra.mxu1 %v3204_v52  ;;  %v3300_v52 = vld [vmem:[%s4468_s1 + $0x2a0] ss:$8 sps:$4 sm:$0xff]  }
  0x75   : > { %2360 = vmatpush1.bf16.msra.mxu0 %v3207_v53  ;;  %2189 = vmatprep.subr.bf16.mxu1 %v3212_v54  ;;  %v3303_v53 = vld [vmem:[%s4468_s1 + $0x6a0] ss:$8 sps:$4 sm:$0xff]   ;;  %v3308_v54 = vld [vmem:[%s4468_s1 + $0x2b4] ss:$8 sps:$4 sm:$0xff]  }
  0x76   : > { %2361 = vmatprep.subr.bf16.mxu0 %v3215_v55  ;;  %v3311_v55 = vld [vmem:[%s4468_s1 + $0x6b4] ss:$8 sps:$4 sm:$0xff]  }
  0x78   : > { %2190 = vmatpush1.bf16.msra.mxu1 %v3210_v56  ;;  %v3306_v56 = vld [vmem:[%s4468_s1 + $0x2b0] ss:$8 sps:$4 sm:$0xff]  }
  0x79   : > { %2362 = vmatpush1.bf16.msra.mxu0 %v3213_v57  ;;  %2191 = vmatprep.subr.bf16.mxu1 %v3218_v58  ;;  %v3309_v57 = vld [vmem:[%s4468_s1 + $0x6b0] ss:$8 sps:$4 sm:$0xff]   ;;  %v3314_v58 = vld [vmem:[%s4468_s1 + $0x2c4] ss:$8 sps:$4 sm:$0xff]  }
  0x7a   : > { %2363 = vmatprep.subr.bf16.mxu0 %v3221_v59  ;;  %v3317_v59 = vld [vmem:[%s4468_s1 + $0x6c4] ss:$8 sps:$4 sm:$0xff]  }
  0x7c   : > { %2192 = vmatpush1.bf16.msra.mxu1 %v3216_v60  ;;  %v3312_v60 = vld [vmem:[%s4468_s1 + $0x2c0] ss:$8 sps:$4 sm:$0xff]  }
  0x7d   : > { %2364 = vmatpush1.bf16.msra.mxu0 %v3219_v61  ;;  %2193 = vmatprep.subr.bf16.mxu1 %v3224_v62  ;;  %v3315_v61 = vld [vmem:[%s4468_s1 + $0x6c0] ss:$8 sps:$4 sm:$0xff]   ;;  %v3320_v62 = vld [vmem:[%s4468_s1 + $0x2d4] ss:$8 sps:$4 sm:$0xff]  }
  0x7e   : > { %2365 = vmatprep.subr.bf16.mxu0 %v3227_v63  ;;  %v3323_v63 = vld [vmem:[%s4468_s1 + $0x6d4] ss:$8 sps:$4 sm:$0xff]  }
  0x80   : > { %2194 = vmatpush1.bf16.msra.mxu1 %v3222_v0  ;;  %v3318_v0 = vld [vmem:[%s4468_s1 + $0x2d0] ss:$8 sps:$4 sm:$0xff]  }
  0x81   : > { %2366 = vmatpush1.bf16.msra.mxu0 %v3225_v1  ;;  %2195 = vmatprep.subr.bf16.mxu1 %v3230_v2  ;;  %v3321_v1 = vld [vmem:[%s4468_s1 + $0x6d0] ss:$8 sps:$4 sm:$0xff]   ;;  %v3326_v2 = vld [vmem:[%s4468_s1 + $0x2e4] ss:$8 sps:$4 sm:$0xff]  }
  0x82   : > { %2367 = vmatprep.subr.bf16.mxu0 %v3233_v3  ;;  %v3329_v3 = vld [vmem:[%s4468_s1 + $0x6e4] ss:$8 sps:$4 sm:$0xff]  }
  0x84   : > { %2196 = vmatpush1.bf16.msra.mxu1 %v3228_v4  ;;  %v3324_v4 = vld [vmem:[%s4468_s1 + $0x2e0] ss:$8 sps:$4 sm:$0xff]  }
  0x85   : > { %2368 = vmatpush1.bf16.msra.mxu0 %v3231_v5  ;;  %2208 = vmatprep.subr.bf16.mxu1 %v3239_v6  ;;  %v3327_v5 = vld [vmem:[%s4468_s1 + $0x6e0] ss:$8 sps:$4 sm:$0xff]   ;;  %v3332_v6 = vld [vmem:[%s4468_s1 + $0x2f4] ss:$8 sps:$4 sm:$0xff]  }
  0x86   : > { %2380 = vmatprep.subr.bf16.mxu0 %v3245_v7  ;;  %v3335_v7 = vld [vmem:[%s4468_s1 + $0x6f4] ss:$8 sps:$4 sm:$0xff]  }
  0x87   : > { %2198 = vmatmul.mubr.bf16.vlgmr.msra.gmra.mrb[0].mxu1 %v3234_v8  ;;  %v3330_v8 = vld [vmem:[%s4468_s1 + $0x2f0] ss:$8 sps:$4 sm:$0xff]  }
  0x88   : > { %2370 = vmatmul.mubr.bf16.vlgmr.msra.gmra.mrb[0].mxu0 %v3240_v10  ;;  %2209 = vmatpush1.bf16.msra.mxu1 %v3237_v9  ;;  %v3333_v9 = vld [vmem:[%s4468_s1 + $0x6f0] ss:$8 sps:$4 sm:$0xff]   ;;  %v3341_v10 = vld [vmem:[%s4468_s1 + $0x304] ss:$8 sps:$4 sm:$0xff]  }
  0x89   : > { %2381 = vmatpush1.bf16.msra.mxu0 %v3243_v11  ;;  %2210 = vmatprep.subr.bf16.mxu1 %v3248_v12  ;;  %v3347_v11 = vld [vmem:[%s4468_s1 + $0x704] ss:$8 sps:$4 sm:$0xff]   ;;  %v3336_v12 = vld [vmem:[%s3702_s17 + $0x10] ss:$72 sps:$4 sm:$0xff]  }
  0x8a   : > { %2382 = vmatprep.subr.bf16.mxu0 %v3251_v13  ;;  %2240 = vmatprep.mubr.bf16.mxu1 %v3338_v19  ;;  %v3339_v13 = vld [vmem:[%s4468_s1 + $0x300] ss:$8 sps:$4 sm:$0xff]   ;;  %v3443_v19 = vld [vmem:[%s3702_s17 + $0x3c] ss:$72 sps:$4 sm:$0xff]  }
  0x8b   : > { %2412 = vmatprep.mubr.bf16.mxu0 %v3344_v23  ;;  %v3359_v23 = vld [vmem:[%s4468_s1 + $0x724] ss:$8 sps:$4 sm:$0xff]  }
  0x8c   : > { %2211 = vmatpush1.bf16.msra.mxu1 %v3246_v14  ;;  %v3342_v14 = vld [vmem:[%s3702_s17 + $0x30] ss:$72 sps:$4 sm:$0xff]  }
  0x8d   : > { %2383 = vmatpush1.bf16.msra.mxu0 %v3249_v15  ;;  %2212 = vmatprep.subr.bf16.mxu1 %v3254_v16  ;;  %v3345_v15 = vld [vmem:[%s4468_s1 + $0x700] ss:$8 sps:$4 sm:$0xff]   ;;  %v3350_v16 = vld [vmem:[%s4468_s1 + $0x314] ss:$8 sps:$4 sm:$0xff]  }
  0x8e   : > { %2384 = vmatprep.subr.bf16.mxu0 %v3257_v17  ;;  %v3353_v17 = vld [vmem:[%s4468_s1 + $0x714] ss:$8 sps:$4 sm:$0xff]  }
  0x90   : > { %2213 = vmatpush1.bf16.msra.mxu1 %v3252_v18  ;;  %v3440_v18 = vld [vmem:[%s3702_s17 + $0x1c] ss:$72 sps:$4 sm:$0xff]  }
  0x91   : > { %2385 = vmatpush1.bf16.msra.mxu0 %v3255_v20  ;;  %2214 = vmatprep.subr.bf16.mxu1 %v3260_v21  ;;  %v3348_v20 = vld [vmem:[%s4468_s1 + $0x310] ss:$8 sps:$4 sm:$0xff]  }
  0x92   : > { %2386 = vmatprep.subr.bf16.mxu0 %v3263_v22  ;;  %v3351_v21 = vld [vmem:[%s4468_s1 + $0x710] ss:$8 sps:$4 sm:$0xff]   ;;  %v3356_v22 = vld [vmem:[%s4468_s1 + $0x324] ss:$8 sps:$4 sm:$0xff]  }
  0x94   : > { %2215 = vmatpush1.bf16.msra.mxu1 %v3258_v24  ;;  %v3354_v24 = vld [vmem:[%s4468_s1 + $0x320] ss:$8 sps:$4 sm:$0xff]  }
  0x95   : > { %2387 = vmatpush1.bf16.msra.mxu0 %v3261_v25  ;;  %2216 = vmatprep.subr.bf16.mxu1 %v3266_v26  ;;  %v3357_v25 = vld [vmem:[%s4468_s1 + $0x720] ss:$8 sps:$4 sm:$0xff]   ;;  %v3362_v26 = vld [vmem:[%s4468_s1 + $0x334] ss:$8 sps:$4 sm:$0xff]  }
  0x96   : > { %2388 = vmatprep.subr.bf16.mxu0 %v3269_v27  ;;  %v3365_v27 = vld [vmem:[%s4468_s1 + $0x734] ss:$8 sps:$4 sm:$0xff]  }
  0x98   : > { %2217 = vmatpush1.bf16.msra.mxu1 %v3264_v28  ;;  %v3360_v28 = vld [vmem:[%s4468_s1 + $0x330] ss:$8 sps:$4 sm:$0xff]  }
  0x99   : > { %2389 = vmatpush1.bf16.msra.mxu0 %v3267_v29  ;;  %2218 = vmatprep.subr.bf16.mxu1 %v3272_v30  ;;  %v3363_v29 = vld [vmem:[%s4468_s1 + $0x730] ss:$8 sps:$4 sm:$0xff]   ;;  %v3368_v30 = vld [vmem:[%s4468_s1 + $0x344] ss:$8 sps:$4 sm:$0xff]  }
  0x9a   : > { %2390 = vmatprep.subr.bf16.mxu0 %v3275_v31  ;;  %v3371_v31 = vld [vmem:[%s4468_s1 + $0x744] ss:$8 sps:$4 sm:$0xff]  }
  0x9c   : > { %2219 = vmatpush1.bf16.msra.mxu1 %v3270_v32  ;;  %v3366_v32 = vld [vmem:[%s4468_s1 + $0x340] ss:$8 sps:$4 sm:$0xff]  }
  0x9d   : > { %2391 = vmatpush1.bf16.msra.mxu0 %v3273_v33  ;;  %2220 = vmatprep.subr.bf16.mxu1 %v3278_v34  ;;  %v3369_v33 = vld [vmem:[%s4468_s1 + $0x740] ss:$8 sps:$4 sm:$0xff]   ;;  %v3374_v34 = vld [vmem:[%s4468_s1 + $0x354] ss:$8 sps:$4 sm:$0xff]  }
  0x9e   : > { %2392 = vmatprep.subr.bf16.mxu0 %v3281_v35  ;;  %v3377_v35 = vld [vmem:[%s4468_s1 + $0x754] ss:$8 sps:$4 sm:$0xff]  }
  0xa0   : > { %2221 = vmatpush1.bf16.msra.mxu1 %v3276_v36  ;;  %v3372_v36 = vld [vmem:[%s4468_s1 + $0x350] ss:$8 sps:$4 sm:$0xff]  }
  0xa1   : > { %2393 = vmatpush1.bf16.msra.mxu0 %v3279_v37  ;;  %2222 = vmatprep.subr.bf16.mxu1 %v3284_v38  ;;  %v3375_v37 = vld [vmem:[%s4468_s1 + $0x750] ss:$8 sps:$4 sm:$0xff]   ;;  %v3380_v38 = vld [vmem:[%s4468_s1 + $0x364] ss:$8 sps:$4 sm:$0xff]  }
  0xa2   : > { %2394 = vmatprep.subr.bf16.mxu0 %v3287_v39  ;;  %v3383_v39 = vld [vmem:[%s4468_s1 + $0x764] ss:$8 sps:$4 sm:$0xff]  }
  0xa4   : > { %2223 = vmatpush1.bf16.msra.mxu1 %v3282_v40  ;;  %v3378_v40 = vld [vmem:[%s4468_s1 + $0x360] ss:$8 sps:$4 sm:$0xff]  }
  0xa5   : > { %2395 = vmatpush1.bf16.msra.mxu0 %v3285_v41  ;;  %2224 = vmatprep.subr.bf16.mxu1 %v3290_v42  ;;  %v3381_v41 = vld [vmem:[%s4468_s1 + $0x760] ss:$8 sps:$4 sm:$0xff]   ;;  %v3386_v42 = vld [vmem:[%s4468_s1 + $0x374] ss:$8 sps:$4 sm:$0xff]  }
  0xa6   : > { %2396 = vmatprep.subr.bf16.mxu0 %v3293_v43  ;;  %v3389_v43 = vld [vmem:[%s4468_s1 + $0x774] ss:$8 sps:$4 sm:$0xff]  }
  0xa8   : > { %2225 = vmatpush1.bf16.msra.mxu1 %v3288_v44  ;;  %v3384_v44 = vld [vmem:[%s4468_s1 + $0x370] ss:$8 sps:$4 sm:$0xff]  }
  0xa9   : > { %2397 = vmatpush1.bf16.msra.mxu0 %v3291_v45  ;;  %2226 = vmatprep.subr.bf16.mxu1 %v3296_v46  ;;  %v3387_v45 = vld [vmem:[%s4468_s1 + $0x770] ss:$8 sps:$4 sm:$0xff]   ;;  %v3392_v46 = vld [vmem:[%s4468_s1 + $0x384] ss:$8 sps:$4 sm:$0xff]  }
  0xaa   : > { %2398 = vmatprep.subr.bf16.mxu0 %v3299_v47  ;;  %v3395_v47 = vld [vmem:[%s4468_s1 + $0x784] ss:$8 sps:$4 sm:$0xff]  }
  0xac   : > { %2227 = vmatpush1.bf16.msra.mxu1 %v3294_v48  ;;  %v3390_v48 = vld [vmem:[%s4468_s1 + $0x380] ss:$8 sps:$4 sm:$0xff]  }
  0xad   : > { %2399 = vmatpush1.bf16.msra.mxu0 %v3297_v49  ;;  %2228 = vmatprep.subr.bf16.mxu1 %v3302_v50  ;;  %v3393_v49 = vld [vmem:[%s4468_s1 + $0x780] ss:$8 sps:$4 sm:$0xff]   ;;  %v3398_v50 = vld [vmem:[%s4468_s1 + $0x394] ss:$8 sps:$4 sm:$0xff]  }
  0xae   : > { %2400 = vmatprep.subr.bf16.mxu0 %v3305_v51  ;;  %v3401_v51 = vld [vmem:[%s4468_s1 + $0x794] ss:$8 sps:$4 sm:$0xff]  }
  0xb0   : > { %2229 = vmatpush1.bf16.msra.mxu1 %v3300_v52  ;;  %v3396_v52 = vld [vmem:[%s4468_s1 + $0x390] ss:$8 sps:$4 sm:$0xff]  }
  0xb1   : > { %2401 = vmatpush1.bf16.msra.mxu0 %v3303_v53  ;;  %2230 = vmatprep.subr.bf16.mxu1 %v3308_v54  ;;  %v3399_v53 = vld [vmem:[%s4468_s1 + $0x790] ss:$8 sps:$4 sm:$0xff]   ;;  %v3404_v54 = vld [vmem:[%s4468_s1 + $0x3a4] ss:$8 sps:$4 sm:$0xff]  }
  0xb2   : > { %2402 = vmatprep.subr.bf16.mxu0 %v3311_v55  ;;  %v3407_v55 = vld [vmem:[%s4468_s1 + $0x7a4] ss:$8 sps:$4 sm:$0xff]  }
  0xb4   : > { %2231 = vmatpush1.bf16.msra.mxu1 %v3306_v56  ;;  %v3402_v56 = vld [vmem:[%s4468_s1 + $0x3a0] ss:$8 sps:$4 sm:$0xff]  }
  0xb5   : > { %2403 = vmatpush1.bf16.msra.mxu0 %v3309_v57  ;;  %2232 = vmatprep.subr.bf16.mxu1 %v3314_v58  ;;  %v3405_v57 = vld [vmem:[%s4468_s1 + $0x7a0] ss:$8 sps:$4 sm:$0xff]   ;;  %v3410_v58 = vld [vmem:[%s4468_s1 + $0x3b4] ss:$8 sps:$4 sm:$0xff]  }
  0xb6   : > { %2404 = vmatprep.subr.bf16.mxu0 %v3317_v59  ;;  %v3413_v59 = vld [vmem:[%s4468_s1 + $0x7b4] ss:$8 sps:$4 sm:$0xff]  }
  0xb8   : > { %2233 = vmatpush1.bf16.msra.mxu1 %v3312_v60  ;;  %v3408_v60 = vld [vmem:[%s4468_s1 + $0x3b0] ss:$8 sps:$4 sm:$0xff]  }
  0xb9   : > { %2405 = vmatpush1.bf16.msra.mxu0 %v3315_v61  ;;  %2234 = vmatprep.subr.bf16.mxu1 %v3320_v62  ;;  %v3411_v61 = vld [vmem:[%s4468_s1 + $0x7b0] ss:$8 sps:$4 sm:$0xff]   ;;  %v3416_v62 = vld [vmem:[%s4468_s1 + $0x3c4] ss:$8 sps:$4 sm:$0xff]  }
  0xba   : > { %2406 = vmatprep.subr.bf16.mxu0 %v3323_v63  ;;  %v3419_v63 = vld [vmem:[%s4468_s1 + $0x7c4] ss:$8 sps:$4 sm:$0xff]  }
  0xbc   : > { %2235 = vmatpush1.bf16.msra.mxu1 %v3318_v0  ;;  %v3414_v0 = vld [vmem:[%s4468_s1 + $0x3c0] ss:$8 sps:$4 sm:$0xff]  }
  0xbd   : > { %2407 = vmatpush1.bf16.msra.mxu0 %v3321_v1  ;;  %2236 = vmatprep.subr.bf16.mxu1 %v3326_v2  ;;  %v3417_v1 = vld [vmem:[%s4468_s1 + $0x7c0] ss:$8 sps:$4 sm:$0xff]   ;;  %v3422_v2 = vld [vmem:[%s4468_s1 + $0x3d4] ss:$8 sps:$4 sm:$0xff]  }
  0xbe   : > { %2408 = vmatprep.subr.bf16.mxu0 %v3329_v3  ;;  %v3425_v3 = vld [vmem:[%s4468_s1 + $0x7d4] ss:$8 sps:$4 sm:$0xff]  }
  0xc0   : > { %2237 = vmatpush1.bf16.msra.mxu1 %v3324_v4  ;;  %v3420_v4 = vld [vmem:[%s4468_s1 + $0x3d0] ss:$8 sps:$4 sm:$0xff]  }
  0xc1   : > { %2409 = vmatpush1.bf16.msra.mxu0 %v3327_v5  ;;  %2238 = vmatprep.subr.bf16.mxu1 %v3332_v6  ;;  %v3423_v5 = vld [vmem:[%s4468_s1 + $0x7d0] ss:$8 sps:$4 sm:$0xff]   ;;  %v3428_v6 = vld [vmem:[%s4468_s1 + $0x3e4] ss:$8 sps:$4 sm:$0xff]  }
  0xc2   : > { %2410 = vmatprep.subr.bf16.mxu0 %v3335_v7  ;;  %v3431_v7 = vld [vmem:[%s4468_s1 + $0x7e4] ss:$8 sps:$4 sm:$0xff]  }
  0xc4   : > { %2239 = vmatpush1.bf16.msra.mxu1 %v3330_v8  ;;  %v3426_v8 = vld [vmem:[%s4468_s1 + $0x3e0] ss:$8 sps:$4 sm:$0xff]  }
  0xc5   : > { %2411 = vmatpush1.bf16.msra.mxu0 %v3333_v9  ;;  %2251 = vmatprep.subr.bf16.mxu1 %v3341_v10  ;;  %v3429_v9 = vld [vmem:[%s4468_s1 + $0x7e0] ss:$8 sps:$4 sm:$0xff]   ;;  %v3434_v10 = vld [vmem:[%s4468_s1 + $0x3f4] ss:$8 sps:$4 sm:$0xff]  }
  0xc6   : > { %2423 = vmatprep.subr.bf16.mxu0 %v3347_v11  ;;  %v3437_v11 = vld [vmem:[%s4468_s1 + $0x7f4] ss:$8 sps:$4 sm:$0xff]  }
  0xc7   : > { %2241 = vmatmul.mubr.bf16.vlgmr.msra.gmra.mrb[0].mxu1 %v3336_v12  ;;  %v3432_v12 = vld [vmem:[%s4468_s1 + $0x3f0] ss:$8 sps:$4 sm:$0xff]  }
  0xc8   : > { %2413 = vmatmul.mubr.bf16.vlgmr.msra.gmra.mrb[0].mxu0 %v3342_v14  ;;  %2252 = vmatpush1.bf16.msra.mxu1 %v3339_v13  ;;  %v3435_v13 = vld [vmem:[%s4468_s1 + $0x7f0] ss:$8 sps:$4 sm:$0xff]   ;;  %v3446_v14 = vld [vmem:[%s4468_s1 + $0x804] ss:$8 sps:$4 sm:$0xff]  }
  0xc9   : > { %2424 = vmatpush1.bf16.msra.mxu0 %v3345_v15  ;;  %2253 = vmatprep.subr.bf16.mxu1 %v3350_v16  ;;  %v3438_v15 = vld [vmem:[%s3702_s17 + $0x18] ss:$72 sps:$4 sm:$0xff]  }
  0xca   : > { %2425 = vmatprep.subr.bf16.mxu0 %v3353_v17  ;;  %2283 = vmatprep.mubr.bf16.mxu1 %v3440_v18  ;;  %v3441_v16 = vld [vmem:[%s3702_s17 + $0x38] ss:$72 sps:$4 sm:$0xff]   ;;  %v3494_v18 = vld [vmem:[%s3702_s17 + $0x44] ss:$72 sps:$4 sm:$0xff]  }
  0xcb   : > { %2455 = vmatprep.mubr.bf16.mxu0 %v3443_v19  ;;  %v3444_v17 = vld [vmem:[%s4468_s1 + $0x800] ss:$8 sps:$4 sm:$0xff]   ;;  %v3449_v19 = vld [vmem:[%s4468_s1 + $0x814] ss:$8 sps:$4 sm:$0xff]  }
  0xcc   : > { %2254 = vmatpush1.bf16.msra.mxu1 %v3348_v20  ;;  %v3447_v20 = vld [vmem:[%s4468_s1 + $0x810] ss:$8 sps:$4 sm:$0xff]  }
  0xcd   : > { %2426 = vmatpush1.bf16.msra.mxu0 %v3351_v21  ;;  %2255 = vmatprep.subr.bf16.mxu1 %v3356_v22  ;;  %v3452_v21 = vld [vmem:[%s4468_s1 + $0x824] ss:$8 sps:$4 sm:$0xff]   ;;  %v3450_v22 = vld [vmem:[%s4468_s1 + $0x820] ss:$8 sps:$4 sm:$0xff]  }
  0xce   : > { %2427 = vmatprep.subr.bf16.mxu0 %v3359_v23  ;;  %v3455_v23 = vld [vmem:[%s4468_s1 + $0x834] ss:$8 sps:$4 sm:$0xff]  }
  0xd0   : > { %2256 = vmatpush1.bf16.msra.mxu1 %v3354_v24  ;;  %v3453_v24 = vld [vmem:[%s4468_s1 + $0x830] ss:$8 sps:$4 sm:$0xff]  }
  0xd1   : > { %2428 = vmatpush1.bf16.msra.mxu0 %v3357_v25  ;;  %2257 = vmatprep.subr.bf16.mxu1 %v3362_v26  ;;  %v3458_v25 = vld [vmem:[%s4468_s1 + $0x844] ss:$8 sps:$4 sm:$0xff]   ;;  %v3456_v26 = vld [vmem:[%s4468_s1 + $0x840] ss:$8 sps:$4 sm:$0xff]  }
  0xd2   : > { %2429 = vmatprep.subr.bf16.mxu0 %v3365_v27  ;;  %v3461_v27 = vld [vmem:[%s4468_s1 + $0x854] ss:$8 sps:$4 sm:$0xff]  }
  0xd4   : > { %2258 = vmatpush1.bf16.msra.mxu1 %v3360_v28  ;;  %v3459_v28 = vld [vmem:[%s4468_s1 + $0x850] ss:$8 sps:$4 sm:$0xff]  }
  0xd5   : > { %2430 = vmatpush1.bf16.msra.mxu0 %v3363_v29  ;;  %2259 = vmatprep.subr.bf16.mxu1 %v3368_v30  ;;  %v3464_v29 = vld [vmem:[%s4468_s1 + $0x864] ss:$8 sps:$4 sm:$0xff]   ;;  %v3462_v30 = vld [vmem:[%s4468_s1 + $0x860] ss:$8 sps:$4 sm:$0xff]  }
  0xd6   : > { %2431 = vmatprep.subr.bf16.mxu0 %v3371_v31  ;;  %v3467_v31 = vld [vmem:[%s4468_s1 + $0x874] ss:$8 sps:$4 sm:$0xff]  }
  0xd8   : > { %2260 = vmatpush1.bf16.msra.mxu1 %v3366_v32  ;;  %v3465_v32 = vld [vmem:[%s4468_s1 + $0x870] ss:$8 sps:$4 sm:$0xff]  }
  0xd9   : > { %2432 = vmatpush1.bf16.msra.mxu0 %v3369_v33  ;;  %2261 = vmatprep.subr.bf16.mxu1 %v3374_v34  ;;  %v3470_v33 = vld [vmem:[%s4468_s1 + $0x884] ss:$8 sps:$4 sm:$0xff]   ;;  %v3468_v34 = vld [vmem:[%s4468_s1 + $0x880] ss:$8 sps:$4 sm:$0xff]  }
  0xda   : > { %2433 = vmatprep.subr.bf16.mxu0 %v3377_v35  ;;  %v3473_v35 = vld [vmem:[%s4468_s1 + $0x894] ss:$8 sps:$4 sm:$0xff]  }
  0xdc   : > { %2262 = vmatpush1.bf16.msra.mxu1 %v3372_v36  ;;  %v3471_v36 = vld [vmem:[%s4468_s1 + $0x890] ss:$8 sps:$4 sm:$0xff]  }
  0xdd   : > { %2434 = vmatpush1.bf16.msra.mxu0 %v3375_v37  ;;  %2263 = vmatprep.subr.bf16.mxu1 %v3380_v38  ;;  %v3476_v37 = vld [vmem:[%s4468_s1 + $0x8a4] ss:$8 sps:$4 sm:$0xff]   ;;  %v3474_v38 = vld [vmem:[%s4468_s1 + $0x8a0] ss:$8 sps:$4 sm:$0xff]  }
  0xde   : > { %2435 = vmatprep.subr.bf16.mxu0 %v3383_v39  ;;  %v3479_v39 = vld [vmem:[%s4468_s1 + $0x8b4] ss:$8 sps:$4 sm:$0xff]  }
  0xe0   : > { %2264 = vmatpush1.bf16.msra.mxu1 %v3378_v40  ;;  %v3477_v40 = vld [vmem:[%s4468_s1 + $0x8b0] ss:$8 sps:$4 sm:$0xff]  }
  0xe1   : > { %2436 = vmatpush1.bf16.msra.mxu0 %v3381_v41  ;;  %2265 = vmatprep.subr.bf16.mxu1 %v3386_v42  ;;  %v3482_v41 = vld [vmem:[%s4468_s1 + $0x8c4] ss:$8 sps:$4 sm:$0xff]   ;;  %v3480_v42 = vld [vmem:[%s4468_s1 + $0x8c0] ss:$8 sps:$4 sm:$0xff]  }
  0xe2   : > { %2437 = vmatprep.subr.bf16.mxu0 %v3389_v43  ;;  %v3485_v43 = vld [vmem:[%s4468_s1 + $0x8d4] ss:$8 sps:$4 sm:$0xff]  }
  0xe4   : > { %2266 = vmatpush1.bf16.msra.mxu1 %v3384_v44  ;;  %v3483_v44 = vld [vmem:[%s4468_s1 + $0x8d0] ss:$8 sps:$4 sm:$0xff]  }
  0xe5   : > { %2438 = vmatpush1.bf16.msra.mxu0 %v3387_v45  ;;  %2267 = vmatprep.subr.bf16.mxu1 %v3392_v46  ;;  %v3488_v45 = vld [vmem:[%s4468_s1 + $0x8e4] ss:$8 sps:$4 sm:$0xff]   ;;  %v3486_v46 = vld [vmem:[%s4468_s1 + $0x8e0] ss:$8 sps:$4 sm:$0xff]  }
  0xe6   : > { %2439 = vmatprep.subr.bf16.mxu0 %v3395_v47  ;;  %v3491_v47 = vld [vmem:[%s4468_s1 + $0x8f4] ss:$8 sps:$4 sm:$0xff]  }
  0xe8   : > { %2268 = vmatpush1.bf16.msra.mxu1 %v3390_v48  ;;  %v3489_v48 = vld [vmem:[%s4468_s1 + $0x8f0] ss:$8 sps:$4 sm:$0xff]  }
  0xe9   : > { %2440 = vmatpush1.bf16.msra.mxu0 %v3393_v49  ;;  %2269 = vmatprep.subr.bf16.mxu1 %v3398_v50  ;;  %v3492_v49 = vld [vmem:[%s3702_s17 + $0x40] ss:$72 sps:$4 sm:$0xff]  }
  0xea   : > { %2441 = vmatprep.subr.bf16.mxu0 %v3401_v51 }
  0xec   : > { %2270 = vmatpush1.bf16.msra.mxu1 %v3396_v52 }
  0xed   : > { %2442 = vmatpush1.bf16.msra.mxu0 %v3399_v53  ;;  %2271 = vmatprep.subr.bf16.mxu1 %v3404_v54  ;;  %v582_v54 = vlaneseq }
  0xee   : > { %2443 = vmatprep.subr.bf16.mxu0 %v3407_v55 }
  0xef   : > { %v583_v55 = vshrl.u32 %v582_v54, 7 }
  0xf0   : > { %2272 = vmatpush1.bf16.msra.mxu1 %v3402_v56 }
  0xf1   : > { %2444 = vmatpush1.bf16.msra.mxu0 %v3405_v57  ;;  %2273 = vmatprep.subr.bf16.mxu1 %v3410_v58  ;;  %v584_v56 = vsub.s32 0, %v583_v55  ;;  %v580_v57 = vld [vmem:[%s4469_s2] sm:$0x3]  ;;  %v588_v58 = vsub.s32 1, %v583_v55 }
  0xf2   : > { %2445 = vmatprep.subr.bf16.mxu0 %v3413_v59 }
  0xf3   : > { %v585_v59 = vrot.slane %v580_v57, %v584_v56 }
  0xf4   : > { %2274 = vmatpush1.bf16.msra.mxu1 %v3408_v60  ;;  %v589_v60 = vrot.slane %v580_v57, %v588_v58 }
  0xf5   : > { %2446 = vmatpush1.bf16.msra.mxu0 %v3411_v61  ;;  %2275 = vmatprep.subr.bf16.mxu1 %v3416_v62 }
  0xf6   : > { %2447 = vmatprep.subr.bf16.mxu0 %v3419_v63 }
  0xf8   : > { %2276 = vmatpush1.bf16.msra.mxu1 %v3414_v0 }
  0xf9   : > { %2448 = vmatpush1.bf16.msra.mxu0 %v3417_v1  ;;  %2277 = vmatprep.subr.bf16.mxu1 %v3422_v2 }
  0xfa   : > { %2449 = vmatprep.subr.bf16.mxu0 %v3425_v3 }
  0xfc   : > { %2278 = vmatpush1.bf16.msra.mxu1 %v3420_v4 }
  0xfd   : > { %2450 = vmatpush1.bf16.msra.mxu0 %v3423_v5  ;;  %2279 = vmatprep.subr.bf16.mxu1 %v3428_v6 }
  0xfe   : > { %2451 = vmatprep.subr.bf16.mxu0 %v3431_v7 }
 0x100   : > { %2280 = vmatpush1.bf16.msra.mxu1 %v3426_v8 }
 0x101   : > { %2452 = vmatpush1.bf16.msra.mxu0 %v3429_v9  ;;  %2281 = vmatprep.subr.bf16.mxu1 %v3434_v10 }
 0x102   : > { %2453 = vmatprep.subr.bf16.mxu0 %v3437_v11 }
 0x104   : > { %2282 = vmatpush1.bf16.msra.mxu1 %v3432_v12 }
 0x105   : > { %2454 = vmatpush1.bf16.msra.mxu0 %v3435_v13 }
 0x106   : > { %2466 = vmatprep.subr.bf16.mxu0 %v3446_v14 }
 0x107   : > { %2284 = vmatmul.mubr.bf16.vlgmr.msra.gmra.mrb[0].mxu1 %v3438_v15 }
 0x108   : > { %2456 = vmatmul.mubr.bf16.vlgmr.msra.gmra.mrb[0].mxu0 %v3441_v16 }
 0x109   : > { %2467 = vmatpush1.bf16.msra.mxu0 %v3444_v17  ;;  %2498 = vmatprep.mubr.bf16.mxu0 %v3494_v18 }
 0x10a   : > { %2468 = vmatprep.subr.bf16.mxu0 %v3449_v19 }
 0x10d   : > { %2469 = vmatpush1.bf16.msra.mxu0 %v3447_v20 }
 0x10e   : > { %2470 = vmatprep.subr.bf16.mxu0 %v3452_v21 }
 0x111   : > { %2471 = vmatpush1.bf16.msra.mxu0 %v3450_v22 }
 0x112   : > { %2472 = vmatprep.subr.bf16.mxu0 %v3455_v23 }
 0x115   : > { %2473 = vmatpush1.bf16.msra.mxu0 %v3453_v24 }
 0x116   : > { %2474 = vmatprep.subr.bf16.mxu0 %v3458_v25 }
 0x119   : > { %2475 = vmatpush1.bf16.msra.mxu0 %v3456_v26 }
 0x11a   : > { %2476 = vmatprep.subr.bf16.mxu0 %v3461_v27 }
 0x11d   : > { %2477 = vmatpush1.bf16.msra.mxu0 %v3459_v28 }
 0x11e   : > { %2478 = vmatprep.subr.bf16.mxu0 %v3464_v29 }
 0x121   : > { %2479 = vmatpush1.bf16.msra.mxu0 %v3462_v30 }
 0x122   : > { %2480 = vmatprep.subr.bf16.mxu0 %v3467_v31 }
 0x125   : > { %2481 = vmatpush1.bf16.msra.mxu0 %v3465_v32 }
 0x126   : > { %2482 = vmatprep.subr.bf16.mxu0 %v3470_v33 }
 0x129   : > { %2483 = vmatpush1.bf16.msra.mxu0 %v3468_v34 }
 0x12a   : > { %2484 = vmatprep.subr.bf16.mxu0 %v3473_v35 }
 0x12d   : > { %2485 = vmatpush1.bf16.msra.mxu0 %v3471_v36 }
 0x12e   : > { %2486 = vmatprep.subr.bf16.mxu0 %v3476_v37 }
 0x131   : > { %2487 = vmatpush1.bf16.msra.mxu0 %v3474_v38 }
 0x132   : > { %2488 = vmatprep.subr.bf16.mxu0 %v3479_v39 }
 0x135   : > { %2489 = vmatpush1.bf16.msra.mxu0 %v3477_v40 }
 0x136   : > { %2490 = vmatprep.subr.bf16.mxu0 %v3482_v41 }
 0x139   : > { %2491 = vmatpush1.bf16.msra.mxu0 %v3480_v42 }
 0x13a   : > { %2492 = vmatprep.subr.bf16.mxu0 %v3485_v43 }
 0x13d   : > { %2493 = vmatpush1.bf16.msra.mxu0 %v3483_v44 }
 0x13e   : > { %2494 = vmatprep.subr.bf16.mxu0 %v3488_v45 }
 0x141   : > { %2495 = vmatpush1.bf16.msra.mxu0 %v3486_v46 }
 0x142   : > { %2496 = vmatprep.subr.bf16.mxu0 %v3491_v47 }
 0x145   : > { %2497 = vmatpush1.bf16.msra.mxu0 %v3489_v48 }
 0x148   : > { %2499 = vmatmul.mubr.bf16.vlgmr.msra.gmra.mrb[0].mxu0 %v3492_v49 }
 0x1da   : > { %v2285_v50 = vpop.f32.mrb[0].mxu1 }
 0x1db   : > { %v2287_v51 = vpop.f32.mrb[1].mxu1  ;;  %v2975_v61 = vadd.f32 %v2285_v50, %v585_v59 }
 0x1dc   : > { %v2289_v52 = vpop.f32.mrb[2].mxu1  ;;  %v2977_v62 = vadd.f32 %v2287_v51, %v589_v60 }
 0x1dd   : > { %v2291_v53 = vpop.f32.mrb[3].mxu1  ;;  %v2979_v0 = vadd.f32 %v2289_v52, %v585_v59 }
 0x1de   : > { %v2981_v3 = vadd.f32 %v2291_v53, %v589_v60 }
 0x21b   : > { %v2500_v63 = vpop.f32.mrb[0].mxu0 }
 0x21c   : > { %v2976_v1 = vadd.f32 %v2975_v61, %v2500_v63  ;;  %v2502_v2 = vpop.f32.mrb[1].mxu0 }
 0x21d   : > { %v2978_v4 = vadd.f32 %v2977_v62, %v2502_v2  ;;  %v2504_v5 = vpop.f32.mrb[2].mxu0 }
 0x21e   : > { %v2509_v6 = vmax.f32 %v2976_v1, 0.0  ;;  %v2980_v7 = vadd.f32 %v2979_v0, %v2504_v5  ;;  %v2506_v8 = vpop.f32.mrb[3].mxu0 }
 0x21f   : > { %v2510_v9 = vmax.f32 %v2978_v4, 0.0  ;;  %v2982_v10 = vadd.f32 %v2981_v3, %v2506_v8 }
 0x220   : > { %2513 = vst [vmem:[%s271_s24] sm:$0xff] %v2509_v6  ;;  %v2511_v11 = vmax.f32 %v2980_v7, 0.0 }
 0x221   : > { %2514 = vst [vmem:[%s271_s24 + $0x8] sm:$0xff] %v2510_v9  ;;  %v2512_v12 = vmax.f32 %v2982_v10, 0.0 }
 0x222   : > { %2515 = vst [vmem:[%s271_s24 + $0x10] sm:$0xff] %v2511_v11 }
 0x223   : > { %2516 = vst [vmem:[%s271_s24 + $0x18] sm:$0xff] %v2512_v12 }
 0x224 PF: > { %s13_s14 = sadd.s32 1, %s3517_s14   ;;  %s4471_s12 = smov %s3513_s13 }
 0x225   : > { %p10_p5 = scmp.ge.s32.totalorder %s13_s14, 4   ;;  %s4472_s13 = smov %s4474_s15 }
 0x227   :  { %12 = sbr.rel (!%p10_p5) target bundleno = 2 (0x2), region = 68 }

</bundles_post_ra>
